<compile_context>
chip_gen: v6e
topology: v6e:2x2x1
jax: 0.10.0
libtpu: 0.0.40
codegen_flags: <defaults>
</compile_context>

<pallas_src>
import jax
import jax.numpy as jnp
from jax.experimental import pallas as pl
from jax.experimental.pallas import tpu as pltpu

# ---------------------------------------------------------------------------
# Static architecture constants (from Net_mnist.__init__)
# ---------------------------------------------------------------------------
IN_HW = 28            # input spatial size
K = 5                 # conv kernel size
C1 = 20               # conv1 out channels
C2 = 50               # conv2 out channels
H1 = IN_HW - K + 1    # 24  conv1 output spatial
P1 = H1 // 2          # 12  pool1 output spatial
H2 = P1 - K + 1       # 8   conv2 output spatial
P2 = H2 // 2          # 4   pool2 output spatial
FC1 = 128
NCLASS = 10

# lane-dense (multiple-of-128) padded activation widths
C1_LANES = 512        # conv1: 20*24 = 480 -> 512
P1_LANES = 256        # pool1: 20*12 = 240 -> 256
C2_LANES = 512        # conv2: 50*8  = 400 -> 512
P2_LANES = 256        # pool2: 50*4  = 200 -> 256
LOGITS_PAD = 128      # fc2:   10 -> 128


# ---------------------------------------------------------------------------
# Fused kernel: TB images per grid step, everything stays in VMEM.
# Row order of all 2-D activation slabs is (spatial_row * TB + batch).
# ---------------------------------------------------------------------------
def _fused_forward_kernel(
    x_ref,                    # (28, TB, 28) bf16 images, (row, batch, col)
    b1w_ref, b1b_ref,         # conv1 folded band (140, 512), bias (1, 512)
    ce1_ref,                  # pool1 even-column compaction (512, 256)
    b2w_ref, b2b_ref,         # conv2 folded band (1280, 512), bias (1, 512)
    ce2_ref,                  # pool2 even-column compaction (512, 256)
    w1_ref, fb1_ref,          # fc1 per-pooled-row slabs (4, 256, 128), bias (1, 128)
    w2_ref, fb2_ref,          # fc2 padded (128, 128), bias (1, 128)
    out_ref,                  # (TB, 128) f32 logits (first 10 valid)
    c1_scr,                   # VMEM (24, TB, 256) bf16
    p1_scr,                   # VMEM (12, TB, 256) bf16
    c2_scr,                   # VMEM (8,  TB, 256) bf16
):
    f32, bf16 = jnp.float32, jnp.bfloat16
    tb = x_ref.shape[1]

    # ---- conv1 + tanh: fold the 5 kernel rows into ONE K=140 contraction ----
    x5 = jnp.concatenate([x_ref[ky:ky + H1] for ky in range(K)], axis=-1)
    x5 = x5.reshape(H1 * tb, K * IN_HW)                       # (24*TB, 140)
    y1 = jnp.dot(x5, b1w_ref[...], preferred_element_type=f32)
    y1 = jnp.tanh(y1 + b1b_ref[...]).astype(bf16)             # (24*TB, 512)

    # ---- pool1 ----
    # column (ow) max: VPU max against a lane-shift-by-one, then a single
    # even-column compaction matmul (odd/row selector matrices eliminated).
    cm1 = jnp.maximum(y1, jnp.roll(y1, -1, axis=-1))
    c1 = jnp.dot(cm1, ce1_ref[...], preferred_element_type=f32)
    c1_scr[...] = c1.astype(bf16).reshape(H1, tb, P1_LANES)
    # row (oh) max: even/odd spatial-row planes, pure VPU maxima.
    for ph in range(P1):
        p1_scr[ph] = jnp.maximum(c1_scr[2 * ph], c1_scr[2 * ph + 1])

    # ---- conv2 + tanh: fold ky AND Cin into ONE K=1280 contraction ----
    x5b = jnp.concatenate([p1_scr[ky:ky + H2] for ky in range(K)], axis=-1)
    x5b = x5b.reshape(H2 * tb, K * P1_LANES)                  # (8*TB, 1280)
    y2 = jnp.dot(x5b, b2w_ref[...], preferred_element_type=f32)
    y2 = jnp.tanh(y2 + b2b_ref[...]).astype(bf16)             # (8*TB, 512)

    # ---- pool2 (columns) ----
    cm2 = jnp.maximum(y2, jnp.roll(y2, -1, axis=-1))
    c2 = jnp.dot(cm2, ce2_ref[...], preferred_element_type=f32)
    c2_scr[...] = c2.astype(bf16).reshape(H2, tb, P2_LANES)

    # ---- pool2 (rows) fused with fc1: batch-major (TB,256)@(256,128) dots ----
    h1 = jnp.zeros((tb, FC1), f32)
    for h in range(P2):
        qh = jnp.maximum(c2_scr[2 * h], c2_scr[2 * h + 1])    # (TB, 256)
        h1 = h1 + jnp.dot(qh, w1_ref[h], preferred_element_type=f32)
    h1 = jnp.tanh(h1 + fb1_ref[...]).astype(bf16)             # (TB, 128)

    # ---- fc2 (lane-dense 128-wide logits, cropped to 10 in the wrapper) ----
    out = jnp.dot(h1, w2_ref[...], preferred_element_type=f32) + fb2_ref[...]
    out_ref[...] = out.astype(out_ref.dtype)


# ---------------------------------------------------------------------------
# Wrapper-side weight packing (run ONCE, outside the jitted forward)
# ---------------------------------------------------------------------------
def _band_matrix(w_oihw, in_w, out_w):
    """Fold (kx, Cin, Cout) of one conv-kernel row into a (Cin*in_w, Cout*out_w)
    band matrix so the valid conv becomes  sum_ky  X[ky+oh, :] @ B[ky]."""
    cout, cin, kh, kw = w_oihw.shape
    wi = jnp.arange(in_w)[:, None]            # input column index
    ow = jnp.arange(out_w)[None, :]           # output column index
    kx = wi - ow
    valid = (kx >= 0) & (kx < kw)
    t = w_oihw[:, :, :, jnp.clip(kx, 0, kw - 1)]     # (Cout, Cin, KH, in_w, out_w)
    t = jnp.where(valid[None, None, None], t, 0.0)
    t = jnp.transpose(t, (2, 1, 3, 0, 4))            # (KH, Cin, in_w, Cout, out_w)
    return t.reshape(kh, cin * in_w, cout * out_w)


def _pool_compaction(channels, width, rows_pad, cols_pad):
    """Selector matrix: column co*width + 2q  ->  co*(width//2) + q (else 0)."""
    half = width // 2
    ch = jnp.arange(channels)
    q = jnp.arange(half)
    rows = (ch[:, None] * width + 2 * q[None, :]).reshape(-1)
    cols = (ch[:, None] * half + q[None, :]).reshape(-1)
    return jnp.zeros((rows_pad, cols_pad), jnp.float32).at[rows, cols].set(1.0)


def pack_params(params, dtype=jnp.bfloat16):
    f32 = jnp.float32

    # conv1: fold the 5 kernel rows -> (140, 512) single contraction.
    b1 = _band_matrix(params["conv1_w"].astype(f32), IN_HW, H1)        # (5, 28, 480)
    b1 = b1.reshape(K * IN_HW, C1 * H1)
    b1w = jnp.zeros((K * IN_HW, C1_LANES), f32).at[:, :C1 * H1].set(b1)
    b1b = jnp.zeros((1, C1_LANES), f32).at[0, :C1 * H1].set(
        jnp.repeat(params["conv1_b"].astype(f32), H1))

    # conv2: fold ky; each ky block's rows padded 240 -> 256  => (1280, 512).
    b2 = _band_matrix(params["conv2_w"].astype(f32), P1, H2)           # (5, 240, 400)
    b2p = jnp.zeros((K, P1_LANES, C2_LANES), f32)
    b2p = b2p.at[:, :C1 * P1, :C2 * H2].set(b2)
    b2w = b2p.reshape(K * P1_LANES, C2_LANES)
    b2b = jnp.zeros((1, C2_LANES), f32).at[0, :C2 * H2].set(
        jnp.repeat(params["conv2_b"].astype(f32), H2))

    # pooling even-column compaction selectors (lane-dense 512 -> 256).
    ce1 = _pool_compaction(C1, H1, C1_LANES, P1_LANES)
    ce2 = _pool_compaction(C2, H2, C2_LANES, P2_LANES)

    # fc1: PyTorch flatten index co*16 + h*4 + w -> per-pooled-row slabs
    # [h, co*4+w, n], rows padded 200 -> 256.
    w1 = params["fc1_w"].astype(f32).reshape(FC1, C2, P2, P2)          # (n, co, h, w)
    w1 = jnp.transpose(w1, (2, 1, 3, 0)).reshape(P2, C2 * P2, FC1)     # (4, 200, 128)
    w1p = jnp.zeros((P2, P2_LANES, FC1), f32).at[:, :C2 * P2, :].set(w1)
    fb1 = params["fc1_b"].astype(f32)[None, :]

    # fc2: transpose to (128, 10), zero-pad to lane-dense (128, 128).
    w2p = jnp.zeros((FC1, LOGITS_PAD), f32).at[:, :NCLASS].set(
        params["fc2_w"].astype(f32).T)
    fb2 = jnp.zeros((1, LOGITS_PAD), f32).at[0, :NCLASS].set(
        params["fc2_b"].astype(f32))

    return (b1w.astype(dtype), b1b,
            ce1.astype(dtype),
            b2w.astype(dtype), b2b,
            ce2.astype(dtype),
            w1p.astype(dtype), fb1,
            w2p.astype(dtype), fb2)


# ---------------------------------------------------------------------------
# Forward pass (single fused pallas_call, batched grid over the images)
# ---------------------------------------------------------------------------
def net_mnist_forward(x_nchw, packed, *, tb=32):
    assert tb % 8 == 0, "tb must be a multiple of 8 (sublane granularity)"
    n = x_nchw.shape[0]
    assert x_nchw.shape[1:] == (1, IN_HW, IN_HW)
    npad = pl.cdiv(n, tb) * tb

    x = x_nchw[:, 0, :, :].astype(jnp.bfloat16)             # (N, 28, 28)
    if npad != n:
        x = jnp.pad(x, ((0, npad - n), (0, 0), (0, 0)))     # pad batch, crop later
    # (row, batch, col) layout so every in-kernel row access is leading-dim.
    xt = jnp.transpose(x, (1, 0, 2))                        # (28, Npad, 28)

    def resident(a):
        # Full-array block, constant index map -> fetched once, VMEM-resident
        # across all grid steps (constant block index => no re-DMA).
        zeros = (0,) * a.ndim
        return pl.BlockSpec(a.shape, lambda i, _z=zeros: _z)

    out = pl.pallas_call(
        _fused_forward_kernel,
        out_shape=jax.ShapeDtypeStruct((npad, LOGITS_PAD), jnp.float32),
        grid=(npad // tb,),
        in_specs=[pl.BlockSpec((IN_HW, tb, IN_HW), lambda i: (0, i, 0))]
                 + [resident(w) for w in packed],
        out_specs=pl.BlockSpec((tb, LOGITS_PAD), lambda i: (i, 0)),
        scratch_shapes=[
            pltpu.VMEM((H1, tb, P1_LANES), jnp.bfloat16),
            pltpu.VMEM((P1, tb, P1_LANES), jnp.bfloat16),
            pltpu.VMEM((H2, tb, P2_LANES), jnp.bfloat16),
        ],
        compiler_params=pltpu.CompilerParams(
            dimension_semantics=("parallel",)),   # shards across TCs on v7x
    )(xt, *packed)
    return out[:n, :NCLASS]


# ---------------------------------------------------------------------------
# Pure-JAX/XLA reference (mirrors the PyTorch module), params, demo
# ---------------------------------------------------------------------------
def net_mnist_reference(x_nchw, params):
    dn = ("NCHW", "OIHW", "NCHW")
    y = jax.lax.conv_general_dilated(x_nchw.astype(jnp.float32),
                                     params["conv1_w"], (1, 1), "VALID",
                                     dimension_numbers=dn)
    y = jnp.tanh(y + params["conv1_b"][None, :, None, None])
    y = jax.lax.reduce_window(y, -jnp.inf, jax.lax.max,
                              (1, 1, 2, 2), (1, 1, 2, 2), "VALID")
    y = jax.lax.conv_general_dilated(y, params["conv2_w"], (1, 1), "VALID",
                                     dimension_numbers=dn)
    y = jnp.tanh(y + params["conv2_b"][None, :, None, None])
    y = jax.lax.reduce_window(y, -jnp.inf, jax.lax.max,
                              (1, 1, 2, 2), (1, 1, 2, 2), "VALID")
    y = y.reshape(y.shape[0], -1)                          # NCHW flatten (N, 800)
    y = jnp.tanh(y @ params["fc1_w"].T + params["fc1_b"])
    return y @ params["fc2_w"].T + params["fc2_b"]


def init_params(key):
    """Deterministic PyTorch-default-style uniform init (PyTorch layouts)."""
    ks = jax.random.split(key, 8)

    def u(k, shape, fan_in):
        bound = 1.0 / float(fan_in) ** 0.5
        return jax.random.uniform(k, shape, jnp.float32, -bound, bound)

    return {
        "conv1_w": u(ks[0], (C1, 1, K, K), 1 * K * K),
        "conv1_b": u(ks[1], (C1,), 1 * K * K),
        "conv2_w": u(ks[2], (C2, C1, K, K), C1 * K * K),
        "conv2_b": u(ks[3], (C2,), C1 * K * K),
        "fc1_w": u(ks[4], (FC1, P2 * P2 * C2), P2 * P2 * C2),
        "fc1_b": u(ks[5], (FC1,), P2 * P2 * C2),
        "fc2_w": u(ks[6], (NCLASS, FC1), FC1),
        "fc2_b": u(ks[7], (NCLASS,), FC1),
    }


if __name__ == "__main__":
    key = jax.random.PRNGKey(0)
    pkey, xkey = jax.random.split(key)
    params = init_params(pkey)

    # MNIST-shaped input (28x28 spatial is required by the 4*4*50 flatten).
    # Batch 13 with tb=8 exercises padding/cropping and >=2 grid steps.
    n = 13
    x = jax.random.normal(xkey, (n, 1, IN_HW, IN_HW), jnp.float32)

    # Weight packing hoisted out of the per-call jitted forward (done once).
    packed = pack_params(params)

    fwd = jax.jit(lambda xx, pp: net_mnist_forward(xx, pp, tb=8))
    out = jax.block_until_ready(fwd(x, packed))
    assert out.shape == (n, NCLASS) and out.dtype == jnp.float32
    assert bool(jnp.all(jnp.isfinite(out)))

    ref = jax.block_until_ready(jax.jit(net_mnist_reference)(x, params))
    max_err = float(jnp.max(jnp.abs(out - ref)))
    assert max_err < 1e-1, f"mismatch vs reference: max|diff|={max_err}"
    print("KERNEL_OK")
</pallas_src>

<mosaic_0001>
module attributes {stable_mosaic.version = 11 : i64} {
  func.func @_fused_forward_kernel(%arg0: i32, %arg1: memref<28x8x28xbf16, #tpu.memory_space<vmem>>, %arg2: memref<140x512xbf16, #tpu.memory_space<vmem>>, %arg3: memref<1x512xf32, #tpu.memory_space<vmem>>, %arg4: memref<512x256xbf16, #tpu.memory_space<vmem>>, %arg5: memref<1280x512xbf16, #tpu.memory_space<vmem>>, %arg6: memref<1x512xf32, #tpu.memory_space<vmem>>, %arg7: memref<512x256xbf16, #tpu.memory_space<vmem>>, %arg8: memref<4x256x128xbf16, #tpu.memory_space<vmem>>, %arg9: memref<1x128xf32, #tpu.memory_space<vmem>>, %arg10: memref<128x128xbf16, #tpu.memory_space<vmem>>, %arg11: memref<1x128xf32, #tpu.memory_space<vmem>>, %arg12: memref<8x128xf32, #tpu.memory_space<vmem>>, %arg13: memref<24x8x256xbf16, #tpu.memory_space<vmem>>, %arg14: memref<12x8x256xbf16, #tpu.memory_space<vmem>>, %arg15: memref<8x8x256xbf16, #tpu.memory_space<vmem>>) attributes {dimension_semantics = [#tpu.dimension_semantics<parallel>], iteration_bounds = array<i64: 2>, scalar_prefetch = 0 : i64, scratch_operands = 3 : i64, tpu.core_type = #tpu.core_type<tc>, window_params = [{transform_indices = @transform_0, window_bounds = array<i64: 28, 8, 28>}, {pipeline_mode = #tpu.pipeline_mode<synchronous>, transform_indices = @transform_1, window_bounds = array<i64: 140, 512>}, {pipeline_mode = #tpu.pipeline_mode<synchronous>, transform_indices = @transform_2, window_bounds = array<i64: 1, 512>}, {pipeline_mode = #tpu.pipeline_mode<synchronous>, transform_indices = @transform_3, window_bounds = array<i64: 512, 256>}, {pipeline_mode = #tpu.pipeline_mode<synchronous>, transform_indices = @transform_4, window_bounds = array<i64: 1280, 512>}, {pipeline_mode = #tpu.pipeline_mode<synchronous>, transform_indices = @transform_5, window_bounds = array<i64: 1, 512>}, {pipeline_mode = #tpu.pipeline_mode<synchronous>, transform_indices = @transform_6, window_bounds = array<i64: 512, 256>}, {pipeline_mode = #tpu.pipeline_mode<synchronous>, transform_indices = @transform_7, window_bounds = array<i64: 4, 256, 128>}, {pipeline_mode = #tpu.pipeline_mode<synchronous>, transform_indices = @transform_8, window_bounds = array<i64: 1, 128>}, {pipeline_mode = #tpu.pipeline_mode<synchronous>, transform_indices = @transform_9, window_bounds = array<i64: 128, 128>}, {pipeline_mode = #tpu.pipeline_mode<synchronous>, transform_indices = @transform_10, window_bounds = array<i64: 1, 128>}, {transform_indices = @transform_11, window_bounds = array<i64: 8, 128>}]} {
    %c0 = arith.constant 0 : index
    %c0_0 = arith.constant 0 : index
    %c0_1 = arith.constant 0 : index
    %0 = vector.load %arg1[%c0, %c0_0, %c0_1] : memref<28x8x28xbf16, #tpu.memory_space<vmem>>, vector<24x8x28xbf16>
    %c1 = arith.constant 1 : index
    %c0_2 = arith.constant 0 : index
    %c0_3 = arith.constant 0 : index
    %1 = vector.load %arg1[%c1, %c0_2, %c0_3] : memref<28x8x28xbf16, #tpu.memory_space<vmem>>, vector<24x8x28xbf16>
    %c2 = arith.constant 2 : index
    %c0_4 = arith.constant 0 : index
    %c0_5 = arith.constant 0 : index
    %2 = vector.load %arg1[%c2, %c0_4, %c0_5] : memref<28x8x28xbf16, #tpu.memory_space<vmem>>, vector<24x8x28xbf16>
    %c3 = arith.constant 3 : index
    %c0_6 = arith.constant 0 : index
    %c0_7 = arith.constant 0 : index
    %3 = vector.load %arg1[%c3, %c0_6, %c0_7] : memref<28x8x28xbf16, #tpu.memory_space<vmem>>, vector<24x8x28xbf16>
    %c4 = arith.constant 4 : index
    %c0_8 = arith.constant 0 : index
    %c0_9 = arith.constant 0 : index
    %4 = vector.load %arg1[%c4, %c0_8, %c0_9] : memref<28x8x28xbf16, #tpu.memory_space<vmem>>, vector<24x8x28xbf16>
    %5 = tpu.concatenate %0, %1, %2, %3, %4 in 2 : vector<24x8x28xbf16>, vector<24x8x28xbf16>, vector<24x8x28xbf16>, vector<24x8x28xbf16>, vector<24x8x28xbf16> -> vector<24x8x140xbf16>
    %6 = vector.shape_cast %5 : vector<24x8x140xbf16> to vector<192x140xbf16>
    %c0_10 = arith.constant 0 : index
    %c0_11 = arith.constant 0 : index
    %7 = vector.load %arg2[%c0_10, %c0_11] : memref<140x512xbf16, #tpu.memory_space<vmem>>, vector<140x512xbf16>
    %cst = arith.constant dense<0.000000e+00> : vector<192x512xf32>
    %8 = tpu.matmul %6, %7, %cst {dimension_numbers = #tpu.dot_dimension_numbers<[1], [0], [0], [1], [0, 0, 1, 1], [], []>} : vector<192x140xbf16>, vector<140x512xbf16>, vector<192x512xf32> -> vector<192x512xf32>
    %c0_12 = arith.constant 0 : index
    %c0_13 = arith.constant 0 : index
    %9 = vector.load %arg3[%c0_12, %c0_13] : memref<1x512xf32, #tpu.memory_space<vmem>>, vector<1x512xf32>
    %10 = vector.broadcast %9 : vector<1x512xf32> to vector<192x512xf32>
    %11 = arith.addf %8, %10 : vector<192x512xf32>
    %12 = math.tanh %11 : vector<192x512xf32>
    %13 = arith.truncf %12 : vector<192x512xf32> to vector<192x512xbf16>
    %14 = vector.extract_strided_slice %13 {offsets = [0, 1], sizes = [192, 511], strides = [1, 1]} : vector<192x512xbf16> to vector<192x511xbf16>
    %15 = vector.extract_strided_slice %13 {offsets = [0, 0], sizes = [192, 1], strides = [1, 1]} : vector<192x512xbf16> to vector<192x1xbf16>
    %16 = tpu.concatenate %14, %15 in 1 : vector<192x511xbf16>, vector<192x1xbf16> -> vector<192x512xbf16>
    %17 = arith.maximumf %13, %16 : vector<192x512xbf16>
    %c0_14 = arith.constant 0 : index
    %c0_15 = arith.constant 0 : index
    %18 = vector.load %arg4[%c0_14, %c0_15] : memref<512x256xbf16, #tpu.memory_space<vmem>>, vector<512x256xbf16>
    %cst_16 = arith.constant dense<0.000000e+00> : vector<192x256xf32>
    %19 = tpu.matmul %17, %18, %cst_16 {dimension_numbers = #tpu.dot_dimension_numbers<[1], [0], [0], [1], [0, 0, 1, 1], [], []>} : vector<192x512xbf16>, vector<512x256xbf16>, vector<192x256xf32> -> vector<192x256xf32>
    %20 = arith.truncf %19 : vector<192x256xf32> to vector<192x256xbf16>
    %21 = vector.shape_cast %20 : vector<192x256xbf16> to vector<24x8x256xbf16>
    %c0_17 = arith.constant 0 : index
    %c0_18 = arith.constant 0 : index
    %c0_19 = arith.constant 0 : index
    %22 = vector.load %arg13[%c0_17, %c0_18, %c0_19] : memref<24x8x256xbf16, #tpu.memory_space<vmem>>, vector<24x8x256xbf16>
    tpu.vector_store %arg13[%c0_17, %c0_18, %c0_19], %21 {strides = array<i32>} : memref<24x8x256xbf16, #tpu.memory_space<vmem>>, vector<24x8x256xbf16>,
    %c0_20 = arith.constant 0 : index
    %c0_21 = arith.constant 0 : index
    %c0_22 = arith.constant 0 : index
    %23 = vector.load %arg13[%c0_20, %c0_21, %c0_22] : memref<24x8x256xbf16, #tpu.memory_space<vmem>>, vector<1x8x256xbf16>
    %24 = vector.shape_cast %23 : vector<1x8x256xbf16> to vector<8x256xbf16>
    %c1_23 = arith.constant 1 : index
    %c0_24 = arith.constant 0 : index
    %c0_25 = arith.constant 0 : index
    %25 = vector.load %arg13[%c1_23, %c0_24, %c0_25] : memref<24x8x256xbf16, #tpu.memory_space<vmem>>, vector<1x8x256xbf16>
    %26 = vector.shape_cast %25 : vector<1x8x256xbf16> to vector<8x256xbf16>
    %27 = arith.maximumf %24, %26 : vector<8x256xbf16>
    %c0_26 = arith.constant 0 : index
    %c0_27 = arith.constant 0 : index
    %c0_28 = arith.constant 0 : index
    %28 = vector.load %arg14[%c0_26, %c0_27, %c0_28] : memref<12x8x256xbf16, #tpu.memory_space<vmem>>, vector<1x8x256xbf16>
    %29 = vector.shape_cast %28 : vector<1x8x256xbf16> to vector<8x256xbf16>
    %30 = vector.shape_cast %27 : vector<8x256xbf16> to vector<1x8x256xbf16>
    tpu.vector_store %arg14[%c0_26, %c0_27, %c0_28], %30 {strides = array<i32>} : memref<12x8x256xbf16, #tpu.memory_space<vmem>>, vector<1x8x256xbf16>,
    %c2_29 = arith.constant 2 : index
    %c0_30 = arith.constant 0 : index
    %c0_31 = arith.constant 0 : index
    %31 = vector.load %arg13[%c2_29, %c0_30, %c0_31] : memref<24x8x256xbf16, #tpu.memory_space<vmem>>, vector<1x8x256xbf16>
    %32 = vector.shape_cast %31 : vector<1x8x256xbf16> to vector<8x256xbf16>
    %c3_32 = arith.constant 3 : index
    %c0_33 = arith.constant 0 : index
    %c0_34 = arith.constant 0 : index
    %33 = vector.load %arg13[%c3_32, %c0_33, %c0_34] : memref<24x8x256xbf16, #tpu.memory_space<vmem>>, vector<1x8x256xbf16>
    %34 = vector.shape_cast %33 : vector<1x8x256xbf16> to vector<8x256xbf16>
    %35 = arith.maximumf %32, %34 : vector<8x256xbf16>
    %c1_35 = arith.constant 1 : index
    %c0_36 = arith.constant 0 : index
    %c0_37 = arith.constant 0 : index
    %36 = vector.load %arg14[%c1_35, %c0_36, %c0_37] : memref<12x8x256xbf16, #tpu.memory_space<vmem>>, vector<1x8x256xbf16>
    %37 = vector.shape_cast %36 : vector<1x8x256xbf16> to vector<8x256xbf16>
    %38 = vector.shape_cast %35 : vector<8x256xbf16> to vector<1x8x256xbf16>
    tpu.vector_store %arg14[%c1_35, %c0_36, %c0_37], %38 {strides = array<i32>} : memref<12x8x256xbf16, #tpu.memory_space<vmem>>, vector<1x8x256xbf16>,
    %c4_38 = arith.constant 4 : index
    %c0_39 = arith.constant 0 : index
    %c0_40 = arith.constant 0 : index
    %39 = vector.load %arg13[%c4_38, %c0_39, %c0_40] : memref<24x8x256xbf16, #tpu.memory_space<vmem>>, vector<1x8x256xbf16>
    %40 = vector.shape_cast %39 : vector<1x8x256xbf16> to vector<8x256xbf16>
    %c5 = arith.constant 5 : index
    %c0_41 = arith.constant 0 : index
    %c0_42 = arith.constant 0 : index
    %41 = vector.load %arg13[%c5, %c0_41, %c0_42] : memref<24x8x256xbf16, #tpu.memory_space<vmem>>, vector<1x8x256xbf16>
    %42 = vector.shape_cast %41 : vector<1x8x256xbf16> to vector<8x256xbf16>
    %43 = arith.maximumf %40, %42 : vector<8x256xbf16>
    %c2_43 = arith.constant 2 : index
    %c0_44 = arith.constant 0 : index
    %c0_45 = arith.constant 0 : index
    %44 = vector.load %arg14[%c2_43, %c0_44, %c0_45] : memref<12x8x256xbf16, #tpu.memory_space<vmem>>, vector<1x8x256xbf16>
    %45 = vector.shape_cast %44 : vector<1x8x256xbf16> to vector<8x256xbf16>
    %46 = vector.shape_cast %43 : vector<8x256xbf16> to vector<1x8x256xbf16>
    tpu.vector_store %arg14[%c2_43, %c0_44, %c0_45], %46 {strides = array<i32>} : memref<12x8x256xbf16, #tpu.memory_space<vmem>>, vector<1x8x256xbf16>,
    %c6 = arith.constant 6 : index
    %c0_46 = arith.constant 0 : index
    %c0_47 = arith.constant 0 : index
    %47 = vector.load %arg13[%c6, %c0_46, %c0_47] : memref<24x8x256xbf16, #tpu.memory_space<vmem>>, vector<1x8x256xbf16>
    %48 = vector.shape_cast %47 : vector<1x8x256xbf16> to vector<8x256xbf16>
    %c7 = arith.constant 7 : index
    %c0_48 = arith.constant 0 : index
    %c0_49 = arith.constant 0 : index
    %49 = vector.load %arg13[%c7, %c0_48, %c0_49] : memref<24x8x256xbf16, #tpu.memory_space<vmem>>, vector<1x8x256xbf16>
    %50 = vector.shape_cast %49 : vector<1x8x256xbf16> to vector<8x256xbf16>
    %51 = arith.maximumf %48, %50 : vector<8x256xbf16>
    %c3_50 = arith.constant 3 : index
    %c0_51 = arith.constant 0 : index
    %c0_52 = arith.constant 0 : index
    %52 = vector.load %arg14[%c3_50, %c0_51, %c0_52] : memref<12x8x256xbf16, #tpu.memory_space<vmem>>, vector<1x8x256xbf16>
    %53 = vector.shape_cast %52 : vector<1x8x256xbf16> to vector<8x256xbf16>
    %54 = vector.shape_cast %51 : vector<8x256xbf16> to vector<1x8x256xbf16>
    tpu.vector_store %arg14[%c3_50, %c0_51, %c0_52], %54 {strides = array<i32>} : memref<12x8x256xbf16, #tpu.memory_space<vmem>>, vector<1x8x256xbf16>,
    %c8 = arith.constant 8 : index
    %c0_53 = arith.constant 0 : index
    %c0_54 = arith.constant 0 : index
    %55 = vector.load %arg13[%c8, %c0_53, %c0_54] : memref<24x8x256xbf16, #tpu.memory_space<vmem>>, vector<1x8x256xbf16>
    %56 = vector.shape_cast %55 : vector<1x8x256xbf16> to vector<8x256xbf16>
    %c9 = arith.constant 9 : index
    %c0_55 = arith.constant 0 : index
    %c0_56 = arith.constant 0 : index
    %57 = vector.load %arg13[%c9, %c0_55, %c0_56] : memref<24x8x256xbf16, #tpu.memory_space<vmem>>, vector<1x8x256xbf16>
    %58 = vector.shape_cast %57 : vector<1x8x256xbf16> to vector<8x256xbf16>
    %59 = arith.maximumf %56, %58 : vector<8x256xbf16>
    %c4_57 = arith.constant 4 : index
    %c0_58 = arith.constant 0 : index
    %c0_59 = arith.constant 0 : index
    %60 = vector.load %arg14[%c4_57, %c0_58, %c0_59] : memref<12x8x256xbf16, #tpu.memory_space<vmem>>, vector<1x8x256xbf16>
    %61 = vector.shape_cast %60 : vector<1x8x256xbf16> to vector<8x256xbf16>
    %62 = vector.shape_cast %59 : vector<8x256xbf16> to vector<1x8x256xbf16>
    tpu.vector_store %arg14[%c4_57, %c0_58, %c0_59], %62 {strides = array<i32>} : memref<12x8x256xbf16, #tpu.memory_space<vmem>>, vector<1x8x256xbf16>,
    %c10 = arith.constant 10 : index
    %c0_60 = arith.constant 0 : index
    %c0_61 = arith.constant 0 : index
    %63 = vector.load %arg13[%c10, %c0_60, %c0_61] : memref<24x8x256xbf16, #tpu.memory_space<vmem>>, vector<1x8x256xbf16>
    %64 = vector.shape_cast %63 : vector<1x8x256xbf16> to vector<8x256xbf16>
    %c11 = arith.constant 11 : index
    %c0_62 = arith.constant 0 : index
    %c0_63 = arith.constant 0 : index
    %65 = vector.load %arg13[%c11, %c0_62, %c0_63] : memref<24x8x256xbf16, #tpu.memory_space<vmem>>, vector<1x8x256xbf16>
    %66 = vector.shape_cast %65 : vector<1x8x256xbf16> to vector<8x256xbf16>
    %67 = arith.maximumf %64, %66 : vector<8x256xbf16>
    %c5_64 = arith.constant 5 : index
    %c0_65 = arith.constant 0 : index
    %c0_66 = arith.constant 0 : index
    %68 = vector.load %arg14[%c5_64, %c0_65, %c0_66] : memref<12x8x256xbf16, #tpu.memory_space<vmem>>, vector<1x8x256xbf16>
    %69 = vector.shape_cast %68 : vector<1x8x256xbf16> to vector<8x256xbf16>
    %70 = vector.shape_cast %67 : vector<8x256xbf16> to vector<1x8x256xbf16>
    tpu.vector_store %arg14[%c5_64, %c0_65, %c0_66], %70 {strides = array<i32>} : memref<12x8x256xbf16, #tpu.memory_space<vmem>>, vector<1x8x256xbf16>,
    %c12 = arith.constant 12 : index
    %c0_67 = arith.constant 0 : index
    %c0_68 = arith.constant 0 : index
    %71 = vector.load %arg13[%c12, %c0_67, %c0_68] : memref<24x8x256xbf16, #tpu.memory_space<vmem>>, vector<1x8x256xbf16>
    %72 = vector.shape_cast %71 : vector<1x8x256xbf16> to vector<8x256xbf16>
    %c13 = arith.constant 13 : index
    %c0_69 = arith.constant 0 : index
    %c0_70 = arith.constant 0 : index
    %73 = vector.load %arg13[%c13, %c0_69, %c0_70] : memref<24x8x256xbf16, #tpu.memory_space<vmem>>, vector<1x8x256xbf16>
    %74 = vector.shape_cast %73 : vector<1x8x256xbf16> to vector<8x256xbf16>
    %75 = arith.maximumf %72, %74 : vector<8x256xbf16>
    %c6_71 = arith.constant 6 : index
    %c0_72 = arith.constant 0 : index
    %c0_73 = arith.constant 0 : index
    %76 = vector.load %arg14[%c6_71, %c0_72, %c0_73] : memref<12x8x256xbf16, #tpu.memory_space<vmem>>, vector<1x8x256xbf16>
    %77 = vector.shape_cast %76 : vector<1x8x256xbf16> to vector<8x256xbf16>
    %78 = vector.shape_cast %75 : vector<8x256xbf16> to vector<1x8x256xbf16>
    tpu.vector_store %arg14[%c6_71, %c0_72, %c0_73], %78 {strides = array<i32>} : memref<12x8x256xbf16, #tpu.memory_space<vmem>>, vector<1x8x256xbf16>,
    %c14 = arith.constant 14 : index
    %c0_74 = arith.constant 0 : index
    %c0_75 = arith.constant 0 : index
    %79 = vector.load %arg13[%c14, %c0_74, %c0_75] : memref<24x8x256xbf16, #tpu.memory_space<vmem>>, vector<1x8x256xbf16>
    %80 = vector.shape_cast %79 : vector<1x8x256xbf16> to vector<8x256xbf16>
    %c15 = arith.constant 15 : index
    %c0_76 = arith.constant 0 : index
    %c0_77 = arith.constant 0 : index
    %81 = vector.load %arg13[%c15, %c0_76, %c0_77] : memref<24x8x256xbf16, #tpu.memory_space<vmem>>, vector<1x8x256xbf16>
    %82 = vector.shape_cast %81 : vector<1x8x256xbf16> to vector<8x256xbf16>
    %83 = arith.maximumf %80, %82 : vector<8x256xbf16>
    %c7_78 = arith.constant 7 : index
    %c0_79 = arith.constant 0 : index
    %c0_80 = arith.constant 0 : index
    %84 = vector.load %arg14[%c7_78, %c0_79, %c0_80] : memref<12x8x256xbf16, #tpu.memory_space<vmem>>, vector<1x8x256xbf16>
    %85 = vector.shape_cast %84 : vector<1x8x256xbf16> to vector<8x256xbf16>
    %86 = vector.shape_cast %83 : vector<8x256xbf16> to vector<1x8x256xbf16>
    tpu.vector_store %arg14[%c7_78, %c0_79, %c0_80], %86 {strides = array<i32>} : memref<12x8x256xbf16, #tpu.memory_space<vmem>>, vector<1x8x256xbf16>,
    %c16 = arith.constant 16 : index
    %c0_81 = arith.constant 0 : index
    %c0_82 = arith.constant 0 : index
    %87 = vector.load %arg13[%c16, %c0_81, %c0_82] : memref<24x8x256xbf16, #tpu.memory_space<vmem>>, vector<1x8x256xbf16>
    %88 = vector.shape_cast %87 : vector<1x8x256xbf16> to vector<8x256xbf16>
    %c17 = arith.constant 17 : index
    %c0_83 = arith.constant 0 : index
    %c0_84 = arith.constant 0 : index
    %89 = vector.load %arg13[%c17, %c0_83, %c0_84] : memref<24x8x256xbf16, #tpu.memory_space<vmem>>, vector<1x8x256xbf16>
    %90 = vector.shape_cast %89 : vector<1x8x256xbf16> to vector<8x256xbf16>
    %91 = arith.maximumf %88, %90 : vector<8x256xbf16>
    %c8_85 = arith.constant 8 : index
    %c0_86 = arith.constant 0 : index
    %c0_87 = arith.constant 0 : index
    %92 = vector.load %arg14[%c8_85, %c0_86, %c0_87] : memref<12x8x256xbf16, #tpu.memory_space<vmem>>, vector<1x8x256xbf16>
    %93 = vector.shape_cast %92 : vector<1x8x256xbf16> to vector<8x256xbf16>
    %94 = vector.shape_cast %91 : vector<8x256xbf16> to vector<1x8x256xbf16>
    tpu.vector_store %arg14[%c8_85, %c0_86, %c0_87], %94 {strides = array<i32>} : memref<12x8x256xbf16, #tpu.memory_space<vmem>>, vector<1x8x256xbf16>,
    %c18 = arith.constant 18 : index
    %c0_88 = arith.constant 0 : index
    %c0_89 = arith.constant 0 : index
    %95 = vector.load %arg13[%c18, %c0_88, %c0_89] : memref<24x8x256xbf16, #tpu.memory_space<vmem>>, vector<1x8x256xbf16>
    %96 = vector.shape_cast %95 : vector<1x8x256xbf16> to vector<8x256xbf16>
    %c19 = arith.constant 19 : index
    %c0_90 = arith.constant 0 : index
    %c0_91 = arith.constant 0 : index
    %97 = vector.load %arg13[%c19, %c0_90, %c0_91] : memref<24x8x256xbf16, #tpu.memory_space<vmem>>, vector<1x8x256xbf16>
    %98 = vector.shape_cast %97 : vector<1x8x256xbf16> to vector<8x256xbf16>
    %99 = arith.maximumf %96, %98 : vector<8x256xbf16>
    %c9_92 = arith.constant 9 : index
    %c0_93 = arith.constant 0 : index
    %c0_94 = arith.constant 0 : index
    %100 = vector.load %arg14[%c9_92, %c0_93, %c0_94] : memref<12x8x256xbf16, #tpu.memory_space<vmem>>, vector<1x8x256xbf16>
    %101 = vector.shape_cast %100 : vector<1x8x256xbf16> to vector<8x256xbf16>
    %102 = vector.shape_cast %99 : vector<8x256xbf16> to vector<1x8x256xbf16>
    tpu.vector_store %arg14[%c9_92, %c0_93, %c0_94], %102 {strides = array<i32>} : memref<12x8x256xbf16, #tpu.memory_space<vmem>>, vector<1x8x256xbf16>,
    %c20 = arith.constant 20 : index
    %c0_95 = arith.constant 0 : index
    %c0_96 = arith.constant 0 : index
    %103 = vector.load %arg13[%c20, %c0_95, %c0_96] : memref<24x8x256xbf16, #tpu.memory_space<vmem>>, vector<1x8x256xbf16>
    %104 = vector.shape_cast %103 : vector<1x8x256xbf16> to vector<8x256xbf16>
    %c21 = arith.constant 21 : index
    %c0_97 = arith.constant 0 : index
    %c0_98 = arith.constant 0 : index
    %105 = vector.load %arg13[%c21, %c0_97, %c0_98] : memref<24x8x256xbf16, #tpu.memory_space<vmem>>, vector<1x8x256xbf16>
    %106 = vector.shape_cast %105 : vector<1x8x256xbf16> to vector<8x256xbf16>
    %107 = arith.maximumf %104, %106 : vector<8x256xbf16>
    %c10_99 = arith.constant 10 : index
    %c0_100 = arith.constant 0 : index
    %c0_101 = arith.constant 0 : index
    %108 = vector.load %arg14[%c10_99, %c0_100, %c0_101] : memref<12x8x256xbf16, #tpu.memory_space<vmem>>, vector<1x8x256xbf16>
    %109 = vector.shape_cast %108 : vector<1x8x256xbf16> to vector<8x256xbf16>
    %110 = vector.shape_cast %107 : vector<8x256xbf16> to vector<1x8x256xbf16>
    tpu.vector_store %arg14[%c10_99, %c0_100, %c0_101], %110 {strides = array<i32>} : memref<12x8x256xbf16, #tpu.memory_space<vmem>>, vector<1x8x256xbf16>,
    %c22 = arith.constant 22 : index
    %c0_102 = arith.constant 0 : index
    %c0_103 = arith.constant 0 : index
    %111 = vector.load %arg13[%c22, %c0_102, %c0_103] : memref<24x8x256xbf16, #tpu.memory_space<vmem>>, vector<1x8x256xbf16>
    %112 = vector.shape_cast %111 : vector<1x8x256xbf16> to vector<8x256xbf16>
    %c23 = arith.constant 23 : index
    %c0_104 = arith.constant 0 : index
    %c0_105 = arith.constant 0 : index
    %113 = vector.load %arg13[%c23, %c0_104, %c0_105] : memref<24x8x256xbf16, #tpu.memory_space<vmem>>, vector<1x8x256xbf16>
    %114 = vector.shape_cast %113 : vector<1x8x256xbf16> to vector<8x256xbf16>
    %115 = arith.maximumf %112, %114 : vector<8x256xbf16>
    %c11_106 = arith.constant 11 : index
    %c0_107 = arith.constant 0 : index
    %c0_108 = arith.constant 0 : index
    %116 = vector.load %arg14[%c11_106, %c0_107, %c0_108] : memref<12x8x256xbf16, #tpu.memory_space<vmem>>, vector<1x8x256xbf16>
    %117 = vector.shape_cast %116 : vector<1x8x256xbf16> to vector<8x256xbf16>
    %118 = vector.shape_cast %115 : vector<8x256xbf16> to vector<1x8x256xbf16>
    tpu.vector_store %arg14[%c11_106, %c0_107, %c0_108], %118 {strides = array<i32>} : memref<12x8x256xbf16, #tpu.memory_space<vmem>>, vector<1x8x256xbf16>,
    %c0_109 = arith.constant 0 : index
    %c0_110 = arith.constant 0 : index
    %c0_111 = arith.constant 0 : index
    %119 = vector.load %arg14[%c0_109, %c0_110, %c0_111] : memref<12x8x256xbf16, #tpu.memory_space<vmem>>, vector<8x8x256xbf16>
    %c1_112 = arith.constant 1 : index
    %c0_113 = arith.constant 0 : index
    %c0_114 = arith.constant 0 : index
    %120 = vector.load %arg14[%c1_112, %c0_113, %c0_114] : memref<12x8x256xbf16, #tpu.memory_space<vmem>>, vector<8x8x256xbf16>
    %c2_115 = arith.constant 2 : index
    %c0_116 = arith.constant 0 : index
    %c0_117 = arith.constant 0 : index
    %121 = vector.load %arg14[%c2_115, %c0_116, %c0_117] : memref<12x8x256xbf16, #tpu.memory_space<vmem>>, vector<8x8x256xbf16>
    %c3_118 = arith.constant 3 : index
    %c0_119 = arith.constant 0 : index
    %c0_120 = arith.constant 0 : index
    %122 = vector.load %arg14[%c3_118, %c0_119, %c0_120] : memref<12x8x256xbf16, #tpu.memory_space<vmem>>, vector<8x8x256xbf16>
    %c4_121 = arith.constant 4 : index
    %c0_122 = arith.constant 0 : index
    %c0_123 = arith.constant 0 : index
    %123 = vector.load %arg14[%c4_121, %c0_122, %c0_123] : memref<12x8x256xbf16, #tpu.memory_space<vmem>>, vector<8x8x256xbf16>
    %124 = tpu.concatenate %119, %120, %121, %122, %123 in 2 : vector<8x8x256xbf16>, vector<8x8x256xbf16>, vector<8x8x256xbf16>, vector<8x8x256xbf16>, vector<8x8x256xbf16> -> vector<8x8x1280xbf16>
    %125 = vector.shape_cast %124 : vector<8x8x1280xbf16> to vector<64x1280xbf16>
    %c0_124 = arith.constant 0 : index
    %c0_125 = arith.constant 0 : index
    %126 = vector.load %arg5[%c0_124, %c0_125] : memref<1280x512xbf16, #tpu.memory_space<vmem>>, vector<1280x512xbf16>
    %cst_126 = arith.constant dense<0.000000e+00> : vector<64x512xf32>
    %127 = tpu.matmul %125, %126, %cst_126 {dimension_numbers = #tpu.dot_dimension_numbers<[1], [0], [0], [1], [0, 0, 1, 1], [], []>} : vector<64x1280xbf16>, vector<1280x512xbf16>, vector<64x512xf32> -> vector<64x512xf32>
    %c0_127 = arith.constant 0 : index
    %c0_128 = arith.constant 0 : index
    %128 = vector.load %arg6[%c0_127, %c0_128] : memref<1x512xf32, #tpu.memory_space<vmem>>, vector<1x512xf32>
    %129 = vector.broadcast %128 : vector<1x512xf32> to vector<64x512xf32>
    %130 = arith.addf %127, %129 : vector<64x512xf32>
    %131 = math.tanh %130 : vector<64x512xf32>
    %132 = arith.truncf %131 : vector<64x512xf32> to vector<64x512xbf16>
    %133 = vector.extract_strided_slice %132 {offsets = [0, 1], sizes = [64, 511], strides = [1, 1]} : vector<64x512xbf16> to vector<64x511xbf16>
    %134 = vector.extract_strided_slice %132 {offsets = [0, 0], sizes = [64, 1], strides = [1, 1]} : vector<64x512xbf16> to vector<64x1xbf16>
    %135 = tpu.concatenate %133, %134 in 1 : vector<64x511xbf16>, vector<64x1xbf16> -> vector<64x512xbf16>
    %136 = arith.maximumf %132, %135 : vector<64x512xbf16>
    %c0_129 = arith.constant 0 : index
    %c0_130 = arith.constant 0 : index
    %137 = vector.load %arg7[%c0_129, %c0_130] : memref<512x256xbf16, #tpu.memory_space<vmem>>, vector<512x256xbf16>
    %cst_131 = arith.constant dense<0.000000e+00> : vector<64x256xf32>
    %138 = tpu.matmul %136, %137, %cst_131 {dimension_numbers = #tpu.dot_dimension_numbers<[1], [0], [0], [1], [0, 0, 1, 1], [], []>} : vector<64x512xbf16>, vector<512x256xbf16>, vector<64x256xf32> -> vector<64x256xf32>
    %139 = arith.truncf %138 : vector<64x256xf32> to vector<64x256xbf16>
    %140 = vector.shape_cast %139 : vector<64x256xbf16> to vector<8x8x256xbf16>
    %c0_132 = arith.constant 0 : index
    %c0_133 = arith.constant 0 : index
    %c0_134 = arith.constant 0 : index
    %141 = vector.load %arg15[%c0_132, %c0_133, %c0_134] : memref<8x8x256xbf16, #tpu.memory_space<vmem>>, vector<8x8x256xbf16>
    tpu.vector_store %arg15[%c0_132, %c0_133, %c0_134], %140 {strides = array<i32>} : memref<8x8x256xbf16, #tpu.memory_space<vmem>>, vector<8x8x256xbf16>,
    %cst_135 = arith.constant 0.000000e+00 : f32
    %142 = vector.broadcast %cst_135 : f32 to vector<8x128xf32>
    %c0_136 = arith.constant 0 : index
    %c0_137 = arith.constant 0 : index
    %c0_138 = arith.constant 0 : index
    %143 = vector.load %arg15[%c0_136, %c0_137, %c0_138] : memref<8x8x256xbf16, #tpu.memory_space<vmem>>, vector<1x8x256xbf16>
    %144 = vector.shape_cast %143 : vector<1x8x256xbf16> to vector<8x256xbf16>
    %c1_139 = arith.constant 1 : index
    %c0_140 = arith.constant 0 : index
    %c0_141 = arith.constant 0 : index
    %145 = vector.load %arg15[%c1_139, %c0_140, %c0_141] : memref<8x8x256xbf16, #tpu.memory_space<vmem>>, vector<1x8x256xbf16>
    %146 = vector.shape_cast %145 : vector<1x8x256xbf16> to vector<8x256xbf16>
    %147 = arith.maximumf %144, %146 : vector<8x256xbf16>
    %c0_142 = arith.constant 0 : index
    %c0_143 = arith.constant 0 : index
    %c0_144 = arith.constant 0 : index
    %148 = vector.load %arg8[%c0_142, %c0_143, %c0_144] : memref<4x256x128xbf16, #tpu.memory_space<vmem>>, vector<1x256x128xbf16>
    %149 = vector.shape_cast %148 : vector<1x256x128xbf16> to vector<256x128xbf16>
    %cst_145 = arith.constant dense<0.000000e+00> : vector<8x128xf32>
    %150 = tpu.matmul %147, %149, %cst_145 {dimension_numbers = #tpu.dot_dimension_numbers<[1], [0], [0], [1], [0, 0, 1, 1], [], []>} : vector<8x256xbf16>, vector<256x128xbf16>, vector<8x128xf32> -> vector<8x128xf32>
    %151 = arith.addf %142, %150 : vector<8x128xf32>
    %c2_146 = arith.constant 2 : index
    %c0_147 = arith.constant 0 : index
    %c0_148 = arith.constant 0 : index
    %152 = vector.load %arg15[%c2_146, %c0_147, %c0_148] : memref<8x8x256xbf16, #tpu.memory_space<vmem>>, vector<1x8x256xbf16>
    %153 = vector.shape_cast %152 : vector<1x8x256xbf16> to vector<8x256xbf16>
    %c3_149 = arith.constant 3 : index
    %c0_150 = arith.constant 0 : index
    %c0_151 = arith.constant 0 : index
    %154 = vector.load %arg15[%c3_149, %c0_150, %c0_151] : memref<8x8x256xbf16, #tpu.memory_space<vmem>>, vector<1x8x256xbf16>
    %155 = vector.shape_cast %154 : vector<1x8x256xbf16> to vector<8x256xbf16>
    %156 = arith.maximumf %153, %155 : vector<8x256xbf16>
    %c1_152 = arith.constant 1 : index
    %c0_153 = arith.constant 0 : index
    %c0_154 = arith.constant 0 : index
    %157 = vector.load %arg8[%c1_152, %c0_153, %c0_154] : memref<4x256x128xbf16, #tpu.memory_space<vmem>>, vector<1x256x128xbf16>
    %158 = vector.shape_cast %157 : vector<1x256x128xbf16> to vector<256x128xbf16>
    %cst_155 = arith.constant dense<0.000000e+00> : vector<8x128xf32>
    %159 = tpu.matmul %156, %158, %cst_155 {dimension_numbers = #tpu.dot_dimension_numbers<[1], [0], [0], [1], [0, 0, 1, 1], [], []>} : vector<8x256xbf16>, vector<256x128xbf16>, vector<8x128xf32> -> vector<8x128xf32>
    %160 = arith.addf %151, %159 : vector<8x128xf32>
    %c4_156 = arith.constant 4 : index
    %c0_157 = arith.constant 0 : index
    %c0_158 = arith.constant 0 : index
    %161 = vector.load %arg15[%c4_156, %c0_157, %c0_158] : memref<8x8x256xbf16, #tpu.memory_space<vmem>>, vector<1x8x256xbf16>
    %162 = vector.shape_cast %161 : vector<1x8x256xbf16> to vector<8x256xbf16>
    %c5_159 = arith.constant 5 : index
    %c0_160 = arith.constant 0 : index
    %c0_161 = arith.constant 0 : index
    %163 = vector.load %arg15[%c5_159, %c0_160, %c0_161] : memref<8x8x256xbf16, #tpu.memory_space<vmem>>, vector<1x8x256xbf16>
    %164 = vector.shape_cast %163 : vector<1x8x256xbf16> to vector<8x256xbf16>
    %165 = arith.maximumf %162, %164 : vector<8x256xbf16>
    %c2_162 = arith.constant 2 : index
    %c0_163 = arith.constant 0 : index
    %c0_164 = arith.constant 0 : index
    %166 = vector.load %arg8[%c2_162, %c0_163, %c0_164] : memref<4x256x128xbf16, #tpu.memory_space<vmem>>, vector<1x256x128xbf16>
    %167 = vector.shape_cast %166 : vector<1x256x128xbf16> to vector<256x128xbf16>
    %cst_165 = arith.constant dense<0.000000e+00> : vector<8x128xf32>
    %168 = tpu.matmul %165, %167, %cst_165 {dimension_numbers = #tpu.dot_dimension_numbers<[1], [0], [0], [1], [0, 0, 1, 1], [], []>} : vector<8x256xbf16>, vector<256x128xbf16>, vector<8x128xf32> -> vector<8x128xf32>
    %169 = arith.addf %160, %168 : vector<8x128xf32>
    %c6_166 = arith.constant 6 : index
    %c0_167 = arith.constant 0 : index
    %c0_168 = arith.constant 0 : index
    %170 = vector.load %arg15[%c6_166, %c0_167, %c0_168] : memref<8x8x256xbf16, #tpu.memory_space<vmem>>, vector<1x8x256xbf16>
    %171 = vector.shape_cast %170 : vector<1x8x256xbf16> to vector<8x256xbf16>
    %c7_169 = arith.constant 7 : index
    %c0_170 = arith.constant 0 : index
    %c0_171 = arith.constant 0 : index
    %172 = vector.load %arg15[%c7_169, %c0_170, %c0_171] : memref<8x8x256xbf16, #tpu.memory_space<vmem>>, vector<1x8x256xbf16>
    %173 = vector.shape_cast %172 : vector<1x8x256xbf16> to vector<8x256xbf16>
    %174 = arith.maximumf %171, %173 : vector<8x256xbf16>
    %c3_172 = arith.constant 3 : index
    %c0_173 = arith.constant 0 : index
    %c0_174 = arith.constant 0 : index
    %175 = vector.load %arg8[%c3_172, %c0_173, %c0_174] : memref<4x256x128xbf16, #tpu.memory_space<vmem>>, vector<1x256x128xbf16>
    %176 = vector.shape_cast %175 : vector<1x256x128xbf16> to vector<256x128xbf16>
    %cst_175 = arith.constant dense<0.000000e+00> : vector<8x128xf32>
    %177 = tpu.matmul %174, %176, %cst_175 {dimension_numbers = #tpu.dot_dimension_numbers<[1], [0], [0], [1], [0, 0, 1, 1], [], []>} : vector<8x256xbf16>, vector<256x128xbf16>, vector<8x128xf32> -> vector<8x128xf32>
    %178 = arith.addf %169, %177 : vector<8x128xf32>
    %c0_176 = arith.constant 0 : index
    %c0_177 = arith.constant 0 : index
    %179 = vector.load %arg9[%c0_176, %c0_177] : memref<1x128xf32, #tpu.memory_space<vmem>>, vector<1x128xf32>
    %180 = vector.broadcast %179 : vector<1x128xf32> to vector<8x128xf32>
    %181 = arith.addf %178, %180 : vector<8x128xf32>
    %182 = math.tanh %181 : vector<8x128xf32>
    %183 = arith.truncf %182 : vector<8x128xf32> to vector<8x128xbf16>
    %c0_178 = arith.constant 0 : index
    %c0_179 = arith.constant 0 : index
    %184 = vector.load %arg10[%c0_178, %c0_179] : memref<128x128xbf16, #tpu.memory_space<vmem>>, vector<128x128xbf16>
    %cst_180 = arith.constant dense<0.000000e+00> : vector<8x128xf32>
    %185 = tpu.matmul %183, %184, %cst_180 {dimension_numbers = #tpu.dot_dimension_numbers<[1], [0], [0], [1], [0, 0, 1, 1], [], []>} : vector<8x128xbf16>, vector<128x128xbf16>, vector<8x128xf32> -> vector<8x128xf32>
    %c0_181 = arith.constant 0 : index
    %c0_182 = arith.constant 0 : index
    %186 = vector.load %arg11[%c0_181, %c0_182] : memref<1x128xf32, #tpu.memory_space<vmem>>, vector<1x128xf32>
    %187 = vector.broadcast %186 : vector<1x128xf32> to vector<8x128xf32>
    %188 = arith.addf %185, %187 : vector<8x128xf32>
    %c0_183 = arith.constant 0 : index
    %c0_184 = arith.constant 0 : index
    %189 = vector.load %arg12[%c0_183, %c0_184] : memref<8x128xf32, #tpu.memory_space<vmem>>, vector<8x128xf32>
    tpu.vector_store %arg12[%c0_183, %c0_184], %188 {strides = array<i32>} : memref<8x128xf32, #tpu.memory_space<vmem>>, vector<8x128xf32>,
    return
  }
  func.func @transform_0(%arg0: i32) -> (i32, i32, i32) {
    %c0_i32 = arith.constant 0 : i32
    %c0_i32_0 = arith.constant 0 : i32
    %c0_i32_1 = arith.constant 0 : i32
    return %c0_i32, %arg0, %c0_i32_0 : i32, i32, i32
  }
  func.func @transform_1(%arg0: i32) -> (i32, i32) {
    %c0_i32 = arith.constant 0 : i32
    %c0_i32_0 = arith.constant 0 : i32
    %c0_i32_1 = arith.constant 0 : i32
    return %c0_i32, %c0_i32_0 : i32, i32
  }
  func.func @transform_2(%arg0: i32) -> (i32, i32) {
    %c0_i32 = arith.constant 0 : i32
    %c0_i32_0 = arith.constant 0 : i32
    %c0_i32_1 = arith.constant 0 : i32
    return %c0_i32, %c0_i32_0 : i32, i32
  }
  func.func @transform_3(%arg0: i32) -> (i32, i32) {
    %c0_i32 = arith.constant 0 : i32
    %c0_i32_0 = arith.constant 0 : i32
    %c0_i32_1 = arith.constant 0 : i32
    return %c0_i32, %c0_i32_0 : i32, i32
  }
  func.func @transform_4(%arg0: i32) -> (i32, i32) {
    %c0_i32 = arith.constant 0 : i32
    %c0_i32_0 = arith.constant 0 : i32
    %c0_i32_1 = arith.constant 0 : i32
    return %c0_i32, %c0_i32_0 : i32, i32
  }
  func.func @transform_5(%arg0: i32) -> (i32, i32) {
    %c0_i32 = arith.constant 0 : i32
    %c0_i32_0 = arith.constant 0 : i32
    %c0_i32_1 = arith.constant 0 : i32
    return %c0_i32, %c0_i32_0 : i32, i32
  }
  func.func @transform_6(%arg0: i32) -> (i32, i32) {
    %c0_i32 = arith.constant 0 : i32
    %c0_i32_0 = arith.constant 0 : i32
    %c0_i32_1 = arith.constant 0 : i32
    return %c0_i32, %c0_i32_0 : i32, i32
  }
  func.func @transform_7(%arg0: i32) -> (i32, i32, i32) {
    %c0_i32 = arith.constant 0 : i32
    %c0_i32_0 = arith.constant 0 : i32
    %c0_i32_1 = arith.constant 0 : i32
    %c0_i32_2 = arith.constant 0 : i32
    return %c0_i32, %c0_i32_0, %c0_i32_1 : i32, i32, i32
  }
  func.func @transform_8(%arg0: i32) -> (i32, i32) {
    %c0_i32 = arith.constant 0 : i32
    %c0_i32_0 = arith.constant 0 : i32
    %c0_i32_1 = arith.constant 0 : i32
    return %c0_i32, %c0_i32_0 : i32, i32
  }
  func.func @transform_9(%arg0: i32) -> (i32, i32) {
    %c0_i32 = arith.constant 0 : i32
    %c0_i32_0 = arith.constant 0 : i32
    %c0_i32_1 = arith.constant 0 : i32
    return %c0_i32, %c0_i32_0 : i32, i32
  }
  func.func @transform_10(%arg0: i32) -> (i32, i32) {
    %c0_i32 = arith.constant 0 : i32
    %c0_i32_0 = arith.constant 0 : i32
    %c0_i32_1 = arith.constant 0 : i32
    return %c0_i32, %c0_i32_0 : i32, i32
  }
  func.func @transform_11(%arg0: i32) -> (i32, i32) {
    %c0_i32 = arith.constant 0 : i32
    %c0_i32_0 = arith.constant 0 : i32
    return %arg0, %c0_i32 : i32, i32
  }
}

</mosaic_0001>

<bundles_post_ra>
// kernel: _lambda_.1
= control target key start
LH: loop header
LB: loop body
LE: loop exit
PB: predicated region body
PF: predicated region fallthrough
CT: control target
= control target key end

     0   :  { %s12613_s0 = inlined_call_operand.vmem [shape: bf16[28,16,28], index: 0, kind: input, shape index: {}]   ;;  %s12614_s1 = inlined_call_operand.hbm [shape: bf16[140,512], index: 1, kind: input, shape index: {}]   ;;  %s12615_s2 = inlined_call_operand.hbm [shape: f32[1,512], index: 2, kind: input, shape index: {}]   ;;  %s12616_s3 = inlined_call_operand.hbm [shape: bf16[512,256], index: 3, kind: input, shape index: {}]   ;;  %s12617_s4 = inlined_call_operand.hbm [shape: bf16[1280,512], index: 4, kind: input, shape index: {}]   ;;  %s12618_s5 = inlined_call_operand.hbm [shape: f32[1,512], index: 5, kind: input, shape index: {}]   ;;  %s12619_s6 = inlined_call_operand.hbm [shape: bf16[512,256], index: 6, kind: input, shape index: {}]   ;;  %s12620_s7 = inlined_call_operand.hbm [shape: bf16[4,256,128], index: 7, kind: input, shape index: {}]   ;;  %s12621_s8 = inlined_call_operand.hbm [shape: f32[1,128], index: 8, kind: input, shape index: {}]   ;;  %s12622_s9 = inlined_call_operand.hbm [shape: bf16[128,128], index: 9, kind: input, shape index: {}]   ;;  %s12623_s10 = inlined_call_operand.hbm [shape: f32[1,128], index: 10, kind: input, shape index: {}]   ;;  %s12624_s11 = inlined_call_operand.hbm [shape: f32[16,128], index: 11, kind: output, shape index: {}]  }
   0x1   :  { %12644 = sst [smem:[#allocation46_spill]] %s12615_s2 }
   0x2   :  { %16 = vsyncpa [#allocation7], 0 }
   0x3   :  { %17 = vsyncpa [#allocation10], 0 }
   0x4   :  { %18 = vsyncpa [#allocation13], 0 }
   0x5   :  { %19 = vsyncpa [#allocation16], 0 }
   0x6   :  { %20 = vsyncpa [#allocation19], 0 }
   0x7   :  { %21 = vsyncpa [#allocation22], 0 }
   0x8   :  { %22 = vsyncpa [#allocation8], 0 }
   0x9   :  { %24 = vsyncpa [#allocation8 + $0x1], 0  ;;  %s11065_s17 = smov 0   ;;  %s11067_s18 = smov 0  }
   0xa   :  { %s11069_s19 = smov 0   ;;  %s11071_s20 = smov 0  }
   0xb LB: > { %12645 = sst [smem:[#allocation31_spill]] %s10967_s17  ;;  %s11086_s21 = sadd.s32 4294967295, %s10979_s20   ;;  %s10979_s20 = sphi %s11071_s20, %s12700_s20   ;;  %s10975_s19 = sphi %s11069_s19, %s12704_s19   ;;  %s10971_s18 = sphi %s11067_s18, %s12703_s18   ;;  %s10967_s17 = sphi %s11065_s17, %s12702_s17  }
   0xc   : > { %s8268_s22 = sadd.s32 4294967294, %s10979_s20   ;;  %s11090_s23 = sadd.s32 1, %s10979_s20  }
   0xd   : > { %12646 = sst [smem:[#allocation32_spill]] %s11090_s23  ;;  %s37_s24 = sadd.s32 1, %s10975_s19 }
   0xe   : > { %s34_s25 = ssub.s32 %s10979_s20, %s11090_s23  ;;  %p44_p0 = scmp.ne.s32.totalorder %s10975_s19, %s10971_s18 }
   0xf   : > { %p35_p1 = scmp.eq.s32.totalorder %s34_s25, 0  ;;  %p45_p2 = scmp.eq.s32.totalorder %s10979_s20, 0 }
  0x10   : > { %p284_p3 = scmp.eq.s32.totalorder %s11086_s21, 1  ;;  %p289_p4 = scmp.ne.s32.totalorder %s10971_s18, %s10967_s17 }
  0x11   : > { %s11102_s26 = scalar_select %p35_p1, %s10975_s19, %s37_s24  }
  0x12   : > { %p11104_p5 = por %p45_p2, %p44_p0  ;;  %p11108_p6 = por %p284_p3, %p44_p0 }
  0x13   : > { %12647 = sst [smem:[#allocation33_spill]] %s11102_s26  ;;  %p290_p7 = scmp.eq.s32.totalorder %s8268_s22, 1 }
  0x14   : > { %s12648_s27 = scalar_select %p11104_p5, 1, 0 }
  0x15   : > { %s12649_s28 = scalar_select %p11108_p6, 1, 0 }
  0x16   : > { %p8269_p8 = scmp.ge.s32.totalorder %s10979_s20, 1  ;;  %p297_p9 = scmp.lt.s32.totalorder %s10979_s20, 3 }
  0x17   : > { %p11114_p10 = por %p290_p7, %p289_p4  ;;  %p12625_p11 = scmp.eq.s32.totalorder %s11086_s21, 0 }
  0x18   : > { %p11119_p12 = pnand %p8269_p8, %p297_p9  ;;  %s10981_s12 = smov [#allocation9]  }
  0x19   : > { %s12650_s29 = scalar_select %p11114_p10, 1, 0 }
  0x1a   : > { %s12652_s30 = scalar_select %p11119_p12, 1, 0 }
  0x1b   : > { %12651 = sst [smem:[#allocation34_spill]] %s12650_s29  ;;  %s323_s13 = sshll.u32 %s10981_s12, 4  ;;  %s324_s13 = int_to_ptr.vmem [resolvable:$true] %s323_s13 }
  0x1c   : > { %p9371_p13 = pneg %p11119_p12  ;;  %s10982_s15 = smov [#allocation12]  }
  0x1d   : > { %s346_s16 = sshll.u32 %s10982_s15, 4  ;;  %s10646_s24 = scalar_lea.vmem %s324_s13, 64  ;;  %s347_s16 = int_to_ptr.vmem [resolvable:$true] %s346_s16 }
  0x1e   : > { %p11127_p0 = pnand %p12625_p11, %p9371_p13  ;;  %p10647_p2 = scmp.ne.s32.totalorder %s324_s13, %s10646_s24 }
  0x1f   : > { %p10654_p7 = scmp.lt.s32.totalorder %s324_s13, %s324_s13  ;;  %p10655_p8 = scmp.lt.s32.totalorder %s10646_s24, %s10646_s24 }
  0x20   : > { %p11133_p1 = pneg %p11127_p0 }
  0x21   : > { %p10656_p9 = por %p10655_p8, %p10654_p7 }
  0x22   : > { %p10649_p3 = pnand %p10647_p2, %p11133_p1 }
  0x24   : > { %p10650_p4 = pneg %p10649_p3 }
  0x26   : > { %p10657_p13 = pnand %p10656_p9, %p10650_p4 }
  0x28   : > { %10660 = shalt.err (!%p10657_p13)
}
  0x29   : > { %s12655_s2 = sld [smem:[#allocation46_spill]]  ;;  %s10672_s15 = scalar_lea.vmem %s347_s16, 40960 }
  0x2a   : > { %p10673_p11 = scmp.ne.s32.totalorder %s347_s16, %s10672_s15  ;;  %p10680_p12 = scmp.lt.s32.totalorder %s347_s16, %s347_s16 }
  0x2b   : > { %p10681_p2 = scmp.lt.s32.totalorder %s10672_s15, %s10672_s15 }
  0x2c   : > { %p10675_p10 = pnand %p10673_p11, %p11133_p1 }
  0x2d   : > { %p10682_p3 = por %p10681_p2, %p10680_p12 }
  0x2e   : > { %p10676_p6 = pneg %p10675_p10 }
  0x2f   : > { %9377 = dma.hbm_to_vmem [thread:$0]  (!%p11127_p0), %s12655_s2, 64, %s324_s13, [#allocation10]  }
  0x30   : > { %p10683_p5 = pnand %p10682_p3, %p10676_p6 }
  0x32   : > { %10686 = shalt.err (!%p10683_p5)
}
  0x33   : > { %s12632_s24 = smov 256   ;;  %s10984_s26 = smov 16  }
  0x34   : > { %9383 = dma.hbm_to_vmem [thread:$0]  (!%p11127_p0), %s12617_s4, 40960, %s347_s16, [#allocation13], %s12632_s24, %s12632_s24, %s10984_s26  }
  0x35   : > { %s10985_s12 = smov [#allocation15]   ;;  %s10986_s23 = smov [#allocation18]  }
  0x36   : > { %s370_s2 = sshll.u32 %s10985_s12, 4  ;;  %s397_s29 = sshll.u32 %s10986_s23, 4  ;;  %s371_s2 = int_to_ptr.vmem [resolvable:$true] %s370_s2  ;;  %s398_s29 = int_to_ptr.vmem [resolvable:$true] %s397_s29 }
  0x37   : > { %s10698_s15 = scalar_lea.vmem %s371_s2, 8192  ;;  %p10706_p11 = scmp.lt.s32.totalorder %s371_s2, %s371_s2 }
  0x38   : > { %p10699_p5 = scmp.ne.s32.totalorder %s371_s2, %s10698_s15  ;;  %p10707_p12 = scmp.lt.s32.totalorder %s10698_s15, %s10698_s15 }
  0x3a   : > { %p10701_p6 = pnand %p10699_p5, %p11133_p1  ;;  %p10708_p4 = por %p10707_p12, %p10706_p11 }
  0x3c   : > { %p10702_p10 = pneg %p10701_p6 }
  0x3e   : > { %p10709_p7 = pnand %p10708_p4, %p10702_p10 }
  0x40   : > { %10712 = shalt.err (!%p10709_p7)
}
  0x41   : > { %s12633_s17 = smov 128   ;;  %s12634_s16 = smov 8  }
  0x42   : > { %9389 = dma.hbm_to_vmem [thread:$0]  (!%p11127_p0), %s12619_s6, 8192, %s371_s2, [#allocation16], %s12633_s17, %s12633_s17, %s12634_s16  }
  0x43   : > { %s10724_s13 = scalar_lea.vmem %s398_s29, 16  ;;  %s10731_s12 = scalar_lea.vmem %s398_s29, 32 }
  0x44   : > { %p10725_p8 = scmp.ne.s32.totalorder %s398_s29, %s10724_s13  ;;  %p10732_p2 = scmp.lt.s32.totalorder %s398_s29, %s398_s29 }
  0x45   : > { %p10733_p3 = scmp.lt.s32.totalorder %s10731_s12, %s10724_s13 }
  0x46   : > { %p10727_p9 = pnand %p10725_p8, %p11133_p1 }
  0x47   : > { %p10734_p5 = por %p10733_p3, %p10732_p2 }
  0x48   : > { %p10728_p13 = pneg %p10727_p9 }
  0x4a   : > { %p10735_p6 = pnand %p10734_p5, %p10728_p13 }
  0x4c   : > { %10738 = shalt.err (!%p10735_p6)
}
  0x4d   : > { %9395 = dma.hbm_to_vmem [thread:$0]  (!%p11127_p0), %s12621_s8, 16, %s398_s29, [#allocation19]  }
  0x4e   : > { %s10989_s23 = smov [#allocation6]   ;;  %s10990_s25 = smov [#allocation11]  }
  0x4f   : > { %s309_s2 = sshll.u32 %s10989_s23, 4  ;;  %s333_s17 = sshll.u32 %s10990_s25, 4  ;;  %s310_s2 = int_to_ptr.vmem [resolvable:$true] %s309_s2  ;;  %s334_s17 = int_to_ptr.vmem [resolvable:$true] %s333_s17 }
  0x50   : > { %s10750_s16 = scalar_lea.vmem %s310_s2, 4608  ;;  %p10758_p4 = scmp.lt.s32.totalorder %s310_s2, %s310_s2 }
  0x51   : > { %p10751_p10 = scmp.ne.s32.totalorder %s310_s2, %s10750_s16  ;;  %p10759_p7 = scmp.lt.s32.totalorder %s10750_s16, %s10750_s16 }
  0x53   : > { %p10753_p11 = pnand %p10751_p10, %p11133_p1  ;;  %p10760_p8 = por %p10759_p7, %p10758_p4 }
  0x55   : > { %p10754_p12 = pneg %p10753_p11 }
  0x57   : > { %p10761_p9 = pnand %p10760_p8, %p10754_p12 }
  0x59   : > { %10764 = shalt.err (!%p10761_p9)
}
  0x5a   : > { %s12656_s29 = smov 256   ;;  %s10776_s12 = scalar_lea.vmem %s334_s17, 8192 }
  0x5b   : > { %9374 = dma.hbm_to_vmem [thread:$0]  (!%p11127_p0), %s12614_s1, 4608, %s310_s2, [#allocation7], %s12656_s29, %s12656_s29, %s10984_s26  }
  0x5c   : > { %p10777_p13 = scmp.ne.s32.totalorder %s334_s17, %s10776_s12  ;;  %p10784_p5 = scmp.lt.s32.totalorder %s334_s17, %s334_s17 }
  0x5d   : > { %p10785_p6 = scmp.lt.s32.totalorder %s10776_s12, %s10776_s12 }
  0x5e   : > { %p10779_p2 = pnand %p10777_p13, %p11133_p1 }
  0x5f   : > { %p10786_p10 = por %p10785_p6, %p10784_p5 }
  0x60   : > { %p10780_p3 = pneg %p10779_p2 }
  0x62   : > { %p10787_p11 = pnand %p10786_p10, %p10780_p3 }
  0x64   : > { %10790 = shalt.err (!%p10787_p11)
}
  0x65   : > { %s12657_s16 = smov 8   ;;  %s12658_s15 = smov 128  }
  0x66   : > { %9380 = dma.hbm_to_vmem [thread:$0]  (!%p11127_p0), %s12616_s3, 8192, %s334_s17, [#allocation10], %s12658_s15, %s12658_s15, %s12657_s16  }
  0x67   : > { %s10991_s26 = smov [#allocation14]   ;;  %s10992_s29 = smov [#allocation17]  }
  0x68   : > { %s360_s2 = sshll.u32 %s10991_s26, 4  ;;  %s383_s24 = sshll.u32 %s10992_s29, 4  ;;  %s361_s2 = int_to_ptr.vmem [resolvable:$true] %s360_s2  ;;  %s384_s24 = int_to_ptr.vmem [resolvable:$true] %s383_s24 }
  0x69   : > { %s10802_s13 = scalar_lea.vmem %s361_s2, 64  ;;  %p10810_p8 = scmp.lt.s32.totalorder %s361_s2, %s361_s2 }
  0x6a   : > { %p10803_p12 = scmp.ne.s32.totalorder %s361_s2, %s10802_s13  ;;  %p10811_p9 = scmp.lt.s32.totalorder %s10802_s13, %s10802_s13 }
  0x6c   : > { %p10805_p4 = pnand %p10803_p12, %p11133_p1  ;;  %p10812_p13 = por %p10811_p9, %p10810_p8 }
  0x6e   : > { %p10806_p7 = pneg %p10805_p4 }
  0x70   : > { %p10813_p2 = pnand %p10812_p13, %p10806_p7 }
  0x72   : > { %10816 = shalt.err (!%p10813_p2)
}
  0x73   : > { %9386 = dma.hbm_to_vmem [thread:$0]  (!%p11127_p0), %s12618_s5, 64, %s361_s2, [#allocation13]  }
  0x74   : > { %s10828_s16 = scalar_lea.vmem %s384_s24, 8192  ;;  %p10836_p10 = scmp.lt.s32.totalorder %s384_s24, %s384_s24 }
  0x75   : > { %p10829_p3 = scmp.ne.s32.totalorder %s384_s24, %s10828_s16  ;;  %p10837_p11 = scmp.lt.s32.totalorder %s10828_s16, %s10828_s16 }
  0x77   : > { %p10831_p5 = pnand %p10829_p3, %p11133_p1  ;;  %p10838_p12 = por %p10837_p11, %p10836_p10 }
  0x79   : > { %p10832_p6 = pneg %p10831_p5 }
  0x7b   : > { %p10839_p4 = pnand %p10838_p12, %p10832_p6 }
  0x7d   : > { %10842 = shalt.err (!%p10839_p4)
}
  0x7e   : > { %s10993_s15 = smov 64   ;;  %s10994_s23 = smov 4  }
  0x7f   : > { %9392 = dma.hbm_to_vmem [thread:$0]  (!%p11127_p0), %s12620_s7, 8192, %s384_s24, [#allocation16], %s10993_s15, %s10993_s15, %s10994_s23  }
  0x80   : > { %s10995_s2 = smov [#allocation20]   ;;  %s10996_s13 = smov [#allocation21]  }
  0x81   : > { %s407_s29 = sshll.u32 %s10995_s2, 4  ;;  %s421_s12 = sshll.u32 %s10996_s13, 4  ;;  %s408_s29 = int_to_ptr.vmem [resolvable:$true] %s407_s29  ;;  %s422_s12 = int_to_ptr.vmem [resolvable:$true] %s421_s12 }
  0x82   : > { %s10854_s17 = scalar_lea.vmem %s408_s29, 1024  ;;  %p10862_p13 = scmp.lt.s32.totalorder %s408_s29, %s408_s29 }
  0x83   : > { %p10855_p7 = scmp.ne.s32.totalorder %s408_s29, %s10854_s17  ;;  %p10863_p2 = scmp.lt.s32.totalorder %s10854_s17, %s10854_s17 }
  0x85   : > { %p10857_p8 = pnand %p10855_p7, %p11133_p1  ;;  %p10864_p3 = por %p10863_p2, %p10862_p13 }
  0x87   : > { %p10858_p9 = pneg %p10857_p8 }
  0x89   : > { %p10865_p5 = pnand %p10864_p3, %p10858_p9 }
  0x8b   : > { %10868 = shalt.err (!%p10865_p5)
}
  0x8c   : > { %9398 = dma.hbm_to_vmem [thread:$0]  (!%p11127_p0), %s12622_s9, 1024, %s408_s29, [#allocation19], %s10993_s15, %s10993_s15, %s10994_s23  }
  0x8d   : > { %s10880_s25 = scalar_lea.vmem %s422_s12, 16  ;;  %s10887_s26 = scalar_lea.vmem %s422_s12, 32 }
  0x8e   : > { %p10881_p6 = scmp.ne.s32.totalorder %s422_s12, %s10880_s25  ;;  %p10888_p12 = scmp.lt.s32.totalorder %s422_s12, %s422_s12 }
  0x8f   : > { %p10889_p4 = scmp.lt.s32.totalorder %s10887_s26, %s10880_s25 }
  0x90   : > { %p10883_p10 = pnand %p10881_p6, %p11133_p1 }
  0x91   : > { %p10890_p7 = por %p10889_p4, %p10888_p12 }
  0x92   : > { %p10884_p11 = pneg %p10883_p10 }
  0x94   : > { %p10891_p8 = pnand %p10890_p7, %p10884_p11 }
  0x96   : > { %10894 = shalt.err (!%p10891_p8)
}
  0x97   : > { %9401 = dma.hbm_to_vmem [thread:$0]  (!%p11127_p0), %s12623_s10, 16, %s422_s12, [#allocation22]  }
  0x98   : > { %p8280_p9 = scmp.ge.s32.totalorder %s10979_s20, 2 }
  0x99   : > { %p12659_p1 = scmp.ne.s32.totalorder (!%p8280_p9), %s12648_s27, 0 }
  0x9a   : > { %428 = sbr.rel (%p8280_p9) target bundleno = 182 (0xb6), region = 56 }
  0x9f   : > { %431 = sbr.rel (!%p12659_p1) target bundleno = 182 (0xb6), region = 60  ;;  %s433_s22 = sand.u32 (%p12659_p1), 1, %s10975_s19  }
  0xa0   : > { %s8281_s15 = sshll.u32 (%p12659_p1), %s10979_s20, 2  ;;  %s9327_s23 = smul.u32 (%p12659_p1), 112, %s433_s22 }
  0xa1   : > { %s11229_s14 = scalar_lea.vmem (%p12659_p1), %s12613_s0, %s8281_s15 }
  0xa2   : > { %v454_v0 = vld [vmem:[%s11229_s14] sm:$0xf] (%p12659_p1)  ;;  %v456_v1 = vld [vmem:[%s11229_s14 + $0x8] sm:$0xf] (%p12659_p1)  ;;  %v458_v2 = vld [vmem:[%s11229_s14 + $0x10] sm:$0xf] (%p12659_p1) }
  0xa3   : > { %v460_v3 = vld [vmem:[%s11229_s14 + $0x18] sm:$0xf] (%p12659_p1)  ;;  %v462_v4 = vld [vmem:[%s11229_s14 + $0x20] sm:$0xf] (%p12659_p1)  ;;  %s11236_s27 = scalar_lea.vmem (%p12659_p1), [#allocation5], %s9327_s23 }
  0xa4   : > { %455 = vst [vmem:[%s11236_s27] sm:$0xf] %v454_v0  ;;  %457 = vst [vmem:[%s11236_s27 + $0x4] sm:$0xf] %v456_v1  ;;  %v464_v5 = vld [vmem:[%s11229_s14 + $0x28] sm:$0xf] }
  0xa5   : > { %459 = vst [vmem:[%s11236_s27 + $0x8] sm:$0xf] %v458_v2  ;;  %461 = vst [vmem:[%s11236_s27 + $0xc] sm:$0xf] %v460_v3  ;;  %v466_v6 = vld [vmem:[%s11229_s14 + $0x30] sm:$0xf] }
  0xa6   : > { %463 = vst [vmem:[%s11236_s27 + $0x10] sm:$0xf] %v462_v4  ;;  %v468_v7 = vld [vmem:[%s11229_s14 + $0x38] sm:$0xf]  ;;  %465 = vst [vmem:[%s11236_s27 + $0x14] sm:$0xf] %v464_v5 }
  0xa7   : > { %467 = vst [vmem:[%s11236_s27 + $0x18] sm:$0xf] %v466_v6  ;;  %469 = vst [vmem:[%s11236_s27 + $0x1c] sm:$0xf] %v468_v7  ;;  %v470_v8 = vld [vmem:[%s11229_s14 + $0x40] sm:$0xf] }
  0xa8   : > { %v472_v9 = vld [vmem:[%s11229_s14 + $0x48] sm:$0xf]  ;;  %v474_v10 = vld [vmem:[%s11229_s14 + $0x50] sm:$0xf]  ;;  %471 = vst [vmem:[%s11236_s27 + $0x20] sm:$0xf] %v470_v8 }
  0xa9   : > { %473 = vst [vmem:[%s11236_s27 + $0x24] sm:$0xf] %v472_v9  ;;  %475 = vst [vmem:[%s11236_s27 + $0x28] sm:$0xf] %v474_v10  ;;  %v476_v11 = vld [vmem:[%s11229_s14 + $0x58] sm:$0xf] }
  0xaa   : > { %v478_v12 = vld [vmem:[%s11229_s14 + $0x60] sm:$0xf]  ;;  %v480_v13 = vld [vmem:[%s11229_s14 + $0x68] sm:$0xf]  ;;  %477 = vst [vmem:[%s11236_s27 + $0x2c] sm:$0xf] %v476_v11 }
  0xab   : > { %479 = vst [vmem:[%s11236_s27 + $0x30] sm:$0xf] %v478_v12  ;;  %481 = vst [vmem:[%s11236_s27 + $0x34] sm:$0xf] %v480_v13  ;;  %v482_v14 = vld [vmem:[%s11229_s14 + $0x70] sm:$0xf] }
  0xac   : > { %v484_v15 = vld [vmem:[%s11229_s14 + $0x78] sm:$0xf]  ;;  %v486_v16 = vld [vmem:[%s11229_s14 + $0x80] sm:$0xf]  ;;  %483 = vst [vmem:[%s11236_s27 + $0x38] sm:$0xf] %v482_v14 }
  0xad   : > { %485 = vst [vmem:[%s11236_s27 + $0x3c] sm:$0xf] %v484_v15  ;;  %487 = vst [vmem:[%s11236_s27 + $0x40] sm:$0xf] %v486_v16  ;;  %v488_v17 = vld [vmem:[%s11229_s14 + $0x88] sm:$0xf] }
  0xae   : > { %v490_v18 = vld [vmem:[%s11229_s14 + $0x90] sm:$0xf]  ;;  %v492_v19 = vld [vmem:[%s11229_s14 + $0x98] sm:$0xf]  ;;  %489 = vst [vmem:[%s11236_s27 + $0x44] sm:$0xf] %v488_v17 }
  0xaf   : > { %491 = vst [vmem:[%s11236_s27 + $0x48] sm:$0xf] %v490_v18  ;;  %493 = vst [vmem:[%s11236_s27 + $0x4c] sm:$0xf] %v492_v19  ;;  %v494_v20 = vld [vmem:[%s11229_s14 + $0xa0] sm:$0xf] }
  0xb0   : > { %v496_v21 = vld [vmem:[%s11229_s14 + $0xa8] sm:$0xf]  ;;  %v498_v22 = vld [vmem:[%s11229_s14 + $0xb0] sm:$0xf]  ;;  %495 = vst [vmem:[%s11236_s27 + $0x50] sm:$0xf] %v494_v20 }
  0xb1   : > { %497 = vst [vmem:[%s11236_s27 + $0x54] sm:$0xf] %v496_v21  ;;  %499 = vst [vmem:[%s11236_s27 + $0x58] sm:$0xf] %v498_v22  ;;  %v500_v23 = vld [vmem:[%s11229_s14 + $0xb8] sm:$0xf] }
  0xb2   : > { %v502_v24 = vld [vmem:[%s11229_s14 + $0xc0] sm:$0xf]  ;;  %v504_v25 = vld [vmem:[%s11229_s14 + $0xc8] sm:$0xf]  ;;  %501 = vst [vmem:[%s11236_s27 + $0x5c] sm:$0xf] %v500_v23 }
  0xb3   : > { %503 = vst [vmem:[%s11236_s27 + $0x60] sm:$0xf] %v502_v24  ;;  %505 = vst [vmem:[%s11236_s27 + $0x64] sm:$0xf] %v504_v25  ;;  %v506_v26 = vld [vmem:[%s11229_s14 + $0xd0] sm:$0xf] }
  0xb4   : > { %v508_v27 = vld [vmem:[%s11229_s14 + $0xd8] sm:$0xf]  ;;  %507 = vst [vmem:[%s11236_s27 + $0x68] sm:$0xf] %v506_v26 }
  0xb5   : > { %509 = vst [vmem:[%s11236_s27 + $0x6c] sm:$0xf] %v508_v27 }
  0xb6 PF: > { %p12660_p0 = scmp.ne.s32.totalorder %s12652_s30, 0 }
  0xb8   : > { %592 = sbr.rel (%p12660_p0) target bundleno = 2232 (0x8b8), region = 101 }
  0xbd   : > { %s11292_s12 = sand.u32 1, %s10971_s18   ;;  %p12661_p13 = scmp.eq.s32.totalorder %s11086_s21, 0 }
  0xbe   : > { %s9328_s16 = smul.u32 112, %s11292_s12 }
  0xc0   : > { %s11295_s24 = scalar_lea.vmem [#allocation5], %s9328_s16 }
  0xc1   : > { %10938 = dma.done.wait (%p12661_p13), [#allocation7], 4608   ;;  %p12662_p2 = pmov %p12661_p13 }
  0xc3   : > { %10940 = vsyncadd (%p12662_p2), [#allocation7], 4294962688  ;;  %p12663_p3 = pmov %p12662_p2 }
  0xc4   : > { %p12664_p5 = pmov %p12662_p2 }
  0xc5   : > { %10942 = dma.done.wait (%p12663_p3), [#allocation10], 8256  }
  0xc6   : > { %10944 = vsyncadd (%p12664_p5), [#allocation10], 4294959040  ;;  %p12665_p6 = pmov %p12662_p2 }
  0xc7   : > { %p12666_p10 = pmov %p12662_p2 }
  0xc8   : > { %10946 = dma.done.wait (%p12665_p6), [#allocation13], 41024  }
  0xc9   : > { %10948 = vsyncadd (%p12666_p10), [#allocation13], 4294926272  ;;  %p12667_p11 = pmov %p12662_p2 }
  0xca   : > { %p12668_p12 = pmov %p12662_p2 }
  0xcb   : > { %10950 = dma.done.wait (%p12667_p11), [#allocation16], 16384  }
  0xcc   : > { %10952 = vsyncadd (%p12668_p12), [#allocation16], 4294950912  ;;  %p12669_p4 = pmov %p12662_p2 }
  0xcd   : > { %p12670_p7 = pmov %p12662_p2 }
  0xce   : > { %10954 = dma.done.wait (%p12669_p4), [#allocation19], 1040  }
  0xcf   : > { %10956 = vsyncadd (%p12670_p7), [#allocation19], 4294966256  ;;  %p12671_p8 = pmov %p12662_p2 }
  0xd0   : > { %p12672_p1 = pmov %p12662_p2 }
  0xd1   : > { %10958 = dma.done.wait (%p12671_p8), [#allocation22], 16  }
  0xd2   : > { %10960 = vsyncadd (%p12672_p1), [#allocation22], 4294967280  ;;  %v9482_v28 = vld [vmem:[%s11295_s24 + $0x8] ss:$0 sps:$4 sm:$0xff]   ;;  %v9483_v29 = vld [vmem:[%s11295_s24 + $0x4] ss:$0 sps:$4 sm:$0xff]  }
  0xd3   : > { %s10997_s30 = smov 56   ;;  %v9484_v30 = vld [vmem:[%s11295_s24 + $0xc] ss:$0 sps:$4 sm:$0xff]   ;;  %s10998_s25 = smov 28   ;;  %v9485_v31 = vld [vmem:[%s11295_s24 + $0x8] ss:$0 sps:$4 sm:$0xff]  }
  0xd4   : > { %991 = vrot.lane.b32.xlu1 %v9482_v28, %s10997_s30  ;;  %871 = vrot.lane.b32.xlu0 %v9483_v29, %s10998_s25  ;;  %v9486_v32 = vld [vmem:[%s11295_s24 + $0x10] ss:$0 sps:$4 sm:$0xff]   ;;  %v9487_v33 = vld [vmem:[%s11295_s24 + $0xc] ss:$0 sps:$4 sm:$0xff]   ;;  %s10999_s26 = smov 84   ;;  %s11000_s2 = smov 112  }
  0xd5   : > { %v9488_v34 = vld [vmem:[%s11295_s24 + $0x14] ss:$0 sps:$4 sm:$0xff]   ;;  %v9489_v35 = vld [vmem:[%s11295_s24 + $0x10] ss:$0 sps:$4 sm:$0xff]   ;;  %v9491_v37 = vld [vmem:[%s11295_s24 + $0xc] ss:$0 sps:$4 sm:$0xff]  }
  0xd6   : > { %v9490_v36 = vld [vmem:[%s11295_s24 + $0x10] ss:$0 sps:$4 sm:$0xff]   ;;  %v9492_v38 = vld [vmem:[%s11295_s24 + $0x14] ss:$0 sps:$4 sm:$0xff]   ;;  %v9494_v40 = vld [vmem:[%s11295_s24 + $0x18] ss:$0 sps:$4 sm:$0xff]  }
  0xd7   : > { %v9493_v39 = vld [vmem:[%s11295_s24 + $0x10] ss:$0 sps:$4 sm:$0xff]   ;;  %v9495_v41 = vld [vmem:[%s11295_s24 + $0x14] ss:$0 sps:$4 sm:$0xff]   ;;  %v9496_v42 = vld [vmem:[%s11295_s24 + $0x1c] ss:$0 sps:$4 sm:$0xff]  }
  0xd8   : > { %993 = vrot.lane.b32.xlu1 %v9484_v30, %s10997_s30  ;;  %873 = vrot.lane.b32.xlu0 %v9485_v31, %s10998_s25  ;;  %v9497_v43 = vld [vmem:[%s11295_s24 + $0x18] ss:$0 sps:$4 sm:$0xff]   ;;  %v9499_v45 = vld [vmem:[%s11295_s24 + $0x14] ss:$0 sps:$4 sm:$0xff]   ;;  %v9532_v48 = vld [vmem:[#allocation6 + $0xec] ss:$16 sps:$4 sm:$0xff]  }
  0xd9   : > { %v9498_v44 = vld [vmem:[%s11295_s24 + $0x18] ss:$0 sps:$4 sm:$0xff]   ;;  %v9500_v46 = vld [vmem:[%s11295_s24 + $0x1c] ss:$0 sps:$4 sm:$0xff]   ;;  %v9530_v47 = vld [vmem:[#allocation6 + $0xe4] ss:$16 sps:$4 sm:$0xff]   ;;  %2044 = vmatprep.subr.bf16.mxu1 %v9532_v48 }
  0xda   : > { %1891 = vmatprep.subr.bf16.mxu0 %v9530_v47  ;;  %v9534_v49 = vld [vmem:[#allocation6 + $0xe0] ss:$16 sps:$4 sm:$0xff]   ;;  %v9535_v50 = vld [vmem:[#allocation6 + $0xe8] ss:$16 sps:$4 sm:$0xff]   ;;  %v9538_v53 = vld [vmem:[#allocation6 + $0xc4] ss:$16 sps:$4 sm:$0xff]  }
  0xdb   : > { %v9501_v51 = vld [vmem:[%s11295_s24 + $0x18] ss:$0 sps:$4 sm:$0xff]   ;;  %v9502_v52 = vld [vmem:[%s11295_s24 + $0x20] ss:$0 sps:$4 sm:$0xff]   ;;  %1892 = vmatpush1.bf16.msra.mxu0 %v9534_v49  ;;  %2045 = vmatpush1.bf16.msra.mxu1 %v9535_v50  ;;  %v9540_v54 = vld [vmem:[#allocation6 + $0xcc] ss:$16 sps:$4 sm:$0xff]  }
  0xdc   : > { %1113 = vrot.lane.b32.xlu1 %v9486_v32, %s10999_s26  ;;  %1111 = vrot.lane.b32.xlu0 %v9487_v33, %s10999_s26  ;;  %v9542_v55 = vld [vmem:[#allocation6 + $0xc0] ss:$16 sps:$4 sm:$0xff]   ;;  %v9543_v56 = vld [vmem:[#allocation6 + $0xc8] ss:$16 sps:$4 sm:$0xff]   ;;  %v9503_v57 = vld [vmem:[%s11295_s24 + $0x1c] ss:$0 sps:$4 sm:$0xff]  }
  0xdd   : > { %1893 = vmatprep.subr.bf16.mxu0 %v9538_v53  ;;  %2046 = vmatprep.subr.bf16.mxu1 %v9540_v54  ;;  %v9504_v58 = vld [vmem:[%s11295_s24 + $0x24] ss:$0 sps:$4 sm:$0xff]   ;;  %v9548_v60 = vld [vmem:[#allocation6 + $0xac] ss:$16 sps:$4 sm:$0xff]   ;;  %v9550_v61 = vld [vmem:[#allocation6 + $0xa0] ss:$16 sps:$4 sm:$0xff]  }
  0xde   : > { %v9546_v59 = vld [vmem:[#allocation6 + $0xa4] ss:$16 sps:$4 sm:$0xff]   ;;  %v9551_v62 = vld [vmem:[#allocation6 + $0xa8] ss:$16 sps:$4 sm:$0xff]   ;;  %v9505_v63 = vld [vmem:[%s11295_s24 + $0x20] ss:$0 sps:$4 sm:$0xff]  }
  0xdf   : > { %1894 = vmatpush1.bf16.msra.mxu0 %v9542_v55  ;;  %2047 = vmatpush1.bf16.msra.mxu1 %v9543_v56  ;;  %v9506_v0 = vld [vmem:[%s11295_s24 + $0x20] ss:$0 sps:$4 sm:$0xff]   ;;  %v9554_v1 = vld [vmem:[#allocation6 + $0x84] ss:$16 sps:$4 sm:$0xff]   ;;  %v9556_v2 = vld [vmem:[#allocation6 + $0x8c] ss:$16 sps:$4 sm:$0xff]  }
  0xe0   : > { %1233 = vrot.lane.b32.xlu1 %v9488_v34, %s11000_s2  ;;  %1231 = vrot.lane.b32.xlu0 %v9489_v35, %s11000_s2  ;;  %v9558_v3 = vld [vmem:[#allocation6 + $0x80] ss:$16 sps:$4 sm:$0xff]   ;;  %v9559_v4 = vld [vmem:[#allocation6 + $0x88] ss:$16 sps:$4 sm:$0xff]   ;;  %v9507_v5 = vld [vmem:[%s11295_s24 + $0x1c] ss:$0 sps:$4 sm:$0xff]  }
  0xe1   : > { %1895 = vmatprep.subr.bf16.mxu0 %v9546_v59  ;;  %2048 = vmatprep.subr.bf16.mxu1 %v9548_v60  ;;  %v9508_v6 = vld [vmem:[%s11295_s24 + $0x24] ss:$0 sps:$4 sm:$0xff]   ;;  %v9564_v8 = vld [vmem:[#allocation6 + $0x6c] ss:$16 sps:$4 sm:$0xff]   ;;  %v9566_v9 = vld [vmem:[#allocation6 + $0x60] ss:$16 sps:$4 sm:$0xff]  }
  0xe2   : > { %v9562_v7 = vld [vmem:[#allocation6 + $0x64] ss:$16 sps:$4 sm:$0xff]   ;;  %v9567_v10 = vld [vmem:[#allocation6 + $0x68] ss:$16 sps:$4 sm:$0xff]   ;;  %v9509_v11 = vld [vmem:[%s11295_s24 + $0x20] ss:$0 sps:$4 sm:$0xff]  }
  0xe3   : > { %1896 = vmatpush1.bf16.msra.mxu0 %v9550_v61  ;;  %2049 = vmatpush1.bf16.msra.mxu1 %v9551_v62  ;;  %v9570_v12 = vld [vmem:[#allocation6 + $0x44] ss:$16 sps:$4 sm:$0xff]   ;;  %v9572_v13 = vld [vmem:[#allocation6 + $0x4c] ss:$16 sps:$4 sm:$0xff]   ;;  %v9510_v14 = vld [vmem:[%s11295_s24 + $0x28] ss:$0 sps:$4 sm:$0xff]  }
  0xe4   : > { %877 = vrot.lane.b32.xlu1 %v9490_v36, %s10998_s25  ;;  %875 = vrot.lane.b32.xlu0 %v9491_v37, %s10998_s25  ;;  %v9574_v15 = vld [vmem:[#allocation6 + $0x40] ss:$16 sps:$4 sm:$0xff]   ;;  %v9575_v16 = vld [vmem:[#allocation6 + $0x48] ss:$16 sps:$4 sm:$0xff]   ;;  %v9511_v17 = vld [vmem:[%s11295_s24 + $0x24] ss:$0 sps:$4 sm:$0xff]  }
  0xe5   : > { %1897 = vmatprep.subr.bf16.mxu0 %v9554_v1  ;;  %2050 = vmatprep.subr.bf16.mxu1 %v9556_v2  ;;  %v9578_v18 = vld [vmem:[#allocation6 + $0x24] ss:$16 sps:$4 sm:$0xff]   ;;  %v9512_v19 = vld [vmem:[%s11295_s24 + $0x2c] ss:$0 sps:$4 sm:$0xff]   ;;  %v9582_v21 = vld [vmem:[#allocation6 + $0x20] ss:$16 sps:$4 sm:$0xff]  }
  0xe6   : > { %v9580_v20 = vld [vmem:[#allocation6 + $0x2c] ss:$16 sps:$4 sm:$0xff]   ;;  %v9513_v22 = vld [vmem:[%s11295_s24 + $0x28] ss:$0 sps:$4 sm:$0xff]   ;;  %v9586_v25 = vld [vmem:[#allocation6 + $0x4] ss:$16 sps:$4 sm:$0xff]  }
  0xe7   : > { %1898 = vmatpush1.bf16.msra.mxu0 %v9558_v3  ;;  %2051 = vmatpush1.bf16.msra.mxu1 %v9559_v4  ;;  %v9583_v23 = vld [vmem:[#allocation6 + $0x28] ss:$16 sps:$4 sm:$0xff]   ;;  %v9588_v26 = vld [vmem:[#allocation6 + $0xc] ss:$16 sps:$4 sm:$0xff]   ;;  %v9590_v27 = vld [vmem:[#allocation6] ss:$16 sps:$4 sm:$0xff]  }
  0xe8   : > { %997 = vrot.lane.b32.xlu1 %v9492_v38, %s10997_s30  ;;  %995 = vrot.lane.b32.xlu0 %v9493_v39, %s10997_s30  ;;  %v9514_v24 = vld [vmem:[%s11295_s24 + $0x28] ss:$0 sps:$4 sm:$0xff]   ;;  %v9515_v28 = vld [vmem:[%s11295_s24 + $0x24] ss:$0 sps:$4 sm:$0xff]   ;;  %vm1878_vm0 = vcmask 1045504   ;;  %vm1279_vm1 = vcmask 228352  }
  0xe9   : > { %1899 = vmatprep.subr.bf16.mxu0 %v9562_v7  ;;  %2052 = vmatprep.subr.bf16.mxu1 %v9564_v8  ;;  %v9591_v29 = vld [vmem:[#allocation6 + $0x8] ss:$16 sps:$4 sm:$0xff]   ;;  %v9516_v30 = vld [vmem:[%s11295_s24 + $0x2c] ss:$0 sps:$4 sm:$0xff]   ;;  %v9518_v38 = vld [vmem:[%s11295_s24 + $0x30] ss:$0 sps:$4 sm:$0xff]  }
  0xea   : > { %v9517_v31 = vld [vmem:[%s11295_s24 + $0x28] ss:$0 sps:$4 sm:$0xff]   ;;  %v9594_v32 = vld [vmem:[#allocation6 + $0x104] ss:$16 sps:$4 sm:$0x3f]   ;;  %vm1352_vm2 = vcmask 457728  }
  0xeb   : > { %1900 = vmatpush1.bf16.msra.mxu0 %v9566_v9  ;;  %2053 = vmatpush1.bf16.msra.mxu1 %v9567_v10  ;;  %v9596_v33 = vld [vmem:[#allocation6 + $0x10c] ss:$16 sps:$4 sm:$0x3f]   ;;  %v9598_v34 = vld [vmem:[#allocation6 + $0x100] ss:$16 sps:$4 sm:$0x3f]  }
  0xec   : > { %1117 = vrot.lane.b32.xlu1 %v9494_v40, %s10999_s26  ;;  %1115 = vrot.lane.b32.xlu0 %v9495_v41, %s10999_s26  ;;  %v9599_v35 = vld [vmem:[#allocation6 + $0x108] ss:$16 sps:$4 sm:$0x3f]   ;;  %v1880_v36 = vsel %vm1878_vm0, %v9598_v34, 0  ;;  %v9519_v39 = vld [vmem:[%s11295_s24 + $0x2c] ss:$0 sps:$4 sm:$0xff]  }
  0xed   : > { %1901 = vmatprep.subr.bf16.mxu0 %v9570_v12  ;;  %2054 = vmatprep.subr.bf16.mxu1 %v9572_v13  ;;  %v1886_v37 = vsel %vm1878_vm0, %v9599_v35, 0  ;;  %v9520_v40 = vld [vmem:[%s11295_s24 + $0x34] ss:$0 sps:$4 sm:$0xff]   ;;  %v9521_v41 = vld [vmem:[%s11295_s24 + $0x30] ss:$0 sps:$4 sm:$0xff]   ;;  %vm1401_vm3 = vcmask 687104  }
  0xee   : > { %v9527_v47 = vld [vmem:[%s11295_s24 + $0x34] ss:$0 sps:$4 sm:$0xff]   ;;  %v9528_v48 = vld [vmem:[%s11295_s24 + $0x3c] ss:$0 sps:$4 sm:$0xff]   ;;  %v9529_v49 = vld [vmem:[%s11295_s24 + $0x38] ss:$0 sps:$4 sm:$0xff]  }
  0xef   : > { %1902 = vmatpush1.bf16.msra.mxu0 %v9574_v15  ;;  %2055 = vmatpush1.bf16.msra.mxu1 %v9575_v16  ;;  %v9536_v50 = vld [vmem:[%s11295_s24 + $0x38] ss:$0 sps:$4 sm:$0xff]   ;;  %v9552_v54 = vld [vmem:[%s11295_s24 + $0x40] ss:$0 sps:$4 sm:$0xff]   ;;  %v9553_v55 = vld [vmem:[%s11295_s24 + $0x3c] ss:$0 sps:$4 sm:$0xff]  }
  0xf0   : > { %1237 = vrot.lane.b32.xlu1 %v9496_v42, %s11000_s2  ;;  %1235 = vrot.lane.b32.xlu0 %v9497_v43, %s11000_s2  ;;  %v9522_v42 = vld [vmem:[%s11295_s24 + $0x30] ss:$0 sps:$4 sm:$0xff]   ;;  %v9523_v43 = vld [vmem:[%s11295_s24 + $0x2c] ss:$0 sps:$4 sm:$0xff]   ;;  %vm1450_vm4 = vcmask 916480   ;;  %vm1841_vm5 = vcmask 97280  }
  0xf1   : > { %1903 = vmatprep.subr.bf16.mxu0 %v9578_v18  ;;  %2056 = vmatprep.subr.bf16.mxu1 %v9580_v20  ;;  %v9545_v53 = vld [vmem:[%s11295_s24 + $0x38] ss:$0 sps:$4 sm:$0xff]   ;;  %v9560_v56 = vld [vmem:[%s11295_s24 + $0x44] ss:$0 sps:$4 sm:$0xff]   ;;  %v9569_v59 = vld [vmem:[%s11295_s24 + $0x3c] ss:$0 sps:$4 sm:$0xff]  }
  0xf2   : > { %v9576_v60 = vld [vmem:[%s11295_s24 + $0x44] ss:$0 sps:$4 sm:$0xff]   ;;  %v9577_v61 = vld [vmem:[%s11295_s24 + $0x40] ss:$0 sps:$4 sm:$0xff]   ;;  %v9593_v7 = vld [vmem:[%s11295_s24 + $0x48] ss:$0 sps:$4 sm:$0xff]  }
  0xf3   : > { %1904 = vmatpush1.bf16.msra.mxu0 %v9582_v21  ;;  %2057 = vmatpush1.bf16.msra.mxu1 %v9583_v23  ;;  %v9585_v1 = vld [vmem:[%s11295_s24 + $0x44] ss:$0 sps:$4 sm:$0xff]   ;;  %v675_v3 = vld [vmem:[%s11295_s24] sm:$0xf]  ;;  %v9600_v10 = vld [vmem:[%s11295_s24 + $0x48] ss:$0 sps:$4 sm:$0xff]  }
  0xf4   : > { %881 = vrot.lane.b32.xlu1 %v9498_v44, %s10998_s25  ;;  %879 = vrot.lane.b32.xlu0 %v9499_v45, %s10998_s25  ;;  %v9524_v44 = vld [vmem:[%s11295_s24 + $0x34] ss:$0 sps:$4 sm:$0xff]   ;;  %v9525_v45 = vld [vmem:[%s11295_s24 + $0x30] ss:$0 sps:$4 sm:$0xff]   ;;  %s11001_s13 = smov 127   ;;  %vm2485_vm6 = vcmask 1039360  }
  0xf5   : > { %1905 = vmatprep.subr.bf16.mxu0 %v9586_v25  ;;  %2058 = vmatprep.subr.bf16.mxu1 %v9588_v26  ;;  %v676_v2 = vld [vmem:[%s11295_s24 + $0x4] sm:$0xf]  ;;  %v9602_v18 = vld [vmem:[%s11295_s24 + $0x4c] ss:$0 sps:$4 sm:$0xff]   ;;  %v9607_v34 = vld [vmem:[%s11295_s24 + $0x50] ss:$0 sps:$4 sm:$0xff]  }
  0xf6   : > { %v9601_v13 = vld [vmem:[%s11295_s24 + $0x44] ss:$0 sps:$4 sm:$0xff]   ;;  %v677_v35 = vld [vmem:[%s11295_s24 + $0x8] sm:$0xf]  ;;  %vm11003_vm7 = vmmov 0   ;;  %s8293_s22 = sshll.u32 %s11292_s12, 3 }
  0xf7   : > { %1906 = vmatpush1.bf16.msra.mxu0 %v9590_v27  ;;  %2059 = vmatpush1.bf16.msra.mxu1 %v9591_v29  ;;  %v9604_v27 = vld [vmem:[%s11295_s24 + $0x50] ss:$0 sps:$4 sm:$0xff]   ;;  %v9605_v29 = vld [vmem:[%s11295_s24 + $0x4c] ss:$0 sps:$4 sm:$0xff]   ;;  %s9175_s15 = sshll.u32 %s11086_s21, 7  ;;  %s673_s23 = scalar_lea.vmem [#allocation23], %s8293_s22 }
  0xf8   : > { %1001 = vrot.lane.b32.xlu1 %v9500_v46, %s10997_s30  ;;  %999 = vrot.lane.b32.xlu0 %v9501_v51, %s10997_s30  ;;  %v9526_v46 = vld [vmem:[%s11295_s24 + $0x38] ss:$0 sps:$4 sm:$0xff]   ;;  %v9537_v51 = vld [vmem:[%s11295_s24 + $0x34] ss:$0 sps:$4 sm:$0xff]   ;;  %s8105_s29 = sshll.u32 %s673_s23, 4  ;;  %s12570_s27 = scalar_lea.hbm %s12624_s11, %s9175_s15  ;;  %s12572_s29 = int_to_ptr.vmem [resolvable:$true] %s8105_s29 }
  0xf9   : > { %8546 = vmatprep.subr.msk.bf16.mxu0 %vm1878_vm0, %v9594_v32  ;;  %8559 = vmatprep.subr.msk.bf16.mxu1 %vm1878_vm0, %v9596_v33  ;;  %v678_v32 = vld [vmem:[%s11295_s24 + $0xc] sm:$0xf]  ;;  %s8092_s16 = scalar_lea.sflag [#allocation8], %s11292_s12  ;;  %p12696_p13 = scmp.ne.s32.totalorder %s12649_s28, 0 }
  0xfa   : > { %s11004_s21 = smov [#allocation23]  }
  0xfb   : > { %1922 = vmatpush2.bf16.msra.mxu0 %v1880_v36  ;;  %2075 = vmatpush2.bf16.msra.mxu1 %v1886_v37  ;;  %v9608_v37 = vld [vmem:[%s11295_s24 + $0x50] ss:$0 sps:$4 sm:$0xff]  }
  0xfc   : > { %1121 = vrot.lane.b32.xlu1 %v9502_v52, %s10999_s26  ;;  %1119 = vrot.lane.b32.xlu0 %v9503_v57, %s10999_s26  ;;  %v9544_v52 = vld [vmem:[%s11295_s24 + $0x3c] ss:$0 sps:$4 sm:$0xff]   ;;  %v9561_v57 = vld [vmem:[%s11295_s24 + $0x40] ss:$0 sps:$4 sm:$0xff]  }
 0x100   : > { %1241 = vrot.lane.b32.xlu1 %v9504_v58, %s11000_s2  ;;  %1239 = vrot.lane.b32.xlu0 %v9505_v63, %s11000_s2  ;;  %v9568_v58 = vld [vmem:[%s11295_s24 + $0x40] ss:$0 sps:$4 sm:$0xff]   ;;  %v9584_v63 = vld [vmem:[%s11295_s24 + $0x48] ss:$0 sps:$4 sm:$0xff]  }
 0x104   : > { %885 = vrot.lane.b32.xlu1 %v9506_v0, %s10998_s25  ;;  %883 = vrot.lane.b32.xlu0 %v9507_v5, %s10998_s25  ;;  %v9592_v5 = vld [vmem:[%s11295_s24 + $0x4c] ss:$0 sps:$4 sm:$0xff]  }
 0x108   : > { %1005 = vrot.lane.b32.xlu1 %v9508_v6, %s10997_s30  ;;  %1003 = vrot.lane.b32.xlu0 %v9509_v11, %s10997_s30 }
 0x10c   : > { %1125 = vrot.lane.b32.xlu1 %v9510_v14, %s10999_s26  ;;  %1123 = vrot.lane.b32.xlu0 %v9511_v17, %s10999_s26 }
 0x110   : > { %1245 = vrot.lane.b32.xlu1 %v9512_v19, %s11000_s2  ;;  %1243 = vrot.lane.b32.xlu0 %v9513_v22, %s11000_s2  ;;  %v9603_v22 = vld [vmem:[%s11295_s24 + $0x48] ss:$0 sps:$4 sm:$0xff]  }
 0x114   : > { %889 = vrot.lane.b32.xlu1 %v9514_v24, %s10998_s25  ;;  %887 = vrot.lane.b32.xlu0 %v9515_v28, %s10998_s25 }
 0x118   : > { %1009 = vrot.lane.b32.xlu1 %v9516_v30, %s10997_s30  ;;  %1007 = vrot.lane.b32.xlu0 %v9517_v31, %s10997_s30  ;;  %v9606_v31 = vld [vmem:[%s11295_s24 + $0x54] ss:$0 sps:$4 sm:$0xff]  }
 0x11c   : > { %1129 = vrot.lane.b32.xlu1 %v9518_v38, %s10999_s26  ;;  %1127 = vrot.lane.b32.xlu0 %v9519_v39, %s10999_s26  ;;  %v9609_v39 = vld [vmem:[%s11295_s24 + $0x4c] ss:$0 sps:$4 sm:$0xff]  }
 0x120   : > { %1249 = vrot.lane.b32.xlu1 %v9520_v40, %s11000_s2  ;;  %1247 = vrot.lane.b32.xlu0 %v9521_v41, %s11000_s2 }
 0x124   : > { %893 = vrot.lane.b32.xlu1 %v9522_v42, %s10998_s25  ;;  %891 = vrot.lane.b32.xlu0 %v9523_v43, %s10998_s25 }
 0x128   : > { %1013 = vrot.lane.b32.xlu1 %v9524_v44, %s10997_s30  ;;  %1011 = vrot.lane.b32.xlu0 %v9525_v45, %s10997_s30 }
 0x12c   : > { %1133 = vrot.lane.b32.xlu1 %v9526_v46, %s10999_s26  ;;  %1131 = vrot.lane.b32.xlu0 %v9527_v47, %s10999_s26  ;;  %v9610_v46 = vld [vmem:[%s11295_s24 + $0x54] ss:$0 sps:$4 sm:$0xff]  }
 0x130   : > { %1253 = vrot.lane.b32.xlu1 %v9528_v48, %s11000_s2  ;;  %1251 = vrot.lane.b32.xlu0 %v9529_v49, %s11000_s2 }
 0x134   : > { %897 = vrot.lane.b32.xlu1 %v9536_v50, %s10998_s25  ;;  %895 = vrot.lane.b32.xlu0 %v9537_v51, %s10998_s25  ;;  %v9611_v50 = vld [vmem:[%s11295_s24 + $0x50] ss:$0 sps:$4 sm:$0xff]  }
 0x138   : > { %1017 = vrot.lane.b32.xlu1 %v9544_v52, %s10997_s30  ;;  %1015 = vrot.lane.b32.xlu0 %v9545_v53, %s10997_s30 }
 0x13c   : > { %1137 = vrot.lane.b32.xlu1 %v9552_v54, %s10999_s26  ;;  %1135 = vrot.lane.b32.xlu0 %v9553_v55, %s10999_s26  ;;  %v9612_v55 = vld [vmem:[%s11295_s24 + $0x58] ss:$0 sps:$4 sm:$0xff]  }
 0x140   : > { %1257 = vrot.lane.b32.xlu1 %v9560_v56, %s11000_s2  ;;  %1255 = vrot.lane.b32.xlu0 %v9561_v57, %s11000_s2  ;;  %v9613_v57 = vld [vmem:[%s11295_s24 + $0x54] ss:$0 sps:$4 sm:$0xff]  }
 0x144   : > { %901 = vrot.lane.b32.xlu1 %v9568_v58, %s10998_s25  ;;  %899 = vrot.lane.b32.xlu0 %v9569_v59, %s10998_s25  ;;  %v9614_v59 = vld [vmem:[%s11295_s24 + $0x5c] ss:$0 sps:$4 sm:$0xff]  }
 0x146   : > { %v992_v62 = vpop.permute.xlu1 %991  ;;  %v872_v0 = vpop.permute.xlu0 %871 }
 0x147   : > { %v1282_v11 = vsel %vm1279_vm1, %v675_v3, %v872_v0  ;;  %v9617_v3 = vld [vmem:[%s11295_s24 + $0x54] ss:$0 sps:$4 sm:$0xff]  }
 0x148   : > { %1021 = vrot.lane.b32.xlu1 %v9576_v60, %s10997_s30  ;;  %1019 = vrot.lane.b32.xlu0 %v9577_v61, %s10997_s30  ;;  %v1354_v16 = vsel %vm1352_vm2, %v1282_v11, %v992_v62  ;;  %v680_v60 = vld [vmem:[%s11295_s24 + $0x14] sm:$0xf]  ;;  %v9615_v62 = vld [vmem:[%s11295_s24 + $0x58] ss:$0 sps:$4 sm:$0xff]  }
 0x14a   : > { %v994_v4 = vpop.permute.xlu1 %993  ;;  %v874_v6 = vpop.permute.xlu0 %873 }
 0x14b   : > { %v1285_v8 = vsel %vm1279_vm1, %v676_v2, %v874_v6 }
 0x14c   : > { %1141 = vrot.lane.b32.xlu1 %v9584_v63, %s10999_s26  ;;  %1139 = vrot.lane.b32.xlu0 %v9585_v1, %s10999_s26  ;;  %v1356_v14 = vsel %vm1352_vm2, %v1285_v8, %v994_v4  ;;  %v679_v63 = vld [vmem:[%s11295_s24 + $0x10] sm:$0xf]  ;;  %v9616_v1 = vld [vmem:[%s11295_s24 + $0x58] ss:$0 sps:$4 sm:$0xff]  }
 0x14e   : > { %v1114_v9 = vpop.permute.xlu1 %1113  ;;  %v1112_v12 = vpop.permute.xlu0 %1111 }
 0x14f   : > { %v1405_v15 = vsel %vm1401_vm3, %v1356_v14, %v1114_v9  ;;  %v1403_v19 = vsel %vm1401_vm3, %v1354_v16, %v1112_v12  ;;  %v9619_v14 = vld [vmem:[%s11295_s24 + $0x58] ss:$0 sps:$4 sm:$0xff]  }
 0x150   : > { %1261 = vrot.lane.b32.xlu1 %v9592_v5, %s11000_s2  ;;  %1259 = vrot.lane.b32.xlu0 %v9593_v7, %s11000_s2 }
 0x152   : > { %v1234_v17 = vpop.permute.xlu1 %1233  ;;  %v1232_v21 = vpop.permute.xlu0 %1231 }
 0x153   : > { %v1454_v20 = vsel %vm1450_vm4, %v1405_v15, %v1234_v17  ;;  %v1452_v23 = vsel %vm1450_vm4, %v1403_v19, %v1232_v21  ;;  %v8487_v24 = vcombine.low %v1232_v21, %v1234_v17  ;;  %v9620_v19 = vld [vmem:[%s11295_s24 + $0x60] ss:$0 sps:$4 sm:$0xff]   ;;  %v9621_v21 = vld [vmem:[%s11295_s24 + $0x5c] ss:$0 sps:$4 sm:$0xff]  }
 0x154   : > { %905 = vrot.lane.b32.xlu1 %v9600_v10, %s10998_s25  ;;  %903 = vrot.lane.b32.xlu0 %v9601_v13, %s10998_s25  ;;  %v8486_v25 = vcombine.low %v1452_v23, %v1454_v20  ;;  %v9618_v10 = vld [vmem:[%s11295_s24 + $0x5c] ss:$0 sps:$4 sm:$0xff]   ;;  %v9622_v23 = vld [vmem:[%s11295_s24 + $0x64] ss:$0 sps:$4 sm:$0xff]  }
 0x155   : > { %8547 = vmatprep.mubr.msk.bf16.mxu0 %vm1841_vm5, %v8487_v24  ;;  %8560 = vmatprep.mubr.msk.bf16.mxu1 %vm1841_vm5, %v8487_v24  ;;  %v682_v24 = vld [vmem:[%s11295_s24 + $0x1c] sm:$0xf] }
 0x156   : > { %v878_v26 = vpop.permute.xlu1 %877  ;;  %v876_v28 = vpop.permute.xlu0 %875  ;;  %1924 = vmatmul.mubr.bf16.vlgmr.msra.gmra.mxu0 %v8486_v25  ;;  %2077 = vmatmul.mubr.bf16.vlgmr.msra.gmra.mxu1 %v8486_v25 }
 0x157   : > { %v1291_v40 = vsel %vm1279_vm1, %v678_v32, %v878_v26  ;;  %v1288_v41 = vsel %vm1279_vm1, %v677_v35, %v876_v28  ;;  %v9623_v26 = vld [vmem:[%s11295_s24 + $0x60] ss:$0 sps:$4 sm:$0xff]  }
 0x158   : > { %1025 = vrot.lane.b32.xlu1 %v9602_v18, %s10997_s30  ;;  %1023 = vrot.lane.b32.xlu0 %v9603_v22, %s10997_s30 }
 0x15a   : > { %v998_v30 = vpop.permute.xlu1 %997  ;;  %v996_v33 = vpop.permute.xlu0 %995 }
 0x15b   : > { %v1360_v42 = vsel %vm1352_vm2, %v1291_v40, %v998_v30  ;;  %v1358_v43 = vsel %vm1352_vm2, %v1288_v41, %v996_v33 }
 0x15c   : > { %1145 = vrot.lane.b32.xlu1 %v9604_v27, %s10999_s26  ;;  %1143 = vrot.lane.b32.xlu0 %v9605_v29, %s10999_s26  ;;  %v681_v27 = vld [vmem:[%s11295_s24 + $0x18] sm:$0xf]  ;;  %v9624_v29 = vld [vmem:[%s11295_s24 + $0x60] ss:$0 sps:$4 sm:$0xff]  }
 0x15e   : > { %v1118_v36 = vpop.permute.xlu1 %1117  ;;  %v1116_v38 = vpop.permute.xlu0 %1115 }
 0x15f   : > { %v1409_v44 = vsel %vm1401_vm3, %v1360_v42, %v1118_v36  ;;  %v1407_v47 = vsel %vm1401_vm3, %v1358_v43, %v1116_v38  ;;  %v9626_v38 = vld [vmem:[%s11295_s24 + $0x64] ss:$0 sps:$4 sm:$0xff]   ;;  %v9627_v42 = vld [vmem:[%s11295_s24 + $0x60] ss:$0 sps:$4 sm:$0xff]  }
 0x160   : > { %1265 = vrot.lane.b32.xlu1 %v9606_v31, %s11000_s2  ;;  %1263 = vrot.lane.b32.xlu0 %v9607_v34, %s11000_s2  ;;  %v9625_v31 = vld [vmem:[%s11295_s24 + $0x5c] ss:$0 sps:$4 sm:$0xff]  }
 0x162   : > { %v1238_v45 = vpop.permute.xlu1 %1237  ;;  %v1236_v49 = vpop.permute.xlu0 %1235 }
 0x163   : > { %v1458_v48 = vsel %vm1450_vm4, %v1409_v44, %v1238_v45  ;;  %v1456_v51 = vsel %vm1450_vm4, %v1407_v47, %v1236_v49  ;;  %v8489_v52 = vcombine.low %v1236_v49, %v1238_v45  ;;  %v9628_v47 = vld [vmem:[%s11295_s24 + $0x68] ss:$0 sps:$4 sm:$0xff]   ;;  %v9629_v49 = vld [vmem:[%s11295_s24 + $0x64] ss:$0 sps:$4 sm:$0xff]  }
 0x164   : > { %909 = vrot.lane.b32.xlu1 %v9608_v37, %s10998_s25  ;;  %907 = vrot.lane.b32.xlu0 %v9609_v39, %s10998_s25  ;;  %v8488_v53 = vcombine.low %v1456_v51, %v1458_v48  ;;  %v9630_v51 = vld [vmem:[%s11295_s24 + $0x6c] ss:$0 sps:$4 sm:$0xff]  }
 0x165   : > { %8548 = vmatprep.mubr.msk.bf16.mxu0 %vm1841_vm5, %v8489_v52  ;;  %8561 = vmatprep.mubr.msk.bf16.mxu1 %vm1841_vm5, %v8489_v52  ;;  %v684_v52 = vld [vmem:[%s11295_s24 + $0x24] sm:$0xf] }
 0x166   : > { %v882_v54 = vpop.permute.xlu1 %881  ;;  %v880_v56 = vpop.permute.xlu0 %879  ;;  %1934 = vmatmul.mubr.bf16.gmra.mxu0 %v8488_v53  ;;  %2087 = vmatmul.mubr.bf16.gmra.mxu1 %v8488_v53 }
 0x167   : > { %v1297_v4 = vsel %vm1279_vm1, %v680_v60, %v882_v54  ;;  %v1294_v5 = vsel %vm1279_vm1, %v679_v63, %v880_v56  ;;  %v9631_v54 = vld [vmem:[%s11295_s24 + $0x68] ss:$0 sps:$4 sm:$0xff]  }
 0x168   : > { %1029 = vrot.lane.b32.xlu1 %v9610_v46, %s10997_s30  ;;  %1027 = vrot.lane.b32.xlu0 %v9611_v50, %s10997_s30 }
 0x16a   : > { %v1002_v58 = vpop.permute.xlu1 %1001  ;;  %v1000_v61 = vpop.permute.xlu0 %999 }
 0x16b   : > { %v1364_v6 = vsel %vm1352_vm2, %v1297_v4, %v1002_v58  ;;  %v1362_v7 = vsel %vm1352_vm2, %v1294_v5, %v1000_v61 }
 0x16c   : > { %1149 = vrot.lane.b32.xlu1 %v9612_v55, %s10999_s26  ;;  %1147 = vrot.lane.b32.xlu0 %v9613_v57, %s10999_s26  ;;  %v683_v55 = vld [vmem:[%s11295_s24 + $0x20] sm:$0xf] }
 0x16e   : > { %v1122_v0 = vpop.permute.xlu1 %1121  ;;  %v1120_v2 = vpop.permute.xlu0 %1119 }
 0x16f   : > { %v1413_v8 = vsel %vm1401_vm3, %v1364_v6, %v1122_v0  ;;  %v1411_v11 = vsel %vm1401_vm3, %v1362_v7, %v1120_v2 }
 0x170   : > { %1269 = vrot.lane.b32.xlu1 %v9614_v59, %s11000_s2  ;;  %1267 = vrot.lane.b32.xlu0 %v9615_v62, %s11000_s2 }
 0x172   : > { %v1242_v9 = vpop.permute.xlu1 %1241  ;;  %v1240_v13 = vpop.permute.xlu0 %1239 }
 0x173   : > { %v1462_v12 = vsel %vm1450_vm4, %v1413_v8, %v1242_v9  ;;  %v1460_v15 = vsel %vm1450_vm4, %v1411_v11, %v1240_v13  ;;  %v8491_v16 = vcombine.low %v1240_v13, %v1242_v9  ;;  %v686_v9 = vld [vmem:[%s11295_s24 + $0x2c] sm:$0xf]  ;;  %v685_v11 = vld [vmem:[%s11295_s24 + $0x28] sm:$0xf] }
 0x174   : > { %913 = vrot.lane.b32.xlu1 %v9616_v1, %s10998_s25  ;;  %911 = vrot.lane.b32.xlu0 %v9617_v3, %s10998_s25  ;;  %v8490_v17 = vcombine.low %v1460_v15, %v1462_v12 }
 0x175   : > { %8549 = vmatprep.mubr.msk.bf16.mxu0 %vm1841_vm5, %v8491_v16  ;;  %8562 = vmatprep.mubr.msk.bf16.mxu1 %vm1841_vm5, %v8491_v16 }
 0x176   : > { %v886_v18 = vpop.permute.xlu1 %885  ;;  %v884_v20 = vpop.permute.xlu0 %883  ;;  %1944 = vmatmul.mubr.bf16.gmra.mxu0 %v8490_v17  ;;  %2097 = vmatmul.mubr.bf16.gmra.mxu1 %v8490_v17 }
 0x177   : > { %v1303_v32 = vsel %vm1279_vm1, %v682_v24, %v886_v18  ;;  %v1300_v33 = vsel %vm1279_vm1, %v681_v27, %v884_v20 }
 0x178   : > { %1033 = vrot.lane.b32.xlu1 %v9618_v10, %s10997_s30  ;;  %1031 = vrot.lane.b32.xlu0 %v9619_v14, %s10997_s30 }
 0x17a   : > { %v1006_v22 = vpop.permute.xlu1 %1005  ;;  %v1004_v25 = vpop.permute.xlu0 %1003 }
 0x17b   : > { %v1368_v34 = vsel %vm1352_vm2, %v1303_v32, %v1006_v22  ;;  %v1366_v35 = vsel %vm1352_vm2, %v1300_v33, %v1004_v25 }
 0x17c   : > { %1153 = vrot.lane.b32.xlu1 %v9620_v19, %s10999_s26  ;;  %1151 = vrot.lane.b32.xlu0 %v9621_v21, %s10999_s26 }
 0x17e   : > { %v1126_v28 = vpop.permute.xlu1 %1125  ;;  %v1124_v30 = vpop.permute.xlu0 %1123 }
 0x17f   : > { %v1417_v36 = vsel %vm1401_vm3, %v1368_v34, %v1126_v28  ;;  %v1415_v39 = vsel %vm1401_vm3, %v1366_v35, %v1124_v30 }
 0x180   : > { %1273 = vrot.lane.b32.xlu1 %v9622_v23, %s11000_s2  ;;  %1271 = vrot.lane.b32.xlu0 %v9623_v26, %s11000_s2 }
 0x182   : > { %v1246_v37 = vpop.permute.xlu1 %1245  ;;  %v1244_v41 = vpop.permute.xlu0 %1243 }
 0x183   : > { %v1466_v40 = vsel %vm1450_vm4, %v1417_v36, %v1246_v37  ;;  %v1464_v43 = vsel %vm1450_vm4, %v1415_v39, %v1244_v41  ;;  %v8493_v44 = vcombine.low %v1244_v41, %v1246_v37 }
 0x184   : > { %917 = vrot.lane.b32.xlu1 %v9624_v29, %s10998_s25  ;;  %915 = vrot.lane.b32.xlu0 %v9625_v31, %s10998_s25  ;;  %v8492_v45 = vcombine.low %v1464_v43, %v1466_v40  ;;  %v688_v29 = vld [vmem:[%s11295_s24 + $0x34] sm:$0xf]  ;;  %v687_v31 = vld [vmem:[%s11295_s24 + $0x30] sm:$0xf] }
 0x185   : > { %8550 = vmatprep.mubr.msk.bf16.mxu0 %vm1841_vm5, %v8493_v44  ;;  %8563 = vmatprep.mubr.msk.bf16.mxu1 %vm1841_vm5, %v8493_v44 }
 0x186   : > { %v890_v46 = vpop.permute.xlu1 %889  ;;  %v888_v48 = vpop.permute.xlu0 %887  ;;  %1954 = vmatmul.mubr.bf16.gmra.mxu0 %v8492_v45  ;;  %2107 = vmatmul.mubr.bf16.gmra.mxu1 %v8492_v45 }
 0x187   : > { %v1309_v58 = vsel %vm1279_vm1, %v684_v52, %v890_v46  ;;  %v1306_v59 = vsel %vm1279_vm1, %v683_v55, %v888_v48 }
 0x188   : > { %1037 = vrot.lane.b32.xlu1 %v9626_v38, %s10997_s30  ;;  %1035 = vrot.lane.b32.xlu0 %v9627_v42, %s10997_s30  ;;  %s10899_s30 = sshll.u32 %s11004_s21, 4  ;;  %s10900_s30 = int_to_ptr.vmem [resolvable:$false] %s10899_s30 }
 0x189   : > { %s10901_s25 = scalar_lea.vmem %s10900_s30, 256  ;;  %p10902_p5 = scmp.lt.s32.totalorder %s12572_s29, %s10900_s30 }
 0x18a   : > { %v1010_v50 = vpop.permute.xlu1 %1009  ;;  %v1008_v53 = vpop.permute.xlu0 %1007 }
 0x18b   : > { %v1372_v60 = vsel %vm1352_vm2, %v1309_v58, %v1010_v50  ;;  %v1370_v61 = vsel %vm1352_vm2, %v1306_v59, %v1008_v53 }
 0x18c   : > { %1157 = vrot.lane.b32.xlu1 %v9628_v47, %s10999_s26  ;;  %1155 = vrot.lane.b32.xlu0 %v9629_v49, %s10999_s26  ;;  %v690_v49 = vld [vmem:[%s11295_s24 + $0x3c] sm:$0xf] }
 0x18e   : > { %v1130_v56 = vpop.permute.xlu1 %1129  ;;  %v1128_v57 = vpop.permute.xlu0 %1127 }
 0x18f   : > { %v1421_v62 = vsel %vm1401_vm3, %v1372_v60, %v1130_v56  ;;  %v1419_v0 = vsel %vm1401_vm3, %v1370_v61, %v1128_v57 }
 0x190   : > { %1277 = vrot.lane.b32.xlu1 %v9630_v51, %s11000_s2  ;;  %1275 = vrot.lane.b32.xlu0 %v9631_v54, %s11000_s2  ;;  %v689_v51 = vld [vmem:[%s11295_s24 + $0x38] sm:$0xf] }
 0x192   : > { %v1250_v63 = vpop.permute.xlu1 %1249  ;;  %v1248_v2 = vpop.permute.xlu0 %1247 }
 0x193   : > { %v1470_v1 = vsel %vm1450_vm4, %v1421_v62, %v1250_v63  ;;  %v1468_v3 = vsel %vm1450_vm4, %v1419_v0, %v1248_v2  ;;  %v8495_v4 = vcombine.low %v1248_v2, %v1250_v63 }
 0x194   : > { %v8494_v5 = vcombine.low %v1468_v3, %v1470_v1 }
 0x195   : > { %8551 = vmatprep.mubr.msk.bf16.mxu0 %vm1841_vm5, %v8495_v4  ;;  %8564 = vmatprep.mubr.msk.bf16.mxu1 %vm1841_vm5, %v8495_v4 }
 0x196   : > { %v894_v6 = vpop.permute.xlu1 %893  ;;  %v892_v7 = vpop.permute.xlu0 %891  ;;  %1964 = vmatmul.mubr.bf16.gmra.mxu0 %v8494_v5  ;;  %2117 = vmatmul.mubr.bf16.gmra.mxu1 %v8494_v5  ;;  %v692_v5 = vld [vmem:[%s11295_s24 + $0x44] sm:$0xf] }
 0x197   : > { %v1315_v14 = vsel %vm1279_vm1, %v686_v9, %v894_v6  ;;  %v1312_v15 = vsel %vm1279_vm1, %v685_v11, %v892_v7  ;;  %v691_v7 = vld [vmem:[%s11295_s24 + $0x40] sm:$0xf] }
 0x19a   : > { %v1014_v8 = vpop.permute.xlu1 %1013  ;;  %v1012_v10 = vpop.permute.xlu0 %1011 }
 0x19b   : > { %v1376_v16 = vsel %vm1352_vm2, %v1315_v14, %v1014_v8  ;;  %v1374_v17 = vsel %vm1352_vm2, %v1312_v15, %v1012_v10 }
 0x19e   : > { %v1134_v12 = vpop.permute.xlu1 %1133  ;;  %v1132_v13 = vpop.permute.xlu0 %1131 }
 0x19f   : > { %v1425_v18 = vsel %vm1401_vm3, %v1376_v16, %v1134_v12  ;;  %v1423_v20 = vsel %vm1401_vm3, %v1374_v17, %v1132_v13 }
 0x1a2   : > { %v1254_v19 = vpop.permute.xlu1 %1253  ;;  %v1252_v22 = vpop.permute.xlu0 %1251 }
 0x1a3   : > { %v1474_v21 = vsel %vm1450_vm4, %v1425_v18, %v1254_v19  ;;  %v1472_v23 = vsel %vm1450_vm4, %v1423_v20, %v1252_v22  ;;  %v8497_v24 = vcombine.low %v1252_v22, %v1254_v19  ;;  %v694_v22 = vld [vmem:[%s11295_s24 + $0x4c] sm:$0xf] }
 0x1a4   : > { %v8496_v25 = vcombine.low %v1472_v23, %v1474_v21 }
 0x1a5   : > { %8552 = vmatprep.mubr.msk.bf16.mxu0 %vm1841_vm5, %v8497_v24  ;;  %8565 = vmatprep.mubr.msk.bf16.mxu1 %vm1841_vm5, %v8497_v24  ;;  %v693_v24 = vld [vmem:[%s11295_s24 + $0x48] sm:$0xf] }
 0x1a6   : > { %v898_v26 = vpop.permute.xlu1 %897  ;;  %v896_v27 = vpop.permute.xlu0 %895  ;;  %1974 = vmatmul.mubr.bf16.gmra.mxu0 %v8496_v25  ;;  %2127 = vmatmul.mubr.bf16.gmra.mxu1 %v8496_v25 }
 0x1a7   : > { %v1321_v34 = vsel %vm1279_vm1, %v688_v29, %v898_v26  ;;  %v1318_v35 = vsel %vm1279_vm1, %v687_v31, %v896_v27 }
 0x1aa   : > { %v1018_v28 = vpop.permute.xlu1 %1017  ;;  %v1016_v30 = vpop.permute.xlu0 %1015 }
 0x1ab   : > { %v1380_v36 = vsel %vm1352_vm2, %v1321_v34, %v1018_v28  ;;  %v1378_v37 = vsel %vm1352_vm2, %v1318_v35, %v1016_v30 }
 0x1ae   : > { %v1138_v32 = vpop.permute.xlu1 %1137  ;;  %v1136_v33 = vpop.permute.xlu0 %1135 }
 0x1af   : > { %v1429_v38 = vsel %vm1401_vm3, %v1380_v36, %v1138_v32  ;;  %v1427_v40 = vsel %vm1401_vm3, %v1378_v37, %v1136_v33 }
 0x1b2   : > { %v1258_v39 = vpop.permute.xlu1 %1257  ;;  %v1256_v42 = vpop.permute.xlu0 %1255 }
 0x1b3   : > { %v1478_v41 = vsel %vm1450_vm4, %v1429_v38, %v1258_v39  ;;  %v1476_v43 = vsel %vm1450_vm4, %v1427_v40, %v1256_v42  ;;  %v8499_v44 = vcombine.low %v1256_v42, %v1258_v39  ;;  %v696_v42 = vld [vmem:[%s11295_s24 + $0x54] sm:$0xf] }
 0x1b4   : > { %v8498_v45 = vcombine.low %v1476_v43, %v1478_v41 }
 0x1b5   : > { %8553 = vmatprep.mubr.msk.bf16.mxu0 %vm1841_vm5, %v8499_v44  ;;  %8566 = vmatprep.mubr.msk.bf16.mxu1 %vm1841_vm5, %v8499_v44  ;;  %v695_v44 = vld [vmem:[%s11295_s24 + $0x50] sm:$0xf] }
 0x1b6   : > { %v902_v46 = vpop.permute.xlu1 %901  ;;  %v900_v47 = vpop.permute.xlu0 %899  ;;  %1984 = vmatmul.mubr.bf16.gmra.mxu0 %v8498_v45  ;;  %2137 = vmatmul.mubr.bf16.gmra.mxu1 %v8498_v45 }
 0x1b7   : > { %v1327_v54 = vsel %vm1279_vm1, %v690_v49, %v902_v46  ;;  %v1324_v55 = vsel %vm1279_vm1, %v689_v51, %v900_v47  ;;  %v9634_v46 = vld [vmem:[#allocation11 + $0x74] ss:$8 sps:$4 sm:$0xff]   ;;  %v9632_v47 = vld [vmem:[#allocation11 + $0x70] ss:$8 sps:$4 sm:$0xff]  }
 0x1b8   : > { %3039 = vmatprep.subr.bf16.mxu0 %v9634_v46 }
 0x1b9   : > { %3040 = vmatpush1.bf16.msra.mxu0 %v9632_v47  ;;  %v9674_v47 = vld [vmem:[#allocation11] ss:$8 sps:$4 sm:$0xff]  }
 0x1ba   : > { %v1022_v48 = vpop.permute.xlu1 %1021  ;;  %v1020_v50 = vpop.permute.xlu0 %1019 }
 0x1bb   : > { %v1384_v56 = vsel %vm1352_vm2, %v1327_v54, %v1022_v48  ;;  %v1382_v57 = vsel %vm1352_vm2, %v1324_v55, %v1020_v50  ;;  %v9637_v50 = vld [vmem:[#allocation11 + $0x174] ss:$8 sps:$4 sm:$0xff]   ;;  %v9640_v54 = vld [vmem:[#allocation11 + $0x64] ss:$8 sps:$4 sm:$0xff]  }
 0x1bc   : > { %3192 = vmatprep.subr.bf16.mxu1 %v9637_v50  ;;  %3041 = vmatprep.subr.bf16.mxu0 %v9640_v54  ;;  %v1609_v50 = vlaneseq  ;;  %v9683_v54 = vld [vmem:[#allocation11 + $0x1f0] ss:$8 sps:$4 sm:$0xff]  }
 0x1be   : > { %v1142_v52 = vpop.permute.xlu1 %1141  ;;  %v1140_v53 = vpop.permute.xlu0 %1139 }
 0x1bf   : > { %v1433_v58 = vsel %vm1401_vm3, %v1384_v56, %v1142_v52  ;;  %v1431_v60 = vsel %vm1401_vm3, %v1382_v57, %v1140_v53  ;;  %v9635_v53 = vld [vmem:[#allocation11 + $0x170] ss:$8 sps:$4 sm:$0xff]   ;;  %v9638_v56 = vld [vmem:[#allocation11 + $0x60] ss:$8 sps:$4 sm:$0xff]  }
 0x1c0   : > { %3193 = vmatpush1.bf16.msra.mxu1 %v9635_v53  ;;  %3042 = vmatpush1.bf16.msra.mxu0 %v9638_v56  ;;  %v9685_v53 = vld [vmem:[#allocation11 + $0x1f4] ss:$8 sps:$4 sm:$0xff]   ;;  %v9688_v56 = vld [vmem:[#allocation11 + $0xe4] ss:$8 sps:$4 sm:$0xff]  }
 0x1c2   : > { %v1262_v59 = vpop.permute.xlu1 %1261  ;;  %v1260_v62 = vpop.permute.xlu0 %1259 }
 0x1c3   : > { %v1482_v61 = vsel %vm1450_vm4, %v1433_v58, %v1262_v59  ;;  %v1480_v63 = vsel %vm1450_vm4, %v1431_v60, %v1260_v62  ;;  %v8501_v0 = vcombine.low %v1260_v62, %v1262_v59  ;;  %v9643_v59 = vld [vmem:[#allocation11 + $0x164] ss:$8 sps:$4 sm:$0xff]  }
 0x1c4   : > { %v8500_v1 = vcombine.low %v1480_v63, %v1482_v61  ;;  %v9641_v61 = vld [vmem:[#allocation11 + $0x160] ss:$8 sps:$4 sm:$0xff]   ;;  %3194 = vmatprep.subr.bf16.mxu1 %v9643_v59  ;;  %v9646_v63 = vld [vmem:[#allocation11 + $0x54] ss:$8 sps:$4 sm:$0xff]  }
 0x1c5   : > { %8554 = vmatprep.mubr.msk.bf16.mxu0 %vm1841_vm5, %v8501_v0  ;;  %8567 = vmatprep.mubr.msk.bf16.mxu1 %vm1841_vm5, %v8501_v0  ;;  %v9689_v59 = vld [vmem:[#allocation11 + $0x1e0] ss:$8 sps:$4 sm:$0xff]  }
 0x1c6   : > { %v906_v2 = vpop.permute.xlu1 %905  ;;  %v904_v3 = vpop.permute.xlu0 %903  ;;  %1994 = vmatmul.mubr.bf16.gmra.mxu0 %v8500_v1  ;;  %2147 = vmatmul.mubr.bf16.gmra.mxu1 %v8500_v1  ;;  %v9644_v1 = vld [vmem:[#allocation11 + $0x50] ss:$8 sps:$4 sm:$0xff]  }
 0x1c7   : > { %v1333_v10 = vsel %vm1279_vm1, %v692_v5, %v906_v2  ;;  %v1330_v11 = vsel %vm1279_vm1, %v691_v7, %v904_v3  ;;  %3195 = vmatpush1.bf16.msra.mxu1 %v9641_v61  ;;  %3043 = vmatprep.subr.bf16.mxu0 %v9646_v63  ;;  %v9647_v3 = vld [vmem:[#allocation11 + $0x150] ss:$8 sps:$4 sm:$0xff]   ;;  %v9694_v61 = vld [vmem:[#allocation11 + $0xd4] ss:$8 sps:$4 sm:$0xff]  }
 0x1c8   : > { %3044 = vmatpush1.bf16.msra.mxu0 %v9644_v1  ;;  %v9692_v63 = vld [vmem:[#allocation11 + $0xd0] ss:$8 sps:$4 sm:$0xff]  }
 0x1c9   : > { %v9695_v1 = vld [vmem:[#allocation11 + $0x1d0] ss:$8 sps:$4 sm:$0xff]  }
 0x1ca   : > { %v1026_v4 = vpop.permute.xlu1 %1025  ;;  %v1024_v6 = vpop.permute.xlu0 %1023 }
 0x1cb   : > { %v1388_v12 = vsel %vm1352_vm2, %v1333_v10, %v1026_v4  ;;  %v1386_v13 = vsel %vm1352_vm2, %v1330_v11, %v1024_v6  ;;  %v9649_v4 = vld [vmem:[#allocation11 + $0x154] ss:$8 sps:$4 sm:$0xff]   ;;  %v9652_v10 = vld [vmem:[#allocation11 + $0x44] ss:$8 sps:$4 sm:$0xff]  }
 0x1cc   : > { %3196 = vmatprep.subr.bf16.mxu1 %v9649_v4  ;;  %3045 = vmatprep.subr.bf16.mxu0 %v9652_v10  ;;  %v9700_v4 = vld [vmem:[#allocation11 + $0xc4] ss:$8 sps:$4 sm:$0xff]  }
 0x1cd   : > { %3197 = vmatpush1.bf16.msra.mxu1 %v9647_v3 }
 0x1ce   : > { %v1146_v8 = vpop.permute.xlu1 %1145  ;;  %v1144_v9 = vpop.permute.xlu0 %1143 }
 0x1cf   : > { %v1437_v14 = vsel %vm1401_vm3, %v1388_v12, %v1146_v8  ;;  %v1435_v16 = vsel %vm1401_vm3, %v1386_v13, %v1144_v9  ;;  %v9650_v9 = vld [vmem:[#allocation11 + $0x40] ss:$8 sps:$4 sm:$0xff]  }
 0x1d0   : > { %v698_v12 = vld [vmem:[%s11295_s24 + $0x5c] sm:$0xf]  ;;  %3046 = vmatpush1.bf16.msra.mxu0 %v9650_v9 }
 0x1d2   : > { %v1266_v15 = vpop.permute.xlu1 %1265  ;;  %v1264_v18 = vpop.permute.xlu0 %1263 }
 0x1d3   : > { %v1486_v17 = vsel %vm1450_vm4, %v1437_v14, %v1266_v15  ;;  %v1484_v19 = vsel %vm1450_vm4, %v1435_v16, %v1264_v18  ;;  %v8503_v20 = vcombine.low %v1264_v18, %v1266_v15  ;;  %v697_v14 = vld [vmem:[%s11295_s24 + $0x58] sm:$0xf]  ;;  %s10895_s24 = scalar_lea.vmem %s12572_s29, 128 }
 0x1d4   : > { %v8502_v21 = vcombine.low %v1484_v19, %v1486_v17  ;;  %v9655_v15 = vld [vmem:[#allocation11 + $0x144] ss:$8 sps:$4 sm:$0xff]   ;;  %v9653_v17 = vld [vmem:[#allocation11 + $0x140] ss:$8 sps:$4 sm:$0xff]   ;;  %v9658_v18 = vld [vmem:[#allocation11 + $0x34] ss:$8 sps:$4 sm:$0xff]   ;;  %p10896_p0 = scmp.ne.s32.totalorder %s12572_s29, %s10895_s24  ;;  %p10903_p6 = scmp.lt.s32.totalorder %s10901_s25, %s10895_s24 }
 0x1d5   : > { %8555 = vmatprep.mubr.msk.bf16.mxu0 %vm1841_vm5, %v8503_v20  ;;  %8568 = vmatprep.mubr.msk.bf16.mxu1 %vm1841_vm5, %v8503_v20  ;;  %v9656_v19 = vld [vmem:[#allocation11 + $0x30] ss:$8 sps:$4 sm:$0xff]  }
 0x1d6   : > { %v910_v23 = vpop.permute.xlu1 %909  ;;  %v908_v25 = vpop.permute.xlu0 %907  ;;  %2004 = vmatmul.mubr.bf16.gmra.mxu0 %v8502_v21  ;;  %2157 = vmatmul.mubr.bf16.gmra.mxu1 %v8502_v21  ;;  %p10897_p2 = pnand %p10896_p0, %p12696_p13  ;;  %p10904_p10 = por %p10903_p6, %p10902_p5 }
 0x1d7   : > { %v1339_v26 = vsel %vm1279_vm1, %v694_v22, %v910_v23  ;;  %v1336_v28 = vsel %vm1279_vm1, %v693_v24, %v908_v25  ;;  %3198 = vmatprep.subr.bf16.mxu1 %v9655_v15  ;;  %3047 = vmatprep.subr.bf16.mxu0 %v9658_v18  ;;  %v9661_v22 = vld [vmem:[#allocation11 + $0x134] ss:$8 sps:$4 sm:$0xff]   ;;  %v9659_v25 = vld [vmem:[#allocation11 + $0x130] ss:$8 sps:$4 sm:$0xff]  }
 0x1d8   : > { %3199 = vmatpush1.bf16.msra.mxu1 %v9653_v17  ;;  %3048 = vmatpush1.bf16.msra.mxu0 %v9656_v19  ;;  %v9704_v18 = vld [vmem:[#allocation11 + $0xb0] ss:$8 sps:$4 sm:$0xff]   ;;  %p10898_p3 = pneg %p10897_p2 }
 0x1d9   : > { %3200 = vmatprep.subr.bf16.mxu1 %v9661_v22 }
 0x1da   : > { %v1030_v27 = vpop.permute.xlu1 %1029  ;;  %v1028_v29 = vpop.permute.xlu0 %1027  ;;  %p10905_p11 = pnand %p10904_p10, %p10898_p3 }
 0x1db   : > { %v1392_v30 = vsel %vm1352_vm2, %v1339_v26, %v1030_v27  ;;  %v1390_v31 = vsel %vm1352_vm2, %v1336_v28, %v1028_v29  ;;  %v9664_v26 = vld [vmem:[#allocation11 + $0x24] ss:$8 sps:$4 sm:$0xff]   ;;  %v9662_v28 = vld [vmem:[#allocation11 + $0x20] ss:$8 sps:$4 sm:$0xff]  }
 0x1dc   : > { %3201 = vmatpush1.bf16.msra.mxu1 %v9659_v25  ;;  %3049 = vmatprep.subr.bf16.mxu0 %v9664_v26 }
 0x1dd   : > { %3050 = vmatpush1.bf16.msra.mxu0 %v9662_v28 }
 0x1de   : > { %v1150_v32 = vpop.permute.xlu1 %1149  ;;  %v1148_v33 = vpop.permute.xlu0 %1147 }
 0x1df   : > { %v1441_v34 = vsel %vm1401_vm3, %v1392_v30, %v1150_v32  ;;  %v1439_v35 = vsel %vm1401_vm3, %v1390_v31, %v1148_v33  ;;  %v9667_v31 = vld [vmem:[#allocation11 + $0x124] ss:$8 sps:$4 sm:$0xff]   ;;  %v9665_v33 = vld [vmem:[#allocation11 + $0x120] ss:$8 sps:$4 sm:$0xff]  }
 0x1e0   : > { %3202 = vmatprep.subr.bf16.mxu1 %v9667_v31  ;;  %v9710_v31 = vld [vmem:[#allocation11 + $0xa0] ss:$8 sps:$4 sm:$0xff]  }
 0x1e1   : > { %3203 = vmatpush1.bf16.msra.mxu1 %v9665_v33 }
 0x1e2   : > { %v1270_v36 = vpop.permute.xlu1 %1269  ;;  %v1268_v38 = vpop.permute.xlu0 %1267 }
 0x1e3   : > { %v1490_v37 = vsel %vm1450_vm4, %v1441_v34, %v1270_v36  ;;  %v1488_v39 = vsel %vm1450_vm4, %v1439_v35, %v1268_v38  ;;  %v8505_v40 = vcombine.low %v1268_v38, %v1270_v36  ;;  %v9670_v35 = vld [vmem:[#allocation11 + $0x14] ss:$8 sps:$4 sm:$0xff]  }
 0x1e4   : > { %v8504_v41 = vcombine.low %v1488_v39, %v1490_v37  ;;  %v9668_v37 = vld [vmem:[#allocation11 + $0x10] ss:$8 sps:$4 sm:$0xff]   ;;  %3051 = vmatprep.subr.bf16.mxu0 %v9670_v35  ;;  %v9713_v35 = vld [vmem:[#allocation11 + $0x1a0] ss:$8 sps:$4 sm:$0xff]  }
 0x1e5   : > { %8556 = vmatprep.mubr.msk.bf16.mxu0 %vm1841_vm5, %v8505_v40  ;;  %8569 = vmatprep.mubr.msk.bf16.mxu1 %vm1841_vm5, %v8505_v40  ;;  %v9671_v39 = vld [vmem:[#allocation11 + $0x110] ss:$8 sps:$4 sm:$0xff]   ;;  %v9673_v40 = vld [vmem:[#allocation11 + $0x114] ss:$8 sps:$4 sm:$0xff]  }
 0x1e6   : > { %v914_v43 = vpop.permute.xlu1 %913  ;;  %v912_v45 = vpop.permute.xlu0 %911  ;;  %2014 = vmatmul.mubr.bf16.gmra.mxu0 %v8504_v41  ;;  %2167 = vmatmul.mubr.bf16.gmra.mxu1 %v8504_v41 }
 0x1e7   : > { %v1345_v48 = vsel %vm1279_vm1, %v696_v42, %v914_v43  ;;  %v1342_v51 = vsel %vm1279_vm1, %v695_v44, %v912_v45  ;;  %3204 = vmatprep.subr.bf16.mxu1 %v9673_v40  ;;  %v9676_v45 = vld [vmem:[#allocation11 + $0x4] ss:$8 sps:$4 sm:$0xff]   ;;  %3052 = vmatpush1.bf16.msra.mxu0 %v9668_v37  ;;  %v9718_v37 = vld [vmem:[#allocation11 + $0x94] ss:$8 sps:$4 sm:$0xff]   ;;  %v9719_v40 = vld [vmem:[#allocation11 + $0x190] ss:$8 sps:$4 sm:$0xff]  }
 0x1e8   : > { %3205 = vmatpush1.bf16.msra.mxu1 %v9671_v39  ;;  %3053 = vmatprep.subr.bf16.mxu0 %v9676_v45  ;;  %v9721_v39 = vld [vmem:[#allocation11 + $0x194] ss:$8 sps:$4 sm:$0xff]  }
 0x1ea   : > { %v1034_v49 = vpop.permute.xlu1 %1033  ;;  %v1032_v52 = vpop.permute.xlu0 %1031 }
 0x1eb   : > { %v1396_v55 = vsel %vm1352_vm2, %v1345_v48, %v1034_v49  ;;  %v1394_v57 = vsel %vm1352_vm2, %v1342_v51, %v1032_v52  ;;  %v9679_v48 = vld [vmem:[#allocation11 + $0x104] ss:$8 sps:$4 sm:$0xff]   ;;  %v9677_v49 = vld [vmem:[#allocation11 + $0x100] ss:$8 sps:$4 sm:$0xff]   ;;  %v9682_v51 = vld [vmem:[#allocation11 + $0xf4] ss:$8 sps:$4 sm:$0xff]   ;;  %3054 = vmatpush1.bf16.msra.mxu0 %v9674_v47 }
 0x1ec   : > { %3206 = vmatprep.subr.bf16.mxu1 %v9679_v48  ;;  %v9680_v52 = vld [vmem:[#allocation11 + $0xf0] ss:$8 sps:$4 sm:$0xff]   ;;  %3055 = vmatprep.subr.bf16.mxu0 %v9682_v51 }
 0x1ed   : > { %3207 = vmatpush1.bf16.msra.mxu1 %v9677_v49 }
 0x1ee   : > { %v1154_v58 = vpop.permute.xlu1 %1153  ;;  %v1152_v60 = vpop.permute.xlu0 %1151  ;;  %3208 = vmatprep.subr.bf16.mxu1 %v9685_v53 }
 0x1ef   : > { %v1445_v62 = vsel %vm1401_vm3, %v1396_v55, %v1154_v58  ;;  %v1443_v0 = vsel %vm1401_vm3, %v1394_v57, %v1152_v60  ;;  %v11657_v55 = vshrl.u32 %v1609_v50, 7  ;;  %3056 = vmatpush2.bf16.msra.mxu0 %v9680_v52  ;;  %v9686_v57 = vld [vmem:[#allocation11 + $0xe0] ss:$8 sps:$4 sm:$0xff]   ;;  %v9691_v58 = vld [vmem:[#allocation11 + $0x1e4] ss:$8 sps:$4 sm:$0xff]  }
 0x1f0   : > { %3057 = vmatprep.subr.bf16.mxu0 %v9688_v56 }
 0x1f1   : > { %3209 = vmatpush2.bf16.msra.mxu1 %v9683_v54  ;;  %v1611_v60 = vsub.s32 0, %v11657_v55 }
 0x1f2   : > { %v1274_v2 = vpop.permute.xlu1 %1273  ;;  %v1272_v6 = vpop.permute.xlu0 %1271  ;;  %3210 = vmatprep.subr.bf16.mxu1 %v9691_v58 }
 0x1f3   : > { %v1494_v5 = vsel %vm1450_vm4, %v1445_v62, %v1274_v2  ;;  %v1492_v7 = vsel %vm1450_vm4, %v1443_v0, %v1272_v6  ;;  %v8507_v8 = vcombine.low %v1272_v6, %v1274_v2  ;;  %v1607_v62 = vld [vmem:[#allocation9] sm:$0xf]  ;;  %3058 = vmatpush2.bf16.msra.mxu0 %v9686_v57  ;;  %v1615_v0 = vsub.s32 1, %v11657_v55  ;;  %v9698_v6 = vld [vmem:[#allocation11 + $0xc0] ss:$8 sps:$4 sm:$0xff]  }
 0x1f4   : > { %v8506_v11 = vcombine.low %v1492_v7, %v1494_v5  ;;  %3059 = vmatprep.subr.bf16.mxu0 %v9694_v61  ;;  %v9697_v2 = vld [vmem:[#allocation11 + $0x1d4] ss:$8 sps:$4 sm:$0xff]   ;;  %v11663_v3 = vrot.slane %v1607_v62, %v1611_v60  ;;  %v1619_v5 = vsub.s32 2, %v11657_v55 }
 0x1f5   : > { %8557 = vmatprep.mubr.msk.bf16.mxu0 %vm1841_vm5, %v8507_v8  ;;  %8570 = vmatprep.mubr.msk.bf16.mxu1 %vm1841_vm5, %v8507_v8  ;;  %v11668_v7 = vrot.slane %v1607_v62, %v1615_v0  ;;  %v9703_v8 = vld [vmem:[#allocation11 + $0x1c4] ss:$8 sps:$4 sm:$0xff]  }
 0x1f6   : > { %v918_v13 = vpop.permute.xlu1 %917  ;;  %v916_v16 = vpop.permute.xlu0 %915  ;;  %2024 = vmatmul.mubr.bf16.gmra.mxu0 %v8506_v11  ;;  %2177 = vmatmul.mubr.bf16.gmra.mxu1 %v8506_v11  ;;  %v9701_v11 = vld [vmem:[#allocation11 + $0x1c0] ss:$8 sps:$4 sm:$0xff]   ;;  %v11674_v15 = vrot.slane %v1607_v62, %v1619_v5 }
 0x1f7   : > { %v1351_v20 = vsel %vm1279_vm1, %v698_v12, %v918_v13  ;;  %v1348_v23 = vsel %vm1279_vm1, %v697_v14, %v916_v16  ;;  %3211 = vmatpush2.bf16.msra.mxu1 %v9689_v59  ;;  %3060 = vmatpush2.bf16.msra.mxu0 %v9692_v63  ;;  %v12635_v13 = vsub.s32 3, %v11657_v55  ;;  %v9706_v14 = vld [vmem:[#allocation11 + $0xb4] ss:$8 sps:$4 sm:$0xff]  }
 0x1f8   : > { %3212 = vmatprep.subr.bf16.mxu1 %v9697_v2  ;;  %3061 = vmatprep.subr.bf16.mxu0 %v9700_v4 }
 0x1fa   : > { %v1038_v21 = vpop.permute.xlu1 %1037  ;;  %v1036_v24 = vpop.permute.xlu0 %1035 }
 0x1fb   : > { %v1400_v27 = vsel %vm1352_vm2, %v1351_v20, %v1038_v21  ;;  %v1398_v29 = vsel %vm1352_vm2, %v1348_v23, %v1036_v24  ;;  %3213 = vmatpush2.bf16.msra.mxu1 %v9695_v1  ;;  %3062 = vmatpush2.bf16.msra.mxu0 %v9698_v6  ;;  %v9709_v20 = vld [vmem:[#allocation11 + $0x1b4] ss:$8 sps:$4 sm:$0xff]   ;;  %v9707_v23 = vld [vmem:[#allocation11 + $0x1b0] ss:$8 sps:$4 sm:$0xff]   ;;  %v11679_v24 = vrot.slane %v1607_v62, %v12635_v13  ;;  %v10634_v13 = vld [vmem:[#allocation14] sm:$0xf] }
 0x1fc   : > { %3214 = vmatprep.subr.bf16.mxu1 %v9703_v8  ;;  %3063 = vmatprep.subr.bf16.mxu0 %v9706_v14 }
 0x1fe   : > { %v1158_v30 = vpop.permute.xlu1 %1157  ;;  %v1156_v32 = vpop.permute.xlu0 %1155 }
 0x1ff   : > { %v1449_v34 = vsel %vm1401_vm3, %v1400_v27, %v1158_v30  ;;  %v1447_v36 = vsel %vm1401_vm3, %v1398_v29, %v1156_v32  ;;  %3215 = vmatpush2.bf16.msra.mxu1 %v9701_v11  ;;  %v9712_v27 = vld [vmem:[#allocation11 + $0xa4] ss:$8 sps:$4 sm:$0xff]   ;;  %3064 = vmatpush2.bf16.msra.mxu0 %v9704_v18 }
 0x200   : > { %3216 = vmatprep.subr.bf16.mxu1 %v9709_v20  ;;  %3065 = vmatprep.subr.bf16.mxu0 %v9712_v27 }
 0x202   : > { %v1278_v38 = vpop.permute.xlu1 %1277  ;;  %v1276_v42 = vpop.permute.xlu0 %1275 }
 0x203   : > { %v1498_v41 = vsel %vm1450_vm4, %v1449_v34, %v1278_v38  ;;  %v1496_v43 = vsel %vm1450_vm4, %v1447_v36, %v1276_v42  ;;  %v8509_v44 = vcombine.low %v1276_v42, %v1278_v38  ;;  %3217 = vmatpush2.bf16.msra.mxu1 %v9707_v23  ;;  %v9715_v34 = vld [vmem:[#allocation11 + $0x1a4] ss:$8 sps:$4 sm:$0xff]   ;;  %3066 = vmatpush2.bf16.msra.mxu0 %v9710_v31  ;;  %v9716_v38 = vld [vmem:[#allocation11 + $0x90] ss:$8 sps:$4 sm:$0xff]   ;;  %v9722_v42 = vld [vmem:[#allocation11 + $0x80] ss:$8 sps:$4 sm:$0xff]  }
 0x204   : > { %v8508_v46 = vcombine.low %v1496_v43, %v1498_v41  ;;  %3218 = vmatprep.subr.bf16.mxu1 %v9715_v34  ;;  %3067 = vmatprep.subr.bf16.mxu0 %v9718_v37  ;;  %v9724_v41 = vld [vmem:[#allocation11 + $0x84] ss:$8 sps:$4 sm:$0xff]  }
 0x205   : > { %8558 = vmatprep.mubr.msk.bf16.mxu0 %vm1841_vm5, %v8509_v44  ;;  %8571 = vmatprep.mubr.msk.bf16.mxu1 %vm1841_vm5, %v8509_v44  ;;  %v9727_v43 = vld [vmem:[#allocation11 + $0x184] ss:$8 sps:$4 sm:$0xff]  }
 0x206   : > { %2034 = vmatmul.mubr.bf16.gmra.mxu0 %v8508_v46  ;;  %2187 = vmatmul.mubr.bf16.gmra.mxu1 %v8508_v46  ;;  %v9725_v46 = vld [vmem:[#allocation11 + $0x180] ss:$8 sps:$4 sm:$0xff]  }
 0x207   : > { %3219 = vmatpush2.bf16.msra.mxu1 %v9713_v35  ;;  %3068 = vmatpush2.bf16.msra.mxu0 %v9716_v38 }
 0x208   : > { %3220 = vmatprep.subr.bf16.mxu1 %v9721_v39  ;;  %3069 = vmatprep.subr.bf16.mxu0 %v9724_v41 }
 0x20b   : > { %3221 = vmatpush2.bf16.msra.mxu1 %v9719_v40  ;;  %3070 = vmatpush2.bf16.msra.mxu0 %v9722_v42 }
 0x20c   : > { %3222 = vmatprep.subr.bf16.mxu1 %v9727_v43 }
 0x20f   : > { %3223 = vmatpush2.bf16.msra.mxu1 %v9725_v46 }
 0x216   : > { %v1925_v9 = vpop.f32.mrf.mxu0  ;;  %v2078_v10 = vpop.f32.mrf.mxu1 }
 0x217   : > { %v1926_v12 = vadd.f32 %v1925_v9, %v11663_v3  ;;  %v2079_v28 = vadd.f32 %v2078_v10, %v11674_v15 }
 0x218   : > { %v1927_v16 = vpop.f32.mrf.mxu0  ;;  %v2080_v17 = vpop.f32.mrf.mxu1 }
 0x219   : > { %v1928_v19 = vadd.f32 %v1927_v16, %v11668_v7  ;;  %10376 = vtanh.f32 %v1926_v12  ;;  %v2081_v36 = vadd.f32 %v2080_v17, %v11679_v24 }
 0x21a   : > { %v1929_v21 = vpop.f32.mrf.mxu0  ;;  %v2082_v22 = vpop.f32.mrf.mxu1 }
 0x21b   : > { %v1930_v25 = vadd.f32 %v1929_v21, %v11663_v3  ;;  %v2083_v26 = vadd.f32 %v2082_v22, %v11674_v15  ;;  %10378 = vtanh.f32 %v1928_v19 }
 0x21c   : > { %v1931_v29 = vpop.f32.mrf.mxu0  ;;  %v2084_v30 = vpop.f32.mrf.mxu1 }
 0x21d   : > { %10380 = vtanh.f32 %v1930_v25  ;;  %v1932_v32 = vadd.f32 %v1931_v29, %v11668_v7  ;;  %v2085_v33 = vadd.f32 %v2084_v30, %v11679_v24 }
 0x21e   : > { %10382 = vtanh.f32 %v2083_v26 }
 0x21f   : > { %10384 = vtanh.f32 %v1932_v32 }
 0x220   : > { %10386 = vtanh.f32 %v2079_v28 }
 0x221   : > { %10388 = vtanh.f32 %v2085_v33 }
 0x222   : > { %10390 = vtanh.f32 %v2081_v36 }
 0x226   : > { %v1935_v44 = vpop.f32.mrf.mxu0  ;;  %v2088_v45 = vpop.f32.mrf.mxu1 }
 0x227   : > { %v1936_v47 = vadd.f32 %v1935_v44, %v11663_v3  ;;  %v10377_v48 = vpop.eup %10376  ;;  %v2089_v63 = vadd.f32 %v2088_v45, %v11674_v15 }
 0x228   : > { %v1937_v49 = vpop.f32.mrf.mxu0  ;;  %v2090_v50 = vpop.f32.mrf.mxu1 }
 0x229   : > { %v10379_v51 = vpop.eup %10378  ;;  %v1938_v52 = vadd.f32 %v1937_v49, %v11668_v7  ;;  %10392 = vtanh.f32 %v1936_v47  ;;  %v2091_v11 = vadd.f32 %v2090_v50, %v11679_v24 }
 0x22a   : > { %v10381_v53 = vpop.eup %10380  ;;  %v1939_v54 = vpop.f32.mrf.mxu0 }
 0x22b   : > { %v2092_v56 = vpop.f32.mrf.mxu1  ;;  %v10383_v57 = vpop.eup %10382  ;;  %v1940_v58 = vadd.f32 %v1939_v54, %v11663_v3  ;;  %v11691_v61 = vpack.c.bf16 %v10381_v53, %v10377_v48  ;;  %10394 = vtanh.f32 %v1938_v52 }
 0x22c   : > { %v2093_v59 = vadd.f32 %v2092_v56, %v11674_v15  ;;  %v10385_v62 = vpop.eup %10384  ;;  %v1941_v1 = vpop.f32.mrf.mxu0 }
 0x22d   : > { %v2094_v2 = vpop.f32.mrf.mxu1  ;;  %v10387_v4 = vpop.eup %10386  ;;  %10396 = vtanh.f32 %v1940_v58  ;;  %v1942_v6 = vadd.f32 %v1941_v1, %v11668_v7  ;;  %2389 = vrot.lane.b32.xlu0 %v11691_v61, %s11001_s13  ;;  %v11698_v9 = vpack.c.bf16 %v10385_v62, %v10379_v51 }
 0x22e   : > { %v2095_v8 = vadd.f32 %v2094_v2, %v11679_v24  ;;  %v10389_v10 = vpop.eup %10388  ;;  %10398 = vtanh.f32 %v2093_v59  ;;  %v11703_v12 = vpack.c.bf16 %v10383_v57, %v10387_v4 }
 0x22f   : > { %10400 = vtanh.f32 %v1942_v6  ;;  %2391 = vrot.lane.b32.xlu1 %v11698_v9, %s11001_s13  ;;  %v10391_v14 = vpop.eup %10390 }
 0x230   : > { %10402 = vtanh.f32 %v2089_v63  ;;  %v11707_v16 = vpack.c.bf16 %v10389_v10, %v10391_v14 }
 0x231   : > { %10404 = vtanh.f32 %v2095_v8  ;;  %2393 = vrot.lane.b32.xlu0 %v11703_v12, %s11001_s13 }
 0x232   : > { %10406 = vtanh.f32 %v2091_v11 }
 0x233   : > { %2395 = vrot.lane.b32.xlu1 %v11707_v16, %s11001_s13 }
 0x236   : > { %v1945_v17 = vpop.f32.mrf.mxu0  ;;  %v2098_v18 = vpop.f32.mrf.mxu1 }
 0x237   : > { %v1946_v19 = vadd.f32 %v1945_v17, %v11663_v3  ;;  %v10393_v20 = vpop.eup %10392  ;;  %v2099_v34 = vadd.f32 %v2098_v18, %v11674_v15 }
 0x238   : > { %v1947_v21 = vpop.f32.mrf.mxu0  ;;  %v2100_v22 = vpop.f32.mrf.mxu1 }
 0x239   : > { %v10395_v23 = vpop.eup %10394  ;;  %v1948_v25 = vadd.f32 %v1947_v21, %v11668_v7  ;;  %10408 = vtanh.f32 %v1946_v19  ;;  %v2101_v42 = vadd.f32 %v2100_v22, %v11679_v24 }
 0x23a   : > { %v10397_v26 = vpop.eup %10396  ;;  %v1949_v27 = vpop.f32.mrf.mxu0 }
 0x23b   : > { %v2102_v28 = vpop.f32.mrf.mxu1  ;;  %v10399_v29 = vpop.eup %10398  ;;  %v1950_v30 = vadd.f32 %v1949_v27, %v11663_v3  ;;  %v11715_v32 = vpack.c.bf16 %v10397_v26, %v10393_v20  ;;  %10410 = vtanh.f32 %v1948_v25 }
 0x23c   : > { %v2103_v31 = vadd.f32 %v2102_v28, %v11674_v15  ;;  %v10401_v33 = vpop.eup %10400  ;;  %v1951_v35 = vpop.f32.mrf.mxu0 }
 0x23d   : > { %v2104_v36 = vpop.f32.mrf.mxu1  ;;  %v10403_v37 = vpop.eup %10402  ;;  %10412 = vtanh.f32 %v1950_v30  ;;  %v1952_v38 = vadd.f32 %v1951_v35, %v11668_v7  ;;  %2397 = vrot.lane.b32.xlu0 %v11715_v32, %s11001_s13  ;;  %v11722_v40 = vpack.c.bf16 %v10401_v33, %v10395_v23 }
 0x23e   : > { %v2105_v39 = vadd.f32 %v2104_v36, %v11679_v24  ;;  %v10405_v41 = vpop.eup %10404  ;;  %10414 = vtanh.f32 %v2103_v31  ;;  %v11727_v43 = vpack.c.bf16 %v10399_v29, %v10403_v37 }
 0x23f   : > { %10416 = vtanh.f32 %v1952_v38  ;;  %2399 = vrot.lane.b32.xlu1 %v11722_v40, %s11001_s13  ;;  %v10407_v44 = vpop.eup %10406 }
 0x240   : > { %10418 = vtanh.f32 %v2099_v34  ;;  %v11731_v45 = vpack.c.bf16 %v10405_v41, %v10407_v44 }
 0x241   : > { %10420 = vtanh.f32 %v2105_v39  ;;  %2401 = vrot.lane.b32.xlu0 %v11727_v43, %s11001_s13 }
 0x242   : > { %10422 = vtanh.f32 %v2101_v42 }
 0x243   : > { %2403 = vrot.lane.b32.xlu1 %v11731_v45, %s11001_s13 }
 0x246   : > { %v1955_v46 = vpop.f32.mrf.mxu0  ;;  %v2108_v47 = vpop.f32.mrf.mxu1 }
 0x247   : > { %v1956_v48 = vadd.f32 %v1955_v46, %v11663_v3  ;;  %v10409_v49 = vpop.eup %10408  ;;  %v2109_v2 = vadd.f32 %v2108_v47, %v11674_v15 }
 0x248   : > { %v1957_v50 = vpop.f32.mrf.mxu0  ;;  %v2110_v51 = vpop.f32.mrf.mxu1 }
 0x249   : > { %v10411_v52 = vpop.eup %10410  ;;  %v1958_v53 = vadd.f32 %v1957_v50, %v11668_v7  ;;  %10424 = vtanh.f32 %v1956_v48  ;;  %v2111_v18 = vadd.f32 %v2110_v51, %v11679_v24 }
 0x24a   : > { %v10413_v54 = vpop.eup %10412  ;;  %v1959_v56 = vpop.f32.mrf.mxu0 }
 0x24b   : > { %v2112_v57 = vpop.f32.mrf.mxu1  ;;  %v10415_v58 = vpop.eup %10414  ;;  %v1960_v59 = vadd.f32 %v1959_v56, %v11663_v3  ;;  %v11739_v63 = vpack.c.bf16 %v10413_v54, %v10409_v49  ;;  %10426 = vtanh.f32 %v1958_v53 }
 0x24c   : > { %v2113_v62 = vadd.f32 %v2112_v57, %v11674_v15  ;;  %v10417_v1 = vpop.eup %10416  ;;  %v1961_v4 = vpop.f32.mrf.mxu0 }
 0x24d   : > { %v2114_v6 = vpop.f32.mrf.mxu1  ;;  %v10419_v8 = vpop.eup %10418  ;;  %10428 = vtanh.f32 %v1960_v59  ;;  %v1962_v10 = vadd.f32 %v1961_v4, %v11668_v7  ;;  %2405 = vrot.lane.b32.xlu0 %v11739_v63, %s11001_s13  ;;  %v11746_v14 = vpack.c.bf16 %v10417_v1, %v10411_v52 }
 0x24e   : > { %v2115_v11 = vadd.f32 %v2114_v6, %v11679_v24  ;;  %v10421_v17 = vpop.eup %10420  ;;  %10430 = vtanh.f32 %v2113_v62  ;;  %v11751_v19 = vpack.c.bf16 %v10415_v58, %v10419_v8 }
 0x24f   : > { %10432 = vtanh.f32 %v1962_v10  ;;  %2407 = vrot.lane.b32.xlu1 %v11746_v14, %s11001_s13  ;;  %v10423_v20 = vpop.eup %10422 }
 0x250   : > { %10434 = vtanh.f32 %v2109_v2  ;;  %v11755_v21 = vpack.c.bf16 %v10421_v17, %v10423_v20 }
 0x251   : > { %10436 = vtanh.f32 %v2115_v11  ;;  %2409 = vrot.lane.b32.xlu0 %v11751_v19, %s11001_s13 }
 0x252   : > { %10438 = vtanh.f32 %v2111_v18 }
 0x253   : > { %2411 = vrot.lane.b32.xlu1 %v11755_v21, %s11001_s13 }
 0x256   : > { %v1965_v22 = vpop.f32.mrf.mxu0  ;;  %v2118_v23 = vpop.f32.mrf.mxu1 }
 0x257   : > { %v1966_v25 = vadd.f32 %v1965_v22, %v11663_v3  ;;  %v10425_v26 = vpop.eup %10424  ;;  %v2119_v41 = vadd.f32 %v2118_v23, %v11674_v15 }
 0x258   : > { %v1967_v27 = vpop.f32.mrf.mxu0  ;;  %v2120_v28 = vpop.f32.mrf.mxu1 }
 0x259   : > { %v10427_v29 = vpop.eup %10426  ;;  %v1968_v30 = vadd.f32 %v1967_v27, %v11668_v7  ;;  %10440 = vtanh.f32 %v1966_v25  ;;  %v2121_v51 = vadd.f32 %v2120_v28, %v11679_v24 }
 0x25a   : > { %v10429_v31 = vpop.eup %10428  ;;  %v1969_v33 = vpop.f32.mrf.mxu0 }
 0x25b   : > { %v2122_v34 = vpop.f32.mrf.mxu1  ;;  %v10431_v35 = vpop.eup %10430  ;;  %v1970_v36 = vadd.f32 %v1969_v33, %v11663_v3  ;;  %v11763_v38 = vpack.c.bf16 %v10429_v31, %v10425_v26  ;;  %10442 = vtanh.f32 %v1968_v30 }
 0x25c   : > { %v2123_v37 = vadd.f32 %v2122_v34, %v11674_v15  ;;  %v10433_v39 = vpop.eup %10432  ;;  %v1971_v42 = vpop.f32.mrf.mxu0 }
 0x25d   : > { %v2124_v44 = vpop.f32.mrf.mxu1  ;;  %v10435_v46 = vpop.eup %10434  ;;  %10444 = vtanh.f32 %v1970_v36  ;;  %v1972_v47 = vadd.f32 %v1971_v42, %v11668_v7  ;;  %2413 = vrot.lane.b32.xlu0 %v11763_v38, %s11001_s13  ;;  %v11770_v49 = vpack.c.bf16 %v10433_v39, %v10427_v29 }
 0x25e   : > { %v2125_v48 = vadd.f32 %v2124_v44, %v11679_v24  ;;  %v10437_v50 = vpop.eup %10436  ;;  %10446 = vtanh.f32 %v2123_v37  ;;  %v11775_v52 = vpack.c.bf16 %v10431_v35, %v10435_v46 }
 0x25f   : > { %10448 = vtanh.f32 %v1972_v47  ;;  %2415 = vrot.lane.b32.xlu1 %v11770_v49, %s11001_s13  ;;  %v10439_v53 = vpop.eup %10438 }
 0x260   : > { %10450 = vtanh.f32 %v2119_v41  ;;  %v11779_v54 = vpack.c.bf16 %v10437_v50, %v10439_v53 }
 0x261   : > { %10452 = vtanh.f32 %v2125_v48  ;;  %2417 = vrot.lane.b32.xlu0 %v11775_v52, %s11001_s13 }
 0x262   : > { %10454 = vtanh.f32 %v2121_v51 }
 0x263   : > { %2419 = vrot.lane.b32.xlu1 %v11779_v54, %s11001_s13 }
 0x266   : > { %v1975_v56 = vpop.f32.mrf.mxu0  ;;  %v2128_v57 = vpop.f32.mrf.mxu1 }
 0x267   : > { %v1976_v58 = vadd.f32 %v1975_v56, %v11663_v3  ;;  %v10441_v59 = vpop.eup %10440  ;;  %v2129_v23 = vadd.f32 %v2128_v57, %v11674_v15 }
 0x268   : > { %v1977_v62 = vpop.f32.mrf.mxu0  ;;  %v2130_v1 = vpop.f32.mrf.mxu1 }
 0x269   : > { %v10443_v2 = vpop.eup %10442  ;;  %v1978_v4 = vadd.f32 %v1977_v62, %v11668_v7  ;;  %10456 = vtanh.f32 %v1976_v58  ;;  %v2131_v33 = vadd.f32 %v2130_v1, %v11679_v24 }
 0x26a   : > { %v10445_v6 = vpop.eup %10444  ;;  %v1979_v8 = vpop.f32.mrf.mxu0 }
 0x26b   : > { %v2132_v10 = vpop.f32.mrf.mxu1  ;;  %v10447_v11 = vpop.eup %10446  ;;  %v1980_v17 = vadd.f32 %v1979_v8, %v11663_v3  ;;  %v11787_v20 = vpack.c.bf16 %v10445_v6, %v10441_v59  ;;  %10458 = vtanh.f32 %v1978_v4 }
 0x26c   : > { %v2133_v18 = vadd.f32 %v2132_v10, %v11674_v15  ;;  %v10449_v22 = vpop.eup %10448  ;;  %v1981_v25 = vpop.f32.mrf.mxu0 }
 0x26d   : > { %v2134_v26 = vpop.f32.mrf.mxu1  ;;  %v10451_v27 = vpop.eup %10450  ;;  %10460 = vtanh.f32 %v1980_v17  ;;  %v1982_v28 = vadd.f32 %v1981_v25, %v11668_v7  ;;  %2421 = vrot.lane.b32.xlu0 %v11787_v20, %s11001_s13  ;;  %v11794_v30 = vpack.c.bf16 %v10449_v22, %v10443_v2 }
 0x26e   : > { %v2135_v29 = vadd.f32 %v2134_v26, %v11679_v24  ;;  %v10453_v31 = vpop.eup %10452  ;;  %10462 = vtanh.f32 %v2133_v18  ;;  %v11799_v34 = vpack.c.bf16 %v10447_v11, %v10451_v27 }
 0x26f   : > { %10464 = vtanh.f32 %v1982_v28  ;;  %2423 = vrot.lane.b32.xlu1 %v11794_v30, %s11001_s13  ;;  %v10455_v35 = vpop.eup %10454 }
 0x270   : > { %10466 = vtanh.f32 %v2129_v23  ;;  %v11803_v36 = vpack.c.bf16 %v10453_v31, %v10455_v35 }
 0x271   : > { %10468 = vtanh.f32 %v2135_v29  ;;  %2425 = vrot.lane.b32.xlu0 %v11799_v34, %s11001_s13 }
 0x272   : > { %10470 = vtanh.f32 %v2131_v33 }
 0x273   : > { %2427 = vrot.lane.b32.xlu1 %v11803_v36, %s11001_s13 }
 0x276   : > { %v1985_v37 = vpop.f32.mrf.mxu0  ;;  %v2138_v39 = vpop.f32.mrf.mxu1 }
 0x277   : > { %v1986_v41 = vadd.f32 %v1985_v37, %v11663_v3  ;;  %v10457_v42 = vpop.eup %10456  ;;  %v2139_v1 = vadd.f32 %v2138_v39, %v11674_v15 }
 0x278   : > { %v1987_v44 = vpop.f32.mrf.mxu0  ;;  %v2140_v46 = vpop.f32.mrf.mxu1 }
 0x279   : > { %v10459_v47 = vpop.eup %10458  ;;  %v1988_v48 = vadd.f32 %v1987_v44, %v11668_v7  ;;  %10472 = vtanh.f32 %v1986_v41  ;;  %v2141_v18 = vadd.f32 %v2140_v46, %v11679_v24 }
 0x27a   : > { %v10461_v50 = vpop.eup %10460  ;;  %v1989_v51 = vpop.f32.mrf.mxu0 }
 0x27b   : > { %v2142_v53 = vpop.f32.mrf.mxu1  ;;  %v10463_v56 = vpop.eup %10462  ;;  %v1990_v57 = vadd.f32 %v1989_v51, %v11663_v3  ;;  %v11811_v59 = vpack.c.bf16 %v10461_v50, %v10457_v42  ;;  %10474 = vtanh.f32 %v1988_v48 }
 0x27c   : > { %v2143_v58 = vadd.f32 %v2142_v53, %v11674_v15  ;;  %v10465_v62 = vpop.eup %10464  ;;  %v1991_v2 = vpop.f32.mrf.mxu0 }
 0x27d   : > { %v2144_v4 = vpop.f32.mrf.mxu1  ;;  %v10467_v6 = vpop.eup %10466  ;;  %10476 = vtanh.f32 %v1990_v57  ;;  %v1992_v8 = vadd.f32 %v1991_v2, %v11668_v7  ;;  %2429 = vrot.lane.b32.xlu0 %v11811_v59, %s11001_s13  ;;  %v11818_v11 = vpack.c.bf16 %v10465_v62, %v10459_v47 }
 0x27e   : > { %v2145_v10 = vadd.f32 %v2144_v4, %v11679_v24  ;;  %v10469_v17 = vpop.eup %10468  ;;  %10478 = vtanh.f32 %v2143_v58  ;;  %v11823_v22 = vpack.c.bf16 %v10463_v56, %v10467_v6 }
 0x27f   : > { %10480 = vtanh.f32 %v1992_v8  ;;  %2431 = vrot.lane.b32.xlu1 %v11818_v11, %s11001_s13  ;;  %v10471_v23 = vpop.eup %10470 }
 0x280   : > { %10482 = vtanh.f32 %v2139_v1  ;;  %v11827_v25 = vpack.c.bf16 %v10469_v17, %v10471_v23 }
 0x281   : > { %10484 = vtanh.f32 %v2145_v10  ;;  %2433 = vrot.lane.b32.xlu0 %v11823_v22, %s11001_s13 }
 0x282   : > { %10486 = vtanh.f32 %v2141_v18 }
 0x283   : > { %2435 = vrot.lane.b32.xlu1 %v11827_v25, %s11001_s13 }
 0x286   : > { %v1995_v26 = vpop.f32.mrf.mxu0  ;;  %v2148_v27 = vpop.f32.mrf.mxu1 }
 0x287   : > { %v1996_v28 = vadd.f32 %v1995_v26, %v11663_v3  ;;  %v10473_v29 = vpop.eup %10472  ;;  %v2149_v51 = vadd.f32 %v2148_v27, %v11674_v15 }
 0x288   : > { %v1997_v31 = vpop.f32.mrf.mxu0  ;;  %v2150_v33 = vpop.f32.mrf.mxu1 }
 0x289   : > { %v10475_v35 = vpop.eup %10474  ;;  %v1998_v37 = vadd.f32 %v1997_v31, %v11668_v7  ;;  %10488 = vtanh.f32 %v1996_v28  ;;  %v2151_v4 = vadd.f32 %v2150_v33, %v11679_v24 }
 0x28a   : > { %v10477_v39 = vpop.eup %10476  ;;  %v1999_v41 = vpop.f32.mrf.mxu0 }
 0x28b   : > { %v2152_v42 = vpop.f32.mrf.mxu1  ;;  %v10479_v44 = vpop.eup %10478  ;;  %v2000_v46 = vadd.f32 %v1999_v41, %v11663_v3  ;;  %v11835_v48 = vpack.c.bf16 %v10477_v39, %v10473_v29  ;;  %10490 = vtanh.f32 %v1998_v37 }
 0x28c   : > { %v2153_v47 = vadd.f32 %v2152_v42, %v11674_v15  ;;  %v10481_v50 = vpop.eup %10480  ;;  %v2001_v53 = vpop.f32.mrf.mxu0 }
 0x28d   : > { %v2154_v56 = vpop.f32.mrf.mxu1  ;;  %v10483_v57 = vpop.eup %10482  ;;  %10492 = vtanh.f32 %v2000_v46  ;;  %v2002_v58 = vadd.f32 %v2001_v53, %v11668_v7  ;;  %2437 = vrot.lane.b32.xlu0 %v11835_v48, %s11001_s13  ;;  %v11842_v1 = vpack.c.bf16 %v10481_v50, %v10475_v35 }
 0x28e   : > { %v2155_v62 = vadd.f32 %v2154_v56, %v11679_v24  ;;  %v10485_v2 = vpop.eup %10484  ;;  %10494 = vtanh.f32 %v2153_v47  ;;  %v11847_v6 = vpack.c.bf16 %v10479_v44, %v10483_v57 }
 0x28f   : > { %10496 = vtanh.f32 %v2002_v58  ;;  %2439 = vrot.lane.b32.xlu1 %v11842_v1, %s11001_s13  ;;  %v10487_v8 = vpop.eup %10486 }
 0x290   : > { %10498 = vtanh.f32 %v2149_v51  ;;  %v11851_v10 = vpack.c.bf16 %v10485_v2, %v10487_v8 }
 0x291   : > { %10500 = vtanh.f32 %v2155_v62  ;;  %2441 = vrot.lane.b32.xlu0 %v11847_v6, %s11001_s13 }
 0x292   : > { %10502 = vtanh.f32 %v2151_v4 }
 0x293   : > { %2443 = vrot.lane.b32.xlu1 %v11851_v10, %s11001_s13 }
 0x296   : > { %v2005_v17 = vpop.f32.mrf.mxu0  ;;  %v2158_v18 = vpop.f32.mrf.mxu1 }
 0x297   : > { %v2006_v23 = vadd.f32 %v2005_v17, %v11663_v3  ;;  %v10489_v26 = vpop.eup %10488  ;;  %v2159_v47 = vadd.f32 %v2158_v18, %v11674_v15 }
 0x298   : > { %v2007_v27 = vpop.f32.mrf.mxu0  ;;  %v2160_v28 = vpop.f32.mrf.mxu1 }
 0x299   : > { %v10491_v29 = vpop.eup %10490  ;;  %v2008_v31 = vadd.f32 %v2007_v27, %v11668_v7  ;;  %10504 = vtanh.f32 %v2006_v23  ;;  %v2161_v2 = vadd.f32 %v2160_v28, %v11679_v24 }
 0x29a   : > { %v10493_v33 = vpop.eup %10492  ;;  %v2009_v35 = vpop.f32.mrf.mxu0 }
 0x29b   : > { %v2162_v37 = vpop.f32.mrf.mxu1  ;;  %v10495_v39 = vpop.eup %10494  ;;  %v2010_v41 = vadd.f32 %v2009_v35, %v11663_v3  ;;  %v11859_v44 = vpack.c.bf16 %v10493_v33, %v10489_v26  ;;  %10506 = vtanh.f32 %v2008_v31 }
 0x29c   : > { %v2163_v42 = vadd.f32 %v2162_v37, %v11674_v15  ;;  %v10497_v46 = vpop.eup %10496  ;;  %v2011_v50 = vpop.f32.mrf.mxu0 }
 0x29d   : > { %v2164_v51 = vpop.f32.mrf.mxu1  ;;  %v10499_v53 = vpop.eup %10498  ;;  %10508 = vtanh.f32 %v2010_v41  ;;  %v2012_v56 = vadd.f32 %v2011_v50, %v11668_v7  ;;  %2445 = vrot.lane.b32.xlu0 %v11859_v44, %s11001_s13  ;;  %v11866_v58 = vpack.c.bf16 %v10497_v46, %v10491_v29 }
 0x29e   : > { %v2165_v57 = vadd.f32 %v2164_v51, %v11679_v24  ;;  %v10501_v62 = vpop.eup %10500  ;;  %10510 = vtanh.f32 %v2163_v42  ;;  %v11871_v8 = vpack.c.bf16 %v10495_v39, %v10499_v53 }
 0x29f   : > { %10512 = vtanh.f32 %v2012_v56  ;;  %2447 = vrot.lane.b32.xlu1 %v11866_v58, %s11001_s13  ;;  %v2390_v4 = vpop.permute.xlu0 %2389  ;;  %v10503_v17 = vpop.eup %10502 }
 0x2a0   : > { %10514 = vtanh.f32 %v2159_v47  ;;  %v11875_v23 = vpack.c.bf16 %v10501_v62, %v10503_v17 }
 0x2a1   : > { %10516 = vtanh.f32 %v2165_v57  ;;  %v2392_v18 = vpop.permute.xlu1 %2391  ;;  %2449 = vrot.lane.b32.xlu0 %v11871_v8, %s11001_s13 }
 0x2a2   : > { %10518 = vtanh.f32 %v2161_v2  ;;  %v2486_v26 = vsel %vm2485_vm6, %v2390_v4, %v2392_v18 }
 0x2a3   : > { %2451 = vrot.lane.b32.xlu1 %v11875_v23, %s11001_s13  ;;  %v2394_v27 = vpop.permute.xlu0 %2393  ;;  %v2607_v33 = vmax.bf16 %v2486_v26, %v11691_v61 }
 0x2a4   : > { %v2487_v28 = vsel %vm2485_vm6, %v2392_v18, %v2394_v27 }
 0x2a5   : > { %v2608_v29 = vmax.bf16 %v2487_v28, %v11698_v9  ;;  %v2396_v31 = vpop.permute.xlu1 %2395 }
 0x2a6   : > { %v2488_v35 = vsel %vm2485_vm6, %v2394_v27, %v2396_v31  ;;  %v2561_v37 = vsel %vm2485_vm6, %v2396_v31, %v2390_v4  ;;  %v2015_v39 = vpop.f32.mrf.mxu0  ;;  %v2168_v41 = vpop.f32.mrf.mxu1 }
 0x2a7   : > { %v2609_v42 = vmax.bf16 %v2488_v35, %v11703_v12  ;;  %v2610_v46 = vmax.bf16 %v2561_v37, %v11707_v16  ;;  %v2016_v47 = vadd.f32 %v2015_v39, %v11663_v3  ;;  %3071 = vmatprep.mubr.bf16.mxu0 %v2608_v29  ;;  %v2169_v50 = vadd.f32 %v2168_v41, %v11674_v15  ;;  %v10505_v51 = vpop.eup %10504 }
 0x2a8   : > { %v2017_v9 = vpop.f32.mrf.mxu0  ;;  %3072 = vmatmul.mubr.bf16.vlgmr.msra.gmra.mxu0 %v2607_v33  ;;  %v2170_v53 = vpop.f32.mrf.mxu1 }
 0x2a9   : > { %v10507_v61 = vpop.eup %10506  ;;  %10520 = vtanh.f32 %v2016_v47  ;;  %v2018_v56 = vadd.f32 %v2017_v9, %v11668_v7  ;;  %3224 = vmatprep.mubr.bf16.mxu1 %v2610_v46  ;;  %v2171_v57 = vadd.f32 %v2170_v53, %v11679_v24 }
 0x2aa   : > { %v10509_v62 = vpop.eup %10508  ;;  %v2019_v12 = vpop.f32.mrf.mxu0  ;;  %10522 = vtanh.f32 %v2169_v50  ;;  %3225 = vmatmul.mubr.bf16.vlgmr.msra.gmra.mxu1 %v2609_v42 }
 0x2ab   : > { %v2172_v16 = vpop.f32.mrf.mxu1  ;;  %v10511_v2 = vpop.eup %10510  ;;  %10524 = vtanh.f32 %v2018_v56  ;;  %v2020_v4 = vadd.f32 %v2019_v12, %v11663_v3  ;;  %v11892_v17 = vpack.c.bf16 %v10509_v62, %v10505_v51 }
 0x2ac   : > { %v2173_v18 = vadd.f32 %v2172_v16, %v11674_v15  ;;  %v10513_v26 = vpop.eup %10512  ;;  %v2021_v27 = vpop.f32.mrf.mxu0  ;;  %10526 = vtanh.f32 %v2171_v57 }
 0x2ad   : > { %v2174_v28 = vpop.f32.mrf.mxu1  ;;  %v10515_v29 = vpop.eup %10514  ;;  %10528 = vtanh.f32 %v2020_v4  ;;  %v2022_v31 = vadd.f32 %v2021_v27, %v11668_v7  ;;  %2453 = vrot.lane.b32.xlu0 %v11892_v17, %s11001_s13  ;;  %v11898_v33 = vpack.c.bf16 %v10513_v26, %v10507_v61 }
 0x2ae   : > { %v2175_v35 = vadd.f32 %v2174_v28, %v11679_v24  ;;  %v10517_v37 = vpop.eup %10516  ;;  %10530 = vtanh.f32 %v2173_v18  ;;  %v11903_v41 = vpack.c.bf16 %v10511_v2, %v10515_v29 }
 0x2af   : > { %10532 = vtanh.f32 %v2022_v31  ;;  %2455 = vrot.lane.b32.xlu1 %v11898_v33, %s11001_s13  ;;  %v2398_v39 = vpop.permute.xlu0 %2397  ;;  %v10519_v42 = vpop.eup %10518 }
 0x2b0   : > { %10534 = vtanh.f32 %v2175_v35  ;;  %v11907_v47 = vpack.c.bf16 %v10517_v37, %v10519_v42 }
 0x2b1   : > { %v2400_v46 = vpop.permute.xlu1 %2399  ;;  %2457 = vrot.lane.b32.xlu0 %v11903_v41, %s11001_s13 }
 0x2b2   : > { %v2489_v50 = vsel %vm2485_vm6, %v2398_v39, %v2400_v46 }
 0x2b3   : > { %2459 = vrot.lane.b32.xlu1 %v11907_v47, %s11001_s13  ;;  %v2402_v51 = vpop.permute.xlu0 %2401  ;;  %v2611_v57 = vmax.bf16 %v2489_v50, %v11715_v32 }
 0x2b4   : > { %v2490_v9 = vsel %vm2485_vm6, %v2400_v46, %v2402_v51 }
 0x2b5   : > { %v2612_v53 = vmax.bf16 %v2490_v9, %v11722_v40  ;;  %v2404_v61 = vpop.permute.xlu1 %2403 }
 0x2b6   : > { %v10521_v56 = vpop.eup %10520  ;;  %v2491_v62 = vsel %vm2485_vm6, %v2402_v51, %v2404_v61  ;;  %v2565_v12 = vsel %vm2485_vm6, %v2404_v61, %v2398_v39  ;;  %v2025_v16 = vpop.f32.mrf.mxu0 }
 0x2b7   : > { %v2178_v2 = vpop.f32.mrf.mxu1  ;;  %v10523_v4 = vpop.eup %10522  ;;  %v2613_v18 = vmax.bf16 %v2491_v62, %v11727_v43  ;;  %v2614_v26 = vmax.bf16 %v2565_v12, %v11731_v45  ;;  %v2026_v27 = vadd.f32 %v2025_v16, %v11663_v3  ;;  %3081 = vmatprep.mubr.bf16.mxu0 %v2612_v53 }
 0x2b8   : > { %v2179_v40 = vadd.f32 %v2178_v2, %v11674_v15  ;;  %v10525_v28 = vpop.eup %10524  ;;  %v2027_v29 = vpop.f32.mrf.mxu0  ;;  %3082 = vmatmul.mubr.bf16.gmra.mxu0 %v2611_v57 }
 0x2b9   : > { %v2180_v32 = vpop.f32.mrf.mxu1  ;;  %v10527_v31 = vpop.eup %10526  ;;  %10536 = vtanh.f32 %v2026_v27  ;;  %v2028_v35 = vadd.f32 %v2027_v29, %v11668_v7  ;;  %3234 = vmatprep.mubr.bf16.mxu1 %v2614_v26 }
 0x2ba   : > { %v2181_v37 = vadd.f32 %v2180_v32, %v11679_v24  ;;  %v10529_v39 = vpop.eup %10528  ;;  %v2029_v43 = vpop.f32.mrf.mxu0  ;;  %10538 = vtanh.f32 %v2179_v40  ;;  %3235 = vmatmul.mubr.bf16.gmra.mxu1 %v2613_v18 }
 0x2bb   : > { %v2182_v45 = vpop.f32.mrf.mxu1  ;;  %v10531_v42 = vpop.eup %10530  ;;  %10540 = vtanh.f32 %v2028_v35  ;;  %v2030_v46 = vadd.f32 %v2029_v43, %v11663_v3  ;;  %v11924_v50 = vpack.c.bf16 %v10529_v39, %v10521_v56 }
 0x2bc   : > { %v2183_v51 = vadd.f32 %v2182_v45, %v11674_v15  ;;  %v10533_v9 = vpop.eup %10532  ;;  %v2031_v53 = vpop.f32.mrf.mxu0  ;;  %10542 = vtanh.f32 %v2181_v37  ;;  %v11927_v57 = vpack.c.bf16 %v10531_v42, %v10523_v4 }
 0x2bd   : > { %v2184_v61 = vpop.f32.mrf.mxu1  ;;  %v10535_v62 = vpop.eup %10534  ;;  %10544 = vtanh.f32 %v2030_v46  ;;  %v2032_v12 = vadd.f32 %v2031_v53, %v11668_v7  ;;  %2461 = vrot.lane.b32.xlu0 %v11924_v50, %s11001_s13  ;;  %v11932_v16 = vpack.c.bf16 %v10533_v9, %v10525_v28 }
 0x2be   : > { %v2185_v56 = vadd.f32 %v2184_v61, %v11679_v24  ;;  %10546 = vtanh.f32 %v2183_v51  ;;  %v11937_v18 = vpack.c.bf16 %v10535_v62, %v10527_v31 }
 0x2bf   : > { %10548 = vtanh.f32 %v2032_v12  ;;  %2463 = vrot.lane.b32.xlu1 %v11932_v16, %s11001_s13  ;;  %v2406_v2 = vpop.permute.xlu0 %2405 }
 0x2c0   : > { %10550 = vtanh.f32 %v2185_v56  ;;  %v9730_v56 = vld [vmem:[#allocation12 + $0xe4] ss:$16 sps:$4 sm:$0xff]  }
 0x2c1   : > { %v2408_v4 = vpop.permute.xlu1 %2407  ;;  %2465 = vrot.lane.b32.xlu0 %v11927_v57, %s11001_s13  ;;  %5777 = vmatprep.subr.bf16.mxu0 %v9730_v56 }
 0x2c2   : > { %v2492_v26 = vsel %vm2485_vm6, %v2406_v2, %v2408_v4 }
 0x2c3   : > { %2467 = vrot.lane.b32.xlu1 %v11937_v18, %s11001_s13  ;;  %v2410_v27 = vpop.permute.xlu0 %2409  ;;  %v2615_v31 = vmax.bf16 %v2492_v26, %v11739_v63  ;;  %v9733_v26 = vld [vmem:[#allocation12 + $0xc4] ss:$16 sps:$4 sm:$0xff]  }
 0x2c4   : > { %v2493_v40 = vsel %vm2485_vm6, %v2408_v4, %v2410_v27  ;;  %v9728_v4 = vld [vmem:[#allocation12 + $0xe0] ss:$16 sps:$4 sm:$0xff]  }
 0x2c5   : > { %v2616_v28 = vmax.bf16 %v2493_v40, %v11746_v14  ;;  %v2412_v29 = vpop.permute.xlu1 %2411  ;;  %5778 = vmatpush1.bf16.msra.mxu0 %v9728_v4 }
 0x2c6   : > { %v10537_v32 = vpop.eup %10536  ;;  %v2494_v35 = vsel %vm2485_vm6, %v2410_v27, %v2412_v29  ;;  %v2569_v37 = vsel %vm2485_vm6, %v2412_v29, %v2406_v2  ;;  %v2035_v39 = vpop.f32.mrf.mxu0  ;;  %5779 = vmatprep.subr.bf16.mxu0 %v9733_v26 }
 0x2c7   : > { %v2188_v43 = vpop.f32.mrf.mxu1  ;;  %v10539_v45 = vpop.eup %10538  ;;  %v2617_v42 = vmax.bf16 %v2494_v35, %v11751_v19  ;;  %v2618_v46 = vmax.bf16 %v2569_v37, %v11755_v21  ;;  %v2036_v51 = vadd.f32 %v2035_v39, %v11663_v3  ;;  %3091 = vmatprep.mubr.bf16.mxu0 %v2616_v28 }
 0x2c8   : > { %v2189_v14 = vadd.f32 %v2188_v43, %v11674_v15  ;;  %v10541_v9 = vpop.eup %10540  ;;  %v2037_v53 = vpop.f32.mrf.mxu0  ;;  %3092 = vmatmul.mubr.bf16.gmra.mxu0 %v2615_v31  ;;  %v9731_v43 = vld [vmem:[#allocation12 + $0xc0] ss:$16 sps:$4 sm:$0xff]  }
 0x2c9   : > { %v2190_v63 = vpop.f32.mrf.mxu1  ;;  %v10543_v61 = vpop.eup %10542  ;;  %10552 = vtanh.f32 %v2036_v51  ;;  %v2038_v62 = vadd.f32 %v2037_v53, %v11668_v7  ;;  %3244 = vmatprep.mubr.bf16.mxu1 %v2618_v46  ;;  %5780 = vmatpush1.bf16.msra.mxu0 %v9731_v43 }
 0x2ca   : > { %v2191_v12 = vadd.f32 %v2190_v63, %v11679_v24  ;;  %v10545_v19 = vpop.eup %10544  ;;  %v2039_v2 = vpop.f32.mrf.mxu0  ;;  %10554 = vtanh.f32 %v2189_v14  ;;  %3245 = vmatmul.mubr.bf16.gmra.mxu1 %v2617_v42  ;;  %v9734_v14 = vld [vmem:[#allocation12 + $0xa0] ss:$16 sps:$4 sm:$0xff]  }
 0x2cb   : > { %v2192_v21 = vpop.f32.mrf.mxu1  ;;  %v10547_v27 = vpop.eup %10546  ;;  %10556 = vtanh.f32 %v2038_v62  ;;  %v2040_v40 = vadd.f32 %v2039_v2, %v11663_v3  ;;  %v11956_v28 = vpack.c.bf16 %v10545_v19, %v10537_v32  ;;  %v9739_v62 = vld [vmem:[#allocation12 + $0x84] ss:$16 sps:$4 sm:$0xff]  }
 0x2cc   : > { %v2193_v29 = vadd.f32 %v2192_v21, %v11674_v15  ;;  %v10549_v31 = vpop.eup %10548  ;;  %v2041_v35 = vpop.f32.mrf.mxu0  ;;  %10558 = vtanh.f32 %v2191_v12  ;;  %v11959_v39 = vpack.c.bf16 %v10547_v27, %v10539_v45  ;;  %v9737_v21 = vld [vmem:[#allocation12 + $0x80] ss:$16 sps:$4 sm:$0xff]  }
 0x2cd   : > { %v2194_v37 = vpop.f32.mrf.mxu1  ;;  %v10551_v42 = vpop.eup %10550  ;;  %10560 = vtanh.f32 %v2040_v40  ;;  %v2042_v46 = vadd.f32 %v2041_v35, %v11668_v7  ;;  %2469 = vrot.lane.b32.xlu0 %v11956_v28, %s11001_s13  ;;  %v11964_v3 = vpack.c.bf16 %v10549_v31, %v10541_v9  ;;  %v9736_v7 = vld [vmem:[#allocation12 + $0xa4] ss:$16 sps:$4 sm:$0xff]   ;;  %v9740_v35 = vld [vmem:[#allocation12 + $0x60] ss:$16 sps:$4 sm:$0xff]  }
 0x2ce   : > { %v2195_v15 = vadd.f32 %v2194_v37, %v11679_v24  ;;  %10562 = vtanh.f32 %v2193_v29  ;;  %v11969_v45 = vpack.c.bf16 %v10551_v42, %v10543_v61  ;;  %5781 = vmatprep.subr.bf16.mxu0 %v9736_v7  ;;  %v9742_v29 = vld [vmem:[#allocation12 + $0x64] ss:$16 sps:$4 sm:$0xff]   ;;  %v9743_v37 = vld [vmem:[#allocation12 + $0x2e0] ss:$16 sps:$4 sm:$0xff]  }
 0x2cf   : > { %10564 = vtanh.f32 %v2042_v46  ;;  %2471 = vrot.lane.b32.xlu1 %v11964_v3, %s11001_s13  ;;  %v2414_v32 = vpop.permute.xlu0 %2413  ;;  %5782 = vmatpush1.bf16.msra.mxu0 %v9734_v14  ;;  %v9745_v31 = vld [vmem:[#allocation12 + $0x2e4] ss:$16 sps:$4 sm:$0xff]   ;;  %v9746_v14 = vld [vmem:[#allocation12 + $0x40] ss:$16 sps:$4 sm:$0xff]  }
 0x2d0   : > { %10566 = vtanh.f32 %v2195_v15  ;;  %5783 = vmatprep.subr.bf16.mxu0 %v9739_v62  ;;  %5850 = vmatprep.subr.bf16.mxu1 %v9745_v31  ;;  %v9749_v15 = vld [vmem:[#allocation12 + $0x2c0] ss:$16 sps:$4 sm:$0xff]  }
 0x2d1   : > { %v2416_v51 = vpop.permute.xlu1 %2415  ;;  %2473 = vrot.lane.b32.xlu0 %v11959_v39, %s11001_s13  ;;  %5851 = vmatpush1.bf16.msra.mxu1 %v9743_v37 }
 0x2d2   : > { %v2495_v9 = vsel %vm2485_vm6, %v2414_v32, %v2416_v51 }
 0x2d3   : > { %2475 = vrot.lane.b32.xlu1 %v11969_v45, %s11001_s13  ;;  %v2418_v24 = vpop.permute.xlu0 %2417  ;;  %v2619_v56 = vmax.bf16 %v2495_v9, %v11763_v38  ;;  %5784 = vmatpush1.bf16.msra.mxu0 %v9737_v21  ;;  %v9754_v9 = vld [vmem:[#allocation12 + $0x24] ss:$16 sps:$4 sm:$0xff]  }
 0x2d4   : > { %v2496_v53 = vsel %vm2485_vm6, %v2416_v51, %v2418_v24  ;;  %5785 = vmatprep.subr.bf16.mxu0 %v9742_v29 }
 0x2d5   : > { %v2620_v63 = vmax.bf16 %v2496_v53, %v11770_v49  ;;  %v2420_v61 = vpop.permute.xlu1 %2419 }
 0x2d6   : > { %v10553_v12 = vpop.eup %10552  ;;  %v2497_v19 = vsel %vm2485_vm6, %v2418_v24, %v2420_v61  ;;  %v2573_v2 = vsel %vm2485_vm6, %v2420_v61, %v2414_v32  ;;  %v9757_v24 = vld [vmem:[#allocation12 + $0x2a4] ss:$16 sps:$4 sm:$0xff]   ;;  %v9755_v61 = vld [vmem:[#allocation12 + $0x2a0] ss:$16 sps:$4 sm:$0xff]  }
 0x2d7   : > { %v10555_v4 = vpop.eup %10554  ;;  %v2621_v26 = vmax.bf16 %v2497_v19, %v11775_v52  ;;  %v2622_v27 = vmax.bf16 %v2573_v2, %v11779_v54  ;;  %3101 = vmatprep.mubr.bf16.mxu0 %v2620_v63  ;;  %v9748_v52 = vld [vmem:[#allocation12 + $0x44] ss:$16 sps:$4 sm:$0xff]   ;;  %5786 = vmatpush1.bf16.msra.mxu0 %v9740_v35 }
 0x2d8   : > { %v10557_v40 = vpop.eup %10556  ;;  %3102 = vmatmul.mubr.bf16.gmra.mxu0 %v2619_v56  ;;  %v9751_v54 = vld [vmem:[#allocation12 + $0x2c4] ss:$16 sps:$4 sm:$0xff]   ;;  %5787 = vmatprep.subr.bf16.mxu0 %v9748_v52  ;;  %v9764_v52 = vld [vmem:[#allocation12 + $0x1e0] ss:$16 sps:$4 sm:$0xff]  }
 0x2d9   : > { %v10559_v49 = vpop.eup %10558  ;;  %3254 = vmatprep.mubr.bf16.mxu1 %v2622_v27  ;;  %5852 = vmatprep.subr.bf16.mxu1 %v9751_v54  ;;  %v9763_v56 = vld [vmem:[#allocation12 + $0x284] ss:$16 sps:$4 sm:$0xff]   ;;  %v9767_v54 = vld [vmem:[#allocation12 + $0x260] ss:$16 sps:$4 sm:$0xff]  }
 0x2da   : > { %v10561_v38 = vpop.eup %10560  ;;  %3255 = vmatmul.mubr.bf16.gmra.mxu1 %v2621_v26  ;;  %v9760_v19 = vld [vmem:[#allocation12 + $0x4] ss:$16 sps:$4 sm:$0xff]   ;;  %v9761_v26 = vld [vmem:[#allocation12 + $0x280] ss:$16 sps:$4 sm:$0xff]  }
 0x2db   : > { %v10563_v43 = vpop.eup %10562  ;;  %v11983_v42 = vpack.c.bf16 %v10561_v38, %v10553_v12  ;;  %5853 = vmatpush1.bf16.msra.mxu1 %v9749_v15  ;;  %5788 = vmatpush1.bf16.msra.mxu0 %v9746_v14  ;;  %v9752_v12 = vld [vmem:[#allocation12 + $0x20] ss:$16 sps:$4 sm:$0xff]   ;;  %v9778_v14 = vld [vmem:[#allocation12 + $0x1a4] ss:$16 sps:$4 sm:$0xff]  }
 0x2dc   : > { %v10565_v46 = vpop.eup %10564  ;;  %v11989_v7 = vpack.c.bf16 %v10563_v43, %v10555_v4  ;;  %5789 = vmatprep.subr.bf16.mxu0 %v9754_v9  ;;  %5854 = vmatprep.subr.bf16.mxu1 %v9757_v24  ;;  %v9769_v43 = vld [vmem:[#allocation12 + $0x264] ss:$16 sps:$4 sm:$0xff]   ;;  %v9770_v15 = vld [vmem:[#allocation12 + $0x1c0] ss:$16 sps:$4 sm:$0xff]  }
 0x2dd   : > { %v10567_v32 = vpop.eup %10566  ;;  %2477 = vrot.lane.b32.xlu0 %v11983_v42, %s11001_s13  ;;  %v11987_v51 = vpack.c.bf16 %v10565_v46, %v10557_v40  ;;  %v9775_v46 = vld [vmem:[#allocation12 + $0x244] ss:$16 sps:$4 sm:$0xff]   ;;  %v9776_v24 = vld [vmem:[#allocation12 + $0x1a0] ss:$16 sps:$4 sm:$0xff]  }
 0x2de   : > { %v11993_v63 = vpack.c.bf16 %v10567_v32, %v10559_v49  ;;  %v9758_v49 = vld [vmem:[#allocation12] ss:$16 sps:$4 sm:$0xff]   ;;  %v9781_v9 = vld [vmem:[#allocation12 + $0x224] ss:$16 sps:$4 sm:$0xff]  }
 0x2df   : > { %2479 = vrot.lane.b32.xlu1 %v11987_v51, %s11001_s13  ;;  %v2422_v53 = vpop.permute.xlu0 %2421  ;;  %5855 = vmatpush1.bf16.msra.mxu1 %v9755_v61 }
 0x2e0   : > { %5790 = vmatpush1.bf16.msra.mxu0 %v9752_v12  ;;  %5856 = vmatprep.subr.bf16.mxu1 %v9763_v56 }
 0x2e1   : > { %v2424_v62 = vpop.permute.xlu1 %2423  ;;  %2481 = vrot.lane.b32.xlu0 %v11989_v7, %s11001_s13  ;;  %5791 = vmatprep.subr.bf16.mxu0 %v9760_v19 }
 0x2e2   : > { %v2498_v2 = vsel %vm2485_vm6, %v2422_v53, %v2424_v62 }
 0x2e3   : > { %2483 = vrot.lane.b32.xlu1 %v11993_v63, %s11001_s13  ;;  %v2426_v21 = vpop.permute.xlu0 %2425  ;;  %v2623_v29 = vmax.bf16 %v2498_v2, %v11787_v20  ;;  %5857 = vmatpush1.bf16.msra.mxu1 %v9761_v26  ;;  %v9772_v20 = vld [vmem:[#allocation12 + $0x1c4] ss:$16 sps:$4 sm:$0xff]   ;;  %v9782_v2 = vld [vmem:[#allocation12 + $0x180] ss:$16 sps:$4 sm:$0xff]  }
 0x2e4   : > { %v2499_v4 = vsel %vm2485_vm6, %v2424_v62, %v2426_v21  ;;  %5792 = vmatpush1.bf16.msra.mxu0 %v9758_v49  ;;  %5858 = vmatprep.subr.bf16.mxu1 %v9769_v43  ;;  %v9797_v43 = vld [vmem:[#allocation12 + $0x3c0] ss:$16 sps:$4 sm:$0xff]  }
 0x2e5   : > { %v2624_v27 = vmax.bf16 %v2499_v4, %v11794_v30  ;;  %v2428_v40 = vpop.permute.xlu1 %2427  ;;  %v9766_v30 = vld [vmem:[#allocation12 + $0x1e4] ss:$16 sps:$4 sm:$0xff]  }
 0x2e6   : > { %v2500_v31 = vsel %vm2485_vm6, %v2426_v21, %v2428_v40  ;;  %v2577_v38 = vsel %vm2485_vm6, %v2428_v40, %v2422_v53  ;;  %5793 = vmatprep.subr.bf16.mxu0 %v9766_v30  ;;  %v9779_v53 = vld [vmem:[#allocation12 + $0x220] ss:$16 sps:$4 sm:$0xff]   ;;  %v9784_v21 = vld [vmem:[#allocation12 + $0x184] ss:$16 sps:$4 sm:$0xff]  }
 0x2e7   : > { %v2625_v35 = vmax.bf16 %v2500_v31, %v11799_v34  ;;  %v2626_v37 = vmax.bf16 %v2577_v38, %v11803_v36  ;;  %3111 = vmatprep.mubr.bf16.mxu0 %v2624_v27  ;;  %5859 = vmatpush1.bf16.msra.mxu1 %v9767_v54  ;;  %v9773_v34 = vld [vmem:[#allocation12 + $0x240] ss:$16 sps:$4 sm:$0xff]   ;;  %v9787_v40 = vld [vmem:[#allocation12 + $0x204] ss:$16 sps:$4 sm:$0xff]  }
 0x2e8   : > { %3112 = vmatmul.mubr.bf16.gmra.mxu0 %v2623_v29  ;;  %5860 = vmatprep.subr.bf16.mxu1 %v9775_v46  ;;  %v9785_v31 = vld [vmem:[#allocation12 + $0x200] ss:$16 sps:$4 sm:$0xff]   ;;  %v9793_v38 = vld [vmem:[#allocation12 + $0x3e4] ss:$16 sps:$4 sm:$0xff]  }
 0x2e9   : > { %3264 = vmatprep.mubr.bf16.mxu1 %v2626_v37  ;;  %5794 = vmatpush2.bf16.msra.mxu0 %v9764_v52  ;;  %v9796_v37 = vld [vmem:[#allocation12 + $0x144] ss:$16 sps:$4 sm:$0xff]   ;;  %v9794_v30 = vld [vmem:[#allocation12 + $0x140] ss:$16 sps:$4 sm:$0xff]  }
 0x2ea   : > { %3265 = vmatmul.mubr.bf16.gmra.mxu1 %v2625_v35  ;;  %5795 = vmatprep.subr.bf16.mxu0 %v9772_v20  ;;  %v9791_v35 = vld [vmem:[#allocation12 + $0x3e0] ss:$16 sps:$4 sm:$0xff]   ;;  %v9802_v54 = vld [vmem:[#allocation12 + $0x124] ss:$16 sps:$4 sm:$0xff]  }
 0x2eb   : > { %5861 = vmatpush1.bf16.msra.mxu1 %v9773_v34  ;;  %v9805_v20 = vld [vmem:[#allocation12 + $0x3a4] ss:$16 sps:$4 sm:$0xff]   ;;  %v9800_v46 = vld [vmem:[#allocation12 + $0x120] ss:$16 sps:$4 sm:$0xff]  }
 0x2ec   : > { %5862 = vmatprep.subr.bf16.mxu1 %v9781_v9 }
 0x2ed   : > { %5796 = vmatpush2.bf16.msra.mxu0 %v9770_v15 }
 0x2ee   : > { %5797 = vmatprep.subr.bf16.mxu0 %v9778_v14 }
 0x2ef   : > { %v2430_v32 = vpop.permute.xlu0 %2429  ;;  %5863 = vmatpush1.bf16.msra.mxu1 %v9779_v53 }
 0x2f0   : > { %5864 = vmatprep.subr.bf16.mxu1 %v9787_v40 }
 0x2f1   : > { %v2432_v36 = vpop.permute.xlu1 %2431  ;;  %5798 = vmatpush2.bf16.msra.mxu0 %v9776_v24  ;;  %v9808_v24 = vld [vmem:[#allocation12 + $0x104] ss:$16 sps:$4 sm:$0xff]  }
 0x2f2   : > { %v2501_v61 = vsel %vm2485_vm6, %v2430_v32, %v2432_v36  ;;  %5799 = vmatprep.subr.bf16.mxu0 %v9784_v21  ;;  %v9809_v21 = vld [vmem:[#allocation12 + $0x380] ss:$16 sps:$4 sm:$0xff]  }
 0x2f3   : > { %v2434_v62 = vpop.permute.xlu0 %2433  ;;  %v2627_v4 = vmax.bf16 %v2501_v61, %v11811_v59  ;;  %v9788_v59 = vld [vmem:[#allocation12 + $0x160] ss:$16 sps:$4 sm:$0xff]   ;;  %5865 = vmatpush1.bf16.msra.mxu1 %v9785_v31 }
 0x2f4   : > { %v2502_v12 = vsel %vm2485_vm6, %v2432_v36, %v2434_v62  ;;  %5866 = vmatprep.subr.bf16.mxu1 %v9793_v38 }
 0x2f5   : > { %v2628_v56 = vmax.bf16 %v2502_v12, %v11818_v11  ;;  %v2436_v19 = vpop.permute.xlu1 %2435  ;;  %5800 = vmatpush2.bf16.msra.mxu0 %v9782_v2  ;;  %v9790_v11 = vld [vmem:[#allocation12 + $0x164] ss:$16 sps:$4 sm:$0xff]   ;;  %v9806_v12 = vld [vmem:[#allocation12 + $0x100] ss:$16 sps:$4 sm:$0xff]  }
 0x2f6   : > { %v2503_v26 = vsel %vm2485_vm6, %v2434_v62, %v2436_v19  ;;  %v2581_v27 = vsel %vm2485_vm6, %v2436_v19, %v2430_v32  ;;  %5801 = vmatprep.subr.bf16.mxu0 %v9790_v11  ;;  %v9803_v32 = vld [vmem:[#allocation12 + $0x3a0] ss:$16 sps:$4 sm:$0xff]  }
 0x2f7   : > { %v2629_v49 = vmax.bf16 %v2503_v26, %v11823_v22  ;;  %v2630_v29 = vmax.bf16 %v2581_v27, %v11827_v25  ;;  %3121 = vmatprep.mubr.bf16.mxu0 %v2628_v56  ;;  %v9799_v22 = vld [vmem:[#allocation12 + $0x3c4] ss:$16 sps:$4 sm:$0xff]   ;;  %5867 = vmatpush2.bf16.msra.mxu1 %v9791_v35  ;;  %v9815_v27 = vld [vmem:[#allocation12 + $0x340] ss:$16 sps:$4 sm:$0xff]  }
 0x2f8   : > { %3122 = vmatmul.mubr.bf16.gmra.mxu0 %v2627_v4  ;;  %5868 = vmatprep.subr.bf16.mxu1 %v9799_v22  ;;  %v9811_v56 = vld [vmem:[#allocation12 + $0x384] ss:$16 sps:$4 sm:$0xff]  }
 0x2f9   : > { %3274 = vmatprep.mubr.bf16.mxu1 %v2630_v29  ;;  %5802 = vmatpush2.bf16.msra.mxu0 %v9788_v59  ;;  %v9817_v4 = vld [vmem:[#allocation12 + $0x344] ss:$16 sps:$4 sm:$0xff]   ;;  %v9818_v29 = vld [vmem:[#allocation12 + $0x320] ss:$16 sps:$4 sm:$0xff]  }
 0x2fa   : > { %3275 = vmatmul.mubr.bf16.gmra.mxu1 %v2629_v49  ;;  %5803 = vmatprep.subr.bf16.mxu0 %v9796_v37  ;;  %v9823_v59 = vld [vmem:[#allocation12 + $0x304] ss:$16 sps:$4 sm:$0xff]  }
 0x2fb   : > { %5869 = vmatpush2.bf16.msra.mxu1 %v9797_v43  ;;  %v9821_v43 = vld [vmem:[#allocation12 + $0x300] ss:$16 sps:$4 sm:$0xff]  }
 0x2fc   : > { %5870 = vmatprep.subr.bf16.mxu1 %v9805_v20 }
 0x2fd   : > { %5804 = vmatpush2.bf16.msra.mxu0 %v9794_v30 }
 0x2fe   : > { %5805 = vmatprep.subr.bf16.mxu0 %v9802_v54 }
 0x2ff   : > { %v2438_v25 = vpop.permute.xlu0 %2437  ;;  %5871 = vmatpush2.bf16.msra.mxu1 %v9803_v32 }
 0x300   : > { %5872 = vmatprep.subr.bf16.mxu1 %v9811_v56 }
 0x301   : > { %v2440_v52 = vpop.permute.xlu1 %2439  ;;  %5806 = vmatpush2.bf16.msra.mxu0 %v9800_v46 }
 0x302   : > { %v2504_v15 = vsel %vm2485_vm6, %v2438_v25, %v2440_v52  ;;  %5807 = vmatprep.subr.bf16.mxu0 %v9808_v24 }
 0x303   : > { %v2442_v34 = vpop.permute.xlu0 %2441  ;;  %v2631_v53 = vmax.bf16 %v2504_v15, %v11835_v48  ;;  %5873 = vmatpush2.bf16.msra.mxu1 %v9809_v21  ;;  %v9812_v48 = vld [vmem:[#allocation12 + $0x360] ss:$16 sps:$4 sm:$0xff]   ;;  %v9841_v21 = vld [vmem:[#allocation12 + $0x6e4] ss:$16 sps:$4 sm:$0xff]  }
 0x304   : > { %v2505_v36 = vsel %vm2485_vm6, %v2440_v52, %v2442_v34 }
 0x305   : > { %v2632_v14 = vmax.bf16 %v2505_v36, %v11842_v1  ;;  %v2444_v9 = vpop.permute.xlu1 %2443  ;;  %v9814_v1 = vld [vmem:[#allocation12 + $0x364] ss:$16 sps:$4 sm:$0xff]   ;;  %5808 = vmatpush2.bf16.msra.mxu0 %v9806_v12 }
 0x306   : > { %v2506_v61 = vsel %vm2485_vm6, %v2442_v34, %v2444_v9  ;;  %v2585_v62 = vsel %vm2485_vm6, %v2444_v9, %v2438_v25  ;;  %5874 = vmatprep.subr.bf16.mxu1 %v9814_v1  ;;  %v9826_v9 = vld [vmem:[#allocation12 + $0x4e4] ss:$16 sps:$4 sm:$0xff]  }
 0x307   : > { %v2633_v19 = vmax.bf16 %v2506_v61, %v11847_v6  ;;  %v2634_v2 = vmax.bf16 %v2585_v62, %v11851_v10  ;;  %3131 = vmatprep.mubr.bf16.mxu0 %v2632_v14  ;;  %5875 = vmatpush2.bf16.msra.mxu1 %v9812_v48  ;;  %v9820_v10 = vld [vmem:[#allocation12 + $0x324] ss:$16 sps:$4 sm:$0xff]  }
 0x308   : > { %3132 = vmatmul.mubr.bf16.gmra.mxu0 %v2631_v53  ;;  %5876 = vmatprep.subr.bf16.mxu1 %v9817_v4 }
 0x309   : > { %3284 = vmatprep.mubr.bf16.mxu1 %v2634_v2  ;;  %5923 = vmatprep.subr.bf16.mxu0 %v9826_v9 }
 0x30a   : > { %3285 = vmatmul.mubr.bf16.gmra.mxu1 %v2633_v19 }
 0x30b   : > { %5877 = vmatpush2.bf16.msra.mxu1 %v9815_v27 }
 0x30c   : > { %5878 = vmatprep.subr.bf16.mxu1 %v9820_v10 }
 0x30f   : > { %v2446_v26 = vpop.permute.xlu0 %2445  ;;  %5879 = vmatpush2.bf16.msra.mxu1 %v9818_v29 }
 0x310   : > { %5880 = vmatprep.subr.bf16.mxu1 %v9823_v59 }
 0x311   : > { %v2448_v6 = vpop.permute.xlu1 %2447 }
 0x312   : > { %v2507_v40 = vsel %vm2485_vm6, %v2446_v26, %v2448_v6 }
 0x313   : > { %v2450_v49 = vpop.permute.xlu0 %2449  ;;  %v2635_v35 = vmax.bf16 %v2507_v40, %v11859_v44  ;;  %5881 = vmatpush2.bf16.msra.mxu1 %v9821_v43 }
 0x314   : > { %v2508_v31 = vsel %vm2485_vm6, %v2448_v6, %v2450_v49  ;;  %5996 = vmatprep.subr.bf16.mxu1 %v9841_v21 }
 0x315   : > { %v2636_v11 = vmax.bf16 %v2508_v31, %v11866_v58  ;;  %v2452_v38 = vpop.permute.xlu1 %2451 }
 0x316   : > { %v2509_v37 = vsel %vm2485_vm6, %v2450_v49, %v2452_v38  ;;  %v2589_v22 = vsel %vm2485_vm6, %v2452_v38, %v2446_v26 }
 0x317   : > { %v2637_v30 = vmax.bf16 %v2509_v37, %v11871_v8  ;;  %v2638_v25 = vmax.bf16 %v2589_v22, %v11875_v23  ;;  %3141 = vmatprep.mubr.bf16.mxu0 %v2636_v11 }
 0x318   : > { %3142 = vmatmul.mubr.bf16.gmra.mxu0 %v2635_v35 }
 0x319   : > { %3294 = vmatprep.mubr.bf16.mxu1 %v2638_v25 }
 0x31a   : > { %3295 = vmatmul.mubr.bf16.gmra.mxu1 %v2637_v30 }
 0x31f   : > { %v2454_v58 = vpop.permute.xlu0 %2453 }
 0x321   : > { %v2456_v52 = vpop.permute.xlu1 %2455 }
 0x322   : > { %v2510_v44 = vsel %vm2485_vm6, %v2454_v58, %v2456_v52 }
 0x323   : > { %v2458_v54 = vpop.permute.xlu0 %2457  ;;  %v2639_v23 = vmax.bf16 %v2510_v44, %v11892_v17 }
 0x324   : > { %v2511_v20 = vsel %vm2485_vm6, %v2456_v52, %v2458_v54 }
 0x325   : > { %v2640_v46 = vmax.bf16 %v2511_v20, %v11898_v33  ;;  %v2460_v8 = vpop.permute.xlu1 %2459 }
 0x326   : > { %v2512_v15 = vsel %vm2485_vm6, %v2458_v54, %v2460_v8  ;;  %v2593_v34 = vsel %vm2485_vm6, %v2460_v8, %v2454_v58 }
 0x327   : > { %v2641_v32 = vmax.bf16 %v2512_v15, %v11903_v41  ;;  %v2642_v36 = vmax.bf16 %v2593_v34, %v11907_v47  ;;  %3151 = vmatprep.mubr.bf16.mxu0 %v2640_v46 }
 0x328   : > { %3152 = vmatmul.mubr.bf16.gmra.mxu0 %v2639_v23 }
 0x329   : > { %3304 = vmatprep.mubr.bf16.mxu1 %v2642_v36 }
 0x32a   : > { %3305 = vmatmul.mubr.bf16.gmra.mxu1 %v2641_v32 }
 0x32f   : > { %v2462_v14 = vpop.permute.xlu0 %2461 }
 0x331   : > { %v2464_v24 = vpop.permute.xlu1 %2463 }
 0x332   : > { %v2513_v33 = vsel %vm2485_vm6, %v2462_v14, %v2464_v24 }
 0x333   : > { %v2466_v53 = vpop.permute.xlu0 %2465  ;;  %v2643_v41 = vmax.bf16 %v2513_v33, %v11924_v50 }
 0x334   : > { %v2514_v17 = vsel %vm2485_vm6, %v2464_v24, %v2466_v53 }
 0x335   : > { %v2644_v61 = vmax.bf16 %v2514_v17, %v11932_v16  ;;  %v2468_v62 = vpop.permute.xlu1 %2467 }
 0x336   : > { %v2515_v47 = vsel %vm2485_vm6, %v2466_v53, %v2468_v62  ;;  %v2597_v12 = vsel %vm2485_vm6, %v2468_v62, %v2462_v14 }
 0x337   : > { %v2645_v56 = vmax.bf16 %v2515_v47, %v11927_v57  ;;  %v2646_v19 = vmax.bf16 %v2597_v12, %v11937_v18  ;;  %3161 = vmatprep.mubr.bf16.mxu0 %v2644_v61 }
 0x338   : > { %3162 = vmatmul.mubr.bf16.gmra.mxu0 %v2643_v41 }
 0x339   : > { %3314 = vmatprep.mubr.bf16.mxu1 %v2646_v19 }
 0x33a   : > { %3315 = vmatmul.mubr.bf16.gmra.mxu1 %v2645_v56  ;;  %v9824_v56 = vld [vmem:[#allocation12 + $0x4e0] ss:$16 sps:$4 sm:$0xff]  }
 0x33f   : > { %v2470_v2 = vpop.permute.xlu0 %2469 }
 0x341   : > { %v2472_v1 = vpop.permute.xlu1 %2471 }
 0x342   : > { %v2516_v16 = vsel %vm2485_vm6, %v2470_v2, %v2472_v1 }
 0x343   : > { %v2474_v48 = vpop.permute.xlu0 %2473  ;;  %v2647_v57 = vmax.bf16 %v2516_v16, %v11956_v28  ;;  %v9827_v16 = vld [vmem:[#allocation12 + $0x4c0] ss:$16 sps:$4 sm:$0xff]  }
 0x344   : > { %v2517_v50 = vsel %vm2485_vm6, %v2472_v1, %v2474_v48 }
 0x345   : > { %v2648_v4 = vmax.bf16 %v2517_v50, %v11964_v3  ;;  %v2476_v26 = vpop.permute.xlu1 %2475 }
 0x346   : > { %v2518_v18 = vsel %vm2485_vm6, %v2474_v48, %v2476_v26  ;;  %v2601_v27 = vsel %vm2485_vm6, %v2476_v26, %v2470_v2  ;;  %v9829_v2 = vld [vmem:[#allocation12 + $0x4c4] ss:$16 sps:$4 sm:$0xff]  }
 0x347   : > { %v2649_v6 = vmax.bf16 %v2518_v18, %v11959_v39  ;;  %v2650_v10 = vmax.bf16 %v2601_v27, %v11969_v45  ;;  %3171 = vmatprep.mubr.bf16.mxu0 %v2648_v4  ;;  %v9832_v4 = vld [vmem:[#allocation12 + $0x4a4] ss:$16 sps:$4 sm:$0xff]   ;;  %v9830_v18 = vld [vmem:[#allocation12 + $0x4a0] ss:$16 sps:$4 sm:$0xff]  }
 0x348   : > { %3172 = vmatmul.mubr.bf16.gmra.mxu0 %v2647_v57 }
 0x349   : > { %3324 = vmatprep.mubr.bf16.mxu1 %v2650_v10  ;;  %v9835_v10 = vld [vmem:[#allocation12 + $0x484] ss:$16 sps:$4 sm:$0xff]  }
 0x34a   : > { %3325 = vmatmul.mubr.bf16.gmra.mxu1 %v2649_v6 }
 0x34f   : > { %v2478_v40 = vpop.permute.xlu0 %2477 }
 0x351   : > { %v2480_v49 = vpop.permute.xlu1 %2479 }
 0x352   : > { %v2519_v29 = vsel %vm2485_vm6, %v2478_v40, %v2480_v49 }
 0x353   : > { %v2482_v3 = vpop.permute.xlu0 %2481  ;;  %v2651_v38 = vmax.bf16 %v2519_v29, %v11983_v42 }
 0x354   : > { %v2520_v31 = vsel %vm2485_vm6, %v2480_v49, %v2482_v3 }
 0x355   : > { %v2652_v28 = vmax.bf16 %v2520_v31, %v11987_v51  ;;  %v2484_v11 = vpop.permute.xlu1 %2483 }
 0x356   : > { %v2521_v39 = vsel %vm2485_vm6, %v2482_v3, %v2484_v11  ;;  %v2605_v45 = vsel %vm2485_vm6, %v2484_v11, %v2478_v40  ;;  %v9838_v11 = vld [vmem:[#allocation12 + $0x464] ss:$16 sps:$4 sm:$0xff]  }
 0x357   : > { %v2653_v59 = vmax.bf16 %v2521_v39, %v11989_v7  ;;  %v2654_v35 = vmax.bf16 %v2605_v45, %v11993_v63  ;;  %3181 = vmatprep.mubr.bf16.mxu0 %v2652_v28  ;;  %v9833_v28 = vld [vmem:[#allocation12 + $0x480] ss:$16 sps:$4 sm:$0xff]  }
 0x358   : > { %3182 = vmatmul.mubr.bf16.gmra.mxu0 %v2651_v38 }
 0x359   : > { %3334 = vmatprep.mubr.bf16.mxu1 %v2654_v35  ;;  %v9839_v35 = vld [vmem:[#allocation12 + $0x6e0] ss:$16 sps:$4 sm:$0xff]  }
 0x35a   : > { %3335 = vmatmul.mubr.bf16.gmra.mxu1 %v2653_v59  ;;  %v9836_v59 = vld [vmem:[#allocation12 + $0x460] ss:$16 sps:$4 sm:$0xff]  }
 0x368   : > { %v3073_v37 = vpop.f32.mrf.mxu0 }
 0x36a   : > { %v3226_v22 = vpop.f32.mrf.mxu1  ;;  %v3075_v30 = vpop.f32.mrf.mxu0 }
 0x36b   : > { %v3227_v34 = vadd.f32 %v3226_v22, %v3073_v37  ;;  %v9844_v22 = vld [vmem:[#allocation12 + $0x444] ss:$16 sps:$4 sm:$0xff]  }
 0x36c   : > { %v3228_v25 = vpop.f32.mrf.mxu1  ;;  %v3077_v51 = vpop.f32.mrf.mxu0 }
 0x36d   : > { %v3229_v63 = vadd.f32 %v3228_v25, %v3075_v30  ;;  %v9847_v30 = vld [vmem:[#allocation12 + $0x6c4] ss:$16 sps:$4 sm:$0xff]  }
 0x36e   : > { %v3230_v43 = vpop.f32.mrf.mxu1  ;;  %v3079_v58 = vpop.f32.mrf.mxu0 }
 0x36f   : > { %v3231_v23 = vadd.f32 %v3230_v43, %v3077_v51  ;;  %v9178_v53 = vpack.c.bf16 %v3229_v63, %v3227_v34  ;;  %v9842_v43 = vld [vmem:[#allocation12 + $0x440] ss:$16 sps:$4 sm:$0xff]   ;;  %v9859_v34 = vld [vmem:[#allocation12 + $0x684] ss:$16 sps:$4 sm:$0xff]  }
 0x370   : > { %v3232_v42 = vpop.f32.mrf.mxu1 }
 0x371   : > { %v3233_v7 = vadd.f32 %v3232_v42, %v3079_v58  ;;  %v9845_v58 = vld [vmem:[#allocation12 + $0x6c0] ss:$16 sps:$4 sm:$0xff]  }
 0x373   : > { %v9179_v14 = vpack.c.bf16 %v3233_v7, %v3231_v23  ;;  %v9848_v7 = vld [vmem:[#allocation12 + $0x420] ss:$16 sps:$4 sm:$0xff]  }
 0x375   : > { %v3516_v62 = vmax.bf16 %v9179_v14, %v9178_v53  ;;  %v9857_v53 = vld [vmem:[#allocation12 + $0x680] ss:$16 sps:$4 sm:$0xff]  }
 0x378   : > { %v3083_v52 = vpop.f32.mrf.mxu0 }
 0x37a   : > { %v3085_v44 = vpop.f32.mrf.mxu0  ;;  %v3236_v54 = vpop.f32.mrf.mxu1 }
 0x37b   : > { %v3237_v9 = vadd.f32 %v3236_v54, %v3083_v52  ;;  %v9853_v54 = vld [vmem:[#allocation12 + $0x6a4] ss:$16 sps:$4 sm:$0xff]  }
 0x37c   : > { %v3087_v20 = vpop.f32.mrf.mxu0  ;;  %v3238_v46 = vpop.f32.mrf.mxu1 }
 0x37d   : > { %v3239_v15 = vadd.f32 %v3238_v46, %v3085_v44  ;;  %v9850_v44 = vld [vmem:[#allocation12 + $0x424] ss:$16 sps:$4 sm:$0xff]  }
 0x37e   : > { %v3240_v8 = vpop.f32.mrf.mxu1  ;;  %v3089_v32 = vpop.f32.mrf.mxu0 }
 0x37f   : > { %v3241_v24 = vadd.f32 %v3240_v8, %v3087_v20  ;;  %v9180_v17 = vpack.c.bf16 %v3239_v15, %v3237_v9  ;;  %v9851_v8 = vld [vmem:[#allocation12 + $0x6a0] ss:$16 sps:$4 sm:$0xff]   ;;  %v9856_v15 = vld [vmem:[#allocation12 + $0x404] ss:$16 sps:$4 sm:$0xff]  }
 0x380   : > { %v3242_v36 = vpop.f32.mrf.mxu1 }
 0x381   : > { %v3243_v33 = vadd.f32 %v3242_v36, %v3089_v32 }
 0x383   : > { %v9181_v61 = vpack.c.bf16 %v3243_v33, %v3241_v24  ;;  %v9854_v33 = vld [vmem:[#allocation12 + $0x400] ss:$16 sps:$4 sm:$0xff]  }
 0x385   : > { %v3522_v41 = vmax.bf16 %v9181_v61, %v9180_v17  ;;  %v9862_v17 = vld [vmem:[#allocation12 + $0x5e4] ss:$16 sps:$4 sm:$0xff]  }
 0x386   : > { %v9865_v61 = vld [vmem:[#allocation12 + $0x664] ss:$16 sps:$4 sm:$0xff]  }
 0x387   : > { %v12063_v47 = vcombine.high %v3516_v62, %v3522_v41  ;;  %v12065_v12 = vcombine.low %v3516_v62, %v3522_v41 }
 0x388   : > { %v3093_v19 = vpop.f32.mrf.mxu0 }
 0x389   : > { %5809 = vmatprep.mubr.bf16.mxu0 %v12063_v47 }
 0x38a   : > { %v3095_v21 = vpop.f32.mrf.mxu0  ;;  %v3246_v1 = vpop.f32.mrf.mxu1  ;;  %5810 = vmatmul.mubr.bf16.vlgmr.msra.gmra.mxu0 %v12065_v12 }
 0x38b   : > { %5924 = vmatpush1.bf16.msra.mxu0 %v9824_v56  ;;  %v3247_v40 = vadd.f32 %v3246_v1, %v3093_v19  ;;  %v9860_v19 = vld [vmem:[#allocation12 + $0x5e0] ss:$16 sps:$4 sm:$0xff]   ;;  %v9868_v1 = vld [vmem:[#allocation12 + $0x5c4] ss:$16 sps:$4 sm:$0xff]  }
 0x38c   : > { %v3097_v48 = vpop.f32.mrf.mxu0  ;;  %v3248_v50 = vpop.f32.mrf.mxu1  ;;  %5925 = vmatprep.subr.bf16.mxu0 %v9829_v2  ;;  %v9863_v2 = vld [vmem:[#allocation12 + $0x660] ss:$16 sps:$4 sm:$0xff]  }
 0x38d   : > { %v3249_v57 = vadd.f32 %v3248_v50, %v3095_v21 }
 0x38e   : > { %v3250_v26 = vpop.f32.mrf.mxu1  ;;  %v3099_v27 = vpop.f32.mrf.mxu0 }
 0x38f   : > { %5926 = vmatpush1.bf16.msra.mxu0 %v9827_v16  ;;  %v3251_v49 = vadd.f32 %v3250_v26, %v3097_v48  ;;  %v9182_v3 = vpack.c.bf16 %v3249_v57, %v3247_v40  ;;  %v9871_v16 = vld [vmem:[#allocation12 + $0x644] ss:$16 sps:$4 sm:$0xff]   ;;  %v9869_v26 = vld [vmem:[#allocation12 + $0x640] ss:$16 sps:$4 sm:$0xff]  }
 0x390   : > { %v3252_v6 = vpop.f32.mrf.mxu1  ;;  %5927 = vmatprep.subr.bf16.mxu0 %v9832_v4  ;;  %v9866_v4 = vld [vmem:[#allocation12 + $0x5c0] ss:$16 sps:$4 sm:$0xff]  }
 0x391   : > { %v3253_v29 = vadd.f32 %v3252_v6, %v3099_v27  ;;  %v9874_v27 = vld [vmem:[#allocation12 + $0x5a4] ss:$16 sps:$4 sm:$0xff]  }
 0x392   : > { %v9877_v6 = vld [vmem:[#allocation12 + $0x624] ss:$16 sps:$4 sm:$0xff]  }
 0x393   : > { %v9183_v31 = vpack.c.bf16 %v3253_v29, %v3251_v49  ;;  %5928 = vmatpush1.bf16.msra.mxu0 %v9830_v18  ;;  %v9872_v49 = vld [vmem:[#allocation12 + $0x5a0] ss:$16 sps:$4 sm:$0xff]  }
 0x394   : > { %5929 = vmatprep.subr.bf16.mxu0 %v9835_v10  ;;  %v9875_v29 = vld [vmem:[#allocation12 + $0x620] ss:$16 sps:$4 sm:$0xff]  }
 0x395   : > { %v3529_v38 = vmax.bf16 %v9183_v31, %v9182_v3 }
 0x397   : > { %v12069_v39 = vcombine.high %v3522_v41, %v3529_v38  ;;  %v12071_v45 = vcombine.low %v3522_v41, %v3529_v38  ;;  %5930 = vmatpush1.bf16.msra.mxu0 %v9833_v28  ;;  %v9880_v28 = vld [vmem:[#allocation12 + $0x584] ss:$16 sps:$4 sm:$0xff]  }
 0x398   : > { %v3103_v37 = vpop.f32.mrf.mxu0  ;;  %5931 = vmatprep.subr.bf16.mxu0 %v9838_v11  ;;  %v9883_v11 = vld [vmem:[#allocation12 + $0x604] ss:$16 sps:$4 sm:$0xff]  }
 0x399   : > { %5882 = vmatprep.mubr.bf16.mxu1 %v12069_v39 }
 0x39a   : > { %v3105_v25 = vpop.f32.mrf.mxu0  ;;  %v3256_v51 = vpop.f32.mrf.mxu1  ;;  %5883 = vmatmul.mubr.bf16.vlgmr.msra.gmra.mxu1 %v12071_v45 }
 0x39b   : > { %5932 = vmatpush1.bf16.msra.mxu0 %v9836_v59  ;;  %5997 = vmatpush1.bf16.msra.mxu1 %v9839_v35  ;;  %v3257_v32 = vadd.f32 %v3256_v51, %v3103_v37  ;;  %v9886_v51 = vld [vmem:[#allocation12 + $0x564] ss:$16 sps:$4 sm:$0xff]  }
 0x39c   : > { %v3107_v42 = vpop.f32.mrf.mxu0  ;;  %v3258_v52 = vpop.f32.mrf.mxu1  ;;  %5933 = vmatprep.subr.bf16.mxu0 %v9844_v22  ;;  %5998 = vmatprep.subr.bf16.mxu1 %v9847_v30  ;;  %v9878_v30 = vld [vmem:[#allocation12 + $0x580] ss:$16 sps:$4 sm:$0xff]  }
 0x39d   : > { %v3259_v46 = vadd.f32 %v3258_v52, %v3105_v25  ;;  %v9881_v25 = vld [vmem:[#allocation12 + $0x600] ss:$16 sps:$4 sm:$0xff]  }
 0x39e   : > { %v3260_v20 = vpop.f32.mrf.mxu1  ;;  %v3109_v63 = vpop.f32.mrf.mxu0 }
 0x39f   : > { %5934 = vmatpush1.bf16.msra.mxu0 %v9842_v43  ;;  %5999 = vmatpush1.bf16.msra.mxu1 %v9845_v58  ;;  %v3261_v36 = vadd.f32 %v3260_v20, %v3107_v42  ;;  %v9184_v9 = vpack.c.bf16 %v3259_v46, %v3257_v32  ;;  %v9889_v43 = vld [vmem:[#allocation12 + $0x7e4] ss:$16 sps:$4 sm:$0xff]  }
 0x3a0   : > { %v3262_v23 = vpop.f32.mrf.mxu1  ;;  %5935 = vmatprep.subr.bf16.mxu0 %v9850_v44  ;;  %6000 = vmatprep.subr.bf16.mxu1 %v9853_v54  ;;  %v9884_v44 = vld [vmem:[#allocation12 + $0x560] ss:$16 sps:$4 sm:$0xff]   ;;  %v9892_v46 = vld [vmem:[#allocation12 + $0x544] ss:$16 sps:$4 sm:$0xff]  }
 0x3a1   : > { %v3263_v14 = vadd.f32 %v3262_v23, %v3109_v63  ;;  %v9887_v54 = vld [vmem:[#allocation12 + $0x7e0] ss:$16 sps:$4 sm:$0xff]  }
 0x3a2   : > { %v9890_v23 = vld [vmem:[#allocation12 + $0x540] ss:$16 sps:$4 sm:$0xff]  }
 0x3a3   : > { %v9185_v24 = vpack.c.bf16 %v3263_v14, %v3261_v36  ;;  %5936 = vmatpush1.bf16.msra.mxu0 %v9848_v7  ;;  %6001 = vmatpush1.bf16.msra.mxu1 %v9851_v8  ;;  %v9895_v7 = vld [vmem:[#allocation12 + $0x7c4] ss:$16 sps:$4 sm:$0xff]  }
 0x3a4   : > { %5937 = vmatprep.subr.bf16.mxu0 %v9856_v15  ;;  %6002 = vmatprep.subr.bf16.mxu1 %v9859_v34  ;;  %v9893_v15 = vld [vmem:[#allocation12 + $0x7c0] ss:$16 sps:$4 sm:$0xff]   ;;  %v9898_v36 = vld [vmem:[#allocation12 + $0x524] ss:$16 sps:$4 sm:$0xff]  }
 0x3a5   : > { %v3536_v62 = vmax.bf16 %v9185_v24, %v9184_v9  ;;  %v9901_v14 = vld [vmem:[#allocation12 + $0x7a4] ss:$16 sps:$4 sm:$0xff]  }
 0x3a7   : > { %v12075_v41 = vcombine.high %v3529_v38, %v3536_v62  ;;  %v12077_v56 = vcombine.low %v3529_v38, %v3536_v62  ;;  %5938 = vmatpush1.bf16.msra.mxu0 %v9854_v33  ;;  %6003 = vmatpush1.bf16.msra.mxu1 %v9857_v53  ;;  %v9896_v33 = vld [vmem:[#allocation12 + $0x520] ss:$16 sps:$4 sm:$0xff]  }
 0x3a8   : > { %v3113_v21 = vpop.f32.mrf.mxu0  ;;  %5939 = vmatprep.subr.bf16.mxu0 %v9862_v17  ;;  %6004 = vmatprep.subr.bf16.mxu1 %v9865_v61  ;;  %v9899_v53 = vld [vmem:[#allocation12 + $0x7a0] ss:$16 sps:$4 sm:$0xff]  }
 0x3a9   : > { %5819 = vmatprep.mubr.bf16.mxu0 %v12075_v41 }
 0x3aa   : > { %v3115_v48 = vpop.f32.mrf.mxu0  ;;  %v3266_v50 = vpop.f32.mrf.mxu1  ;;  %5820 = vmatmul.mubr.bf16.gmra.mxu0 %v12077_v56 }
 0x3ab   : > { %5940 = vmatpush2.bf16.msra.mxu0 %v9860_v19  ;;  %6005 = vmatpush1.bf16.msra.mxu1 %v9863_v2  ;;  %v3267_v38 = vadd.f32 %v3266_v50, %v3113_v21  ;;  %v9907_v19 = vld [vmem:[#allocation12 + $0x784] ss:$16 sps:$4 sm:$0xff]   ;;  %v9902_v50 = vld [vmem:[#allocation12 + $0x500] ss:$16 sps:$4 sm:$0xff]  }
 0x3ac   : > { %v3117_v57 = vpop.f32.mrf.mxu0  ;;  %v3268_v18 = vpop.f32.mrf.mxu1  ;;  %5941 = vmatprep.subr.bf16.mxu0 %v9868_v1  ;;  %6006 = vmatprep.subr.bf16.mxu1 %v9871_v16 }
 0x3ad   : > { %v3269_v40 = vadd.f32 %v3268_v18, %v3115_v48 }
 0x3ae   : > { %v3270_v10 = vpop.f32.mrf.mxu1  ;;  %v3119_v3 = vpop.f32.mrf.mxu0 }
 0x3af   : > { %5942 = vmatpush2.bf16.msra.mxu0 %v9866_v4  ;;  %6007 = vmatpush1.bf16.msra.mxu1 %v9869_v26  ;;  %v3271_v59 = vadd.f32 %v3270_v10, %v3117_v57  ;;  %v9186_v37 = vpack.c.bf16 %v3269_v40, %v3267_v38  ;;  %v9905_v4 = vld [vmem:[#allocation12 + $0x780] ss:$16 sps:$4 sm:$0xff]   ;;  %v9910_v26 = vld [vmem:[#allocation12 + $0x764] ss:$16 sps:$4 sm:$0xff]  }
 0x3b0   : > { %v3272_v31 = vpop.f32.mrf.mxu1  ;;  %5943 = vmatprep.subr.bf16.mxu0 %v9874_v27  ;;  %6008 = vmatprep.subr.bf16.mxu1 %v9877_v6  ;;  %v9913_v57 = vld [vmem:[#allocation12 + $0x8e4] ss:$16 sps:$4 sm:$0xff]   ;;  %v9908_v10 = vld [vmem:[#allocation12 + $0x760] ss:$16 sps:$4 sm:$0xff]  }
 0x3b1   : > { %v3273_v35 = vadd.f32 %v3272_v31, %v3119_v3  ;;  %v9914_v31 = vld [vmem:[#allocation12 + $0x740] ss:$16 sps:$4 sm:$0xff]   ;;  %v9922_v38 = vld [vmem:[#allocation12 + $0x724] ss:$16 sps:$4 sm:$0xff]  }
 0x3b3   : > { %v9187_v22 = vpack.c.bf16 %v3273_v35, %v3271_v59  ;;  %5944 = vmatpush2.bf16.msra.mxu0 %v9872_v49  ;;  %6009 = vmatpush1.bf16.msra.mxu1 %v9875_v29  ;;  %v9916_v49 = vld [vmem:[#allocation12 + $0x744] ss:$16 sps:$4 sm:$0xff]  }
 0x3b4   : > { %5945 = vmatprep.subr.bf16.mxu0 %v9880_v28  ;;  %6010 = vmatprep.subr.bf16.mxu1 %v9883_v11 }
 0x3b5   : > { %v3543_v58 = vmax.bf16 %v9187_v22, %v9186_v37  ;;  %v9920_v37 = vld [vmem:[#allocation12 + $0x720] ss:$16 sps:$4 sm:$0xff]  }
 0x3b7   : > { %v12081_v42 = vcombine.high %v3536_v62, %v3543_v58  ;;  %v12083_v52 = vcombine.low %v3536_v62, %v3543_v58  ;;  %5946 = vmatpush2.bf16.msra.mxu0 %v9878_v30  ;;  %6011 = vmatpush1.bf16.msra.mxu1 %v9881_v25  ;;  %v9904_v62 = vld [vmem:[#allocation12 + $0x504] ss:$16 sps:$4 sm:$0xff]  }
 0x3b8   : > { %v3123_v20 = vpop.f32.mrf.mxu0  ;;  %5947 = vmatprep.subr.bf16.mxu0 %v9886_v51  ;;  %6012 = vmatprep.subr.bf16.mxu1 %v9889_v43  ;;  %v9928_v25 = vld [vmem:[#allocation12 + $0x704] ss:$16 sps:$4 sm:$0xff]  }
 0x3b9   : > { %5892 = vmatprep.mubr.bf16.mxu1 %v12081_v42 }
 0x3ba   : > { %v3125_v8 = vpop.f32.mrf.mxu0  ;;  %v3276_v63 = vpop.f32.mrf.mxu1  ;;  %5893 = vmatmul.mubr.bf16.gmra.mxu1 %v12083_v52 }
 0x3bb   : > { %5948 = vmatpush2.bf16.msra.mxu0 %v9884_v44  ;;  %6013 = vmatpush2.bf16.msra.mxu1 %v9887_v54  ;;  %v3277_v2 = vadd.f32 %v3276_v63, %v3123_v20  ;;  %v9926_v20 = vld [vmem:[#allocation12 + $0x700] ss:$16 sps:$4 sm:$0xff]  }
 0x3bc   : > { %v3127_v34 = vpop.f32.mrf.mxu0  ;;  %v3278_v32 = vpop.f32.mrf.mxu1  ;;  %5949 = vmatprep.subr.bf16.mxu0 %v9892_v46  ;;  %6014 = vmatprep.subr.bf16.mxu1 %v9895_v7  ;;  %v9937_v46 = vld [vmem:[#allocation12 + $0xec] ss:$16 sps:$4 sm:$0xff]  }
 0x3bd   : > { %v3279_v24 = vadd.f32 %v3278_v32, %v3125_v8 }
 0x3be   : > { %v3280_v9 = vpop.f32.mrf.mxu1  ;;  %v3129_v17 = vpop.f32.mrf.mxu0 }
 0x3bf   : > { %5950 = vmatpush2.bf16.msra.mxu0 %v9890_v23  ;;  %6015 = vmatpush2.bf16.msra.mxu1 %v9893_v15  ;;  %v3281_v21 = vadd.f32 %v3280_v9, %v3127_v34  ;;  %v9188_v16 = vpack.c.bf16 %v3279_v24, %v3277_v2 }
 0x3c0   : > { %v3282_v61 = vpop.f32.mrf.mxu1  ;;  %5951 = vmatprep.subr.bf16.mxu0 %v9898_v36  ;;  %6016 = vmatprep.subr.bf16.mxu1 %v9901_v14 }
 0x3c1   : > { %v3283_v1 = vadd.f32 %v3282_v61, %v3129_v17 }
 0x3c3   : > { %v9189_v48 = vpack.c.bf16 %v3283_v1, %v3281_v21  ;;  %5952 = vmatpush2.bf16.msra.mxu0 %v9896_v33  ;;  %6017 = vmatpush2.bf16.msra.mxu1 %v9899_v53 }
 0x3c4   : > { %5953 = vmatprep.subr.bf16.mxu0 %v9904_v62  ;;  %6018 = vmatprep.subr.bf16.mxu1 %v9907_v19 }
 0x3c5   : > { %v3550_v18 = vmax.bf16 %v9189_v48, %v9188_v16 }
 0x3c7   : > { %v12087_v27 = vcombine.low %v3543_v58, %v3550_v18  ;;  %v12089_v6 = vcombine.high %v3543_v58, %v3550_v18  ;;  %5954 = vmatpush2.bf16.msra.mxu0 %v9902_v50  ;;  %6019 = vmatpush2.bf16.msra.mxu1 %v9905_v4 }
 0x3c8   : > { %v3133_v40 = vpop.f32.mrf.mxu0  ;;  %6020 = vmatprep.subr.bf16.mxu1 %v9910_v26  ;;  %6069 = vmatprep.subr.bf16.mxu0 %v9913_v57 }
 0x3c9   : > { %5829 = vmatprep.mubr.bf16.mxu0 %v12089_v6 }
 0x3ca   : > { %v3135_v29 = vpop.f32.mrf.mxu0  ;;  %v3286_v3 = vpop.f32.mrf.mxu1  ;;  %5830 = vmatmul.mubr.bf16.gmra.mxu0 %v12087_v27 }
 0x3cb   : > { %6021 = vmatpush2.bf16.msra.mxu1 %v9908_v10  ;;  %v3287_v51 = vadd.f32 %v3286_v3, %v3133_v40  ;;  %v9911_v10 = vld [vmem:[#allocation12 + $0x8e0] ss:$16 sps:$4 sm:$0xff]  }
 0x3cc   : > { %v3137_v28 = vpop.f32.mrf.mxu0  ;;  %v3288_v11 = vpop.f32.mrf.mxu1  ;;  %6022 = vmatprep.subr.bf16.mxu1 %v9916_v49 }
 0x3cd   : > { %v3289_v35 = vadd.f32 %v3288_v11, %v3135_v29  ;;  %v9919_v29 = vld [vmem:[#allocation12 + $0x8c4] ss:$16 sps:$4 sm:$0xff]  }
 0x3ce   : > { %v3290_v59 = vpop.f32.mrf.mxu1  ;;  %v3139_v22 = vpop.f32.mrf.mxu0 }
 0x3cf   : > { %6023 = vmatpush2.bf16.msra.mxu1 %v9914_v31  ;;  %v3291_v43 = vadd.f32 %v3290_v59, %v3137_v28  ;;  %v9190_v44 = vpack.c.bf16 %v3289_v35, %v3287_v51  ;;  %v9917_v59 = vld [vmem:[#allocation12 + $0x8c0] ss:$16 sps:$4 sm:$0xff]   ;;  %v9925_v35 = vld [vmem:[#allocation12 + $0x8a4] ss:$16 sps:$4 sm:$0xff]  }
 0x3d0   : > { %v3292_v30 = vpop.f32.mrf.mxu1  ;;  %6024 = vmatprep.subr.bf16.mxu1 %v9922_v38 }
 0x3d1   : > { %v3293_v58 = vadd.f32 %v3292_v30, %v3139_v22  ;;  %v9923_v30 = vld [vmem:[#allocation12 + $0x8a0] ss:$16 sps:$4 sm:$0xff]  }
 0x3d3   : > { %v9191_v54 = vpack.c.bf16 %v3293_v58, %v3291_v43  ;;  %6025 = vmatpush2.bf16.msra.mxu1 %v9920_v37  ;;  %v9931_v43 = vld [vmem:[#allocation12 + $0x884] ss:$16 sps:$4 sm:$0xff]  }
 0x3d4   : > { %6026 = vmatprep.subr.bf16.mxu1 %v9928_v25 }
 0x3d5   : > { %v3557_v7 = vmax.bf16 %v9191_v54, %v9190_v44  ;;  %v9929_v54 = vld [vmem:[#allocation12 + $0x880] ss:$16 sps:$4 sm:$0xff]  }
 0x3d7   : > { %v12093_v8 = vcombine.high %v3550_v18, %v3557_v7  ;;  %v12095_v63 = vcombine.low %v3550_v18, %v3557_v7  ;;  %6027 = vmatpush2.bf16.msra.mxu1 %v9926_v20 }
 0x3d8   : > { %v3143_v23 = vpop.f32.mrf.mxu0  ;;  %6142 = vmatprep.subr.bf16.mxu1 %v9937_v46 }
 0x3d9   : > { %5902 = vmatprep.mubr.bf16.mxu1 %v12093_v8 }
 0x3da   : > { %v3145_v15 = vpop.f32.mrf.mxu0  ;;  %v3296_v34 = vpop.f32.mrf.mxu1  ;;  %5903 = vmatmul.mubr.bf16.gmra.mxu1 %v12095_v63 }
 0x3db   : > { %v3297_v53 = vadd.f32 %v3296_v34, %v3143_v23  ;;  %v9932_v34 = vld [vmem:[#allocation12 + $0x860] ss:$16 sps:$4 sm:$0xff]  }
 0x3dc   : > { %v3147_v32 = vpop.f32.mrf.mxu0  ;;  %v3298_v36 = vpop.f32.mrf.mxu1 }
 0x3dd   : > { %v3299_v9 = vadd.f32 %v3298_v36, %v3145_v15 }
 0x3de   : > { %v3300_v14 = vpop.f32.mrf.mxu1  ;;  %v3149_v24 = vpop.f32.mrf.mxu0 }
 0x3df   : > { %v3301_v17 = vadd.f32 %v3300_v14, %v3147_v32  ;;  %v9192_v62 = vpack.c.bf16 %v3299_v9, %v3297_v53  ;;  %v9935_v32 = vld [vmem:[#allocation12 + $0xe8] ss:$16 sps:$4 sm:$0xff]   ;;  %v9940_v9 = vld [vmem:[#allocation12 + $0x844] ss:$16 sps:$4 sm:$0xff]  }
 0x3e0   : > { %v3302_v33 = vpop.f32.mrf.mxu1 }
 0x3e1   : > { %v3303_v61 = vadd.f32 %v3302_v33, %v3149_v24 }
 0x3e3   : > { %v9193_v19 = vpack.c.bf16 %v3303_v61, %v3301_v17  ;;  %v9943_v17 = vld [vmem:[#allocation12 + $0xcc] ss:$16 sps:$4 sm:$0xff]  }
 0x3e5   : > { %v3564_v2 = vmax.bf16 %v9193_v19, %v9192_v62  ;;  %v9938_v19 = vld [vmem:[#allocation12 + $0x840] ss:$16 sps:$4 sm:$0xff]  }
 0x3e7   : > { %v12099_v21 = vcombine.low %v3557_v7, %v3564_v2  ;;  %v12101_v1 = vcombine.high %v3557_v7, %v3564_v2  ;;  %v9934_v7 = vld [vmem:[#allocation12 + $0x864] ss:$16 sps:$4 sm:$0xff]  }
 0x3e8   : > { %v3153_v16 = vpop.f32.mrf.mxu0 }
 0x3e9   : > { %5839 = vmatprep.mubr.bf16.mxu0 %v12101_v1 }
 0x3ea   : > { %v3155_v48 = vpop.f32.mrf.mxu0  ;;  %v3306_v50 = vpop.f32.mrf.mxu1  ;;  %5840 = vmatmul.mubr.bf16.gmra.mxu0 %v12099_v21 }
 0x3eb   : > { %5955 = vmatprep.mubr.bf16.mxu0 %v12075_v41  ;;  %v3307_v3 = vadd.f32 %v3306_v50, %v3153_v16  ;;  %v9946_v16 = vld [vmem:[#allocation12 + $0x824] ss:$16 sps:$4 sm:$0xff]  }
 0x3ec   : > { %v3157_v4 = vpop.f32.mrf.mxu0  ;;  %v3308_v26 = vpop.f32.mrf.mxu1 }
 0x3ed   : > { %v3309_v18 = vadd.f32 %v3308_v26, %v3155_v48  ;;  %v9949_v48 = vld [vmem:[#allocation12 + $0xac] ss:$16 sps:$4 sm:$0xff]   ;;  %v9944_v26 = vld [vmem:[#allocation12 + $0x820] ss:$16 sps:$4 sm:$0xff]  }
 0x3ee   : > { %v3310_v57 = vpop.f32.mrf.mxu1  ;;  %v3159_v40 = vpop.f32.mrf.mxu0 }
 0x3ef   : > { %v3311_v31 = vadd.f32 %v3310_v57, %v3157_v4  ;;  %v9194_v11 = vpack.c.bf16 %v3309_v18, %v3307_v3  ;;  %v9947_v57 = vld [vmem:[#allocation12 + $0xa8] ss:$16 sps:$4 sm:$0xff]  }
 0x3f0   : > { %v3312_v49 = vpop.f32.mrf.mxu1 }
 0x3f1   : > { %v3313_v28 = vadd.f32 %v3312_v49, %v3159_v40  ;;  %v9952_v40 = vld [vmem:[#allocation12 + $0x804] ss:$16 sps:$4 sm:$0xff]   ;;  %v9955_v49 = vld [vmem:[#allocation12 + $0x8c] ss:$16 sps:$4 sm:$0xff]  }
 0x3f2   : > { %5956 = vmatmul.mubr.bf16.vlgmr.msra.gmra.mxu0 %v12077_v56 }
 0x3f3   : > { %v9195_v38 = vpack.c.bf16 %v3313_v28, %v3311_v31  ;;  %6070 = vmatpush1.bf16.msra.mxu0 %v9911_v10  ;;  %5965 = vmatprep.mubr.bf16.mxu0 %v12089_v6  ;;  %v9950_v31 = vld [vmem:[#allocation12 + $0x800] ss:$16 sps:$4 sm:$0xff]   ;;  %v9953_v28 = vld [vmem:[#allocation12 + $0x88] ss:$16 sps:$4 sm:$0xff]  }
 0x3f4   : > { %6071 = vmatprep.subr.bf16.mxu0 %v9919_v29 }
 0x3f5   : > { %v3571_v37 = vmax.bf16 %v9195_v38, %v9194_v11 }
 0x3f7   : > { %6072 = vmatpush1.bf16.msra.mxu0 %v9917_v59  ;;  %v12108_v22 = vcombine.high %v3564_v2, %v3571_v37  ;;  %v12110_v25 = vcombine.low %v3564_v2, %v3571_v37  ;;  %v9941_v2 = vld [vmem:[#allocation12 + $0xc8] ss:$16 sps:$4 sm:$0xff]   ;;  %v9958_v59 = vld [vmem:[#allocation12 + $0x9e4] ss:$16 sps:$4 sm:$0xff]  }
 0x3f8   : > { %v3163_v51 = vpop.f32.mrf.mxu0  ;;  %6073 = vmatprep.subr.bf16.mxu0 %v9925_v35  ;;  %v9961_v35 = vld [vmem:[#allocation12 + $0x6c] ss:$16 sps:$4 sm:$0xff]  }
 0x3f9   : > { %5912 = vmatprep.mubr.bf16.mxu1 %v12108_v22 }
 0x3fa   : > { %v3165_v58 = vpop.f32.mrf.mxu0  ;;  %v3316_v44 = vpop.f32.mrf.mxu1  ;;  %5913 = vmatmul.mubr.bf16.gmra.mxu1 %v12110_v25  ;;  %5966 = vmatmul.mubr.bf16.gmra.mxu0 %v12087_v27 }
 0x3fb   : > { %6074 = vmatpush1.bf16.msra.mxu0 %v9923_v30  ;;  %5975 = vmatprep.mubr.bf16.mxu0 %v12101_v1  ;;  %v3317_v24 = vadd.f32 %v3316_v44, %v3163_v51  ;;  %v9956_v51 = vld [vmem:[#allocation12 + $0x9e0] ss:$16 sps:$4 sm:$0xff]  }
 0x3fc   : > { %6028 = vmatprep.mubr.bf16.mxu1 %v12081_v42  ;;  %v3167_v20 = vpop.f32.mrf.mxu0  ;;  %v3318_v46 = vpop.f32.mrf.mxu1  ;;  %6075 = vmatprep.subr.bf16.mxu0 %v9931_v43  ;;  %v9959_v43 = vld [vmem:[#allocation12 + $0x68] ss:$16 sps:$4 sm:$0xff]  }
 0x3fd   : > { %v3319_v15 = vadd.f32 %v3318_v46, %v3165_v58 }
 0x3fe   : > { %v3320_v23 = vpop.f32.mrf.mxu1  ;;  %v3169_v36 = vpop.f32.mrf.mxu0 }
 0x3ff   : > { %6076 = vmatpush1.bf16.msra.mxu0 %v9929_v54  ;;  %v3321_v33 = vadd.f32 %v3320_v23, %v3167_v20  ;;  %v9196_v61 = vpack.c.bf16 %v3319_v15, %v3317_v24  ;;  %v9964_v54 = vld [vmem:[#allocation12 + $0x9c4] ss:$16 sps:$4 sm:$0xff]   ;;  %v9967_v20 = vld [vmem:[#allocation12 + $0x4c] ss:$16 sps:$4 sm:$0xff]  }
 0x400   : > { %v3322_v14 = vpop.f32.mrf.mxu1  ;;  %6077 = vmatprep.subr.bf16.mxu0 %v9934_v7 }
 0x401   : > { %v3323_v53 = vadd.f32 %v3322_v14, %v3169_v36  ;;  %v9965_v36 = vld [vmem:[#allocation12 + $0x48] ss:$16 sps:$4 sm:$0xff]   ;;  %v9970_v14 = vld [vmem:[#allocation12 + $0x9a4] ss:$16 sps:$4 sm:$0xff]  }
 0x402   : > { %5976 = vmatmul.mubr.bf16.gmra.mxu0 %v12099_v21  ;;  %6029 = vmatmul.mubr.bf16.vlgmr.msra.gmra.mxu1 %v12083_v52 }
 0x403   : > { %v9197_v62 = vpack.c.bf16 %v3323_v53, %v3321_v33  ;;  %6078 = vmatpush1.bf16.msra.mxu0 %v9932_v34  ;;  %6143 = vmatpush1.bf16.msra.mxu1 %v9935_v32  ;;  %v9962_v32 = vld [vmem:[#allocation12 + $0x9c0] ss:$16 sps:$4 sm:$0xff]  }
 0x404   : > { %6038 = vmatprep.mubr.bf16.mxu1 %v12093_v8  ;;  %6079 = vmatprep.subr.bf16.mxu0 %v9940_v9  ;;  %v9973_v9 = vld [vmem:[#allocation12 + $0x2c] ss:$16 sps:$4 sm:$0xff]   ;;  %v9968_v53 = vld [vmem:[#allocation12 + $0x9a0] ss:$16 sps:$4 sm:$0xff]  }
 0x405   : > { %v3578_v50 = vmax.bf16 %v9197_v62, %v9196_v61  ;;  %6144 = vmatprep.subr.bf16.mxu1 %v9943_v17  ;;  %v9971_v17 = vld [vmem:[#allocation12 + $0x28] ss:$16 sps:$4 sm:$0xff]   ;;  %v9976_v62 = vld [vmem:[#allocation12 + $0x984] ss:$16 sps:$4 sm:$0xff]  }
 0x407   : > { %6080 = vmatpush1.bf16.msra.mxu0 %v9938_v19  ;;  %6145 = vmatpush1.bf16.msra.mxu1 %v9941_v2  ;;  %v12120_v4 = vcombine.high %v3571_v37, %v3578_v50  ;;  %v12122_v18 = vcombine.low %v3571_v37, %v3578_v50  ;;  %v9979_v19 = vld [vmem:[#allocation12 + $0xc] ss:$16 sps:$4 sm:$0xff]   ;;  %v9974_v2 = vld [vmem:[#allocation12 + $0x980] ss:$16 sps:$4 sm:$0xff]  }
 0x408   : > { %v3173_v10 = vpop.f32.mrf.mxu0  ;;  %6081 = vmatprep.subr.bf16.mxu0 %v9946_v16  ;;  %6146 = vmatprep.subr.bf16.mxu1 %v9949_v48  ;;  %v9977_v16 = vld [vmem:[#allocation12 + $0x8] ss:$16 sps:$4 sm:$0xff]   ;;  %v9982_v48 = vld [vmem:[#allocation12 + $0x964] ss:$16 sps:$4 sm:$0xff]  }
 0x409   : > { %5985 = vmatprep.mubr.bf16.mxu0 %v12120_v4 }
 0x40a   : > { %v3175_v29 = vpop.f32.mrf.mxu0  ;;  %v3326_v3 = vpop.f32.mrf.mxu1  ;;  %5986 = vmatmul.mubr.bf16.gmra.mxu0 %v12122_v18  ;;  %6039 = vmatmul.mubr.bf16.gmra.mxu1 %v12095_v63 }
 0x40b   : > { %6082 = vmatpush1.bf16.msra.mxu0 %v9944_v26  ;;  %6147 = vmatpush1.bf16.msra.mxu1 %v9947_v57  ;;  %v3327_v46 = vadd.f32 %v3326_v3, %v3173_v10  ;;  %v9985_v26 = vld [vmem:[#allocation12 + $0x1ec] ss:$16 sps:$4 sm:$0xff]   ;;  %v9983_v57 = vld [vmem:[#allocation12 + $0x1e8] ss:$16 sps:$4 sm:$0xff]   ;;  %v9988_v10 = vld [vmem:[#allocation12 + $0x944] ss:$16 sps:$4 sm:$0xff]  }
 0x40c   : > { %6048 = vmatprep.mubr.bf16.mxu1 %v12108_v22  ;;  %6101 = vmatprep.mubr.bf16.mxu0 %v12089_v6  ;;  %v3177_v11 = vpop.f32.mrf.mxu0  ;;  %v3328_v38 = vpop.f32.mrf.mxu1  ;;  %v9994_v3 = vld [vmem:[#allocation12 + $0x924] ss:$16 sps:$4 sm:$0xff]  }
 0x40d   : > { %6083 = vmatprep.subr.bf16.mxu0 %v9952_v40  ;;  %6148 = vmatprep.subr.bf16.mxu1 %v9955_v49  ;;  %v3329_v30 = vadd.f32 %v3328_v38, %v3175_v29  ;;  %v9991_v40 = vld [vmem:[#allocation12 + $0x1cc] ss:$16 sps:$4 sm:$0xff]   ;;  %v9986_v49 = vld [vmem:[#allocation12 + $0x940] ss:$16 sps:$4 sm:$0xff]   ;;  %v9989_v29 = vld [vmem:[#allocation12 + $0x1c8] ss:$16 sps:$4 sm:$0xff]  }
 0x40e   : > { %v3330_v37 = vpop.f32.mrf.mxu1  ;;  %v3179_v58 = vpop.f32.mrf.mxu0 }
 0x40f   : > { %6084 = vmatpush1.bf16.msra.mxu0 %v9950_v31  ;;  %6149 = vmatpush1.bf16.msra.mxu1 %v9953_v28  ;;  %v3331_v7 = vadd.f32 %v3330_v37, %v3177_v11  ;;  %v9198_v15 = vpack.c.bf16 %v3329_v30, %v3327_v46  ;;  %v9992_v28 = vld [vmem:[#allocation12 + $0x920] ss:$16 sps:$4 sm:$0xff]   ;;  %v9995_v11 = vld [vmem:[#allocation12 + $0x1a8] ss:$16 sps:$4 sm:$0xff]  }
 0x410   : > { %v3332_v44 = vpop.f32.mrf.mxu1  ;;  %6085 = vmatprep.subr.bf16.mxu0 %v9958_v59  ;;  %6150 = vmatprep.subr.bf16.mxu1 %v9961_v35  ;;  %v10000_v59 = vld [vmem:[#allocation12 + $0x904] ss:$16 sps:$4 sm:$0xff]   ;;  %v10003_v35 = vld [vmem:[#allocation12 + $0x18c] ss:$16 sps:$4 sm:$0xff]   ;;  %v9998_v30 = vld [vmem:[#allocation12 + $0x900] ss:$16 sps:$4 sm:$0xff]  }
 0x411   : > { %v3333_v23 = vadd.f32 %v3332_v44, %v3179_v58  ;;  %v10006_v58 = vld [vmem:[#allocation12 + $0x16c] ss:$16 sps:$4 sm:$0xff]  }
 0x412   : > { %6049 = vmatmul.mubr.bf16.gmra.mxu1 %v12110_v25  ;;  %v10009_v44 = vld [vmem:[#allocation12 + $0x2ec] ss:$16 sps:$4 sm:$0xff]  }
 0x413   : > { %v9199_v34 = vpack.c.bf16 %v3333_v23, %v3331_v7  ;;  %6086 = vmatpush2.bf16.msra.mxu0 %v9956_v51  ;;  %6151 = vmatpush1.bf16.msra.mxu1 %v9959_v43  ;;  %v10001_v51 = vld [vmem:[#allocation12 + $0x188] ss:$16 sps:$4 sm:$0xff]   ;;  %v10012_v23 = vld [vmem:[#allocation12 + $0x14c] ss:$16 sps:$4 sm:$0xff]  }
 0x414   : > { %6087 = vmatprep.subr.bf16.mxu0 %v9964_v54  ;;  %6152 = vmatprep.subr.bf16.mxu1 %v9967_v20  ;;  %v10004_v20 = vld [vmem:[#allocation12 + $0x168] ss:$16 sps:$4 sm:$0xff]  }
 0x415   : > { %v12130_v24 = vmax.bf16 %v9199_v34, %v9198_v15  ;;  %v10007_v7 = vld [vmem:[#allocation12 + $0x2e8] ss:$16 sps:$4 sm:$0xff]   ;;  %v10015_v15 = vld [vmem:[#allocation12 + $0x2cc] ss:$16 sps:$4 sm:$0xff]  }
 0x417   : > { %6088 = vmatpush2.bf16.msra.mxu0 %v9962_v32  ;;  %6153 = vmatpush1.bf16.msra.mxu1 %v9965_v36  ;;  %v12133_v33 = vcombine.high %v3578_v50, %v12130_v24  ;;  %v12136_v61 = vcombine.low %v3578_v50, %v12130_v24  ;;  %v9980_v50 = vld [vmem:[#allocation12 + $0x960] ss:$16 sps:$4 sm:$0xff]   ;;  %v10010_v32 = vld [vmem:[#allocation12 + $0x148] ss:$16 sps:$4 sm:$0xff]  }
 0x418   : > { %6089 = vmatprep.subr.bf16.mxu0 %v9970_v14  ;;  %6154 = vmatprep.subr.bf16.mxu1 %v9973_v9  ;;  %v3183_v38 = vpop.f32.mrf.mxu0  ;;  %v10013_v14 = vld [vmem:[#allocation12 + $0x2c8] ss:$16 sps:$4 sm:$0xff]   ;;  %v10018_v9 = vld [vmem:[#allocation12 + $0x12c] ss:$16 sps:$4 sm:$0xff]  }
 0x419   : > { %6058 = vmatprep.mubr.bf16.mxu1 %v12133_v33 }
 0x41a   : > { %6059 = vmatmul.mubr.bf16.gmra.mxu1 %v12136_v61  ;;  %v3336_v31 = vpop.f32.mrf.mxu1  ;;  %v3185_v43 = vpop.f32.mrf.mxu0 }
 0x41b   : > { %6090 = vmatpush2.bf16.msra.mxu0 %v9968_v53  ;;  %6155 = vmatpush1.bf16.msra.mxu1 %v9971_v17  ;;  %v10021_v17 = vld [vmem:[#allocation12 + $0x2ac] ss:$16 sps:$4 sm:$0xff]  }
 0x41c   : > { %6174 = vmatprep.mubr.bf16.mxu1 %v12063_v47  ;;  %6091 = vmatprep.subr.bf16.mxu0 %v9976_v62  ;;  %v9997_v47 = vld [vmem:[#allocation12 + $0x1ac] ss:$16 sps:$4 sm:$0xff]   ;;  %v3338_v37 = vpop.f32.mrf.mxu1  ;;  %v3187_v46 = vpop.f32.mrf.mxu0 }
 0x41d   : > { %6156 = vmatprep.subr.bf16.mxu1 %v9979_v19  ;;  %v3339_v62 = vadd.f32 %v3338_v37, %v3185_v43  ;;  %v10037_v37 = vld [vmem:[#allocation12 + $0x4c8] ss:$16 sps:$4 sm:$0xff]  }
 0x41e   : > { %v3340_v54 = vpop.f32.mrf.mxu1  ;;  %v3189_v36 = vpop.f32.mrf.mxu0 }
 0x41f   : > { %6092 = vmatpush2.bf16.msra.mxu0 %v9974_v2  ;;  %6157 = vmatpush1.bf16.msra.mxu1 %v9977_v16  ;;  %v3341_v19 = vadd.f32 %v3340_v54, %v3187_v46  ;;  %v10016_v2 = vld [vmem:[#allocation12 + $0x128] ss:$16 sps:$4 sm:$0xff]   ;;  %v10051_v54 = vld [vmem:[#allocation12 + $0x48c] ss:$16 sps:$4 sm:$0xff]  }
 0x420   : > { %6093 = vmatprep.subr.bf16.mxu0 %v9982_v48  ;;  %6158 = vmatprep.subr.bf16.mxu1 %v9985_v26  ;;  %v3342_v34 = vpop.f32.mrf.mxu1  ;;  %v10019_v16 = vld [vmem:[#allocation12 + $0x2a8] ss:$16 sps:$4 sm:$0xff]   ;;  %v10024_v48 = vld [vmem:[#allocation12 + $0x10c] ss:$16 sps:$4 sm:$0xff]   ;;  %v3337_v26 = vadd.f32 %v3336_v31, %v3183_v38 }
 0x421   : > { %v3343_v53 = vadd.f32 %v3342_v34, %v3189_v36  ;;  %v10028_v31 = vld [vmem:[#allocation12 + $0x268] ss:$16 sps:$4 sm:$0xff]   ;;  %v10036_v38 = vld [vmem:[#allocation12 + $0x24c] ss:$16 sps:$4 sm:$0xff]  }
 0x422   : > { %v10054_v46 = vld [vmem:[#allocation12 + $0x3ec] ss:$16 sps:$4 sm:$0xff]   ;;  %v10061_v36 = vld [vmem:[#allocation12 + $0x448] ss:$16 sps:$4 sm:$0xff]  }
 0x423   : > { %6094 = vmatpush2.bf16.msra.mxu0 %v9980_v50  ;;  %6159 = vmatpush2.bf16.msra.mxu1 %v9983_v57  ;;  %v9201_v50 = vpack.c.bf16 %v3343_v53, %v3341_v19  ;;  %v10027_v57 = vld [vmem:[#allocation12 + $0x28c] ss:$16 sps:$4 sm:$0xff]   ;;  %v10064_v53 = vld [vmem:[#allocation12 + $0x3a8] ss:$16 sps:$4 sm:$0xff]  }
 0x424   : > { %6095 = vmatprep.subr.bf16.mxu0 %v9988_v10  ;;  %6160 = vmatprep.subr.bf16.mxu1 %v9991_v40  ;;  %v9200_v10 = vpack.c.bf16 %v3339_v62, %v3337_v26  ;;  %v10022_v40 = vld [vmem:[#allocation12 + $0x108] ss:$16 sps:$4 sm:$0xff]   ;;  %v10060_v34 = vld [vmem:[#allocation12 + $0x3cc] ss:$16 sps:$4 sm:$0xff]  }
 0x425   : > { %v10072_v62 = vld [vmem:[#allocation12 + $0x38c] ss:$16 sps:$4 sm:$0xff]  }
 0x426   : > { %v10075_v19 = vld [vmem:[#allocation12 + $0x40c] ss:$16 sps:$4 sm:$0xff]  }
 0x427   : > { %6096 = vmatpush2.bf16.msra.mxu0 %v9986_v49  ;;  %6161 = vmatpush2.bf16.msra.mxu1 %v9989_v29  ;;  %v10025_v49 = vld [vmem:[#allocation12 + $0x288] ss:$16 sps:$4 sm:$0xff]   ;;  %v10033_v29 = vld [vmem:[#allocation12 + $0x4ec] ss:$16 sps:$4 sm:$0xff]  }
 0x428   : > { %6097 = vmatprep.subr.bf16.mxu0 %v9994_v3  ;;  %6162 = vmatprep.subr.bf16.mxu1 %v9997_v47  ;;  %v3592_v3 = vmax.bf16 %v9201_v50, %v9200_v10  ;;  %v10030_v47 = vld [vmem:[#allocation12 + $0x26c] ss:$16 sps:$4 sm:$0xff]   ;;  %v10076_v50 = vld [vmem:[#allocation12 + $0x368] ss:$16 sps:$4 sm:$0xff]  }
 0x429   : > { %v10081_v26 = vld [vmem:[#allocation12 + $0x5ec] ss:$16 sps:$4 sm:$0xff]  }
 0x42a   : > { %v12153_v43 = vcombine.low %v12130_v24, %v3592_v3  ;;  %v10084_v10 = vld [vmem:[#allocation12 + $0x34c] ss:$16 sps:$4 sm:$0xff]  }
 0x42b   : > { %6098 = vmatpush2.bf16.msra.mxu0 %v9992_v28  ;;  %6163 = vmatpush2.bf16.msra.mxu1 %v9995_v11  ;;  %v10031_v28 = vld [vmem:[#allocation12 + $0x4e8] ss:$16 sps:$4 sm:$0xff]   ;;  %v12146_v11 = vcombine.high %v12130_v24, %v3592_v3  ;;  %v10090_v3 = vld [vmem:[#allocation12 + $0x32c] ss:$16 sps:$4 sm:$0xff]  }
 0x42c   : > { %6099 = vmatprep.subr.bf16.mxu0 %v10000_v59  ;;  %6164 = vmatprep.subr.bf16.mxu1 %v10003_v35  ;;  %v10039_v59 = vld [vmem:[#allocation12 + $0x4cc] ss:$16 sps:$4 sm:$0xff]   ;;  %v10034_v35 = vld [vmem:[#allocation12 + $0x248] ss:$16 sps:$4 sm:$0xff]  }
 0x42d   : > { %v10046_v24 = vld [vmem:[#allocation12 + $0x208] ss:$16 sps:$4 sm:$0xff]  }
 0x42f   : > { %6100 = vmatpush2.bf16.msra.mxu0 %v9998_v30  ;;  %6165 = vmatpush2.bf16.msra.mxu1 %v10001_v51  ;;  %v10042_v30 = vld [vmem:[#allocation12 + $0x22c] ss:$16 sps:$4 sm:$0xff]  }
 0x430   : > { %6166 = vmatprep.subr.bf16.mxu1 %v10006_v58  ;;  %6215 = vmatprep.subr.bf16.mxu0 %v10009_v44  ;;  %v10045_v51 = vld [vmem:[#allocation12 + $0x4ac] ss:$16 sps:$4 sm:$0xff]   ;;  %v10040_v58 = vld [vmem:[#allocation12 + $0x228] ss:$16 sps:$4 sm:$0xff]  }
 0x431   : > { %v10043_v44 = vld [vmem:[#allocation12 + $0x4a8] ss:$16 sps:$4 sm:$0xff]  }
 0x432   : > { %6102 = vmatmul.mubr.bf16.vlgmr.msra.gmra.mxu0 %v12087_v27 }
 0x433   : > { %6111 = vmatprep.mubr.bf16.mxu0 %v12101_v1  ;;  %6167 = vmatpush2.bf16.msra.mxu1 %v10004_v20  ;;  %v10049_v20 = vld [vmem:[#allocation12 + $0x488] ss:$16 sps:$4 sm:$0xff]  }
 0x434   : > { %6216 = vmatpush1.bf16.msra.mxu0 %v10007_v7  ;;  %6168 = vmatprep.subr.bf16.mxu1 %v10012_v23  ;;  %v10057_v7 = vld [vmem:[#allocation12 + $0x46c] ss:$16 sps:$4 sm:$0xff]   ;;  %v10052_v23 = vld [vmem:[#allocation12 + $0x3e8] ss:$16 sps:$4 sm:$0xff]  }
 0x435   : > { %6217 = vmatprep.subr.bf16.mxu0 %v10015_v15  ;;  %v10055_v15 = vld [vmem:[#allocation12 + $0x468] ss:$16 sps:$4 sm:$0xff]  }
 0x437   : > { %6169 = vmatpush2.bf16.msra.mxu1 %v10010_v32  ;;  %v10063_v32 = vld [vmem:[#allocation12 + $0x44c] ss:$16 sps:$4 sm:$0xff]  }
 0x438   : > { %6218 = vmatpush1.bf16.msra.mxu0 %v10013_v14  ;;  %6170 = vmatprep.subr.bf16.mxu1 %v10018_v9  ;;  %v10066_v14 = vld [vmem:[#allocation12 + $0x3ac] ss:$16 sps:$4 sm:$0xff]  }
 0x439   : > { %6219 = vmatprep.subr.bf16.mxu0 %v10021_v17  ;;  %v10069_v9 = vld [vmem:[#allocation12 + $0x42c] ss:$16 sps:$4 sm:$0xff]   ;;  %v10067_v17 = vld [vmem:[#allocation12 + $0x428] ss:$16 sps:$4 sm:$0xff]  }
 0x43a   : > { %6112 = vmatmul.mubr.bf16.gmra.mxu0 %v12099_v21 }
 0x43b   : > { %6121 = vmatprep.mubr.bf16.mxu0 %v12120_v4  ;;  %6171 = vmatpush2.bf16.msra.mxu1 %v10016_v2  ;;  %v10070_v2 = vld [vmem:[#allocation12 + $0x388] ss:$16 sps:$4 sm:$0xff]  }
 0x43c   : > { %6220 = vmatpush1.bf16.msra.mxu0 %v10019_v16  ;;  %6172 = vmatprep.subr.bf16.mxu1 %v10024_v48  ;;  %v10073_v16 = vld [vmem:[#allocation12 + $0x408] ss:$16 sps:$4 sm:$0xff]   ;;  %v10078_v48 = vld [vmem:[#allocation12 + $0x36c] ss:$16 sps:$4 sm:$0xff]  }
 0x43d   : > { %6221 = vmatprep.subr.bf16.mxu0 %v10027_v57  ;;  %v10079_v57 = vld [vmem:[#allocation12 + $0x5e8] ss:$16 sps:$4 sm:$0xff]  }
 0x43f   : > { %6173 = vmatpush2.bf16.msra.mxu1 %v10022_v40  ;;  %v10087_v40 = vld [vmem:[#allocation12 + $0x5cc] ss:$16 sps:$4 sm:$0xff]  }
 0x440   : > { %6222 = vmatpush1.bf16.msra.mxu0 %v10025_v49  ;;  %6288 = vmatprep.subr.bf16.mxu1 %v10033_v29  ;;  %v10085_v29 = vld [vmem:[#allocation12 + $0x5c8] ss:$16 sps:$4 sm:$0xff]  }
 0x441   : > { %6223 = vmatprep.subr.bf16.mxu0 %v10030_v47  ;;  %v10093_v47 = vld [vmem:[#allocation12 + $0x5ac] ss:$16 sps:$4 sm:$0xff]  }
 0x442   : > { %6122 = vmatmul.mubr.bf16.gmra.mxu0 %v12122_v18  ;;  %6175 = vmatmul.mubr.bf16.vlgmr.msra.gmra.mxu1 %v12065_v12  ;;  %v10048_v12 = vld [vmem:[#allocation12 + $0x20c] ss:$16 sps:$4 sm:$0xff]  }
 0x443   : > { %6131 = vmatprep.mubr.bf16.mxu0 %v12146_v11  ;;  %6184 = vmatprep.mubr.bf16.mxu1 %v12075_v41 }
 0x444   : > { %6224 = vmatpush1.bf16.msra.mxu0 %v10028_v31  ;;  %6289 = vmatpush1.bf16.msra.mxu1 %v10031_v28  ;;  %v10088_v28 = vld [vmem:[#allocation12 + $0x328] ss:$16 sps:$4 sm:$0xff]  }
 0x445   : > { %6225 = vmatprep.subr.bf16.mxu0 %v10036_v38  ;;  %6290 = vmatprep.subr.bf16.mxu1 %v10039_v59  ;;  %v10091_v38 = vld [vmem:[#allocation12 + $0x5a8] ss:$16 sps:$4 sm:$0xff]   ;;  %v10096_v59 = vld [vmem:[#allocation12 + $0x30c] ss:$16 sps:$4 sm:$0xff]  }
 0x448   : > { %6226 = vmatpush1.bf16.msra.mxu0 %v10034_v35  ;;  %6291 = vmatpush1.bf16.msra.mxu1 %v10037_v37  ;;  %v10099_v35 = vld [vmem:[#allocation12 + $0x58c] ss:$16 sps:$4 sm:$0xff]  }
 0x449   : > { %6227 = vmatprep.subr.bf16.mxu0 %v10042_v30  ;;  %6292 = vmatprep.subr.bf16.mxu1 %v10045_v51  ;;  %v10094_v51 = vld [vmem:[#allocation12 + $0x308] ss:$16 sps:$4 sm:$0xff]  }
 0x44a   : > { %6132 = vmatmul.mubr.bf16.gmra.mxu0 %v12153_v43  ;;  %6185 = vmatmul.mubr.bf16.gmra.mxu1 %v12077_v56  ;;  %v12163_v49 = vpop.f32.mrf.mxu0 }
 0x44b   : > { %6194 = vmatprep.mubr.bf16.mxu1 %v12089_v6  ;;  %6247 = vmatprep.mubr.bf16.mxu0 %v12069_v39  ;;  %v10058_v39 = vld [vmem:[#allocation12 + $0x3c8] ss:$16 sps:$4 sm:$0xff]  }
 0x44c   : > { %6228 = vmatpush1.bf16.msra.mxu0 %v10040_v58  ;;  %6293 = vmatpush1.bf16.msra.mxu1 %v10043_v44  ;;  %v12165_v31 = vpop.f32.mrf.mxu0  ;;  %v10097_v58 = vld [vmem:[#allocation12 + $0x588] ss:$16 sps:$4 sm:$0xff]   ;;  %v10102_v44 = vld [vmem:[#allocation12 + $0x56c] ss:$16 sps:$4 sm:$0xff]  }
 0x44d   : > { %6229 = vmatprep.subr.bf16.mxu0 %v10048_v12  ;;  %6294 = vmatprep.subr.bf16.mxu1 %v10051_v54  ;;  %v10105_v12 = vld [vmem:[#allocation12 + $0x6ec] ss:$16 sps:$4 sm:$0xff]  }
 0x44e   : > { %v12167_v37 = vpop.f32.mrf.mxu0 }
 0x450   : > { %6230 = vmatpush1.bf16.msra.mxu0 %v10046_v24  ;;  %6295 = vmatpush1.bf16.msra.mxu1 %v10049_v20  ;;  %v12171_v54 = vpop.f32.mrf.mxu0 }
 0x451   : > { %6231 = vmatprep.subr.bf16.mxu0 %v10054_v46  ;;  %6296 = vmatprep.subr.bf16.mxu1 %v10057_v7  ;;  %v10100_v46 = vld [vmem:[#allocation12 + $0x568] ss:$16 sps:$4 sm:$0xff]  }
 0x452   : > { %6195 = vmatmul.mubr.bf16.gmra.mxu1 %v12087_v27  ;;  %v10103_v7 = vld [vmem:[#allocation12 + $0x6e8] ss:$16 sps:$4 sm:$0xff]  }
 0x453   : > { %6204 = vmatprep.mubr.bf16.mxu1 %v12101_v1 }
 0x454   : > { %6232 = vmatpush2.bf16.msra.mxu0 %v10052_v23  ;;  %6297 = vmatpush1.bf16.msra.mxu1 %v10055_v15  ;;  %v10108_v23 = vld [vmem:[#allocation12 + $0x54c] ss:$16 sps:$4 sm:$0xff]  }
 0x455   : > { %6233 = vmatprep.subr.bf16.mxu0 %v10060_v34  ;;  %6298 = vmatprep.subr.bf16.mxu1 %v10063_v32  ;;  %v10111_v15 = vld [vmem:[#allocation12 + $0x6cc] ss:$16 sps:$4 sm:$0xff]   ;;  %v4075_v34 = vld [vmem:[#allocation14] sm:$0xf] }
 0x458   : > { %6234 = vmatpush2.bf16.msra.mxu0 %v10058_v39  ;;  %6299 = vmatpush1.bf16.msra.mxu1 %v10061_v36  ;;  %v10106_v36 = vld [vmem:[#allocation12 + $0x548] ss:$16 sps:$4 sm:$0xff]  }
 0x459   : > { %6235 = vmatprep.subr.bf16.mxu0 %v10066_v14  ;;  %6300 = vmatprep.subr.bf16.mxu1 %v10069_v9  ;;  %v10109_v14 = vld [vmem:[#allocation12 + $0x6c8] ss:$16 sps:$4 sm:$0xff]   ;;  %v10114_v9 = vld [vmem:[#allocation12 + $0x52c] ss:$16 sps:$4 sm:$0xff]  }
 0x45a   : > { %6205 = vmatmul.mubr.bf16.gmra.mxu1 %v12099_v21  ;;  %v12169_v30 = vpop.f32.mrf.mxu1 }
 0x45b   : > { %6320 = vmatprep.mubr.bf16.mxu1 %v12075_v41  ;;  %v10082_v41 = vld [vmem:[#allocation12 + $0x348] ss:$16 sps:$4 sm:$0xff]  }
 0x45c   : > { %6236 = vmatpush2.bf16.msra.mxu0 %v10064_v53  ;;  %6301 = vmatpush1.bf16.msra.mxu1 %v10067_v17  ;;  %v12173_v24 = vpop.f32.mrf.mxu1  ;;  %v10117_v53 = vld [vmem:[#allocation12 + $0x6ac] ss:$16 sps:$4 sm:$0xff]   ;;  %v12181_v17 = vrot.slane %v4075_v34, %v1611_v60 }
 0x45d   : > { %6237 = vmatprep.subr.bf16.mxu0 %v10072_v62  ;;  %6302 = vmatprep.subr.bf16.mxu1 %v10075_v19  ;;  %v10112_v19 = vld [vmem:[#allocation12 + $0x528] ss:$16 sps:$4 sm:$0xff]  }
 0x45e   : > { %v12176_v32 = vpop.f32.mrf.mxu1 }
 0x460   : > { %6238 = vmatpush2.bf16.msra.mxu0 %v10070_v2  ;;  %6303 = vmatpush1.bf16.msra.mxu1 %v10073_v16  ;;  %v12183_v62 = vpop.f32.mrf.mxu1  ;;  %v12187_v2 = vrot.slane %v4075_v34, %v1615_v0  ;;  %v10138_v34 = vld [vmem:[#allocation12 + $0x62c] ss:$16 sps:$4 sm:$0xff]  }
 0x461   : > { %6239 = vmatprep.subr.bf16.mxu0 %v10078_v48  ;;  %6304 = vmatprep.subr.bf16.mxu1 %v10081_v26  ;;  %v10115_v48 = vld [vmem:[#allocation12 + $0x6a8] ss:$16 sps:$4 sm:$0xff]   ;;  %v10120_v26 = vld [vmem:[#allocation12 + $0x50c] ss:$16 sps:$4 sm:$0xff]  }
 0x464   : > { %6240 = vmatpush2.bf16.msra.mxu0 %v10076_v50  ;;  %6305 = vmatpush2.bf16.msra.mxu1 %v10079_v57  ;;  %v10123_v57 = vld [vmem:[#allocation12 + $0x68c] ss:$16 sps:$4 sm:$0xff]  }
 0x465   : > { %6241 = vmatprep.subr.bf16.mxu0 %v10084_v10  ;;  %6306 = vmatprep.subr.bf16.mxu1 %v10087_v40 }
 0x468   : > { %6242 = vmatpush2.bf16.msra.mxu0 %v10082_v41  ;;  %6307 = vmatpush2.bf16.msra.mxu1 %v10085_v29  ;;  %v10118_v41 = vld [vmem:[#allocation12 + $0x508] ss:$16 sps:$4 sm:$0xff]  }
 0x469   : > { %6243 = vmatprep.subr.bf16.mxu0 %v10090_v3  ;;  %6308 = vmatprep.subr.bf16.mxu1 %v10093_v47  ;;  %v10121_v47 = vld [vmem:[#allocation12 + $0x688] ss:$16 sps:$4 sm:$0xff]  }
 0x46a   : > { %v5821_v20 = vpop.f32.mrf.mxu0 }
 0x46b   : > { %v5822_v16 = vadd.f32 %v5821_v20, %v12181_v17  ;;  %v10127_v20 = vld [vmem:[#allocation12 + $0x8e8] ss:$16 sps:$4 sm:$0xff]  }
 0x46c   : > { %6244 = vmatpush2.bf16.msra.mxu0 %v10088_v28  ;;  %6309 = vmatpush2.bf16.msra.mxu1 %v10091_v38  ;;  %v5823_v39 = vpop.f32.mrf.mxu0  ;;  %v10129_v28 = vld [vmem:[#allocation12 + $0x8ec] ss:$16 sps:$4 sm:$0xff]  }
 0x46d   : > { %6245 = vmatprep.subr.bf16.mxu0 %v10096_v59  ;;  %6310 = vmatprep.subr.bf16.mxu1 %v10099_v35  ;;  %v5824_v60 = vadd.f32 %v5823_v39, %v12187_v2  ;;  %v10126_v59 = vld [vmem:[#allocation12 + $0x66c] ss:$16 sps:$4 sm:$0xff]  }
 0x46e   : > { %v10141_v39 = vld [vmem:[#allocation12 + $0x8ac] ss:$16 sps:$4 sm:$0xff]  }
 0x470   : > { %6246 = vmatpush2.bf16.msra.mxu0 %v10094_v51  ;;  %6311 = vmatpush2.bf16.msra.mxu1 %v10097_v58 }
 0x471   : > { %6312 = vmatprep.subr.bf16.mxu1 %v10102_v44  ;;  %6361 = vmatprep.subr.bf16.mxu0 %v10105_v12  ;;  %v10124_v12 = vld [vmem:[#allocation12 + $0x668] ss:$16 sps:$4 sm:$0xff]  }
 0x473   : > { %6248 = vmatmul.mubr.bf16.vlgmr.msra.gmra.mxu0 %v12071_v45  ;;  %v5825_v45 = vpop.f32.mrf.mxu0 }
 0x474   : > { %6257 = vmatprep.mubr.bf16.mxu0 %v12081_v42  ;;  %6313 = vmatpush2.bf16.msra.mxu1 %v10100_v46  ;;  %v5826_v29 = vadd.f32 %v5825_v45, %v12181_v17  ;;  %v10132_v46 = vld [vmem:[#allocation12 + $0x64c] ss:$16 sps:$4 sm:$0xff]   ;;  %v10145_v45 = vld [vmem:[#allocation12 + $0x888] ss:$16 sps:$4 sm:$0xff]  }
 0x475   : > { %6362 = vmatpush1.bf16.msra.mxu0 %v10103_v7  ;;  %6314 = vmatprep.subr.bf16.mxu1 %v10108_v23  ;;  %v5827_v40 = vpop.f32.mrf.mxu0  ;;  %v10135_v7 = vld [vmem:[#allocation12 + $0x8cc] ss:$16 sps:$4 sm:$0xff]   ;;  %v10130_v23 = vld [vmem:[#allocation12 + $0x648] ss:$16 sps:$4 sm:$0xff]  }
 0x476   : > { %6363 = vmatprep.subr.bf16.mxu0 %v10111_v15  ;;  %v5828_v35 = vadd.f32 %v5827_v40, %v12187_v2  ;;  %v10133_v15 = vld [vmem:[#allocation12 + $0x8c8] ss:$16 sps:$4 sm:$0xff]  }
 0x477   : > { %v10154_v40 = vld [vmem:[#allocation12 + $0x7c8] ss:$16 sps:$4 sm:$0xff]  }
 0x478   : > { %6315 = vmatpush2.bf16.msra.mxu1 %v10106_v36  ;;  %v10136_v36 = vld [vmem:[#allocation12 + $0x628] ss:$16 sps:$4 sm:$0xff]  }
 0x479   : > { %6364 = vmatpush1.bf16.msra.mxu0 %v10109_v14  ;;  %6316 = vmatprep.subr.bf16.mxu1 %v10114_v9  ;;  %v10139_v14 = vld [vmem:[#allocation12 + $0x8a8] ss:$16 sps:$4 sm:$0xff]   ;;  %v10144_v9 = vld [vmem:[#allocation12 + $0x60c] ss:$16 sps:$4 sm:$0xff]  }
 0x47a   : > { %6365 = vmatprep.subr.bf16.mxu0 %v10117_v53  ;;  %v5894_v50 = vpop.f32.mrf.mxu1  ;;  %v10142_v53 = vld [vmem:[#allocation12 + $0x608] ss:$16 sps:$4 sm:$0xff]  }
 0x47b   : > { %6258 = vmatmul.mubr.bf16.gmra.mxu0 %v12083_v52  ;;  %v12192_v10 = vadd.f32 %v5894_v50, %v5822_v16  ;;  %v10153_v16 = vld [vmem:[#allocation12 + $0x86c] ss:$16 sps:$4 sm:$0xff]   ;;  %v10151_v50 = vld [vmem:[#allocation12 + $0x868] ss:$16 sps:$4 sm:$0xff]  }
 0x47c   : > { %6267 = vmatprep.mubr.bf16.mxu0 %v12093_v8  ;;  %6317 = vmatpush2.bf16.msra.mxu1 %v10112_v19  ;;  %v5896_v0 = vpop.f32.mrf.mxu1  ;;  %v10150_v19 = vld [vmem:[#allocation12 + $0x7ec] ss:$16 sps:$4 sm:$0xff]  }
 0x47d   : > { %6366 = vmatpush1.bf16.msra.mxu0 %v10115_v48  ;;  %v12196_v3 = vadd.f32 %v5896_v0, %v5824_v60  ;;  %6318 = vmatprep.subr.bf16.mxu1 %v10120_v26  ;;  %v10148_v26 = vld [vmem:[#allocation12 + $0x7e8] ss:$16 sps:$4 sm:$0xff]   ;;  %v10159_v60 = vld [vmem:[#allocation12 + $0x84c] ss:$16 sps:$4 sm:$0xff]  }
 0x47e   : > { %6367 = vmatprep.subr.bf16.mxu0 %v10123_v57  ;;  %v5898_v38 = vpop.f32.mrf.mxu1  ;;  %v10156_v57 = vld [vmem:[#allocation12 + $0x7cc] ss:$16 sps:$4 sm:$0xff]   ;;  %v10157_v0 = vld [vmem:[#allocation12 + $0x848] ss:$16 sps:$4 sm:$0xff]  }
 0x47f   : > { %v12199_v51 = vadd.f32 %v5898_v38, %v5826_v29  ;;  %v10165_v29 = vld [vmem:[#allocation12 + $0x82c] ss:$16 sps:$4 sm:$0xff]   ;;  %v10160_v38 = vld [vmem:[#allocation12 + $0x7a8] ss:$16 sps:$4 sm:$0xff]  }
 0x480   : > { %6319 = vmatpush2.bf16.msra.mxu1 %v10118_v41  ;;  %v5900_v58 = vpop.f32.mrf.mxu1  ;;  %v10162_v41 = vld [vmem:[#allocation12 + $0x7ac] ss:$16 sps:$4 sm:$0xff]  }
 0x481   : > { %6368 = vmatpush1.bf16.msra.mxu0 %v10121_v47  ;;  %v12201_v44 = vadd.f32 %v5900_v58, %v5828_v35  ;;  %6434 = vmatprep.subr.bf16.mxu1 %v10129_v28  ;;  %v10168_v58 = vld [vmem:[#allocation12 + $0x78c] ss:$16 sps:$4 sm:$0xff]  }
 0x482   : > { %6369 = vmatprep.subr.bf16.mxu0 %v10126_v59  ;;  %v10163_v59 = vld [vmem:[#allocation12 + $0x828] ss:$16 sps:$4 sm:$0xff]  }
 0x483   : > { %6268 = vmatmul.mubr.bf16.gmra.mxu0 %v12095_v63  ;;  %6321 = vmatmul.mubr.bf16.vlgmr.msra.gmra.mxu1 %v12077_v56  ;;  %v10147_v56 = vld [vmem:[#allocation12 + $0x88c] ss:$16 sps:$4 sm:$0xff]  }
 0x484   : > { %6277 = vmatprep.mubr.bf16.mxu0 %v12108_v22  ;;  %6330 = vmatprep.mubr.bf16.mxu1 %v12089_v6 }
 0x485   : > { %6370 = vmatpush1.bf16.msra.mxu0 %v10124_v12  ;;  %6435 = vmatpush1.bf16.msra.mxu1 %v10127_v20  ;;  %v10171_v12 = vld [vmem:[#allocation12 + $0x80c] ss:$16 sps:$4 sm:$0xff]  }
 0x486   : > { %6371 = vmatprep.subr.bf16.mxu0 %v10132_v46  ;;  %6436 = vmatprep.subr.bf16.mxu1 %v10135_v7 }
 0x489   : > { %6372 = vmatpush1.bf16.msra.mxu0 %v10130_v23  ;;  %6437 = vmatpush1.bf16.msra.mxu1 %v10133_v15 }
 0x48a   : > { %6373 = vmatprep.subr.bf16.mxu0 %v10138_v34  ;;  %6438 = vmatprep.subr.bf16.mxu1 %v10141_v39  ;;  %v5831_v48 = vpop.f32.mrf.mxu0  ;;  %v10166_v39 = vld [vmem:[#allocation12 + $0x788] ss:$16 sps:$4 sm:$0xff]  }
 0x48b   : > { %6278 = vmatmul.mubr.bf16.gmra.mxu0 %v12110_v25  ;;  %6331 = vmatmul.mubr.bf16.gmra.mxu1 %v12087_v27  ;;  %v5832_v28 = vadd.f32 %v5831_v48, %v12181_v17  ;;  %v10175_v48 = vld [vmem:[#allocation12 + $0x9e8] ss:$16 sps:$4 sm:$0xff]  }
 0x48c   : > { %6340 = vmatprep.mubr.bf16.mxu1 %v12101_v1  ;;  %6393 = vmatprep.mubr.bf16.mxu0 %v12081_v42  ;;  %v5833_v42 = vpop.f32.mrf.mxu0 }
 0x48d   : > { %6374 = vmatpush1.bf16.msra.mxu0 %v10136_v36  ;;  %6439 = vmatpush1.bf16.msra.mxu1 %v10139_v14  ;;  %v5834_v20 = vadd.f32 %v5833_v42, %v12187_v2  ;;  %v10169_v36 = vld [vmem:[#allocation12 + $0x808] ss:$16 sps:$4 sm:$0xff]   ;;  %v10186_v42 = vld [vmem:[#allocation12 + $0x72c] ss:$16 sps:$4 sm:$0xff]  }
 0x48e   : > { %6375 = vmatprep.subr.bf16.mxu0 %v10144_v9  ;;  %6440 = vmatprep.subr.bf16.mxu1 %v10147_v56  ;;  %v5835_v47 = vpop.f32.mrf.mxu0  ;;  %v10174_v9 = vld [vmem:[#allocation12 + $0x76c] ss:$16 sps:$4 sm:$0xff]  }
 0x48f   : > { %v5836_v15 = vadd.f32 %v5835_v47, %v12181_v17  ;;  %v10177_v56 = vld [vmem:[#allocation12 + $0x9ec] ss:$16 sps:$4 sm:$0xff]  }
 0x490   : > { %v5837_v7 = vpop.f32.mrf.mxu0  ;;  %v10192_v47 = vld [vmem:[#allocation12 + $0x70c] ss:$16 sps:$4 sm:$0xff]  }
 0x491   : > { %6376 = vmatpush1.bf16.msra.mxu0 %v10142_v53  ;;  %6441 = vmatpush1.bf16.msra.mxu1 %v10145_v45  ;;  %v5838_v53 = vadd.f32 %v5837_v7, %v12187_v2  ;;  %v10196_v7 = vld [vmem:[#allocation12 + $0x968] ss:$16 sps:$4 sm:$0xff]  }
 0x492   : > { %6377 = vmatprep.subr.bf16.mxu0 %v10150_v19  ;;  %6442 = vmatprep.subr.bf16.mxu1 %v10153_v16  ;;  %v10172_v16 = vld [vmem:[#allocation12 + $0x768] ss:$16 sps:$4 sm:$0xff]  }
 0x493   : > { %6341 = vmatmul.mubr.bf16.gmra.mxu1 %v12099_v21 }
 0x494   : > { %6350 = vmatprep.mubr.bf16.mxu1 %v12120_v4 }
 0x495   : > { %6378 = vmatpush2.bf16.msra.mxu0 %v10148_v26  ;;  %6443 = vmatpush1.bf16.msra.mxu1 %v10151_v50  ;;  %v10180_v26 = vld [vmem:[#allocation12 + $0x74c] ss:$16 sps:$4 sm:$0xff]  }
 0x496   : > { %6379 = vmatprep.subr.bf16.mxu0 %v10156_v57  ;;  %6444 = vmatprep.subr.bf16.mxu1 %v10159_v60  ;;  %v10183_v50 = vld [vmem:[#allocation12 + $0x9cc] ss:$16 sps:$4 sm:$0xff]   ;;  %v10178_v57 = vld [vmem:[#allocation12 + $0x748] ss:$16 sps:$4 sm:$0xff]  }
 0x497   : > { %v10181_v60 = vld [vmem:[#allocation12 + $0x9c8] ss:$16 sps:$4 sm:$0xff]  }
 0x499   : > { %6380 = vmatpush2.bf16.msra.mxu0 %v10154_v40  ;;  %6445 = vmatpush1.bf16.msra.mxu1 %v10157_v0  ;;  %v10189_v40 = vld [vmem:[#allocation12 + $0x9ac] ss:$16 sps:$4 sm:$0xff]   ;;  %v10184_v0 = vld [vmem:[#allocation12 + $0x728] ss:$16 sps:$4 sm:$0xff]  }
 0x49a   : > { %6381 = vmatprep.subr.bf16.mxu0 %v10162_v41  ;;  %6446 = vmatprep.subr.bf16.mxu1 %v10165_v29  ;;  %v5904_v35 = vpop.f32.mrf.mxu1  ;;  %v10187_v41 = vld [vmem:[#allocation12 + $0x9a8] ss:$16 sps:$4 sm:$0xff]  }
 0x49b   : > { %6351 = vmatmul.mubr.bf16.gmra.mxu1 %v12122_v18  ;;  %v12216_v46 = vadd.f32 %v5904_v35, %v5832_v28  ;;  %v10195_v28 = vld [vmem:[#allocation12 + $0x98c] ss:$16 sps:$4 sm:$0xff]   ;;  %v10193_v35 = vld [vmem:[#allocation12 + $0x988] ss:$16 sps:$4 sm:$0xff]  }
 0x49c   : > { %6466 = vmatprep.mubr.bf16.mxu1 %v12089_v6  ;;  %v5906_v23 = vpop.f32.mrf.mxu1 }
 0x49d   : > { %6382 = vmatpush2.bf16.msra.mxu0 %v10160_v38  ;;  %6447 = vmatpush1.bf16.msra.mxu1 %v10163_v59  ;;  %v12220_v34 = vadd.f32 %v5906_v23, %v5834_v20  ;;  %v10190_v59 = vld [vmem:[#allocation12 + $0x708] ss:$16 sps:$4 sm:$0xff]  }
 0x49e   : > { %6383 = vmatprep.subr.bf16.mxu0 %v10168_v58  ;;  %6448 = vmatprep.subr.bf16.mxu1 %v10171_v12  ;;  %v5908_v14 = vpop.f32.mrf.mxu1  ;;  %v10198_v12 = vld [vmem:[#allocation12 + $0x96c] ss:$16 sps:$4 sm:$0xff]  }
 0x49f   : > { %v12223_v45 = vadd.f32 %v5908_v14, %v5836_v15  ;;  %v10201_v15 = vld [vmem:[#allocation12 + $0x94c] ss:$16 sps:$4 sm:$0xff]  }
 0x4a0   : > { %v5910_v19 = vpop.f32.mrf.mxu1 }
 0x4a1   : > { %6384 = vmatpush2.bf16.msra.mxu0 %v10166_v39  ;;  %6449 = vmatpush1.bf16.msra.mxu1 %v10169_v36  ;;  %v12225_v6 = vadd.f32 %v5910_v19, %v5838_v53  ;;  %v10199_v36 = vld [vmem:[#allocation12 + $0x948] ss:$16 sps:$4 sm:$0xff]  }
 0x4a2   : > { %6385 = vmatprep.subr.bf16.mxu0 %v10174_v9  ;;  %6450 = vmatprep.subr.bf16.mxu1 %v10177_v56  ;;  %v10204_v9 = vld [vmem:[#allocation12 + $0x92c] ss:$16 sps:$4 sm:$0xff]   ;;  %v10202_v19 = vld [vmem:[#allocation12 + $0x928] ss:$16 sps:$4 sm:$0xff]  }
 0x4a5   : > { %6386 = vmatpush2.bf16.msra.mxu0 %v10172_v16  ;;  %6451 = vmatpush2.bf16.msra.mxu1 %v10175_v48 }
 0x4a6   : > { %6387 = vmatprep.subr.bf16.mxu0 %v10180_v26  ;;  %6452 = vmatprep.subr.bf16.mxu1 %v10183_v50 }
 0x4a9   : > { %6388 = vmatpush2.bf16.msra.mxu0 %v10178_v57  ;;  %6453 = vmatpush2.bf16.msra.mxu1 %v10181_v60 }
 0x4aa   : > { %6389 = vmatprep.subr.bf16.mxu0 %v10186_v42  ;;  %6454 = vmatprep.subr.bf16.mxu1 %v10189_v40  ;;  %v5841_v29 = vpop.f32.mrf.mxu0 }
 0x4ab   : > { %v5842_v53 = vadd.f32 %v5841_v29, %v12181_v17 }
 0x4ac   : > { %v5843_v38 = vpop.f32.mrf.mxu0 }
 0x4ad   : > { %6390 = vmatpush2.bf16.msra.mxu0 %v10184_v0  ;;  %6455 = vmatpush2.bf16.msra.mxu1 %v10187_v41  ;;  %v5844_v26 = vadd.f32 %v5843_v38, %v12187_v2  ;;  %v10205_v41 = vld [vmem:[#allocation12 + $0x908] ss:$16 sps:$4 sm:$0xff]  }
 0x4ae   : > { %6391 = vmatprep.subr.bf16.mxu0 %v10192_v47  ;;  %6456 = vmatprep.subr.bf16.mxu1 %v10195_v28  ;;  %v5845_v58 = vpop.f32.mrf.mxu0 }
 0x4af   : > { %v5846_v42 = vadd.f32 %v5845_v58, %v12181_v17 }
 0x4b0   : > { %v5847_v20 = vpop.f32.mrf.mxu0 }
 0x4b1   : > { %6392 = vmatpush2.bf16.msra.mxu0 %v10190_v59  ;;  %6457 = vmatpush2.bf16.msra.mxu1 %v10193_v35  ;;  %v5848_v28 = vadd.f32 %v5847_v20, %v12187_v2 }
 0x4b2   : > { %6458 = vmatprep.subr.bf16.mxu1 %v10198_v12  ;;  %v12227_v23 = vpop.f32.mrf.mxu0 }
 0x4b4   : > { %6394 = vmatmul.mubr.bf16.vlgmr.msra.gmra.mxu0 %v12083_v52  ;;  %v12230_v39 = vpop.f32.mrf.mxu0  ;;  %v10207_v52 = vld [vmem:[#allocation12 + $0x90c] ss:$16 sps:$4 sm:$0xff]  }
 0x4b5   : > { %6403 = vmatprep.mubr.bf16.mxu0 %v12093_v8  ;;  %6459 = vmatpush2.bf16.msra.mxu1 %v10196_v7 }
 0x4b6   : > { %6460 = vmatprep.subr.bf16.mxu1 %v10201_v15  ;;  %v12233_v14 = vpop.f32.mrf.mxu0 }
 0x4b8   : > { %v12235_v56 = vpop.f32.mrf.mxu0 }
 0x4b9   : > { %6461 = vmatpush2.bf16.msra.mxu1 %v10199_v36 }
 0x4ba   : > { %6462 = vmatprep.subr.bf16.mxu1 %v10204_v9  ;;  %v5914_v16 = vpop.f32.mrf.mxu1  ;;  %v5967_v48 = vpop.f32.mrf.mxu0 }
 0x4bb   : > { %v5915_v50 = vadd.f32 %v5914_v16, %v5842_v53  ;;  %v5968_v8 = vadd.f32 %v5967_v48, %v12192_v10 }
 0x4bc   : > { %6404 = vmatmul.mubr.bf16.gmra.mxu0 %v12095_v63  ;;  %v5916_v57 = vpop.f32.mrf.mxu1  ;;  %v5969_v60 = vpop.f32.mrf.mxu0 }
 0x4bd   : > { %6413 = vmatprep.mubr.bf16.mxu0 %v12108_v22  ;;  %6463 = vmatpush2.bf16.msra.mxu1 %v10202_v19  ;;  %v5917_v40 = vadd.f32 %v5916_v57, %v5844_v26  ;;  %v5970_v0 = vadd.f32 %v5969_v60, %v12196_v3 }
 0x4be   : > { %6464 = vmatprep.subr.bf16.mxu1 %v10207_v52  ;;  %v5918_v29 = vpop.f32.mrf.mxu1  ;;  %v5971_v47 = vpop.f32.mrf.mxu0 }
 0x4bf   : > { %v5919_v38 = vadd.f32 %v5918_v29, %v5846_v42  ;;  %v5972_v10 = vadd.f32 %v5971_v47, %v12199_v51 }
 0x4c0   : > { %v5920_v63 = vpop.f32.mrf.mxu1  ;;  %v5973_v59 = vpop.f32.mrf.mxu0 }
 0x4c1   : > { %6465 = vmatpush2.bf16.msra.mxu1 %v10205_v41  ;;  %v5921_v35 = vadd.f32 %v5920_v63, %v5848_v28  ;;  %v5974_v58 = vadd.f32 %v5973_v59, %v12201_v44 }
 0x4c2   : > { %v5977_v22 = vpop.f32.mrf.mxu0  ;;  %v6030_v12 = vpop.f32.mrf.mxu1 }
 0x4c3   : > { %v5978_v7 = vadd.f32 %v5977_v22, %v12216_v46 }
 0x4c4   : > { %6414 = vmatmul.mubr.bf16.gmra.mxu0 %v12110_v25  ;;  %6467 = vmatmul.mubr.bf16.vlgmr.msra.gmra.mxu1 %v12087_v27  ;;  %v5979_v3 = vpop.f32.mrf.mxu0  ;;  %v6032_v15 = vpop.f32.mrf.mxu1 }
 0x4c5   : > { %6423 = vmatprep.mubr.bf16.mxu0 %v12133_v33  ;;  %6476 = vmatprep.mubr.bf16.mxu1 %v12101_v1  ;;  %v5980_v51 = vadd.f32 %v5979_v3, %v12220_v34 }
 0x4c6   : > { %v5981_v20 = vpop.f32.mrf.mxu0  ;;  %v6034_v36 = vpop.f32.mrf.mxu1 }
 0x4c7   : > { %v5982_v44 = vadd.f32 %v5981_v20, %v12223_v45 }
 0x4c8   : > { %v5983_v9 = vpop.f32.mrf.mxu0  ;;  %v6036_v53 = vpop.f32.mrf.mxu1 }
 0x4c9   : > { %v5984_v46 = vadd.f32 %v5983_v9, %v12225_v6 }
 0x4ca   : > { %v5987_v19 = vpop.f32.mrf.mxu0  ;;  %v6040_v25 = vpop.f32.mrf.mxu1 }
 0x4cb   : > { %v5988_v16 = vadd.f32 %v5987_v19, %v5915_v50  ;;  %v12255_v27 = vadd.f32 %v6040_v25, %v5968_v8 }
 0x4cc   : > { %6424 = vmatmul.mubr.bf16.gmra.mxu0 %v12136_v61  ;;  %6477 = vmatmul.mubr.bf16.gmra.mxu1 %v12099_v21  ;;  %v5989_v1 = vpop.f32.mrf.mxu0  ;;  %v6042_v33 = vpop.f32.mrf.mxu1 }
 0x4cd   : > { %6486 = vmatprep.mubr.bf16.mxu1 %v12120_v4  ;;  %v5990_v34 = vadd.f32 %v5989_v1, %v5917_v40  ;;  %v6043_v48 = vadd.f32 %v6042_v33, %v5970_v0 }
 0x4ce   : > { %v5991_v45 = vpop.f32.mrf.mxu0  ;;  %v6044_v52 = vpop.f32.mrf.mxu1 }
 0x4cf   : > { %v5992_v26 = vadd.f32 %v5991_v45, %v5919_v38  ;;  %v6045_v57 = vadd.f32 %v6044_v52, %v5972_v10 }
 0x4d0   : > { %v5993_v6 = vpop.f32.mrf.mxu0  ;;  %v6046_v60 = vpop.f32.mrf.mxu1 }
 0x4d1   : > { %v5994_v42 = vadd.f32 %v5993_v6, %v5921_v35  ;;  %v6047_v50 = vadd.f32 %v6046_v60, %v5974_v58  ;;  %v5814_v58 = vadd.f32 %v12165_v31, %v12187_v2 }
 0x4d2   : > { %v6050_v8 = vpop.f32.mrf.mxu1 }
 0x4d3   : > { %v6051_v41 = vadd.f32 %v6050_v8, %v5978_v7  ;;  %v5887_v7 = vadd.f32 %v12173_v24, %v5814_v58 }
 0x4d4   : > { %6487 = vmatmul.mubr.bf16.gmra.mxu1 %v12122_v18  ;;  %v6052_v61 = vpop.f32.mrf.mxu1 }
 0x4d5   : > { %6496 = vmatprep.mubr.bf16.mxu1 %v12146_v11  ;;  %v6053_v21 = vadd.f32 %v6052_v61, %v5980_v51  ;;  %v5812_v11 = vadd.f32 %v12163_v49, %v12181_v17  ;;  %v5818_v51 = vadd.f32 %v12171_v54, %v12187_v2 }
 0x4d6   : > { %v6054_v29 = vpop.f32.mrf.mxu1 }
 0x4d7   : > { %v6055_v4 = vadd.f32 %v6054_v29, %v5982_v44  ;;  %v5885_v22 = vadd.f32 %v12169_v30, %v5812_v11  ;;  %v5960_v44 = vadd.f32 %v12230_v39, %v5887_v7  ;;  %v5891_v31 = vadd.f32 %v12183_v62, %v5818_v51 }
 0x4d8   : > { %v6056_v40 = vpop.f32.mrf.mxu1 }
 0x4d9   : > { %v12262_v0 = vadd.f32 %v6056_v40, %v5984_v46  ;;  %v5958_v3 = vadd.f32 %v12227_v23, %v5885_v22  ;;  %v6033_v46 = vadd.f32 %v6032_v15, %v5960_v44  ;;  %v5964_v24 = vadd.f32 %v12235_v56, %v5891_v31 }
 0x4da   : > { %v6060_v47 = vpop.f32.mrf.mxu1 }
 0x4db   : > { %v12264_v28 = vadd.f32 %v6060_v47, %v5988_v16  ;;  %v6031_v49 = vadd.f32 %v6030_v12, %v5958_v3  ;;  %v6037_v16 = vadd.f32 %v6036_v53, %v5964_v24 }
 0x4dc   : > { %6497 = vmatmul.mubr.bf16.gmra.mxu1 %v12153_v43  ;;  %v6062_v38 = vpop.f32.mrf.mxu1  ;;  %v5816_v43 = vadd.f32 %v12167_v37, %v12181_v17 }
 0x4dd   : > { %v12267_v10 = vadd.f32 %v6062_v38, %v5990_v34 }
 0x4de   : > { %v6064_v63 = vpop.f32.mrf.mxu1  ;;  %v5889_v20 = vadd.f32 %v12176_v32, %v5816_v43 }
 0x4df   : > { %v12269_v59 = vadd.f32 %v6064_v63, %v5992_v26 }
 0x4e0   : > { %v6066_v18 = vpop.f32.mrf.mxu1  ;;  %v5962_v30 = vadd.f32 %v12233_v14, %v5889_v20 }
 0x4e1   : > { %v12271_v35 = vadd.f32 %v6066_v18, %v5994_v42 }
 0x4e2   : > { %v6035_v17 = vadd.f32 %v6034_v36, %v5962_v30 }
 0x4f2   : > { %v6103_v9 = vpop.f32.mrf.mxu0 }
 0x4f3   : > { %v6104_v19 = vadd.f32 %v6103_v9, %v6031_v49 }
 0x4f4   : > { %v6105_v37 = vpop.f32.mrf.mxu0 }
 0x4f5   : > { %v6106_v23 = vadd.f32 %v6105_v37, %v6033_v46  ;;  %10568 = vtanh.f32 %v6104_v19 }
 0x4f6   : > { %v6107_v25 = vpop.f32.mrf.mxu0 }
 0x4f7   : > { %v6108_v54 = vadd.f32 %v6107_v25, %v6035_v17 }
 0x4f8   : > { %v6109_v32 = vpop.f32.mrf.mxu0 }
 0x4f9   : > { %10570 = vtanh.f32 %v6108_v54  ;;  %v6110_v2 = vadd.f32 %v6109_v32, %v6037_v16 }
 0x4fa   : > { %10572 = vtanh.f32 %v6106_v23  ;;  %v6113_v39 = vpop.f32.mrf.mxu0 }
 0x4fb   : > { %10574 = vtanh.f32 %v6110_v2  ;;  %v6114_v62 = vadd.f32 %v6113_v39, %v12255_v27  ;;  %v10208_v2 = vld [vmem:[#allocation15 + $0x70] ss:$8 sps:$4 sm:$0xff]   ;;  %v10210_v39 = vld [vmem:[#allocation15 + $0x74] ss:$8 sps:$4 sm:$0xff]  }
 0x4fc   : > { %v6115_v14 = vpop.f32.mrf.mxu0  ;;  %7043 = vmatprep.subr.bf16.mxu0 %v10210_v39 }
 0x4fd   : > { %v6116_v12 = vadd.f32 %v6115_v14, %v6043_v48  ;;  %10576 = vtanh.f32 %v6114_v62  ;;  %v10211_v62 = vld [vmem:[#allocation15 + $0x170] ss:$8 sps:$4 sm:$0xff]   ;;  %7044 = vmatpush1.bf16.msra.mxu0 %v10208_v2 }
 0x4fe   : > { %v6117_v15 = vpop.f32.mrf.mxu0 }
 0x4ff   : > { %v6118_v1 = vadd.f32 %v6117_v15, %v6045_v57  ;;  %v10216_v15 = vld [vmem:[#allocation15 + $0x64] ss:$8 sps:$4 sm:$0xff]  }
 0x500   : > { %v6119_v56 = vpop.f32.mrf.mxu0  ;;  %7045 = vmatprep.subr.bf16.mxu0 %v10216_v15  ;;  %v10253_v15 = vld [vmem:[#allocation15 + $0x100] ss:$8 sps:$4 sm:$0xff]  }
 0x501   : > { %10578 = vtanh.f32 %v6118_v1  ;;  %v6120_v36 = vadd.f32 %v6119_v56, %v6047_v50  ;;  %v10219_v1 = vld [vmem:[#allocation15 + $0x164] ss:$8 sps:$4 sm:$0xff]  }
 0x502   : > { %10580 = vtanh.f32 %v6116_v12  ;;  %v6123_v53 = vpop.f32.mrf.mxu0  ;;  %v10569_v45 = vpop.eup %10568  ;;  %v10213_v12 = vld [vmem:[#allocation15 + $0x174] ss:$8 sps:$4 sm:$0xff]  }
 0x503   : > { %10582 = vtanh.f32 %v6120_v36  ;;  %v6124_v33 = vadd.f32 %v6123_v53, %v6051_v41  ;;  %v12292_v57 = vpop.f32.mrf.mxu1  ;;  %7116 = vmatprep.subr.bf16.mxu1 %v10213_v12  ;;  %v10214_v36 = vld [vmem:[#allocation15 + $0x60] ss:$8 sps:$4 sm:$0xff]  }
 0x504   : > { %v6125_v34 = vpop.f32.mrf.mxu0  ;;  %7117 = vmatpush1.bf16.msra.mxu1 %v10211_v62  ;;  %v10217_v53 = vld [vmem:[#allocation15 + $0x160] ss:$8 sps:$4 sm:$0xff]   ;;  %7046 = vmatpush1.bf16.msra.mxu0 %v10214_v36  ;;  %v10255_v62 = vld [vmem:[#allocation15 + $0x104] ss:$8 sps:$4 sm:$0xff]  }
 0x505   : > { %v6126_v52 = vadd.f32 %v6125_v34, %v6053_v21  ;;  %10584 = vtanh.f32 %v6124_v33  ;;  %v12302_v29 = vpop.f32.mrf.mxu1  ;;  %v10222_v33 = vld [vmem:[#allocation15 + $0x54] ss:$8 sps:$4 sm:$0xff]   ;;  %7118 = vmatprep.subr.bf16.mxu1 %v10219_v1  ;;  %v10250_v12 = vld [vmem:[#allocation15] ss:$8 sps:$4 sm:$0xff]  }
 0x506   : > { %v10571_v26 = vpop.eup %10570  ;;  %v6127_v6 = vpop.f32.mrf.mxu0  ;;  %7047 = vmatprep.subr.bf16.mxu0 %v10222_v33  ;;  %v10258_v1 = vld [vmem:[#allocation15 + $0xf4] ss:$8 sps:$4 sm:$0xff]  }
 0x507   : > { %v10573_v60 = vpop.eup %10572  ;;  %v6128_v42 = vadd.f32 %v6127_v6, %v6055_v4  ;;  %v12290_v27 = vpack.c.bf16 %v10571_v26, %v10569_v45  ;;  %v12308_v22 = vpop.f32.mrf.mxu1  ;;  %v10225_v45 = vld [vmem:[#allocation15 + $0x154] ss:$8 sps:$4 sm:$0xff]   ;;  %v10220_v26 = vld [vmem:[#allocation15 + $0x50] ss:$8 sps:$4 sm:$0xff]  }
 0x508   : > { %v10575_v48 = vpop.eup %10574  ;;  %v6129_v8 = vpop.f32.mrf.mxu0  ;;  %7119 = vmatpush1.bf16.msra.mxu1 %v10217_v53  ;;  %v10223_v6 = vld [vmem:[#allocation15 + $0x150] ss:$8 sps:$4 sm:$0xff]   ;;  %7048 = vmatpush1.bf16.msra.mxu0 %v10220_v26  ;;  %v10261_v33 = vld [vmem:[#allocation15 + $0x1f4] ss:$8 sps:$4 sm:$0xff]  }
 0x509   : > { %12673 = vst [vmem:[#allocation35_spill] sm:$0xff] %v12290_v27  ;;  %10586 = vtanh.f32 %v6128_v42  ;;  %v6130_v50 = vadd.f32 %v6129_v8, %v12262_v0  ;;  %6571 = vrot.lane.b32.xlu0 %v12290_v27, %s11001_s13  ;;  %v12297_v41 = vpack.c.bf16 %v10575_v48, %v10573_v60  ;;  %v10228_v60 = vld [vmem:[#allocation15 + $0x44] ss:$8 sps:$4 sm:$0xff]   ;;  %7120 = vmatprep.subr.bf16.mxu1 %v10225_v45  ;;  %v10256_v45 = vld [vmem:[#allocation15 + $0xf0] ss:$8 sps:$4 sm:$0xff]  }
 0x50a   : > { %10588 = vtanh.f32 %v6126_v52  ;;  %v6133_v61 = vpop.f32.mrf.mxu0  ;;  %v10577_v40 = vpop.eup %10576  ;;  %v10231_v48 = vld [vmem:[#allocation15 + $0x144] ss:$8 sps:$4 sm:$0xff]   ;;  %7049 = vmatprep.subr.bf16.mxu0 %v10228_v60  ;;  %v10259_v26 = vld [vmem:[#allocation15 + $0x1f0] ss:$8 sps:$4 sm:$0xff]  }
 0x50b   : > { %12674 = vst [vmem:[#allocation36_spill] sm:$0xff] %v12297_v41  ;;  %10590 = vtanh.f32 %v6130_v50  ;;  %v6134_v21 = vadd.f32 %v6133_v61, %v12264_v28  ;;  %6573 = vrot.lane.b32.xlu1 %v12297_v41, %s11001_s13  ;;  %v10226_v50 = vld [vmem:[#allocation15 + $0x40] ss:$8 sps:$4 sm:$0xff]  }
 0x50c   : > { %v6135_v4 = vpop.f32.mrf.mxu0  ;;  %7121 = vmatpush1.bf16.msra.mxu1 %v10223_v6  ;;  %v10229_v61 = vld [vmem:[#allocation15 + $0x140] ss:$8 sps:$4 sm:$0xff]   ;;  %7050 = vmatpush1.bf16.msra.mxu0 %v10226_v50  ;;  %v10264_v6 = vld [vmem:[#allocation15 + $0xe4] ss:$8 sps:$4 sm:$0xff]  }
 0x50d   : > { %v6136_v47 = vadd.f32 %v6135_v4, %v12267_v10  ;;  %10592 = vtanh.f32 %v6134_v21  ;;  %v12313_v10 = vpop.f32.mrf.mxu1  ;;  %v10234_v21 = vld [vmem:[#allocation15 + $0x34] ss:$8 sps:$4 sm:$0xff]   ;;  %7122 = vmatprep.subr.bf16.mxu1 %v10231_v48  ;;  %v10267_v50 = vld [vmem:[#allocation15 + $0x1e4] ss:$8 sps:$4 sm:$0xff]  }
 0x50e   : > { %v10579_v0 = vpop.eup %10578  ;;  %v6137_v38 = vpop.f32.mrf.mxu0  ;;  %7051 = vmatprep.subr.bf16.mxu0 %v10234_v21  ;;  %v10265_v21 = vld [vmem:[#allocation15 + $0x1e0] ss:$8 sps:$4 sm:$0xff]  }
 0x50f   : > { %v10581_v63 = vpop.eup %10580  ;;  %v6138_v18 = vadd.f32 %v6137_v38, %v12269_v59  ;;  %v12306_v11 = vpack.c.bf16 %v10579_v0, %v10577_v40  ;;  %v12317_v49 = vpop.f32.mrf.mxu1  ;;  %v10237_v40 = vld [vmem:[#allocation15 + $0x134] ss:$8 sps:$4 sm:$0xff]   ;;  %v10232_v0 = vld [vmem:[#allocation15 + $0x30] ss:$8 sps:$4 sm:$0xff]  }
 0x510   : > { %v10583_v58 = vpop.eup %10582  ;;  %v6139_v28 = vpop.f32.mrf.mxu0  ;;  %7123 = vmatpush1.bf16.msra.mxu1 %v10229_v61  ;;  %v10235_v38 = vld [vmem:[#allocation15 + $0x130] ss:$8 sps:$4 sm:$0xff]   ;;  %7052 = vmatpush1.bf16.msra.mxu0 %v10232_v0  ;;  %v10262_v61 = vld [vmem:[#allocation15 + $0xe0] ss:$8 sps:$4 sm:$0xff]  }
 0x511   : > { %12675 = vst [vmem:[#allocation37_spill] sm:$0xff] %v12306_v11  ;;  %10594 = vtanh.f32 %v6138_v18  ;;  %v6140_v43 = vadd.f32 %v6139_v28, %v12271_v35  ;;  %v12311_v7 = vpack.c.bf16 %v10583_v58, %v10581_v63  ;;  %v12321_v31 = vpop.f32.mrf.mxu1  ;;  %v10240_v63 = vld [vmem:[#allocation15 + $0x24] ss:$8 sps:$4 sm:$0xff]   ;;  %7124 = vmatprep.subr.bf16.mxu1 %v10237_v40  ;;  %v10270_v40 = vld [vmem:[#allocation15 + $0xd4] ss:$8 sps:$4 sm:$0xff]  }
 0x512   : > { %10596 = vtanh.f32 %v6136_v47  ;;  %v10585_v3 = vpop.eup %10584  ;;  %v10243_v28 = vld [vmem:[#allocation15 + $0x124] ss:$8 sps:$4 sm:$0xff]   ;;  %7053 = vmatprep.subr.bf16.mxu0 %v10240_v63  ;;  %v10273_v63 = vld [vmem:[#allocation15 + $0x1d4] ss:$8 sps:$4 sm:$0xff]  }
 0x513   : > { %12676 = vst [vmem:[#allocation38_spill] sm:$0xff] %v12311_v7  ;;  %10598 = vtanh.f32 %v6140_v43  ;;  %v12325_v24 = vpop.f32.mrf.mxu1  ;;  %v10238_v43 = vld [vmem:[#allocation15 + $0x20] ss:$8 sps:$4 sm:$0xff]  }
 0x514   : > { %7125 = vmatpush1.bf16.msra.mxu1 %v10235_v38  ;;  %7054 = vmatpush1.bf16.msra.mxu0 %v10238_v43  ;;  %v10271_v43 = vld [vmem:[#allocation15 + $0x1d0] ss:$8 sps:$4 sm:$0xff]  }
 0x515   : > { %v12329_v23 = vpop.f32.mrf.mxu1  ;;  %7126 = vmatprep.subr.bf16.mxu1 %v10243_v28  ;;  %v10268_v28 = vld [vmem:[#allocation15 + $0xd0] ss:$8 sps:$4 sm:$0xff]  }
 0x516   : > { %v10587_v51 = vpop.eup %10586 }
 0x517   : > { %v10589_v20 = vpop.eup %10588  ;;  %v12315_v59 = vpack.c.bf16 %v10587_v51, %v10585_v3  ;;  %v12331_v25 = vpop.f32.mrf.mxu1  ;;  %v10241_v3 = vld [vmem:[#allocation15 + $0x120] ss:$8 sps:$4 sm:$0xff]   ;;  %v10246_v51 = vld [vmem:[#allocation15 + $0x14] ss:$8 sps:$4 sm:$0xff]  }
 0x518   : > { %v10591_v44 = vpop.eup %10590  ;;  %7127 = vmatpush1.bf16.msra.mxu1 %v10241_v3  ;;  %7055 = vmatprep.subr.bf16.mxu0 %v10246_v51  ;;  %v10276_v3 = vld [vmem:[#allocation15 + $0xc4] ss:$8 sps:$4 sm:$0xff]  }
 0x519   : > { %12677 = vst [vmem:[#allocation39_spill] sm:$0xff] %v12315_v59  ;;  %v12319_v9 = vpack.c.bf16 %v10591_v44, %v10589_v20  ;;  %v12333_v16 = vpop.f32.mrf.mxu1 }
 0x51a   : > { %v10593_v30 = vpop.eup %10592 }
 0x51b   : > { %12678 = vst [vmem:[#allocation40_spill] sm:$0xff] %v12319_v9  ;;  %v12335_v54 = vpop.f32.mrf.mxu1 }
 0x51d   : > { %v12337_v32 = vpop.f32.mrf.mxu1 }
 0x51e   : > { %v10595_v35 = vpop.eup %10594 }
 0x51f   : > { %v10597_v46 = vpop.eup %10596  ;;  %v12323_v19 = vpack.c.bf16 %v10595_v35, %v10593_v30  ;;  %v12341_v56 = vpop.f32.mrf.mxu1  ;;  %v10249_v30 = vld [vmem:[#allocation15 + $0x114] ss:$8 sps:$4 sm:$0xff]   ;;  %v10244_v35 = vld [vmem:[#allocation15 + $0x10] ss:$8 sps:$4 sm:$0xff]  }
 0x520   : > { %v10599_v37 = vpop.eup %10598  ;;  %7128 = vmatprep.subr.bf16.mxu1 %v10249_v30  ;;  %7056 = vmatpush1.bf16.msra.mxu0 %v10244_v35  ;;  %v10279_v35 = vld [vmem:[#allocation15 + $0x1c4] ss:$8 sps:$4 sm:$0xff]  }
 0x521   : > { %12679 = vst [vmem:[#allocation41_spill] sm:$0xff] %v12323_v19  ;;  %v12327_v17 = vpack.c.bf16 %v10599_v37, %v10597_v46  ;;  %v12345_v52 = vpop.f32.mrf.mxu1  ;;  %v10247_v46 = vld [vmem:[#allocation15 + $0x110] ss:$8 sps:$4 sm:$0xff]   ;;  %v10252_v37 = vld [vmem:[#allocation15 + $0x4] ss:$8 sps:$4 sm:$0xff]  }
 0x522   : > { %7129 = vmatpush1.bf16.msra.mxu1 %v10247_v46  ;;  %7057 = vmatprep.subr.bf16.mxu0 %v10252_v37  ;;  %v10274_v46 = vld [vmem:[#allocation15 + $0xc0] ss:$8 sps:$4 sm:$0xff]  }
 0x523   : > { %12680 = vst [vmem:[#allocation42_spill] sm:$0xff] %v12327_v17  ;;  %v12349_v8 = vpop.f32.mrf.mxu1  ;;  %7130 = vmatprep.subr.bf16.mxu1 %v10255_v62  ;;  %v10277_v37 = vld [vmem:[#allocation15 + $0x1c0] ss:$8 sps:$4 sm:$0xff]   ;;  %v10282_v62 = vld [vmem:[#allocation15 + $0xb4] ss:$8 sps:$4 sm:$0xff]  }
 0x524   : > { %7058 = vmatpush1.bf16.msra.mxu0 %v10250_v12 }
 0x525   : > { %v12353_v47 = vpop.f32.mrf.mxu1  ;;  %7059 = vmatprep.subr.bf16.mxu0 %v10258_v1  ;;  %v10285_v1 = vld [vmem:[#allocation15 + $0x1b4] ss:$8 sps:$4 sm:$0xff]  }
 0x526   : > { %7131 = vmatpush1.bf16.msra.mxu1 %v10253_v15 }
 0x527   : > { %7132 = vmatprep.subr.bf16.mxu1 %v10261_v33  ;;  %v10280_v33 = vld [vmem:[#allocation15 + $0xb0] ss:$8 sps:$4 sm:$0xff]  }
 0x528   : > { %7060 = vmatpush2.bf16.msra.mxu0 %v10256_v45  ;;  %v10283_v45 = vld [vmem:[#allocation15 + $0x1b0] ss:$8 sps:$4 sm:$0xff]  }
 0x529   : > { %7061 = vmatprep.subr.bf16.mxu0 %v10264_v6 }
 0x52a   : > { %7133 = vmatpush2.bf16.msra.mxu1 %v10259_v26  ;;  %v10288_v26 = vld [vmem:[#allocation15 + $0xa4] ss:$8 sps:$4 sm:$0xff]  }
 0x52b   : > { %7134 = vmatprep.subr.bf16.mxu1 %v10267_v50 }
 0x52c   : > { %7062 = vmatpush2.bf16.msra.mxu0 %v10262_v61  ;;  %v10291_v61 = vld [vmem:[#allocation15 + $0x1a4] ss:$8 sps:$4 sm:$0xff]  }
 0x52d   : > { %7063 = vmatprep.subr.bf16.mxu0 %v10270_v40  ;;  %v10289_v40 = vld [vmem:[#allocation15 + $0x1a0] ss:$8 sps:$4 sm:$0xff]  }
 0x52e   : > { %7135 = vmatpush2.bf16.msra.mxu1 %v10265_v21  ;;  %v10286_v21 = vld [vmem:[#allocation15 + $0xa0] ss:$8 sps:$4 sm:$0xff]  }
 0x52f   : > { %7136 = vmatprep.subr.bf16.mxu1 %v10273_v63  ;;  %v10294_v63 = vld [vmem:[#allocation15 + $0x94] ss:$8 sps:$4 sm:$0xff]  }
 0x530   : > { %7064 = vmatpush2.bf16.msra.mxu0 %v10268_v28 }
 0x531   : > { %7065 = vmatprep.subr.bf16.mxu0 %v10276_v3  ;;  %v10297_v3 = vld [vmem:[#allocation15 + $0x194] ss:$8 sps:$4 sm:$0xff]  }
 0x532   : > { %7137 = vmatpush2.bf16.msra.mxu1 %v10271_v43 }
 0x533   : > { %v12339_v14 = vpop.f32.mrf.mxu0  ;;  %7138 = vmatprep.subr.bf16.mxu1 %v10279_v35  ;;  %v10292_v35 = vld [vmem:[#allocation15 + $0x90] ss:$8 sps:$4 sm:$0xff]  }
 0x534   : > { %7066 = vmatpush2.bf16.msra.mxu0 %v10274_v46  ;;  %v10295_v46 = vld [vmem:[#allocation15 + $0x190] ss:$8 sps:$4 sm:$0xff]  }
 0x535   : > { %v12343_v34 = vpop.f32.mrf.mxu0  ;;  %7067 = vmatprep.subr.bf16.mxu0 %v10282_v62 }
 0x536   : > { %7139 = vmatpush2.bf16.msra.mxu1 %v10277_v37 }
 0x537   : > { %v12347_v42 = vpop.f32.mrf.mxu0  ;;  %7140 = vmatprep.subr.bf16.mxu1 %v10285_v1 }
 0x538   : > { %7068 = vmatpush2.bf16.msra.mxu0 %v10280_v33 }
 0x539   : > { %v12351_v4 = vpop.f32.mrf.mxu0  ;;  %7069 = vmatprep.subr.bf16.mxu0 %v10288_v26 }
 0x53a   : > { %7141 = vmatpush2.bf16.msra.mxu1 %v10283_v45 }
 0x53b   : > { %v12355_v18 = vpop.f32.mrf.mxu0  ;;  %7142 = vmatprep.subr.bf16.mxu1 %v10291_v61 }
 0x53c   : > { %7070 = vmatpush2.bf16.msra.mxu0 %v10286_v21 }
 0x53d   : > { %v12359_v20 = vpop.f32.mrf.mxu0  ;;  %7071 = vmatprep.subr.bf16.mxu0 %v10294_v63 }
 0x53e   : > { %7143 = vmatpush2.bf16.msra.mxu1 %v10289_v40  ;;  %v12407_v40 = vrot.slane %v10634_v13, %v1619_v5 }
 0x53f   : > { %v12363_v2 = vpop.f32.mrf.mxu0  ;;  %7144 = vmatprep.subr.bf16.mxu1 %v10297_v3  ;;  %v12682_v3 = vsub.s32 3, %v11657_v55 }
 0x540   : > { %7072 = vmatpush2.bf16.msra.mxu0 %v10292_v35  ;;  %v6177_v41 = vadd.f32 %v12292_v57, %v12407_v40  ;;  %v6181_v7 = vadd.f32 %v12308_v22, %v12407_v40 }
 0x541   : > { %v12367_v36 = vpop.f32.mrf.mxu0  ;;  %v12413_v35 = vrot.slane %v10634_v13, %v12682_v3 }
 0x542   : > { %7145 = vmatpush2.bf16.msra.mxu1 %v10295_v46  ;;  %v6250_v5 = vadd.f32 %v12339_v14, %v6177_v41 }
 0x543   : > { %v12357_v58 = vpop.f32.mrf.mxu1  ;;  %v12371_v60 = vpop.f32.mrf.mxu0  ;;  %v6179_v9 = vadd.f32 %v12302_v29, %v12413_v35  ;;  %v6183_v57 = vadd.f32 %v12313_v10, %v12413_v35 }
 0x544   : > { %v6323_v13 = vadd.f32 %v12357_v58, %v6250_v5 }
 0x545   : > { %v12361_v44 = vpop.f32.mrf.mxu1  ;;  %v12375_v0 = vpop.f32.mrf.mxu0  ;;  %v6252_v55 = vadd.f32 %v12343_v34, %v6179_v9  ;;  %v6256_v22 = vadd.f32 %v12351_v4, %v6183_v57  ;;  %v6187_v34 = vadd.f32 %v12317_v49, %v12407_v40 }
 0x547   : > { %v12365_v39 = vpop.f32.mrf.mxu1  ;;  %v12379_v51 = vpop.f32.mrf.mxu0  ;;  %v6325_v29 = vadd.f32 %v12361_v44, %v6252_v55  ;;  %v6189_v44 = vadd.f32 %v12321_v31, %v12413_v35 }
 0x549   : > { %v12369_v53 = vpop.f32.mrf.mxu1  ;;  %v12383_v12 = vpop.f32.mrf.mxu0 }
 0x54b   : > { %v12373_v48 = vpop.f32.mrf.mxu1  ;;  %v12387_v6 = vpop.f32.mrf.mxu0 }
 0x54d   : > { %v12377_v38 = vpop.f32.mrf.mxu1  ;;  %v12391_v28 = vpop.f32.mrf.mxu0 }
 0x54f   : > { %v12381_v30 = vpop.f32.mrf.mxu1  ;;  %v12395_v37 = vpop.f32.mrf.mxu0 }
 0x551   : > { %v12385_v15 = vpop.f32.mrf.mxu1  ;;  %v12399_v1 = vpop.f32.mrf.mxu0 }
 0x552   : > { %12681 = vst [vmem:[#allocation43_spill] sm:$0xff] %v12399_v1 }
 0x553   : > { %v12389_v50 = vpop.f32.mrf.mxu1 }
 0x555   : > { %v12393_v43 = vpop.f32.mrf.mxu1 }
 0x557   : > { %v12397_v62 = vpop.f32.mrf.mxu1 }
 0x559   : > { %v12401_v33 = vpop.f32.mrf.mxu1 }
 0x55b   : > { %v12403_v26 = vpop.f32.mrf.mxu1 }
 0x55d   : > { %v12409_v63 = vpop.f32.mrf.mxu1 }
 0x55f   : > { %v12417_v17 = vpop.f32.mrf.mxu1 }
 0x560   : > { %12683 = vst [vmem:[#allocation44_spill] sm:$0xff] %v12417_v17  ;;  %v6254_v17 = vadd.f32 %v12347_v42, %v6181_v7  ;;  %v6329_v7 = vadd.f32 %v12369_v53, %v6256_v22  ;;  %v6197_v22 = vadd.f32 %v12331_v25, %v12407_v40 }
 0x561   : > { %v12426_v3 = vpop.f32.mrf.mxu1 }
 0x562   : > { %12684 = vst [vmem:[#allocation45_spill] sm:$0xff] %v12426_v3  ;;  %v6327_v9 = vadd.f32 %v12365_v39, %v6254_v17  ;;  %v6191_v17 = vadd.f32 %v12325_v24, %v12407_v40  ;;  %v10300_v24 = vld [vmem:[#allocation15 + $0x84] ss:$8 sps:$4 sm:$0xff]  }
 0x563   : > { %7073 = vmatprep.subr.bf16.mxu0 %v10300_v24 }
 0x564   : > { %v6264_v31 = vadd.f32 %v12363_v2, %v6191_v17  ;;  %v6207_v17 = vadd.f32 %v12341_v56, %v12407_v40  ;;  %v6211_v56 = vadd.f32 %v12349_v8, %v12407_v40 }
 0x566   : > { %v6284_v24 = vadd.f32 %v12395_v37, %v6211_v56  ;;  %v12694_v56 = vld [vmem:[#allocation36_spill] sm:$0xff] }
 0x574   : > { %v6395_v45 = vpop.f32.mrf.mxu0 }
 0x575   : > { %v6396_v1 = vadd.f32 %v6395_v45, %v6323_v13  ;;  %v6260_v45 = vadd.f32 %v12355_v18, %v6187_v34 }
 0x576   : > { %v6397_v61 = vpop.f32.mrf.mxu0 }
 0x577   : > { %v6398_v58 = vadd.f32 %v6397_v61, %v6325_v29  ;;  %v6333_v61 = vadd.f32 %v12373_v48, %v6260_v45  ;;  %v6337_v48 = vadd.f32 %v12381_v30, %v6264_v31  ;;  %v6270_v30 = vadd.f32 %v12371_v60, %v6197_v22 }
 0x578   : > { %v6399_v21 = vpop.f32.mrf.mxu0 }
 0x579   : > { %v6400_v42 = vadd.f32 %v6399_v21, %v6327_v9  ;;  %v6193_v21 = vadd.f32 %v12329_v23, %v12413_v35 }
 0x57a   : > { %v6401_v27 = vpop.f32.mrf.mxu0 }
 0x57b   : > { %v6402_v39 = vadd.f32 %v6401_v27, %v6329_v7 }
 0x57c   : > { %v6405_v46 = vpop.f32.mrf.mxu0 }
 0x57d   : > { %v6406_v29 = vadd.f32 %v6405_v46, %v6333_v61 }
 0x57e   : > { %v6407_v19 = vpop.f32.mrf.mxu0 }
 0x580   : > { %v6409_v59 = vpop.f32.mrf.mxu0 }
 0x581   : > { %v6410_v46 = vadd.f32 %v6409_v59, %v6337_v48  ;;  %v6343_v59 = vadd.f32 %v12389_v50, %v6270_v30 }
 0x582   : > { %v6411_v11 = vpop.f32.mrf.mxu0 }
 0x584   : > { %v12432_v41 = vpop.f32.mrf.mxu0  ;;  %v6468_v14 = vpop.f32.mrf.mxu1 }
 0x585   : > { %v6469_v5 = vadd.f32 %v6468_v14, %v6396_v1  ;;  %v6262_v1 = vadd.f32 %v12359_v20, %v6189_v44  ;;  %v6266_v20 = vadd.f32 %v12367_v36, %v6193_v21  ;;  %v10298_v14 = vld [vmem:[#allocation15 + $0x80] ss:$8 sps:$4 sm:$0xff]   ;;  %v6199_v36 = vadd.f32 %v12333_v16, %v12413_v35 }
 0x586   : > { %v12438_v3 = vpop.f32.mrf.mxu0  ;;  %v6470_v10 = vpop.f32.mrf.mxu1  ;;  %7074 = vmatpush2.bf16.msra.mxu0 %v10298_v14  ;;  %v6203_v16 = vadd.f32 %v12337_v32, %v12413_v35 }
 0x587   : > { %v6471_v55 = vadd.f32 %v6470_v10, %v6398_v58  ;;  %10600 = vtanh.f32 %v6469_v5  ;;  %v6335_v57 = vadd.f32 %v12377_v38, %v6262_v1  ;;  %v10303_v58 = vld [vmem:[#allocation15 + $0x184] ss:$8 sps:$4 sm:$0xff]   ;;  %v6339_v38 = vadd.f32 %v12385_v15, %v6266_v20  ;;  %v10301_v5 = vld [vmem:[#allocation15 + $0x180] ss:$8 sps:$4 sm:$0xff]  }
 0x588   : > { %v6472_v4 = vpop.f32.mrf.mxu1  ;;  %v6419_v13 = vpop.f32.mrf.mxu0  ;;  %7146 = vmatprep.subr.bf16.mxu1 %v10303_v58  ;;  %v6272_v44 = vadd.f32 %v12375_v0, %v6199_v36  ;;  %v6276_v0 = vadd.f32 %v12383_v12, %v6203_v16  ;;  %v6280_v12 = vadd.f32 %v12387_v6, %v6207_v17  ;;  %v12690_v16 = vld [vmem:[#allocation39_spill] sm:$0xff] }
 0x589   : > { %v6473_v49 = vadd.f32 %v6472_v4, %v6400_v42  ;;  %v6408_v23 = vadd.f32 %v6407_v19, %v6335_v57  ;;  %v6201_v19 = vadd.f32 %v12335_v54, %v12407_v40  ;;  %v6412_v25 = vadd.f32 %v6411_v11, %v6339_v38  ;;  %7147 = vmatpush2.bf16.msra.mxu1 %v10301_v5  ;;  %v10308_v17 = vld [vmem:[#allocation17 + $0xf8] sm:$0xff]  }
 0x58a   : > { %v6474_v53 = vpop.f32.mrf.mxu1  ;;  %v6421_v9 = vpop.f32.mrf.mxu0  ;;  %v6345_v4 = vadd.f32 %v12393_v43, %v6272_v44  ;;  %v6416_v11 = vadd.f32 %v12432_v41, %v6343_v59  ;;  %v6349_v43 = vadd.f32 %v12401_v33, %v6276_v0  ;;  %v6213_v33 = vadd.f32 %v12353_v47, %v12413_v35  ;;  %9210 = vmatprep.subr.bf16.mxu0 %v10308_v17 }
 0x58b   : > { %10602 = vtanh.f32 %v6473_v49  ;;  %v6475_v18 = vadd.f32 %v6474_v53, %v6402_v39  ;;  %v6274_v60 = vadd.f32 %v12379_v51, %v6201_v19  ;;  %v6209_v53 = vadd.f32 %v12345_v52, %v12413_v35  ;;  %v12689_v19 = vld [vmem:[#allocation38_spill] sm:$0xff] }
 0x58c   : > { %10604 = vtanh.f32 %v6471_v55  ;;  %v6478_v27 = vpop.f32.mrf.mxu1  ;;  %v6425_v15 = vpop.f32.mrf.mxu0  ;;  %v6418_v32 = vadd.f32 %v12438_v3, %v6345_v4  ;;  %v6422_v3 = vadd.f32 %v6421_v9, %v6349_v43  ;;  %v6353_v52 = vadd.f32 %v12403_v26, %v6280_v12  ;;  %v12686_v26 = vld [vmem:[#allocation44_spill] sm:$0xff] }
 0x58d   : > { %10606 = vtanh.f32 %v6475_v18  ;;  %v6479_v2 = vadd.f32 %v6478_v27, %v6406_v29  ;;  %v6347_v50 = vadd.f32 %v12397_v62, %v6274_v60  ;;  %v6357_v14 = vadd.f32 %v12686_v26, %v6284_v24  ;;  %v12691_v4 = vld [vmem:[#allocation40_spill] sm:$0xff]  ;;  %v6574_v12 = vpop.permute.xlu1 %6573 }
 0x58e   : > { %v6480_v34 = vpop.f32.mrf.mxu1  ;;  %v6427_v39 = vpop.f32.mrf.mxu0  ;;  %v6426_v48 = vadd.f32 %v6425_v15, %v6353_v52 }
 0x58f   : > { %v6481_v10 = vadd.f32 %v6480_v34, %v6408_v23  ;;  %10608 = vtanh.f32 %v6479_v2  ;;  %v6420_v61 = vadd.f32 %v6419_v13, %v6347_v50  ;;  %v6282_v13 = vadd.f32 %v12391_v28, %v6209_v53  ;;  %v12685_v28 = vld [vmem:[#allocation43_spill] sm:$0xff]  ;;  %v12687_v34 = vld [vmem:[#allocation45_spill] sm:$0xff]  ;;  %v6572_v53 = vpop.permute.xlu0 %6571 }
 0x590   : > { %v6482_v7 = vpop.f32.mrf.mxu1  ;;  %v6429_v27 = vpop.f32.mrf.mxu0  ;;  %v6286_v35 = vadd.f32 %v12685_v28, %v6213_v33  ;;  %v10304_v50 = vld [vmem:[#allocation17 + $0x78] sm:$0xff]  }
 0x591   : > { %v6483_v42 = vadd.f32 %v6482_v7, %v6410_v46  ;;  %v6355_v40 = vadd.f32 %v12409_v63, %v6282_v13  ;;  %v6430_v38 = vadd.f32 %v6429_v27, %v6357_v14  ;;  %v12688_v63 = vld [vmem:[#allocation37_spill] sm:$0xff]  ;;  %9232 = vmatprep.subr.bf16.mxu1 %v10304_v50  ;;  %v12695_v33 = vld [vmem:[#allocation35_spill] sm:$0xff] }
 0x592   : > { %v6484_v45 = vpop.f32.mrf.mxu1  ;;  %v6431_v22 = vpop.f32.mrf.mxu0  ;;  %v6359_v58 = vadd.f32 %v12687_v34, %v6286_v35  ;;  %v10314_v35 = vld [vmem:[#allocation17 + $0xb0] sm:$0xff]  }
 0x593   : > { %10610 = vtanh.f32 %v6483_v42  ;;  %v6485_v55 = vadd.f32 %v6484_v45, %v6412_v25  ;;  %v6428_v37 = vadd.f32 %v6427_v39, %v6355_v40  ;;  %v12692_v39 = vld [vmem:[#allocation41_spill] sm:$0xff] }
 0x594   : > { %10612 = vtanh.f32 %v6481_v10  ;;  %v6488_v54 = vpop.f32.mrf.mxu1  ;;  %v10601_v1 = vpop.eup %10600  ;;  %v6432_v10 = vadd.f32 %v6431_v22, %v6359_v58 }
 0x595   : > { %10614 = vtanh.f32 %v6485_v55  ;;  %v6489_v51 = vadd.f32 %v6488_v54, %v6416_v11 }
 0x596   : > { %v6490_v49 = vpop.f32.mrf.mxu1 }
 0x597   : > { %v6491_v62 = vadd.f32 %v6490_v49, %v6418_v32  ;;  %10616 = vtanh.f32 %v6489_v51 }
 0x598   : > { %v10603_v41 = vpop.eup %10602  ;;  %v6492_v21 = vpop.f32.mrf.mxu1 }
 0x599   : > { %v10605_v31 = vpop.eup %10604  ;;  %v6493_v18 = vadd.f32 %v6492_v21, %v6420_v61  ;;  %v12480_v57 = vpack.c.bf16 %v10603_v41, %v10601_v1  ;;  %v12693_v1 = vld [vmem:[#allocation42_spill] sm:$0xff] }
 0x59a   : > { %v10607_v29 = vpop.eup %10606  ;;  %v6494_v6 = vpop.f32.mrf.mxu1 }
 0x59b   : > { %10618 = vtanh.f32 %v6493_v18  ;;  %v6495_v20 = vadd.f32 %v6494_v6, %v6422_v3  ;;  %6575 = vrot.lane.b32.xlu0 %v12480_v57, %s11001_s13  ;;  %v12489_v8 = vpack.c.bf16 %v10607_v29, %v10605_v31  ;;  %v10310_v29 = vld [vmem:[#allocation17 + $0xb8] sm:$0xff]   ;;  %v10312_v6 = vld [vmem:[#allocation17 + $0xf0] sm:$0xff]  }
 0x59c   : > { %10620 = vtanh.f32 %v6491_v62  ;;  %v6498_v47 = vpop.f32.mrf.mxu1  ;;  %v10609_v2 = vpop.eup %10608  ;;  %v6603_v62 = vsel %vm2485_vm6, %v6572_v53, %v6574_v12 }
 0x59d   : > { %10622 = vtanh.f32 %v6495_v20  ;;  %6577 = vrot.lane.b32.xlu1 %v12489_v8, %s11001_s13  ;;  %v6499_v23 = vadd.f32 %v6498_v47, %v6426_v48  ;;  %v6643_v13 = vmax.bf16 %v6603_v62, %v12695_v33  ;;  %v10305_v48 = vld [vmem:[#allocation17 + $0x38] sm:$0xff]   ;;  %v10306_v47 = vld [vmem:[#allocation17 + $0x70] sm:$0xff]   ;;  %v10318_v62 = vld [vmem:[#allocation17 + $0xa8] sm:$0xff]  }
 0x59e   : > { %v6500_v9 = vpop.f32.mrf.mxu1  ;;  %v10329_v33 = vld [vmem:[#allocation17 + $0x40] sm:$0xff]  }
 0x59f   : > { %6579 = vrot.lane.b32.xlu0 %v12688_v63, %s11001_s13  ;;  %v6501_v5 = vadd.f32 %v6500_v9, %v6428_v37  ;;  %10624 = vtanh.f32 %v6499_v23  ;;  %v10307_v37 = vld [vmem:[#allocation17 + $0x30] sm:$0xff]  }
 0x5a0   : > { %v10611_v46 = vpop.eup %10610  ;;  %v6502_v36 = vpop.f32.mrf.mxu1 }
 0x5a1   : > { %v10613_v30 = vpop.eup %10612  ;;  %v6503_v7 = vadd.f32 %v6502_v36, %v6430_v38  ;;  %6581 = vrot.lane.b32.xlu1 %v12689_v19, %s11001_s13  ;;  %v12501_v25 = vpack.c.bf16 %v10611_v46, %v10609_v2  ;;  %v10313_v36 = vld [vmem:[#allocation17 + $0x60] sm:$0xff]  }
 0x5a2   : > { %v10615_v42 = vpop.eup %10614  ;;  %v6504_v44 = vpop.f32.mrf.mxu1 }
 0x5a3   : > { %10626 = vtanh.f32 %v6503_v7  ;;  %v6505_v59 = vadd.f32 %v6504_v44, %v6432_v10  ;;  %6583 = vrot.lane.b32.xlu0 %v12501_v25, %s11001_s13  ;;  %v12505_v15 = vpack.c.bf16 %v10615_v42, %v10613_v30  ;;  %v10315_v7 = vld [vmem:[#allocation17 + $0x20] sm:$0xff]  }
 0x5a4   : > { %10628 = vtanh.f32 %v6501_v5  ;;  %v10617_v45 = vpop.eup %10616  ;;  %v10311_v5 = vld [vmem:[#allocation17 + $0x28] sm:$0xff]  }
 0x5a5   : > { %10630 = vtanh.f32 %v6505_v59  ;;  %6585 = vrot.lane.b32.xlu1 %v12505_v15, %s11001_s13 }
 0x5a7   : > { %6587 = vrot.lane.b32.xlu0 %v12690_v16, %s11001_s13 }
 0x5a8   : > { %v10619_v60 = vpop.eup %10618 }
 0x5a9   : > { %v10621_v55 = vpop.eup %10620  ;;  %6589 = vrot.lane.b32.xlu1 %v12691_v4, %s11001_s13  ;;  %v12513_v11 = vpack.c.bf16 %v10619_v60, %v10617_v45 }
 0x5aa   : > { %v10623_v54 = vpop.eup %10622 }
 0x5ab   : > { %6591 = vrot.lane.b32.xlu0 %v12513_v11, %s11001_s13  ;;  %v12517_v0 = vpack.c.bf16 %v10623_v54, %v10621_v55 }
 0x5ac   : > { %v10625_v32 = vpop.eup %10624 }
 0x5ad   : > { %6593 = vrot.lane.b32.xlu1 %v12517_v0, %s11001_s13 }
 0x5af   : > { %6595 = vrot.lane.b32.xlu0 %v12692_v39, %s11001_s13 }
 0x5b0   : > { %v10627_v51 = vpop.eup %10626 }
 0x5b1   : > { %v10629_v49 = vpop.eup %10628  ;;  %6597 = vrot.lane.b32.xlu1 %v12693_v1, %s11001_s13  ;;  %v12525_v43 = vpack.c.bf16 %v10627_v51, %v10625_v32 }
 0x5b2   : > { %v10631_v61 = vpop.eup %10630 }
 0x5b3   : > { %6599 = vrot.lane.b32.xlu0 %v12525_v43, %s11001_s13  ;;  %v12529_v41 = vpack.c.bf16 %v10631_v61, %v10629_v49 }
 0x5b5   : > { %6601 = vrot.lane.b32.xlu1 %v12529_v41, %s11001_s13 }
 0x60d   : > { %v6576_v21 = vpop.permute.xlu0 %6575 }
 0x60e   : > { %v6604_v31 = vsel %vm2485_vm6, %v6574_v12, %v6576_v21  ;;  %v10317_v12 = vld [vmem:[#allocation17 + $0x58] sm:$0xff]  }
 0x60f   : > { %v6644_v3 = vmax.bf16 %v6604_v31, %v12694_v56  ;;  %v6578_v18 = vpop.permute.xlu1 %6577  ;;  %v10322_v31 = vld [vmem:[#allocation17 + $0xa0] sm:$0xff]   ;;  %v10323_v56 = vld [vmem:[#allocation17 + $0x10] sm:$0xff]  }
 0x610   : > { %v6605_v52 = vsel %vm2485_vm6, %v6576_v21, %v6578_v18  ;;  %v6629_v27 = vsel %vm2485_vm6, %v6578_v18, %v6572_v53  ;;  %v10316_v53 = vld [vmem:[#allocation17 + $0xe8] sm:$0xff]   ;;  %v10319_v21 = vld [vmem:[#allocation17 + $0x18] sm:$0xff]  }
 0x611   : > { %v6645_v24 = vmax.bf16 %v6605_v52, %v12480_v57  ;;  %v6646_v20 = vmax.bf16 %v6629_v27, %v12489_v8  ;;  %7075 = vmatprep.mubr.bf16.mxu0 %v6644_v3  ;;  %v6580_v40 = vpop.permute.xlu0 %6579  ;;  %v10309_v8 = vld [vmem:[#allocation17 + $0x68] sm:$0xff]   ;;  %v10326_v3 = vld [vmem:[#allocation17 + $0x98] sm:$0xff]   ;;  %v10331_v52 = vld [vmem:[#allocation17] sm:$0xff]  }
 0x612   : > { %7076 = vmatmul.mubr.bf16.vlgmr.msra.gmra.mxu0 %v6643_v13  ;;  %v10327_v18 = vld [vmem:[#allocation17 + $0x8] sm:$0xff]   ;;  %v10330_v13 = vld [vmem:[#allocation17 + $0x90] sm:$0xff]  }
 0x613   : > { %7148 = vmatprep.mubr.bf16.mxu1 %v6646_v20  ;;  %v6582_v28 = vpop.permute.xlu1 %6581  ;;  %9211 = vmatpush3.bf16.msra.mxu0 %v10310_v29  ;;  %v10328_v29 = vld [vmem:[#allocation17 + $0xd0] sm:$0xff]   ;;  %v10332_v27 = vld [vmem:[#allocation17 + $0xc8] sm:$0xff]   ;;  %v10336_v20 = vld [vmem:[#allocation17 + $0xc0] sm:$0xff]  }
 0x614   : > { %7149 = vmatmul.mubr.bf16.vlgmr.msra.gmra.mxu1 %v6645_v24  ;;  %9212 = vmatprep.subr.bf16.mxu0 %v10312_v6  ;;  %v6606_v26 = vsel %vm2485_vm6, %v6580_v40, %v6582_v28  ;;  %v10333_v6 = vld [vmem:[#allocation17 + $0x1f8] sm:$0xff]   ;;  %v10334_v24 = vld [vmem:[#allocation17 + $0x88] sm:$0xff]  }
 0x615   : > { %v6584_v14 = vpop.permute.xlu0 %6583  ;;  %9233 = vmatpush3.bf16.msra.mxu1 %v10305_v48  ;;  %v6647_v9 = vmax.bf16 %v6606_v26, %v12688_v63  ;;  %v10340_v48 = vld [vmem:[#allocation17 + $0x178] sm:$0xff]  }
 0x616   : > { %v6607_v57 = vsel %vm2485_vm6, %v6582_v28, %v6584_v14  ;;  %9234 = vmatprep.subr.bf16.mxu1 %v10306_v47 }
 0x617   : > { %v6648_v22 = vmax.bf16 %v6607_v57, %v12689_v19  ;;  %v6586_v23 = vpop.permute.xlu1 %6585  ;;  %9213 = vmatpush3.bf16.msra.mxu0 %v10314_v35 }
 0x618   : > { %v6608_v2 = vsel %vm2485_vm6, %v6584_v14, %v6586_v23  ;;  %v6633_v34 = vsel %vm2485_vm6, %v6586_v23, %v6580_v40  ;;  %9214 = vmatprep.subr.bf16.mxu0 %v10316_v53  ;;  %v10338_v40 = vld [vmem:[#allocation17 + $0x80] sm:$0xff]  }
 0x619   : > { %v6649_v58 = vmax.bf16 %v6608_v2, %v12501_v25  ;;  %v6650_v38 = vmax.bf16 %v6633_v34, %v12505_v15  ;;  %7085 = vmatprep.mubr.bf16.mxu0 %v6648_v22  ;;  %v6588_v46 = vpop.permute.xlu0 %6587  ;;  %9235 = vmatpush3.bf16.msra.mxu1 %v10307_v37 }
 0x61a   : > { %7086 = vmatmul.mubr.bf16.gmra.mxu0 %v6647_v9  ;;  %9236 = vmatprep.subr.bf16.mxu1 %v10309_v8 }
 0x61b   : > { %v6590_v30 = vpop.permute.xlu1 %6589  ;;  %7158 = vmatprep.mubr.bf16.mxu1 %v6650_v38  ;;  %9215 = vmatpush3.bf16.msra.mxu0 %v10318_v62 }
 0x61c   : > { %7159 = vmatmul.mubr.bf16.gmra.mxu1 %v6649_v58  ;;  %v6609_v63 = vsel %vm2485_vm6, %v6588_v46, %v6590_v30 }
 0x61d   : > { %v6592_v10 = vpop.permute.xlu0 %6591  ;;  %9237 = vmatpush3.bf16.msra.mxu1 %v10311_v5  ;;  %v6651_v44 = vmax.bf16 %v6609_v63, %v12690_v16 }
 0x61e   : > { %v6610_v19 = vsel %vm2485_vm6, %v6590_v30, %v6592_v10  ;;  %9238 = vmatprep.subr.bf16.mxu1 %v10313_v36 }
 0x61f   : > { %v6652_v25 = vmax.bf16 %v6610_v19, %v12691_v4  ;;  %v6594_v42 = vpop.permute.xlu1 %6593 }
 0x620   : > { %v6611_v59 = vsel %vm2485_vm6, %v6592_v10, %v6594_v42  ;;  %v6637_v15 = vsel %vm2485_vm6, %v6594_v42, %v6588_v46 }
 0x621   : > { %v6653_v45 = vmax.bf16 %v6611_v59, %v12513_v11  ;;  %v6654_v60 = vmax.bf16 %v6637_v15, %v12517_v0  ;;  %7095 = vmatprep.mubr.bf16.mxu0 %v6652_v25  ;;  %v6596_v55 = vpop.permute.xlu0 %6595  ;;  %9239 = vmatpush3.bf16.msra.mxu1 %v10315_v7 }
 0x622   : > { %7096 = vmatmul.mubr.bf16.gmra.mxu0 %v6651_v44  ;;  %9240 = vmatprep.subr.bf16.mxu1 %v10317_v12  ;;  %v10335_v44 = vld [vmem:[#allocation17 + $0x1b8] sm:$0xff]  }
 0x623   : > { %7168 = vmatprep.mubr.bf16.mxu1 %v6654_v60  ;;  %v6598_v54 = vpop.permute.xlu1 %6597 }
 0x624   : > { %7169 = vmatmul.mubr.bf16.gmra.mxu1 %v6653_v45  ;;  %v6612_v4 = vsel %vm2485_vm6, %v6596_v55, %v6598_v54  ;;  %v10337_v45 = vld [vmem:[#allocation17 + $0x1f0] sm:$0xff]  }
 0x625   : > { %v6600_v50 = vpop.permute.xlu0 %6599  ;;  %v6655_v51 = vmax.bf16 %v6612_v4, %v12692_v39  ;;  %9241 = vmatpush3.bf16.msra.mxu1 %v10319_v21  ;;  %v10320_v39 = vld [vmem:[#allocation17 + $0xe0] sm:$0xff]  }
 0x626   : > { %v6613_v16 = vsel %vm2485_vm6, %v6598_v54, %v6600_v50  ;;  %9216 = vmatprep.subr.bf16.mxu0 %v10320_v39  ;;  %v10342_v39 = vld [vmem:[#allocation17 + $0x138] sm:$0xff]  }
 0x627   : > { %v6656_v17 = vmax.bf16 %v6613_v16, %v12693_v1  ;;  %v6602_v32 = vpop.permute.xlu1 %6601  ;;  %v10321_v1 = vld [vmem:[#allocation17 + $0x50] sm:$0xff]   ;;  %9217 = vmatpush3.bf16.msra.mxu0 %v10322_v31 }
 0x628   : > { %v6614_v11 = vsel %vm2485_vm6, %v6600_v50, %v6602_v32  ;;  %v6641_v0 = vsel %vm2485_vm6, %v6602_v32, %v6596_v55  ;;  %9242 = vmatprep.subr.bf16.mxu1 %v10321_v1  ;;  %v10339_v32 = vld [vmem:[#allocation17 + $0x1b0] sm:$0xff]   ;;  %v10343_v1 = vld [vmem:[#allocation17 + $0x1a8] sm:$0xff]  }
 0x629   : > { %v6657_v49 = vmax.bf16 %v6614_v11, %v12525_v43  ;;  %v6658_v61 = vmax.bf16 %v6641_v0, %v12529_v41  ;;  %7105 = vmatprep.mubr.bf16.mxu0 %v6656_v17  ;;  %9243 = vmatpush3.bf16.msra.mxu1 %v10323_v56  ;;  %v10324_v43 = vld [vmem:[#allocation17 + $0xd8] sm:$0xff]   ;;  %v10325_v41 = vld [vmem:[#allocation17 + $0x48] sm:$0xff]  }
 0x62a   : > { %7106 = vmatmul.mubr.bf16.gmra.mxu0 %v6655_v51  ;;  %9218 = vmatprep.subr.bf16.mxu0 %v10324_v43  ;;  %v10341_v0 = vld [vmem:[#allocation17 + $0x1e8] sm:$0xff]   ;;  %v10344_v43 = vld [vmem:[#allocation17 + $0x170] sm:$0xff]  }
 0x62b   : > { %7178 = vmatprep.mubr.bf16.mxu1 %v6658_v61  ;;  %9244 = vmatprep.subr.bf16.mxu1 %v10325_v41  ;;  %v10345_v41 = vld [vmem:[#allocation17 + $0x1e0] sm:$0xff]  }
 0x62c   : > { %7179 = vmatmul.mubr.bf16.gmra.mxu1 %v6657_v49  ;;  %9219 = vmatpush3.bf16.msra.mxu0 %v10326_v3 }
 0x62d   : > { %9245 = vmatpush3.bf16.msra.mxu1 %v10327_v18  ;;  %9220 = vmatprep.subr.bf16.mxu0 %v10328_v29 }
 0x62e   : > { %9246 = vmatprep.subr.bf16.mxu1 %v10329_v33 }
 0x630   : > { %9221 = vmatpush3.bf16.msra.mxu0 %v10330_v13 }
 0x631   : > { %9247 = vmatpush3.bf16.msra.mxu1 %v10331_v52  ;;  %9222 = vmatprep.subr.bf16.mxu0 %v10332_v27 }
 0x632   : > { %9276 = vmatprep.subr.bf16.mxu1 %v10333_v6  ;;  %v10346_v6 = vld [vmem:[#allocation17 + $0x130] sm:$0xff]  }
 0x634   : > { %9223 = vmatpush3.bf16.msra.mxu0 %v10334_v24  ;;  %v10347_v24 = vld [vmem:[#allocation17 + $0x1a0] sm:$0xff]  }
 0x635   : > { %9224 = vmatprep.subr.bf16.mxu0 %v10336_v20 }
 0x638   : > { %9225 = vmatpush3.bf16.msra.mxu0 %v10338_v40 }
 0x639   : > { %9254 = vmatprep.subr.bf16.mxu0 %v10340_v48  ;;  %v10348_v48 = vld [vmem:[#allocation17 + $0x168] sm:$0xff]  }
 0x6d2   : > { %v7077_v47 = vpop.f32.mrf.mxu0 }
 0x6d4   : > { %v7079_v28 = vpop.f32.mrf.mxu0  ;;  %v7150_v35 = vpop.f32.mrf.mxu1 }
 0x6d5   : > { %v7151_v9 = vadd.f32 %v7150_v35, %v7077_v47  ;;  %v10349_v47 = vld [vmem:[#allocation17 + $0x1d8] sm:$0xff]  }
 0x6d6   : > { %v7081_v26 = vpop.f32.mrf.mxu0  ;;  %v7152_v14 = vpop.f32.mrf.mxu1 }
 0x6d7   : > { %v7153_v8 = vadd.f32 %v7152_v14, %v7079_v28  ;;  %v10350_v14 = vld [vmem:[#allocation17 + $0x128] sm:$0xff]  }
 0x6d8   : > { %v7083_v37 = vpop.f32.mrf.mxu0  ;;  %v7154_v57 = vpop.f32.mrf.mxu1 }
 0x6d9   : > { %v7155_v2 = vadd.f32 %v7154_v57, %v7081_v26  ;;  %v9202_v46 = vpack.c.bf16 %v7153_v8, %v7151_v9  ;;  %v10353_v9 = vld [vmem:[#allocation17 + $0x1d0] sm:$0xff]  }
 0x6da   : > { %v7087_v22 = vpop.f32.mrf.mxu0  ;;  %v7156_v23 = vpop.f32.mrf.mxu1 }
 0x6db   : > { %v7157_v34 = vadd.f32 %v7156_v23, %v7083_v37  ;;  %v10351_v37 = vld [vmem:[#allocation17 + $0x198] sm:$0xff]   ;;  %v10352_v23 = vld [vmem:[#allocation17 + $0x160] sm:$0xff]  }
 0x6dc   : > { %v7089_v58 = vpop.f32.mrf.mxu0  ;;  %v7160_v38 = vpop.f32.mrf.mxu1 }
 0x6dd   : > { %v9203_v5 = vpack.c.bf16 %v7157_v34, %v7155_v2  ;;  %v7161_v60 = vadd.f32 %v7160_v38, %v7087_v22 }
 0x6de   : > { %v7091_v36 = vpop.f32.mrf.mxu0  ;;  %v7162_v30 = vpop.f32.mrf.mxu1 }
 0x6df   : > { %v7248_v63 = vmax.bf16 %v9203_v5, %v9202_v46  ;;  %v7163_v25 = vadd.f32 %v7162_v30, %v7089_v58  ;;  %v10354_v5 = vld [vmem:[#allocation17 + $0x120] sm:$0xff]   ;;  %v10356_v30 = vld [vmem:[#allocation17 + $0x158] sm:$0xff]  }
 0x6e0   : > { %v7093_v10 = vpop.f32.mrf.mxu0  ;;  %v7164_v7 = vpop.f32.mrf.mxu1 }
 0x6e1   : > { %v9110_v19 = vcombine.low %v7248_v63, %v7248_v63  ;;  %v9111_v42 = vcombine.high %v7248_v63, %v7248_v63  ;;  %v7165_v55 = vadd.f32 %v7164_v7, %v7091_v36  ;;  %v9204_v16 = vpack.c.bf16 %v7163_v25, %v7161_v60  ;;  %v10355_v36 = vld [vmem:[#allocation17 + $0x190] sm:$0xff]   ;;  %v10357_v63 = vld [vmem:[#allocation17 + $0x1c8] sm:$0xff]  }
 0x6e2   : > { %v7097_v59 = vpop.f32.mrf.mxu0  ;;  %v7166_v15 = vpop.f32.mrf.mxu1  ;;  %v10359_v25 = vld [vmem:[#allocation17 + $0x188] sm:$0xff]  }
 0x6e3   : > { %v7167_v54 = vadd.f32 %v7166_v15, %v7093_v10  ;;  %7597 = vmatprep.mubr.bf16.mxu1 %v9111_v42  ;;  %v10360_v42 = vld [vmem:[#allocation17 + $0x150] sm:$0xff]   ;;  %v10363_v15 = vld [vmem:[#allocation17 + $0x180] sm:$0xff]   ;;  %v10365_v60 = vld [vmem:[#allocation17 + $0x108] sm:$0xff]  }
 0x6e4   : > { %v7099_v4 = vpop.f32.mrf.mxu0  ;;  %v7170_v50 = vpop.f32.mrf.mxu1  ;;  %7598 = vmatmul.mubr.bf16.vlgmr.msra.gmra.mxu1 %v9110_v19  ;;  %v10358_v19 = vld [vmem:[#allocation17 + $0x118] sm:$0xff]  }
 0x6e5   : > { %v9205_v17 = vpack.c.bf16 %v7167_v54, %v7165_v55  ;;  %9277 = vmatpush3.bf16.msra.mxu1 %v10335_v44  ;;  %v7171_v3 = vadd.f32 %v7170_v50, %v7097_v59  ;;  %v10361_v44 = vld [vmem:[#allocation17 + $0x1c0] sm:$0xff]   ;;  %v10362_v59 = vld [vmem:[#allocation17 + $0x110] sm:$0xff]  }
 0x6e6   : > { %v7101_v51 = vpop.f32.mrf.mxu0  ;;  %v7172_v11 = vpop.f32.mrf.mxu1  ;;  %9278 = vmatprep.subr.bf16.mxu1 %v10337_v45  ;;  %v10364_v45 = vld [vmem:[#allocation17 + $0x148] sm:$0xff]   ;;  %v10366_v54 = vld [vmem:[#allocation17 + $0x140] sm:$0xff]  }
 0x6e7   : > { %v7285_v49 = vmax.bf16 %v9205_v17, %v9204_v16  ;;  %v7173_v62 = vadd.f32 %v7172_v11, %v7099_v4  ;;  %v10367_v4 = vld [vmem:[#allocation17 + $0x100] sm:$0xff]   ;;  %v11002_v17 = vmov 0.0  }
 0x6e8   : > { %v7103_v61 = vpop.f32.mrf.mxu0  ;;  %v7174_v53 = vpop.f32.mrf.mxu1  ;;  %v10368_v16 = vld [vmem:[#allocation20 + $0x38] sm:$0xff]   ;;  %v10371_v11 = vld [vmem:[#allocation20 + $0x20] sm:$0xff]  }
 0x6e9   : > { %v9092_v12 = vcombine.low %v7285_v49, %v7285_v49  ;;  %9279 = vmatpush3.bf16.msra.mxu1 %v10339_v32  ;;  %v9093_v21 = vcombine.high %v7285_v49, %v7285_v49  ;;  %v7175_v18 = vadd.f32 %v7174_v53, %v7101_v51  ;;  %v9206_v52 = vpack.c.bf16 %v7173_v62, %v7171_v3  ;;  %v10369_v32 = vld [vmem:[#allocation20 + $0x30] sm:$0xff]   ;;  %v10370_v51 = vld [vmem:[#allocation20 + $0x28] sm:$0xff]   ;;  %v10375_v53 = vld [vmem:[#allocation20] sm:$0xff]  }
 0x6ea   : > { %v7107_v31 = vpop.f32.mrf.mxu0  ;;  %v7176_v56 = vpop.f32.mrf.mxu1  ;;  %9280 = vmatprep.subr.bf16.mxu1 %v10341_v0  ;;  %v10372_v0 = vld [vmem:[#allocation20 + $0x18] sm:$0xff]   ;;  %v10373_v49 = vld [vmem:[#allocation20 + $0x10] sm:$0xff]  }
 0x6eb   : > { %v7177_v29 = vadd.f32 %v7176_v56, %v7103_v61  ;;  %7454 = vmatprep.mubr.bf16.mxu0 %v9093_v21  ;;  %v10374_v61 = vld [vmem:[#allocation20 + $0x8] sm:$0xff]  }
 0x6ec   : > { %v7109_v33 = vpop.f32.mrf.mxu0  ;;  %v7180_v13 = vpop.f32.mrf.mxu1  ;;  %7455 = vmatmul.mubr.bf16.vlgmr.msra.gmra.mxu0 %v9092_v12 }
 0x6ed   : > { %v9207_v27 = vpack.c.bf16 %v7177_v29, %v7175_v18  ;;  %9255 = vmatpush3.bf16.msra.mxu0 %v10342_v39  ;;  %9281 = vmatpush3.bf16.msra.mxu1 %v10343_v1  ;;  %v7181_v2 = vadd.f32 %v7180_v13, %v7107_v31 }
 0x6ee   : > { %v7111_v20 = vpop.f32.mrf.mxu0  ;;  %v7182_v40 = vpop.f32.mrf.mxu1  ;;  %9256 = vmatprep.subr.bf16.mxu0 %v10344_v43  ;;  %9282 = vmatprep.subr.bf16.mxu1 %v10345_v41 }
 0x6ef   : > { %v7609_v28 = vmax.bf16 %v9207_v27, %v9206_v52  ;;  %v7183_v26 = vadd.f32 %v7182_v40, %v7109_v33 }
 0x6f0   : > { %v7184_v35 = vpop.f32.mrf.mxu1  ;;  %v7113_v57 = vpop.f32.mrf.mxu0 }
 0x6f1   : > { %9257 = vmatpush3.bf16.msra.mxu0 %v10346_v6  ;;  %9283 = vmatpush3.bf16.msra.mxu1 %v10347_v24  ;;  %v9129_v22 = vcombine.high %v7609_v28, %v7609_v28  ;;  %v7185_v34 = vadd.f32 %v7184_v35, %v7111_v20  ;;  %v9208_v38 = vpack.c.bf16 %v7183_v26, %v7181_v2 }
 0x6f2   : > { %v7186_v8 = vpop.f32.mrf.mxu1  ;;  %9258 = vmatprep.subr.bf16.mxu0 %v10348_v48  ;;  %9284 = vmatprep.subr.bf16.mxu1 %v10349_v47  ;;  %v9128_v50 = vcombine.low %v7609_v28, %v7609_v28  ;;  %v9164_v47 = vld [vmem:[#allocation18] ss:$0 sm:$0xff] }
 0x6f3   : > { %v7187_v58 = vadd.f32 %v7186_v8, %v7113_v57  ;;  %7778 = vmatprep.mubr.bf16.mxu0 %v9129_v22  ;;  %v9165_v57 = vld [vmem:[#allocation21] ss:$0 sm:$0xff] }
 0x6f5   : > { %v9209_v46 = vpack.c.bf16 %v7187_v58, %v7185_v34  ;;  %9259 = vmatpush3.bf16.msra.mxu0 %v10350_v14  ;;  %9285 = vmatpush3.bf16.msra.mxu1 %v10351_v37 }
 0x6f6   : > { %9260 = vmatprep.subr.bf16.mxu0 %v10352_v23  ;;  %9286 = vmatprep.subr.bf16.mxu1 %v10353_v9 }
 0x6f7   : > { %v7791_v10 = vmax.bf16 %v9209_v46, %v9208_v38 }
 0x6f9   : > { %9261 = vmatpush3.bf16.msra.mxu0 %v10354_v5  ;;  %9287 = vmatpush3.bf16.msra.mxu1 %v10355_v36  ;;  %v9147_v7 = vcombine.high %v7791_v10, %v7791_v10  ;;  %v9146_v55 = vcombine.low %v7791_v10, %v7791_v10 }
 0x6fa   : > { %9262 = vmatprep.subr.bf16.mxu0 %v10356_v30  ;;  %9288 = vmatprep.subr.bf16.mxu1 %v10357_v63 }
 0x6fb   : > { %7960 = vmatprep.mubr.bf16.mxu1 %v9147_v7 }
 0x6fd   : > { %9263 = vmatpush3.bf16.msra.mxu0 %v10358_v19  ;;  %9289 = vmatpush3.bf16.msra.mxu1 %v10359_v25 }
 0x6fe   : > { %9264 = vmatprep.subr.bf16.mxu0 %v10360_v42  ;;  %9290 = vmatprep.subr.bf16.mxu1 %v10361_v44 }
 0x701   : > { %9265 = vmatpush3.bf16.msra.mxu0 %v10362_v59  ;;  %9291 = vmatpush3.bf16.msra.mxu1 %v10363_v15 }
 0x702   : > { %9266 = vmatprep.subr.bf16.mxu0 %v10364_v45 }
 0x704   : > { %7961 = vmatmul.mubr.bf16.vlgmr.msra.gmra.mxu1 %v9146_v55 }
 0x705   : > { %9267 = vmatpush3.bf16.msra.mxu0 %v10365_v60 }
 0x706   : > { %9268 = vmatprep.subr.bf16.mxu0 %v10366_v54 }
 0x709   : > { %9269 = vmatpush3.bf16.msra.mxu0 %v10367_v4 }
 0x70a   : > { %9307 = vmatprep.subr.bf16.mxu0 %v11002_v17 }
 0x70c   : > { %7779 = vmatmul.mubr.bf16.vlgmr.msra.gmra.mxu0 %v9128_v50 }
 0x70d   : > { %9308 = vmatpush3.bf16.msra.mxu0 %v10368_v16  ;;  %9323 = vmatprep.mubr.msk.bf16.mxu0 %vm11003_vm7, %v11002_v17 }
 0x70e   : > { %9309 = vmatprep.subr.bf16.mxu0 %v11002_v17 }
 0x711   : > { %9310 = vmatpush3.bf16.msra.mxu0 %v10369_v32 }
 0x712   : > { %9311 = vmatprep.subr.bf16.mxu0 %v11002_v17 }
 0x715   : > { %9312 = vmatpush3.bf16.msra.mxu0 %v10370_v51 }
 0x716   : > { %9313 = vmatprep.subr.bf16.mxu0 %v11002_v17 }
 0x719   : > { %9314 = vmatpush3.bf16.msra.mxu0 %v10371_v11 }
 0x71a   : > { %9315 = vmatprep.subr.bf16.mxu0 %v11002_v17 }
 0x71d   : > { %9316 = vmatpush3.bf16.msra.mxu0 %v10372_v0 }
 0x71e   : > { %9317 = vmatprep.subr.bf16.mxu0 %v11002_v17 }
 0x721   : > { %9318 = vmatpush3.bf16.msra.mxu0 %v10373_v49 }
 0x722   : > { %9319 = vmatprep.subr.bf16.mxu0 %v11002_v17 }
 0x725   : > { %9320 = vmatpush3.bf16.msra.mxu0 %v10374_v61 }
 0x726   : > { %9321 = vmatprep.subr.bf16.mxu0 %v11002_v17 }
 0x729   : > { %9322 = vmatpush3.bf16.msra.mxu0 %v10375_v53 }
 0x7a4   : > { %v9248_v12 = vpop.f32.mrf.mxu1 }
 0x7a6   : > { %v9249_v62 = vpop.f32.mrf.mxu1 }
 0x7a7   : > { %v9250_v52 = vadd.f32 %v9249_v62, %v9248_v12 }
 0x7a8   : > { %v9251_v21 = vpop.f32.mrf.mxu1 }
 0x7aa   : > { %v9252_v39 = vpop.f32.mrf.mxu1 }
 0x7ac   : > { %v9226_v1 = vpop.f32.mrf.mxu0 }
 0x7ae   : > { %v9227_v31 = vpop.f32.mrf.mxu0 }
 0x7af   : > { %v9228_v33 = vadd.f32 %v9227_v31, %v9226_v1 }
 0x7b0   : > { %v9229_v56 = vpop.f32.mrf.mxu0 }
 0x7b1   : > { %v7600_v6 = vadd.f32 %v9250_v52, %v9228_v33 }
 0x7b2   : > { %v9230_v43 = vpop.f32.mrf.mxu0 }
 0x7c4   : > { %v9292_v41 = vpop.f32.mrf.mxu1 }
 0x7c6   : > { %v9293_v3 = vpop.f32.mrf.mxu1 }
 0x7c7   : > { %v9294_v40 = vadd.f32 %v9293_v3, %v9292_v41 }
 0x7c8   : > { %v9295_v18 = vpop.f32.mrf.mxu1 }
 0x7ca   : > { %v9296_v29 = vpop.f32.mrf.mxu1 }
 0x7cc   : > { %v9270_v13 = vpop.f32.mrf.mxu0 }
 0x7ce   : > { %v9271_v27 = vpop.f32.mrf.mxu0 }
 0x7cf   : > { %v9272_v24 = vadd.f32 %v9271_v27, %v9270_v13 }
 0x7d0   : > { %v9273_v20 = vpop.f32.mrf.mxu0 }
 0x7d1   : > { %v7786_v48 = vadd.f32 %v9272_v24, %v7600_v6 }
 0x7d2   : > { %v9274_v28 = vpop.f32.mrf.mxu0 }
 0x7d3   : > { %v7968_v35 = vadd.f32 %v9294_v40, %v7786_v48 }
 0x7d5   : > { %v7976_v26 = vadd.f32 %v9164_v47, %v7968_v35 }
 0x7d7   : > { %10632 = vtanh.f32 %v7976_v26 }
 0x7e4   : > { %v10633_v14 = vpop.eup %10632 }
 0x7e5   : > { %v7978_v37 = vpack.c.bf16 %v10633_v14, %v10633_v14 }
 0x7e7   : > { %9324 = vmatmul.mubr.bf16.vlgmr.msra.gmra.mxu0 %v7978_v37 }
 0x8a7   : > { %v8084_v8 = vpop.f32.mrf.mxu0 }
 0x8a8   : > { %v8085_v22 = vadd.f32 %v9165_v57, %v8084_v8 }
 0x8a9   : > { %v9325_v23 = vpop.f32.mrf.mxu0 }
 0x8aa   : > { %8090 = vst [vmem:[%s673_s23] sm:$0xff] %v8085_v22 }
 0x8ab   : > { %v8087_v9 = vpop.f32.mrf.mxu0 }
 0x8ac   : > { %10908 = shalt.err (!%p10905_p11)
}
 0x8ad   : > { %s10909_s26 = scalar_lea.hbm %s12570_s27, 128  ;;  %s10913_s13 = scalar_lea.hbm %s12624_s11, 256 }
 0x8ae   : > { %p10910_p12 = scmp.ne.s32.totalorder %s12570_s27, %s10909_s26  ;;  %p10914_p8 = scmp.lt.s32.totalorder %s12570_s27, %s12624_s11 }
 0x8af   : > { %p10915_p1 = scmp.lt.s32.totalorder %s10913_s13, %s10909_s26 }
 0x8b0   : > { %p10911_p4 = pnand %p10910_p12, %p12696_p13 }
 0x8b1   : > { %p10916_p0 = por %p10915_p1, %p10914_p8 }
 0x8b2   : > { %p10912_p7 = pneg %p10911_p4 }
 0x8b4   : > { %p10917_p2 = pnand %p10916_p0, %p10912_p7 }
 0x8b6   : > { %10920 = shalt.err (!%p10917_p2)
}
 0x8b7   : > { %9369 = dma.vmem_to_hbm [thread:$0]  (%p12696_p13), %s12572_s29, 128, %s12570_s27, %s8092_s16   ;;  %v9326_v2 = vpop.f32.mrf.mxu0 }
 0x8b8 PF: > { %s12697_s23 = sld [smem:[#allocation31_spill]] }
 0x8b9   : > { %s12698_s17 = sld [smem:[#allocation34_spill]] }
 0x8be   : > { %s8117_s14 = sand.u32 1, %s12697_s23  }
 0x8bf   : > { %p12699_p3 = scmp.ne.s32.totalorder %s12698_s17, 0  ;;  %s8118_s24 = scalar_lea.sflag [#allocation8], %s8117_s14 }
 0x8c1   : > { %p9403_p5 = pnand %p8280_p9, %p12699_p3 }
 0x8c3   : > { %p9404_p6 = pneg %p9403_p5 }
 0x8c5   : > { %10962 = dma.done.wait (%p9404_p6), %s8118_s24, 128  }
 0x8c6   : > { %10964 = vsyncadd (%p9404_p6), %s8118_s24, 4294967168  ;;  %s12700_s20 = sld [smem:[#allocation32_spill]]  ;;  %s12702_s17 = smov %s10971_s18 }
 0x8c7   : > { %s12701_s28 = sld [smem:[#allocation33_spill]]  ;;  %s12703_s18 = smov %s10975_s19 }
 0x8cc   : > { %p27_p10 = scmp.ge.s32.totalorder %s12700_s20, 4  }
 0x8cd   : > { %s12704_s19 = smov %s12701_s28 }
 0x8ce   :  { %29 = sbr.rel (!%p27_p10) target bundleno = 11 (0xb), region = 234 }
 0x8d3   :  { %8123 = vsyncpa [#allocation7], 1 }
 0x8d4   :  { %8125 = vsyncpa [#allocation7 + $0x1], 1 }
 0x8d5   :  { %8126 = vsyncpa [#allocation10], 1 }
 0x8d6   :  { %8127 = vsyncpa [#allocation13], 1 }
 0x8d7   :  { %8128 = vsyncpa [#allocation16], 1 }
 0x8d8   :  { %8129 = vsyncpa [#allocation19], 1 }
 0x8d9   :  { %8130 = vsyncpa [#allocation22], 1 }
 0x8da   :  { %8131 = vsyncpa [#allocation8], 1 }
 0x8db   :  { %8133 = vsyncpa [#allocation8 + $0x1], 1 }

</bundles_post_ra>
